<compile_context>
chip_gen: v7x
topology: tpu7x:2x2x1
jax: 0.10.0
libtpu: 0.0.40
codegen_flags: <defaults>
</compile_context>

<pallas_src>
import functools

import jax
import jax.numpy as jnp
from jax import lax
from jax.experimental import pallas as pl
from jax.experimental.pallas import tpu as pltpu


def _round_up(x, m):
    return (x + m - 1) // m * m


# ----------------------------------------------------------------------------
# Fused kernel builder.
# ----------------------------------------------------------------------------
def _make_em_kernel(specs, b_tile):
    """specs: static per-layer schedule (tuple of dicts of Python ints)."""
    n_layers = len(specs)

    def kernel(x_ref, w_ref, b_ref, o_ref, *scratch):
        acts = scratch[:n_layers - 1]   # intermediate activations (B,Ho,Wo_pad,Cout)
        unfs = scratch[n_layers - 1:]   # per-layer unfold buffers (B,H,Wo_pad,KW*Cin)

        src = x_ref
        for i, sp in enumerate(specs):
            H_unf, H_act, W_src = sp["H_unf"], sp["H_act"], sp["W_src"]
            p, Cin, KH, KW, Cout = sp["pad"], sp["Cin"], sp["KH"], sp["KW"], sp["Cout"]
            Ho, Wo, Wo_pad = sp["Ho"], sp["Wo"], sp["Wo_pad"]
            Kd, Ncol, r0 = sp["Kd"], sp["Ncol"], sp["r_off"]
            U = unfs[i]

            # ---- stage 1: dense KW-unfold, KW bulk copies per layer --------
            #   U[b, y, x, kx*Cin + c] = padded_src[b, y, x + kx, c]
            if p == 0:
                for kx in range(KW):
                    U[:, :, 0:Wo, kx * Cin:(kx + 1) * Cin] = (
                        src[:, :, kx:kx + Wo, :])
            else:
                # stride-1 ConvTranspose2d == zero-pad by K-1 + conv with the
                # flipped kernel; write the interior straight into the
                # pre-zeroed unfold (no padded activation is materialized).
                U[...] = jnp.zeros(U.shape, U.dtype)
                for kx in range(KW):
                    U[:, p:p + H_act, p - kx:p - kx + W_src,
                      kx * Cin:(kx + 1) * Cin] = src[:, :, 0:W_src, :]

            # ---- stage 2: ONE MXU matmul per layer (KH folded into columns) -
            lhs = U[...].reshape(b_tile * H_unf * Wo_pad, Kd)
            rhs = w_ref[r0:r0 + Kd, 0:Ncol]
            prod = jnp.dot(lhs, rhs, preferred_element_type=jnp.float32)
            prod = prod.reshape(b_tile, H_unf, Wo_pad, Ncol)

            # ---- stage 3: KH row-shifted adds + bias + ReLU (f32 VPU) -------
            acc = prod[:, 0:Ho, :, 0:Cout]
            for ky in range(1, KH):
                acc = acc + prod[:, ky:ky + Ho, :, ky * Cout:(ky + 1) * Cout]
            bias = b_ref[i, 0:Cout].reshape(1, 1, 1, Cout)
            out = jnp.maximum(acc + bias, 0.0)

            if i == n_layers - 1:
                o_ref[...] = out[:, :, 0:Wo, :].astype(o_ref.dtype)
            else:
                acts[i][...] = out
                src = acts[i]

    return kernel


# ----------------------------------------------------------------------------
# Full EnhancementModule forward: single fused pallas_call.
# ----------------------------------------------------------------------------
def forward_pallas(params, x_nchw, *, b_tile=None):
    x = jnp.transpose(x_nchw, (0, 2, 3, 1)).astype(jnp.float32)  # NCHW -> NHWC
    N, H, W, C0 = x.shape

    # Replicate padding for the first conv is pure layout glue -> wrapper.
    xp = jnp.pad(x, ((0, 0), (1, 1), (1, 1), (0, 0)), mode="edge")
    Hc, Wc = H + 2, W + 2

    def t_conv(wt):  # ConvTranspose2d weight (Cin,Cout,KH,KW) -> conv HWIO
        return jnp.transpose(jnp.flip(wt, axis=(2, 3)), (2, 3, 0, 1))

    layer_defs = [
        (params["w1"], params["b1"], 0),
        (params["w2"], params["b2"], 0),
        (params["w3"], params["b3"], 0),
        (params["w4"], params["b4"], 0),
        (t_conv(params["wt1"]), params["bt1"], int(params["wt1"].shape[2]) - 1),
        (t_conv(params["wt2"]), params["bt2"], int(params["wt2"].shape[2]) - 1),
        (params["w5"], params["b5"], 0),
    ]

    # ---- static per-layer schedule + packed weight / bias slabs -----------
    specs, w_blocks, b_vecs = [], [], []
    h, w_, c, r_off = Hc, Wc, C0, 0
    for wgt, bias, p in layer_defs:
        KH, KW, Ci, Co = map(int, wgt.shape)
        assert Ci == c
        hs, ws = h + 2 * p, w_ + 2 * p          # implicitly zero-padded source
        ho, wo = hs - KH + 1, ws - KW + 1
        kd, ncol = KW * Ci, KH * Co             # dense K, KH folded into cols
        specs.append(dict(H_unf=hs, H_act=h, W_src=w_, pad=p, Cin=Ci, KH=KH,
                          KW=KW, Cout=Co, Ho=ho, Wo=wo,
                          Wo_pad=_round_up(wo, 8), Kd=kd, Ncol=ncol,
                          r_off=r_off))
        # Wr[kx*Cin + ci, ky*Cout + co] = w[ky, kx, ci, co]
        w_blocks.append(jnp.transpose(wgt, (1, 2, 0, 3))
                        .reshape(kd, ncol).astype(jnp.float32))
        b_vecs.append(bias.astype(jnp.float32))
        r_off += _round_up(kd, 8)
        h, w_, c = ho, wo, Co

    Ho_f, Wo_f, Co_f = h, w_, c
    ncol_max = max(sp["Ncol"] for sp in specs)
    cmax = max(sp["Cout"] for sp in specs)

    w_slab = jnp.zeros((r_off, ncol_max), jnp.float32)
    for sp, wb in zip(specs, w_blocks):
        w_slab = w_slab.at[sp["r_off"]:sp["r_off"] + sp["Kd"],
                           :sp["Ncol"]].set(wb)
    b_slab = jnp.zeros((_round_up(len(specs), 8), cmax), jnp.float32)
    for i, bv in enumerate(b_vecs):
        b_slab = b_slab.at[i, :bv.shape[0]].set(bv)

    # ---- batch blocking: prefer an even grid length (2 TCs on v7x), cap ----
    # B_tile so per-core scratch (< ~2 MiB/image) stays well inside every
    # generation's scoped VMEM (v5e 16 MiB default, v7x 64 MiB physical).
    if b_tile is None:
        divs = [d for d in range(1, min(4, N) + 1) if N % d == 0]
        even = [d for d in divs if (N // d) % 2 == 0]
        b_tile = max(even) if even else max(divs)
    grid_n = N // b_tile

    kernel = _make_em_kernel(tuple(specs), b_tile)

    act_scratch = [pltpu.VMEM((b_tile, sp["Ho"], sp["Wo_pad"], sp["Cout"]),
                              jnp.float32) for sp in specs[:-1]]
    unf_scratch = [pltpu.VMEM((b_tile, sp["H_unf"], sp["Wo_pad"], sp["Kd"]),
                              jnp.float32) for sp in specs]

    out = pl.pallas_call(
        kernel,
        out_shape=jax.ShapeDtypeStruct((N, Ho_f, Wo_f, Co_f), jnp.float32),
        grid=(grid_n,),
        in_specs=[
            pl.BlockSpec((b_tile, Hc, Wc, C0), lambda n: (n, 0, 0, 0)),
            pl.BlockSpec(w_slab.shape, lambda n: (0, 0)),
            pl.BlockSpec(b_slab.shape, lambda n: (0, 0)),
        ],
        out_specs=pl.BlockSpec((b_tile, Ho_f, Wo_f, Co_f),
                               lambda n: (n, 0, 0, 0)),
        scratch_shapes=act_scratch + unf_scratch,
        compiler_params=pltpu.CompilerParams(
            dimension_semantics=("parallel",)),
    )(xp, w_slab, b_slab)

    return jnp.transpose(out, (0, 3, 1, 2))  # NHWC -> NCHW


# ----------------------------------------------------------------------------
# Pure-JAX reference (for the in-script correctness check).
# ----------------------------------------------------------------------------
def _conv2d_relu_ref(x, w, b):
    y = lax.conv_general_dilated(x, w, (1, 1), "VALID",
                                 dimension_numbers=("NHWC", "HWIO", "NHWC"))
    return jnp.maximum(y + b.reshape(1, 1, 1, -1), 0.0)


def _conv_transpose2d_relu_ref(x, w_t, b):
    Cin, Cout, KH, KW = w_t.shape
    w_conv = jnp.transpose(jnp.flip(w_t, axis=(2, 3)), (2, 3, 0, 1))
    x_pad = jnp.pad(x, ((0, 0), (KH - 1, KH - 1), (KW - 1, KW - 1), (0, 0)))
    return _conv2d_relu_ref(x_pad, w_conv, b)


def forward_ref(params, x_nchw):
    x = jnp.transpose(x_nchw, (0, 2, 3, 1))
    x = _conv2d_relu_ref(
        jnp.pad(x, ((0, 0), (1, 1), (1, 1), (0, 0)), mode="edge"),
        params["w1"], params["b1"])
    x = _conv2d_relu_ref(x, params["w2"], params["b2"])
    x = _conv2d_relu_ref(x, params["w3"], params["b3"])
    x = _conv2d_relu_ref(x, params["w4"], params["b4"])
    x = _conv_transpose2d_relu_ref(x, params["wt1"], params["bt1"])
    x = _conv_transpose2d_relu_ref(x, params["wt2"], params["bt2"])
    x = _conv2d_relu_ref(x, params["w5"], params["b5"])
    return jnp.transpose(x, (0, 3, 1, 2))


# ----------------------------------------------------------------------------
# Deterministic synthetic parameters (PyTorch default-init-like).
# ----------------------------------------------------------------------------
def init_params(key, in_channels=32, mid_channels=8, out_channels=3, k=5):
    keys = iter(jax.random.split(key, 14))

    def uni(kk, shape, fan_in):
        s = 1.0 / jnp.sqrt(jnp.float32(fan_in))
        return jax.random.uniform(kk, shape, jnp.float32, -s, s)

    m = mid_channels
    p = {}
    # conv weights in (KH, KW, Cin, Cout)
    p["w1"] = uni(next(keys), (3, 3, in_channels, m), in_channels * 9)
    p["b1"] = uni(next(keys), (m,), in_channels * 9)
    p["w2"] = uni(next(keys), (k, k, m, m), m * k * k)
    p["b2"] = uni(next(keys), (m,), m * k * k)
    p["w3"] = uni(next(keys), (k, k, m, 2 * m), m * k * k)
    p["b3"] = uni(next(keys), (2 * m,), m * k * k)
    p["w4"] = uni(next(keys), (k, k, 2 * m, 4 * m), 2 * m * k * k)
    p["b4"] = uni(next(keys), (4 * m,), 2 * m * k * k)
    # transposed-conv weights in PyTorch layout (Cin, Cout, KH, KW)
    p["wt1"] = uni(next(keys), (4 * m, 2 * m, k, k), 4 * m * k * k)
    p["bt1"] = uni(next(keys), (2 * m,), 4 * m * k * k)
    p["wt2"] = uni(next(keys), (2 * m, m, k, k), 2 * m * k * k)
    p["bt2"] = uni(next(keys), (m,), 2 * m * k * k)
    p["w5"] = uni(next(keys), (k, k, m, out_channels), m * k * k)
    p["b5"] = uni(next(keys), (out_channels,), m * k * k)
    return p


if __name__ == "__main__":
    key = jax.random.PRNGKey(0)
    pkey, xkey = jax.random.split(key)
    params = init_params(pkey)

    # N=2, C=32 (module's in_channels), H=W=16 -> output (2, 3, 8, 8)
    x = jax.random.normal(xkey, (2, 32, 16, 16), jnp.float32)

    fwd = jax.jit(functools.partial(forward_pallas, params))
    y = jax.block_until_ready(fwd(x))
    assert y.shape == (2, 3, 8, 8), y.shape

    y_ref = forward_ref(params, x)
    err = float(jnp.max(jnp.abs(y - y_ref)))
    # Tolerance covers TPU default-precision (bf16-pass) matmul numerics on
    # both sides while still catching any real packing/bias/combine bug.
    assert err < 1e-2, err
    print("KERNEL_OK")
</pallas_src>

<mosaic_0001>
module attributes {stable_mosaic.version = 11 : i64} {
  func.func @kernel(%arg0: i32, %arg1: memref<1x18x18x32xf32, #tpu.memory_space<vmem>>, %arg2: memref<536x160xf32, #tpu.memory_space<vmem>>, %arg3: memref<8x32xf32, #tpu.memory_space<vmem>>, %arg4: memref<1x8x8x3xf32, #tpu.memory_space<vmem>>, %arg5: memref<1x16x16x8xf32, #tpu.memory_space<vmem>>, %arg6: memref<1x12x16x8xf32, #tpu.memory_space<vmem>>, %arg7: memref<1x8x8x16xf32, #tpu.memory_space<vmem>>, %arg8: memref<1x4x8x32xf32, #tpu.memory_space<vmem>>, %arg9: memref<1x8x8x16xf32, #tpu.memory_space<vmem>>, %arg10: memref<1x12x16x8xf32, #tpu.memory_space<vmem>>, %arg11: memref<1x18x16x96xf32, #tpu.memory_space<vmem>>, %arg12: memref<1x16x16x40xf32, #tpu.memory_space<vmem>>, %arg13: memref<1x12x8x40xf32, #tpu.memory_space<vmem>>, %arg14: memref<1x8x8x80xf32, #tpu.memory_space<vmem>>, %arg15: memref<1x12x8x160xf32, #tpu.memory_space<vmem>>, %arg16: memref<1x16x16x80xf32, #tpu.memory_space<vmem>>, %arg17: memref<1x12x8x40xf32, #tpu.memory_space<vmem>>) attributes {dimension_semantics = [#tpu.dimension_semantics<parallel>], iteration_bounds = array<i64: 2>, scalar_prefetch = 0 : i64, scratch_operands = 13 : i64, tpu.core_type = #tpu.core_type<tc>, window_params = [{transform_indices = @transform_0, window_bounds = array<i64: 1, 18, 18, 32>}, {pipeline_mode = #tpu.pipeline_mode<synchronous>, transform_indices = @transform_1, window_bounds = array<i64: 536, 160>}, {pipeline_mode = #tpu.pipeline_mode<synchronous>, transform_indices = @transform_2, window_bounds = array<i64: 8, 32>}, {transform_indices = @transform_3, window_bounds = array<i64: 1, 8, 8, 3>}]} {
    %c0 = arith.constant 0 : index
    %c0_0 = arith.constant 0 : index
    %c0_1 = arith.constant 0 : index
    %c0_2 = arith.constant 0 : index
    %0 = vector.load %arg1[%c0, %c0_0, %c0_1, %c0_2] : memref<1x18x18x32xf32, #tpu.memory_space<vmem>>, vector<1x18x16x32xf32>
    %c0_3 = arith.constant 0 : index
    %c0_4 = arith.constant 0 : index
    %c0_5 = arith.constant 0 : index
    %c0_6 = arith.constant 0 : index
    %1 = vector.load %arg11[%c0_3, %c0_4, %c0_5, %c0_6] : memref<1x18x16x96xf32, #tpu.memory_space<vmem>>, vector<1x18x16x32xf32>
    tpu.vector_store %arg11[%c0_3, %c0_4, %c0_5, %c0_6], %0 {strides = array<i32>} : memref<1x18x16x96xf32, #tpu.memory_space<vmem>>, vector<1x18x16x32xf32>,
    %c0_7 = arith.constant 0 : index
    %c0_8 = arith.constant 0 : index
    %c1 = arith.constant 1 : index
    %c0_9 = arith.constant 0 : index
    %2 = vector.load %arg1[%c0_7, %c0_8, %c1, %c0_9] : memref<1x18x18x32xf32, #tpu.memory_space<vmem>>, vector<1x18x16x32xf32>
    %c0_10 = arith.constant 0 : index
    %c0_11 = arith.constant 0 : index
    %c0_12 = arith.constant 0 : index
    %c32 = arith.constant 32 : index
    %3 = vector.load %arg11[%c0_10, %c0_11, %c0_12, %c32] : memref<1x18x16x96xf32, #tpu.memory_space<vmem>>, vector<1x18x16x32xf32>
    tpu.vector_store %arg11[%c0_10, %c0_11, %c0_12, %c32], %2 {strides = array<i32>} : memref<1x18x16x96xf32, #tpu.memory_space<vmem>>, vector<1x18x16x32xf32>,
    %c0_13 = arith.constant 0 : index
    %c0_14 = arith.constant 0 : index
    %c2 = arith.constant 2 : index
    %c0_15 = arith.constant 0 : index
    %4 = vector.load %arg1[%c0_13, %c0_14, %c2, %c0_15] : memref<1x18x18x32xf32, #tpu.memory_space<vmem>>, vector<1x18x16x32xf32>
    %c0_16 = arith.constant 0 : index
    %c0_17 = arith.constant 0 : index
    %c0_18 = arith.constant 0 : index
    %c64 = arith.constant 64 : index
    %5 = vector.load %arg11[%c0_16, %c0_17, %c0_18, %c64] : memref<1x18x16x96xf32, #tpu.memory_space<vmem>>, vector<1x18x16x32xf32>
    tpu.vector_store %arg11[%c0_16, %c0_17, %c0_18, %c64], %4 {strides = array<i32>} : memref<1x18x16x96xf32, #tpu.memory_space<vmem>>, vector<1x18x16x32xf32>,
    %c0_19 = arith.constant 0 : index
    %c0_20 = arith.constant 0 : index
    %c0_21 = arith.constant 0 : index
    %c0_22 = arith.constant 0 : index
    %6 = vector.load %arg11[%c0_19, %c0_20, %c0_21, %c0_22] : memref<1x18x16x96xf32, #tpu.memory_space<vmem>>, vector<1x18x16x96xf32>
    %7 = vector.shape_cast %6 : vector<1x18x16x96xf32> to vector<288x96xf32>
    %c0_23 = arith.constant 0 : index
    %c0_24 = arith.constant 0 : index
    %8 = vector.load %arg2[%c0_23, %c0_24] : memref<536x160xf32, #tpu.memory_space<vmem>>, vector<96x24xf32>
    %cst = arith.constant dense<0.000000e+00> : vector<288x24xf32>
    %9 = tpu.matmul %7, %8, %cst {dimension_numbers = #tpu.dot_dimension_numbers<[1], [0], [0], [1], [0, 0, 1, 1], [], []>} : vector<288x96xf32>, vector<96x24xf32>, vector<288x24xf32> -> vector<288x24xf32>
    %10 = vector.shape_cast %9 : vector<288x24xf32> to vector<1x18x16x24xf32>
    %11 = vector.extract_strided_slice %10 {offsets = [0, 0, 0, 0], sizes = [1, 16, 16, 8], strides = [1, 1, 1, 1]} : vector<1x18x16x24xf32> to vector<1x16x16x8xf32>
    %12 = vector.extract_strided_slice %10 {offsets = [0, 1, 0, 8], sizes = [1, 16, 16, 8], strides = [1, 1, 1, 1]} : vector<1x18x16x24xf32> to vector<1x16x16x8xf32>
    %13 = arith.addf %11, %12 : vector<1x16x16x8xf32>
    %14 = vector.extract_strided_slice %10 {offsets = [0, 2, 0, 16], sizes = [1, 16, 16, 8], strides = [1, 1, 1, 1]} : vector<1x18x16x24xf32> to vector<1x16x16x8xf32>
    %15 = arith.addf %13, %14 : vector<1x16x16x8xf32>
    %c0_25 = arith.constant 0 : index
    %c0_26 = arith.constant 0 : index
    %16 = vector.load %arg3[%c0_25, %c0_26] : memref<8x32xf32, #tpu.memory_space<vmem>>, vector<1x8xf32>
    %17 = vector.shape_cast %16 : vector<1x8xf32> to vector<8xf32>
    %18 = vector.shape_cast %17 : vector<8xf32> to vector<1x1x1x8xf32>
    %19 = vector.broadcast %18 : vector<1x1x1x8xf32> to vector<1x16x16x8xf32>
    %20 = arith.addf %15, %19 : vector<1x16x16x8xf32>
    %cst_27 = arith.constant 0.000000e+00 : f32
    %21 = vector.broadcast %cst_27 : f32 to vector<1x16x16x8xf32>
    %22 = arith.maximumf %20, %21 : vector<1x16x16x8xf32>
    %c0_28 = arith.constant 0 : index
    %c0_29 = arith.constant 0 : index
    %c0_30 = arith.constant 0 : index
    %c0_31 = arith.constant 0 : index
    %23 = vector.load %arg5[%c0_28, %c0_29, %c0_30, %c0_31] : memref<1x16x16x8xf32, #tpu.memory_space<vmem>>, vector<1x16x16x8xf32>
    tpu.vector_store %arg5[%c0_28, %c0_29, %c0_30, %c0_31], %22 {strides = array<i32>} : memref<1x16x16x8xf32, #tpu.memory_space<vmem>>, vector<1x16x16x8xf32>,
    %c0_32 = arith.constant 0 : index
    %c0_33 = arith.constant 0 : index
    %c0_34 = arith.constant 0 : index
    %c0_35 = arith.constant 0 : index
    %24 = vector.load %arg5[%c0_32, %c0_33, %c0_34, %c0_35] : memref<1x16x16x8xf32, #tpu.memory_space<vmem>>, vector<1x16x12x8xf32>
    %c0_36 = arith.constant 0 : index
    %c0_37 = arith.constant 0 : index
    %c0_38 = arith.constant 0 : index
    %c0_39 = arith.constant 0 : index
    %25 = vector.load %arg12[%c0_36, %c0_37, %c0_38, %c0_39] : memref<1x16x16x40xf32, #tpu.memory_space<vmem>>, vector<1x16x12x8xf32>
    tpu.vector_store %arg12[%c0_36, %c0_37, %c0_38, %c0_39], %24 {strides = array<i32>} : memref<1x16x16x40xf32, #tpu.memory_space<vmem>>, vector<1x16x12x8xf32>,
    %c0_40 = arith.constant 0 : index
    %c0_41 = arith.constant 0 : index
    %c1_42 = arith.constant 1 : index
    %c0_43 = arith.constant 0 : index
    %26 = vector.load %arg5[%c0_40, %c0_41, %c1_42, %c0_43] : memref<1x16x16x8xf32, #tpu.memory_space<vmem>>, vector<1x16x12x8xf32>
    %c0_44 = arith.constant 0 : index
    %c0_45 = arith.constant 0 : index
    %c0_46 = arith.constant 0 : index
    %c8 = arith.constant 8 : index
    %27 = vector.load %arg12[%c0_44, %c0_45, %c0_46, %c8] : memref<1x16x16x40xf32, #tpu.memory_space<vmem>>, vector<1x16x12x8xf32>
    tpu.vector_store %arg12[%c0_44, %c0_45, %c0_46, %c8], %26 {strides = array<i32>} : memref<1x16x16x40xf32, #tpu.memory_space<vmem>>, vector<1x16x12x8xf32>,
    %c0_47 = arith.constant 0 : index
    %c0_48 = arith.constant 0 : index
    %c2_49 = arith.constant 2 : index
    %c0_50 = arith.constant 0 : index
    %28 = vector.load %arg5[%c0_47, %c0_48, %c2_49, %c0_50] : memref<1x16x16x8xf32, #tpu.memory_space<vmem>>, vector<1x16x12x8xf32>
    %c0_51 = arith.constant 0 : index
    %c0_52 = arith.constant 0 : index
    %c0_53 = arith.constant 0 : index
    %c16 = arith.constant 16 : index
    %29 = vector.load %arg12[%c0_51, %c0_52, %c0_53, %c16] : memref<1x16x16x40xf32, #tpu.memory_space<vmem>>, vector<1x16x12x8xf32>
    tpu.vector_store %arg12[%c0_51, %c0_52, %c0_53, %c16], %28 {strides = array<i32>} : memref<1x16x16x40xf32, #tpu.memory_space<vmem>>, vector<1x16x12x8xf32>,
    %c0_54 = arith.constant 0 : index
    %c0_55 = arith.constant 0 : index
    %c3 = arith.constant 3 : index
    %c0_56 = arith.constant 0 : index
    %30 = vector.load %arg5[%c0_54, %c0_55, %c3, %c0_56] : memref<1x16x16x8xf32, #tpu.memory_space<vmem>>, vector<1x16x12x8xf32>
    %c0_57 = arith.constant 0 : index
    %c0_58 = arith.constant 0 : index
    %c0_59 = arith.constant 0 : index
    %c24 = arith.constant 24 : index
    %31 = vector.load %arg12[%c0_57, %c0_58, %c0_59, %c24] : memref<1x16x16x40xf32, #tpu.memory_space<vmem>>, vector<1x16x12x8xf32>
    tpu.vector_store %arg12[%c0_57, %c0_58, %c0_59, %c24], %30 {strides = array<i32>} : memref<1x16x16x40xf32, #tpu.memory_space<vmem>>, vector<1x16x12x8xf32>,
    %c0_60 = arith.constant 0 : index
    %c0_61 = arith.constant 0 : index
    %c4 = arith.constant 4 : index
    %c0_62 = arith.constant 0 : index
    %32 = vector.load %arg5[%c0_60, %c0_61, %c4, %c0_62] : memref<1x16x16x8xf32, #tpu.memory_space<vmem>>, vector<1x16x12x8xf32>
    %c0_63 = arith.constant 0 : index
    %c0_64 = arith.constant 0 : index
    %c0_65 = arith.constant 0 : index
    %c32_66 = arith.constant 32 : index
    %33 = vector.load %arg12[%c0_63, %c0_64, %c0_65, %c32_66] : memref<1x16x16x40xf32, #tpu.memory_space<vmem>>, vector<1x16x12x8xf32>
    tpu.vector_store %arg12[%c0_63, %c0_64, %c0_65, %c32_66], %32 {strides = array<i32>} : memref<1x16x16x40xf32, #tpu.memory_space<vmem>>, vector<1x16x12x8xf32>,
    %c0_67 = arith.constant 0 : index
    %c0_68 = arith.constant 0 : index
    %c0_69 = arith.constant 0 : index
    %c0_70 = arith.constant 0 : index
    %34 = vector.load %arg12[%c0_67, %c0_68, %c0_69, %c0_70] : memref<1x16x16x40xf32, #tpu.memory_space<vmem>>, vector<1x16x16x40xf32>
    %35 = vector.shape_cast %34 : vector<1x16x16x40xf32> to vector<256x40xf32>
    %c96 = arith.constant 96 : index
    %c0_71 = arith.constant 0 : index
    %36 = vector.load %arg2[%c96, %c0_71] : memref<536x160xf32, #tpu.memory_space<vmem>>, vector<40x40xf32>
    %cst_72 = arith.constant dense<0.000000e+00> : vector<256x40xf32>
    %37 = tpu.matmul %35, %36, %cst_72 {dimension_numbers = #tpu.dot_dimension_numbers<[1], [0], [0], [1], [0, 0, 1, 1], [], []>} : vector<256x40xf32>, vector<40x40xf32>, vector<256x40xf32> -> vector<256x40xf32>
    %38 = vector.shape_cast %37 : vector<256x40xf32> to vector<1x16x16x40xf32>
    %39 = vector.extract_strided_slice %38 {offsets = [0, 0, 0, 0], sizes = [1, 12, 16, 8], strides = [1, 1, 1, 1]} : vector<1x16x16x40xf32> to vector<1x12x16x8xf32>
    %40 = vector.extract_strided_slice %38 {offsets = [0, 1, 0, 8], sizes = [1, 12, 16, 8], strides = [1, 1, 1, 1]} : vector<1x16x16x40xf32> to vector<1x12x16x8xf32>
    %41 = arith.addf %39, %40 : vector<1x12x16x8xf32>
    %42 = vector.extract_strided_slice %38 {offsets = [0, 2, 0, 16], sizes = [1, 12, 16, 8], strides = [1, 1, 1, 1]} : vector<1x16x16x40xf32> to vector<1x12x16x8xf32>
    %43 = arith.addf %41, %42 : vector<1x12x16x8xf32>
    %44 = vector.extract_strided_slice %38 {offsets = [0, 3, 0, 24], sizes = [1, 12, 16, 8], strides = [1, 1, 1, 1]} : vector<1x16x16x40xf32> to vector<1x12x16x8xf32>
    %45 = arith.addf %43, %44 : vector<1x12x16x8xf32>
    %46 = vector.extract_strided_slice %38 {offsets = [0, 4, 0, 32], sizes = [1, 12, 16, 8], strides = [1, 1, 1, 1]} : vector<1x16x16x40xf32> to vector<1x12x16x8xf32>
    %47 = arith.addf %45, %46 : vector<1x12x16x8xf32>
    %c1_73 = arith.constant 1 : index
    %c0_74 = arith.constant 0 : index
    %48 = vector.load %arg3[%c1_73, %c0_74] : memref<8x32xf32, #tpu.memory_space<vmem>>, vector<1x8xf32>
    %49 = vector.shape_cast %48 : vector<1x8xf32> to vector<8xf32>
    %50 = vector.shape_cast %49 : vector<8xf32> to vector<1x1x1x8xf32>
    %51 = vector.broadcast %50 : vector<1x1x1x8xf32> to vector<1x12x16x8xf32>
    %52 = arith.addf %47, %51 : vector<1x12x16x8xf32>
    %cst_75 = arith.constant 0.000000e+00 : f32
    %53 = vector.broadcast %cst_75 : f32 to vector<1x12x16x8xf32>
    %54 = arith.maximumf %52, %53 : vector<1x12x16x8xf32>
    %c0_76 = arith.constant 0 : index
    %c0_77 = arith.constant 0 : index
    %c0_78 = arith.constant 0 : index
    %c0_79 = arith.constant 0 : index
    %55 = vector.load %arg6[%c0_76, %c0_77, %c0_78, %c0_79] : memref<1x12x16x8xf32, #tpu.memory_space<vmem>>, vector<1x12x16x8xf32>
    tpu.vector_store %arg6[%c0_76, %c0_77, %c0_78, %c0_79], %54 {strides = array<i32>} : memref<1x12x16x8xf32, #tpu.memory_space<vmem>>, vector<1x12x16x8xf32>,
    %c0_80 = arith.constant 0 : index
    %c0_81 = arith.constant 0 : index
    %c0_82 = arith.constant 0 : index
    %c0_83 = arith.constant 0 : index
    %56 = vector.load %arg6[%c0_80, %c0_81, %c0_82, %c0_83] : memref<1x12x16x8xf32, #tpu.memory_space<vmem>>, vector<1x12x8x8xf32>
    %c0_84 = arith.constant 0 : index
    %c0_85 = arith.constant 0 : index
    %c0_86 = arith.constant 0 : index
    %c0_87 = arith.constant 0 : index
    %57 = vector.load %arg13[%c0_84, %c0_85, %c0_86, %c0_87] : memref<1x12x8x40xf32, #tpu.memory_space<vmem>>, vector<1x12x8x8xf32>
    tpu.vector_store %arg13[%c0_84, %c0_85, %c0_86, %c0_87], %56 {strides = array<i32>} : memref<1x12x8x40xf32, #tpu.memory_space<vmem>>, vector<1x12x8x8xf32>,
    %c0_88 = arith.constant 0 : index
    %c0_89 = arith.constant 0 : index
    %c1_90 = arith.constant 1 : index
    %c0_91 = arith.constant 0 : index
    %58 = vector.load %arg6[%c0_88, %c0_89, %c1_90, %c0_91] : memref<1x12x16x8xf32, #tpu.memory_space<vmem>>, vector<1x12x8x8xf32>
    %c0_92 = arith.constant 0 : index
    %c0_93 = arith.constant 0 : index
    %c0_94 = arith.constant 0 : index
    %c8_95 = arith.constant 8 : index
    %59 = vector.load %arg13[%c0_92, %c0_93, %c0_94, %c8_95] : memref<1x12x8x40xf32, #tpu.memory_space<vmem>>, vector<1x12x8x8xf32>
    tpu.vector_store %arg13[%c0_92, %c0_93, %c0_94, %c8_95], %58 {strides = array<i32>} : memref<1x12x8x40xf32, #tpu.memory_space<vmem>>, vector<1x12x8x8xf32>,
    %c0_96 = arith.constant 0 : index
    %c0_97 = arith.constant 0 : index
    %c2_98 = arith.constant 2 : index
    %c0_99 = arith.constant 0 : index
    %60 = vector.load %arg6[%c0_96, %c0_97, %c2_98, %c0_99] : memref<1x12x16x8xf32, #tpu.memory_space<vmem>>, vector<1x12x8x8xf32>
    %c0_100 = arith.constant 0 : index
    %c0_101 = arith.constant 0 : index
    %c0_102 = arith.constant 0 : index
    %c16_103 = arith.constant 16 : index
    %61 = vector.load %arg13[%c0_100, %c0_101, %c0_102, %c16_103] : memref<1x12x8x40xf32, #tpu.memory_space<vmem>>, vector<1x12x8x8xf32>
    tpu.vector_store %arg13[%c0_100, %c0_101, %c0_102, %c16_103], %60 {strides = array<i32>} : memref<1x12x8x40xf32, #tpu.memory_space<vmem>>, vector<1x12x8x8xf32>,
    %c0_104 = arith.constant 0 : index
    %c0_105 = arith.constant 0 : index
    %c3_106 = arith.constant 3 : index
    %c0_107 = arith.constant 0 : index
    %62 = vector.load %arg6[%c0_104, %c0_105, %c3_106, %c0_107] : memref<1x12x16x8xf32, #tpu.memory_space<vmem>>, vector<1x12x8x8xf32>
    %c0_108 = arith.constant 0 : index
    %c0_109 = arith.constant 0 : index
    %c0_110 = arith.constant 0 : index
    %c24_111 = arith.constant 24 : index
    %63 = vector.load %arg13[%c0_108, %c0_109, %c0_110, %c24_111] : memref<1x12x8x40xf32, #tpu.memory_space<vmem>>, vector<1x12x8x8xf32>
    tpu.vector_store %arg13[%c0_108, %c0_109, %c0_110, %c24_111], %62 {strides = array<i32>} : memref<1x12x8x40xf32, #tpu.memory_space<vmem>>, vector<1x12x8x8xf32>,
    %c0_112 = arith.constant 0 : index
    %c0_113 = arith.constant 0 : index
    %c4_114 = arith.constant 4 : index
    %c0_115 = arith.constant 0 : index
    %64 = vector.load %arg6[%c0_112, %c0_113, %c4_114, %c0_115] : memref<1x12x16x8xf32, #tpu.memory_space<vmem>>, vector<1x12x8x8xf32>
    %c0_116 = arith.constant 0 : index
    %c0_117 = arith.constant 0 : index
    %c0_118 = arith.constant 0 : index
    %c32_119 = arith.constant 32 : index
    %65 = vector.load %arg13[%c0_116, %c0_117, %c0_118, %c32_119] : memref<1x12x8x40xf32, #tpu.memory_space<vmem>>, vector<1x12x8x8xf32>
    tpu.vector_store %arg13[%c0_116, %c0_117, %c0_118, %c32_119], %64 {strides = array<i32>} : memref<1x12x8x40xf32, #tpu.memory_space<vmem>>, vector<1x12x8x8xf32>,
    %c0_120 = arith.constant 0 : index
    %c0_121 = arith.constant 0 : index
    %c0_122 = arith.constant 0 : index
    %c0_123 = arith.constant 0 : index
    %66 = vector.load %arg13[%c0_120, %c0_121, %c0_122, %c0_123] : memref<1x12x8x40xf32, #tpu.memory_space<vmem>>, vector<1x12x8x40xf32>
    %67 = vector.shape_cast %66 : vector<1x12x8x40xf32> to vector<96x40xf32>
    %c136 = arith.constant 136 : index
    %c0_124 = arith.constant 0 : index
    %68 = vector.load %arg2[%c136, %c0_124] : memref<536x160xf32, #tpu.memory_space<vmem>>, vector<40x80xf32>
    %cst_125 = arith.constant dense<0.000000e+00> : vector<96x80xf32>
    %69 = tpu.matmul %67, %68, %cst_125 {dimension_numbers = #tpu.dot_dimension_numbers<[1], [0], [0], [1], [0, 0, 1, 1], [], []>} : vector<96x40xf32>, vector<40x80xf32>, vector<96x80xf32> -> vector<96x80xf32>
    %70 = vector.shape_cast %69 : vector<96x80xf32> to vector<1x12x8x80xf32>
    %71 = vector.extract_strided_slice %70 {offsets = [0, 0, 0, 0], sizes = [1, 8, 8, 16], strides = [1, 1, 1, 1]} : vector<1x12x8x80xf32> to vector<1x8x8x16xf32>
    %72 = vector.extract_strided_slice %70 {offsets = [0, 1, 0, 16], sizes = [1, 8, 8, 16], strides = [1, 1, 1, 1]} : vector<1x12x8x80xf32> to vector<1x8x8x16xf32>
    %73 = arith.addf %71, %72 : vector<1x8x8x16xf32>
    %74 = vector.extract_strided_slice %70 {offsets = [0, 2, 0, 32], sizes = [1, 8, 8, 16], strides = [1, 1, 1, 1]} : vector<1x12x8x80xf32> to vector<1x8x8x16xf32>
    %75 = arith.addf %73, %74 : vector<1x8x8x16xf32>
    %76 = vector.extract_strided_slice %70 {offsets = [0, 3, 0, 48], sizes = [1, 8, 8, 16], strides = [1, 1, 1, 1]} : vector<1x12x8x80xf32> to vector<1x8x8x16xf32>
    %77 = arith.addf %75, %76 : vector<1x8x8x16xf32>
    %78 = vector.extract_strided_slice %70 {offsets = [0, 4, 0, 64], sizes = [1, 8, 8, 16], strides = [1, 1, 1, 1]} : vector<1x12x8x80xf32> to vector<1x8x8x16xf32>
    %79 = arith.addf %77, %78 : vector<1x8x8x16xf32>
    %c2_126 = arith.constant 2 : index
    %c0_127 = arith.constant 0 : index
    %80 = vector.load %arg3[%c2_126, %c0_127] : memref<8x32xf32, #tpu.memory_space<vmem>>, vector<1x16xf32>
    %81 = vector.shape_cast %80 : vector<1x16xf32> to vector<16xf32>
    %82 = vector.shape_cast %81 : vector<16xf32> to vector<1x1x1x16xf32>
    %83 = vector.broadcast %82 : vector<1x1x1x16xf32> to vector<1x8x8x16xf32>
    %84 = arith.addf %79, %83 : vector<1x8x8x16xf32>
    %cst_128 = arith.constant 0.000000e+00 : f32
    %85 = vector.broadcast %cst_128 : f32 to vector<1x8x8x16xf32>
    %86 = arith.maximumf %84, %85 : vector<1x8x8x16xf32>
    %c0_129 = arith.constant 0 : index
    %c0_130 = arith.constant 0 : index
    %c0_131 = arith.constant 0 : index
    %c0_132 = arith.constant 0 : index
    %87 = vector.load %arg7[%c0_129, %c0_130, %c0_131, %c0_132] : memref<1x8x8x16xf32, #tpu.memory_space<vmem>>, vector<1x8x8x16xf32>
    tpu.vector_store %arg7[%c0_129, %c0_130, %c0_131, %c0_132], %86 {strides = array<i32>} : memref<1x8x8x16xf32, #tpu.memory_space<vmem>>, vector<1x8x8x16xf32>,
    %c0_133 = arith.constant 0 : index
    %c0_134 = arith.constant 0 : index
    %c0_135 = arith.constant 0 : index
    %c0_136 = arith.constant 0 : index
    %88 = vector.load %arg7[%c0_133, %c0_134, %c0_135, %c0_136] : memref<1x8x8x16xf32, #tpu.memory_space<vmem>>, vector<1x8x4x16xf32>
    %c0_137 = arith.constant 0 : index
    %c0_138 = arith.constant 0 : index
    %c0_139 = arith.constant 0 : index
    %c0_140 = arith.constant 0 : index
    %89 = vector.load %arg14[%c0_137, %c0_138, %c0_139, %c0_140] : memref<1x8x8x80xf32, #tpu.memory_space<vmem>>, vector<1x8x4x16xf32>
    tpu.vector_store %arg14[%c0_137, %c0_138, %c0_139, %c0_140], %88 {strides = array<i32>} : memref<1x8x8x80xf32, #tpu.memory_space<vmem>>, vector<1x8x4x16xf32>,
    %c0_141 = arith.constant 0 : index
    %c0_142 = arith.constant 0 : index
    %c1_143 = arith.constant 1 : index
    %c0_144 = arith.constant 0 : index
    %90 = vector.load %arg7[%c0_141, %c0_142, %c1_143, %c0_144] : memref<1x8x8x16xf32, #tpu.memory_space<vmem>>, vector<1x8x4x16xf32>
    %c0_145 = arith.constant 0 : index
    %c0_146 = arith.constant 0 : index
    %c0_147 = arith.constant 0 : index
    %c16_148 = arith.constant 16 : index
    %91 = vector.load %arg14[%c0_145, %c0_146, %c0_147, %c16_148] : memref<1x8x8x80xf32, #tpu.memory_space<vmem>>, vector<1x8x4x16xf32>
    tpu.vector_store %arg14[%c0_145, %c0_146, %c0_147, %c16_148], %90 {strides = array<i32>} : memref<1x8x8x80xf32, #tpu.memory_space<vmem>>, vector<1x8x4x16xf32>,
    %c0_149 = arith.constant 0 : index
    %c0_150 = arith.constant 0 : index
    %c2_151 = arith.constant 2 : index
    %c0_152 = arith.constant 0 : index
    %92 = vector.load %arg7[%c0_149, %c0_150, %c2_151, %c0_152] : memref<1x8x8x16xf32, #tpu.memory_space<vmem>>, vector<1x8x4x16xf32>
    %c0_153 = arith.constant 0 : index
    %c0_154 = arith.constant 0 : index
    %c0_155 = arith.constant 0 : index
    %c32_156 = arith.constant 32 : index
    %93 = vector.load %arg14[%c0_153, %c0_154, %c0_155, %c32_156] : memref<1x8x8x80xf32, #tpu.memory_space<vmem>>, vector<1x8x4x16xf32>
    tpu.vector_store %arg14[%c0_153, %c0_154, %c0_155, %c32_156], %92 {strides = array<i32>} : memref<1x8x8x80xf32, #tpu.memory_space<vmem>>, vector<1x8x4x16xf32>,
    %c0_157 = arith.constant 0 : index
    %c0_158 = arith.constant 0 : index
    %c3_159 = arith.constant 3 : index
    %c0_160 = arith.constant 0 : index
    %94 = vector.load %arg7[%c0_157, %c0_158, %c3_159, %c0_160] : memref<1x8x8x16xf32, #tpu.memory_space<vmem>>, vector<1x8x4x16xf32>
    %c0_161 = arith.constant 0 : index
    %c0_162 = arith.constant 0 : index
    %c0_163 = arith.constant 0 : index
    %c48 = arith.constant 48 : index
    %95 = vector.load %arg14[%c0_161, %c0_162, %c0_163, %c48] : memref<1x8x8x80xf32, #tpu.memory_space<vmem>>, vector<1x8x4x16xf32>
    tpu.vector_store %arg14[%c0_161, %c0_162, %c0_163, %c48], %94 {strides = array<i32>} : memref<1x8x8x80xf32, #tpu.memory_space<vmem>>, vector<1x8x4x16xf32>,
    %c0_164 = arith.constant 0 : index
    %c0_165 = arith.constant 0 : index
    %c4_166 = arith.constant 4 : index
    %c0_167 = arith.constant 0 : index
    %96 = vector.load %arg7[%c0_164, %c0_165, %c4_166, %c0_167] : memref<1x8x8x16xf32, #tpu.memory_space<vmem>>, vector<1x8x4x16xf32>
    %c0_168 = arith.constant 0 : index
    %c0_169 = arith.constant 0 : index
    %c0_170 = arith.constant 0 : index
    %c64_171 = arith.constant 64 : index
    %97 = vector.load %arg14[%c0_168, %c0_169, %c0_170, %c64_171] : memref<1x8x8x80xf32, #tpu.memory_space<vmem>>, vector<1x8x4x16xf32>
    tpu.vector_store %arg14[%c0_168, %c0_169, %c0_170, %c64_171], %96 {strides = array<i32>} : memref<1x8x8x80xf32, #tpu.memory_space<vmem>>, vector<1x8x4x16xf32>,
    %c0_172 = arith.constant 0 : index
    %c0_173 = arith.constant 0 : index
    %c0_174 = arith.constant 0 : index
    %c0_175 = arith.constant 0 : index
    %98 = vector.load %arg14[%c0_172, %c0_173, %c0_174, %c0_175] : memref<1x8x8x80xf32, #tpu.memory_space<vmem>>, vector<1x8x8x80xf32>
    %99 = vector.shape_cast %98 : vector<1x8x8x80xf32> to vector<64x80xf32>
    %c176 = arith.constant 176 : index
    %c0_176 = arith.constant 0 : index
    %100 = vector.load %arg2[%c176, %c0_176] : memref<536x160xf32, #tpu.memory_space<vmem>>, vector<80x160xf32>
    %cst_177 = arith.constant dense<0.000000e+00> : vector<64x160xf32>
    %101 = tpu.matmul %99, %100, %cst_177 {dimension_numbers = #tpu.dot_dimension_numbers<[1], [0], [0], [1], [0, 0, 1, 1], [], []>} : vector<64x80xf32>, vector<80x160xf32>, vector<64x160xf32> -> vector<64x160xf32>
    %102 = vector.shape_cast %101 : vector<64x160xf32> to vector<1x8x8x160xf32>
    %103 = vector.extract_strided_slice %102 {offsets = [0, 0, 0, 0], sizes = [1, 4, 8, 32], strides = [1, 1, 1, 1]} : vector<1x8x8x160xf32> to vector<1x4x8x32xf32>
    %104 = vector.extract_strided_slice %102 {offsets = [0, 1, 0, 32], sizes = [1, 4, 8, 32], strides = [1, 1, 1, 1]} : vector<1x8x8x160xf32> to vector<1x4x8x32xf32>
    %105 = arith.addf %103, %104 : vector<1x4x8x32xf32>
    %106 = vector.extract_strided_slice %102 {offsets = [0, 2, 0, 64], sizes = [1, 4, 8, 32], strides = [1, 1, 1, 1]} : vector<1x8x8x160xf32> to vector<1x4x8x32xf32>
    %107 = arith.addf %105, %106 : vector<1x4x8x32xf32>
    %108 = vector.extract_strided_slice %102 {offsets = [0, 3, 0, 96], sizes = [1, 4, 8, 32], strides = [1, 1, 1, 1]} : vector<1x8x8x160xf32> to vector<1x4x8x32xf32>
    %109 = arith.addf %107, %108 : vector<1x4x8x32xf32>
    %110 = vector.extract_strided_slice %102 {offsets = [0, 4, 0, 128], sizes = [1, 4, 8, 32], strides = [1, 1, 1, 1]} : vector<1x8x8x160xf32> to vector<1x4x8x32xf32>
    %111 = arith.addf %109, %110 : vector<1x4x8x32xf32>
    %c3_178 = arith.constant 3 : index
    %c0_179 = arith.constant 0 : index
    %112 = vector.load %arg3[%c3_178, %c0_179] : memref<8x32xf32, #tpu.memory_space<vmem>>, vector<1x32xf32>
    %113 = vector.shape_cast %112 : vector<1x32xf32> to vector<32xf32>
    %114 = vector.shape_cast %113 : vector<32xf32> to vector<1x1x1x32xf32>
    %115 = vector.broadcast %114 : vector<1x1x1x32xf32> to vector<1x4x8x32xf32>
    %116 = arith.addf %111, %115 : vector<1x4x8x32xf32>
    %cst_180 = arith.constant 0.000000e+00 : f32
    %117 = vector.broadcast %cst_180 : f32 to vector<1x4x8x32xf32>
    %118 = arith.maximumf %116, %117 : vector<1x4x8x32xf32>
    %c0_181 = arith.constant 0 : index
    %c0_182 = arith.constant 0 : index
    %c0_183 = arith.constant 0 : index
    %c0_184 = arith.constant 0 : index
    %119 = vector.load %arg8[%c0_181, %c0_182, %c0_183, %c0_184] : memref<1x4x8x32xf32, #tpu.memory_space<vmem>>, vector<1x4x8x32xf32>
    tpu.vector_store %arg8[%c0_181, %c0_182, %c0_183, %c0_184], %118 {strides = array<i32>} : memref<1x4x8x32xf32, #tpu.memory_space<vmem>>, vector<1x4x8x32xf32>,
    %cst_185 = arith.constant 0.000000e+00 : f32
    %120 = vector.broadcast %cst_185 : f32 to vector<1x12x8x160xf32>
    %c0_186 = arith.constant 0 : index
    %c0_187 = arith.constant 0 : index
    %c0_188 = arith.constant 0 : index
    %c0_189 = arith.constant 0 : index
    %121 = vector.load %arg15[%c0_186, %c0_187, %c0_188, %c0_189] : memref<1x12x8x160xf32, #tpu.memory_space<vmem>>, vector<1x12x8x160xf32>
    tpu.vector_store %arg15[%c0_186, %c0_187, %c0_188, %c0_189], %120 {strides = array<i32>} : memref<1x12x8x160xf32, #tpu.memory_space<vmem>>, vector<1x12x8x160xf32>,
    %c0_190 = arith.constant 0 : index
    %c0_191 = arith.constant 0 : index
    %c0_192 = arith.constant 0 : index
    %c0_193 = arith.constant 0 : index
    %122 = vector.load %arg8[%c0_190, %c0_191, %c0_192, %c0_193] : memref<1x4x8x32xf32, #tpu.memory_space<vmem>>, vector<1x4x4x32xf32>
    %c0_194 = arith.constant 0 : index
    %c4_195 = arith.constant 4 : index
    %c4_196 = arith.constant 4 : index
    %c0_197 = arith.constant 0 : index
    %123 = vector.load %arg15[%c0_194, %c4_195, %c4_196, %c0_197] : memref<1x12x8x160xf32, #tpu.memory_space<vmem>>, vector<1x4x4x32xf32>
    tpu.vector_store %arg15[%c0_194, %c4_195, %c4_196, %c0_197], %122 {strides = array<i32>} : memref<1x12x8x160xf32, #tpu.memory_space<vmem>>, vector<1x4x4x32xf32>,
    %c0_198 = arith.constant 0 : index
    %c0_199 = arith.constant 0 : index
    %c0_200 = arith.constant 0 : index
    %c0_201 = arith.constant 0 : index
    %124 = vector.load %arg8[%c0_198, %c0_199, %c0_200, %c0_201] : memref<1x4x8x32xf32, #tpu.memory_space<vmem>>, vector<1x4x4x32xf32>
    %c0_202 = arith.constant 0 : index
    %c4_203 = arith.constant 4 : index
    %c3_204 = arith.constant 3 : index
    %c32_205 = arith.constant 32 : index
    %125 = vector.load %arg15[%c0_202, %c4_203, %c3_204, %c32_205] : memref<1x12x8x160xf32, #tpu.memory_space<vmem>>, vector<1x4x4x32xf32>
    tpu.vector_store %arg15[%c0_202, %c4_203, %c3_204, %c32_205], %124 {strides = array<i32>} : memref<1x12x8x160xf32, #tpu.memory_space<vmem>>, vector<1x4x4x32xf32>,
    %c0_206 = arith.constant 0 : index
    %c0_207 = arith.constant 0 : index
    %c0_208 = arith.constant 0 : index
    %c0_209 = arith.constant 0 : index
    %126 = vector.load %arg8[%c0_206, %c0_207, %c0_208, %c0_209] : memref<1x4x8x32xf32, #tpu.memory_space<vmem>>, vector<1x4x4x32xf32>
    %c0_210 = arith.constant 0 : index
    %c4_211 = arith.constant 4 : index
    %c2_212 = arith.constant 2 : index
    %c64_213 = arith.constant 64 : index
    %127 = vector.load %arg15[%c0_210, %c4_211, %c2_212, %c64_213] : memref<1x12x8x160xf32, #tpu.memory_space<vmem>>, vector<1x4x4x32xf32>
    tpu.vector_store %arg15[%c0_210, %c4_211, %c2_212, %c64_213], %126 {strides = array<i32>} : memref<1x12x8x160xf32, #tpu.memory_space<vmem>>, vector<1x4x4x32xf32>,
    %c0_214 = arith.constant 0 : index
    %c0_215 = arith.constant 0 : index
    %c0_216 = arith.constant 0 : index
    %c0_217 = arith.constant 0 : index
    %128 = vector.load %arg8[%c0_214, %c0_215, %c0_216, %c0_217] : memref<1x4x8x32xf32, #tpu.memory_space<vmem>>, vector<1x4x4x32xf32>
    %c0_218 = arith.constant 0 : index
    %c4_219 = arith.constant 4 : index
    %c1_220 = arith.constant 1 : index
    %c96_221 = arith.constant 96 : index
    %129 = vector.load %arg15[%c0_218, %c4_219, %c1_220, %c96_221] : memref<1x12x8x160xf32, #tpu.memory_space<vmem>>, vector<1x4x4x32xf32>
    tpu.vector_store %arg15[%c0_218, %c4_219, %c1_220, %c96_221], %128 {strides = array<i32>} : memref<1x12x8x160xf32, #tpu.memory_space<vmem>>, vector<1x4x4x32xf32>,
    %c0_222 = arith.constant 0 : index
    %c0_223 = arith.constant 0 : index
    %c0_224 = arith.constant 0 : index
    %c0_225 = arith.constant 0 : index
    %130 = vector.load %arg8[%c0_222, %c0_223, %c0_224, %c0_225] : memref<1x4x8x32xf32, #tpu.memory_space<vmem>>, vector<1x4x4x32xf32>
    %c0_226 = arith.constant 0 : index
    %c4_227 = arith.constant 4 : index
    %c0_228 = arith.constant 0 : index
    %c128 = arith.constant 128 : index
    %131 = vector.load %arg15[%c0_226, %c4_227, %c0_228, %c128] : memref<1x12x8x160xf32, #tpu.memory_space<vmem>>, vector<1x4x4x32xf32>
    tpu.vector_store %arg15[%c0_226, %c4_227, %c0_228, %c128], %130 {strides = array<i32>} : memref<1x12x8x160xf32, #tpu.memory_space<vmem>>, vector<1x4x4x32xf32>,
    %c0_229 = arith.constant 0 : index
    %c0_230 = arith.constant 0 : index
    %c0_231 = arith.constant 0 : index
    %c0_232 = arith.constant 0 : index
    %132 = vector.load %arg15[%c0_229, %c0_230, %c0_231, %c0_232] : memref<1x12x8x160xf32, #tpu.memory_space<vmem>>, vector<1x12x8x160xf32>
    %133 = vector.shape_cast %132 : vector<1x12x8x160xf32> to vector<96x160xf32>
    %c256 = arith.constant 256 : index
    %c0_233 = arith.constant 0 : index
    %134 = vector.load %arg2[%c256, %c0_233] : memref<536x160xf32, #tpu.memory_space<vmem>>, vector<160x80xf32>
    %cst_234 = arith.constant dense<0.000000e+00> : vector<96x80xf32>
    %135 = tpu.matmul %133, %134, %cst_234 {dimension_numbers = #tpu.dot_dimension_numbers<[1], [0], [0], [1], [0, 0, 1, 1], [], []>} : vector<96x160xf32>, vector<160x80xf32>, vector<96x80xf32> -> vector<96x80xf32>
    %136 = vector.shape_cast %135 : vector<96x80xf32> to vector<1x12x8x80xf32>
    %137 = vector.extract_strided_slice %136 {offsets = [0, 0, 0, 0], sizes = [1, 8, 8, 16], strides = [1, 1, 1, 1]} : vector<1x12x8x80xf32> to vector<1x8x8x16xf32>
    %138 = vector.extract_strided_slice %136 {offsets = [0, 1, 0, 16], sizes = [1, 8, 8, 16], strides = [1, 1, 1, 1]} : vector<1x12x8x80xf32> to vector<1x8x8x16xf32>
    %139 = arith.addf %137, %138 : vector<1x8x8x16xf32>
    %140 = vector.extract_strided_slice %136 {offsets = [0, 2, 0, 32], sizes = [1, 8, 8, 16], strides = [1, 1, 1, 1]} : vector<1x12x8x80xf32> to vector<1x8x8x16xf32>
    %141 = arith.addf %139, %140 : vector<1x8x8x16xf32>
    %142 = vector.extract_strided_slice %136 {offsets = [0, 3, 0, 48], sizes = [1, 8, 8, 16], strides = [1, 1, 1, 1]} : vector<1x12x8x80xf32> to vector<1x8x8x16xf32>
    %143 = arith.addf %141, %142 : vector<1x8x8x16xf32>
    %144 = vector.extract_strided_slice %136 {offsets = [0, 4, 0, 64], sizes = [1, 8, 8, 16], strides = [1, 1, 1, 1]} : vector<1x12x8x80xf32> to vector<1x8x8x16xf32>
    %145 = arith.addf %143, %144 : vector<1x8x8x16xf32>
    %c4_235 = arith.constant 4 : index
    %c0_236 = arith.constant 0 : index
    %146 = vector.load %arg3[%c4_235, %c0_236] : memref<8x32xf32, #tpu.memory_space<vmem>>, vector<1x16xf32>
    %147 = vector.shape_cast %146 : vector<1x16xf32> to vector<16xf32>
    %148 = vector.shape_cast %147 : vector<16xf32> to vector<1x1x1x16xf32>
    %149 = vector.broadcast %148 : vector<1x1x1x16xf32> to vector<1x8x8x16xf32>
    %150 = arith.addf %145, %149 : vector<1x8x8x16xf32>
    %cst_237 = arith.constant 0.000000e+00 : f32
    %151 = vector.broadcast %cst_237 : f32 to vector<1x8x8x16xf32>
    %152 = arith.maximumf %150, %151 : vector<1x8x8x16xf32>
    %c0_238 = arith.constant 0 : index
    %c0_239 = arith.constant 0 : index
    %c0_240 = arith.constant 0 : index
    %c0_241 = arith.constant 0 : index
    %153 = vector.load %arg9[%c0_238, %c0_239, %c0_240, %c0_241] : memref<1x8x8x16xf32, #tpu.memory_space<vmem>>, vector<1x8x8x16xf32>
    tpu.vector_store %arg9[%c0_238, %c0_239, %c0_240, %c0_241], %152 {strides = array<i32>} : memref<1x8x8x16xf32, #tpu.memory_space<vmem>>, vector<1x8x8x16xf32>,
    %cst_242 = arith.constant 0.000000e+00 : f32
    %154 = vector.broadcast %cst_242 : f32 to vector<1x16x16x80xf32>
    %c0_243 = arith.constant 0 : index
    %c0_244 = arith.constant 0 : index
    %c0_245 = arith.constant 0 : index
    %c0_246 = arith.constant 0 : index
    %155 = vector.load %arg16[%c0_243, %c0_244, %c0_245, %c0_246] : memref<1x16x16x80xf32, #tpu.memory_space<vmem>>, vector<1x16x16x80xf32>
    tpu.vector_store %arg16[%c0_243, %c0_244, %c0_245, %c0_246], %154 {strides = array<i32>} : memref<1x16x16x80xf32, #tpu.memory_space<vmem>>, vector<1x16x16x80xf32>,
    %c0_247 = arith.constant 0 : index
    %c0_248 = arith.constant 0 : index
    %c0_249 = arith.constant 0 : index
    %c0_250 = arith.constant 0 : index
    %156 = vector.load %arg9[%c0_247, %c0_248, %c0_249, %c0_250] : memref<1x8x8x16xf32, #tpu.memory_space<vmem>>, vector<1x8x8x16xf32>
    %c0_251 = arith.constant 0 : index
    %c4_252 = arith.constant 4 : index
    %c4_253 = arith.constant 4 : index
    %c0_254 = arith.constant 0 : index
    %157 = vector.load %arg16[%c0_251, %c4_252, %c4_253, %c0_254] : memref<1x16x16x80xf32, #tpu.memory_space<vmem>>, vector<1x8x8x16xf32>
    tpu.vector_store %arg16[%c0_251, %c4_252, %c4_253, %c0_254], %156 {strides = array<i32>} : memref<1x16x16x80xf32, #tpu.memory_space<vmem>>, vector<1x8x8x16xf32>,
    %c0_255 = arith.constant 0 : index
    %c0_256 = arith.constant 0 : index
    %c0_257 = arith.constant 0 : index
    %c0_258 = arith.constant 0 : index
    %158 = vector.load %arg9[%c0_255, %c0_256, %c0_257, %c0_258] : memref<1x8x8x16xf32, #tpu.memory_space<vmem>>, vector<1x8x8x16xf32>
    %c0_259 = arith.constant 0 : index
    %c4_260 = arith.constant 4 : index
    %c3_261 = arith.constant 3 : index
    %c16_262 = arith.constant 16 : index
    %159 = vector.load %arg16[%c0_259, %c4_260, %c3_261, %c16_262] : memref<1x16x16x80xf32, #tpu.memory_space<vmem>>, vector<1x8x8x16xf32>
    tpu.vector_store %arg16[%c0_259, %c4_260, %c3_261, %c16_262], %158 {strides = array<i32>} : memref<1x16x16x80xf32, #tpu.memory_space<vmem>>, vector<1x8x8x16xf32>,
    %c0_263 = arith.constant 0 : index
    %c0_264 = arith.constant 0 : index
    %c0_265 = arith.constant 0 : index
    %c0_266 = arith.constant 0 : index
    %160 = vector.load %arg9[%c0_263, %c0_264, %c0_265, %c0_266] : memref<1x8x8x16xf32, #tpu.memory_space<vmem>>, vector<1x8x8x16xf32>
    %c0_267 = arith.constant 0 : index
    %c4_268 = arith.constant 4 : index
    %c2_269 = arith.constant 2 : index
    %c32_270 = arith.constant 32 : index
    %161 = vector.load %arg16[%c0_267, %c4_268, %c2_269, %c32_270] : memref<1x16x16x80xf32, #tpu.memory_space<vmem>>, vector<1x8x8x16xf32>
    tpu.vector_store %arg16[%c0_267, %c4_268, %c2_269, %c32_270], %160 {strides = array<i32>} : memref<1x16x16x80xf32, #tpu.memory_space<vmem>>, vector<1x8x8x16xf32>,
    %c0_271 = arith.constant 0 : index
    %c0_272 = arith.constant 0 : index
    %c0_273 = arith.constant 0 : index
    %c0_274 = arith.constant 0 : index
    %162 = vector.load %arg9[%c0_271, %c0_272, %c0_273, %c0_274] : memref<1x8x8x16xf32, #tpu.memory_space<vmem>>, vector<1x8x8x16xf32>
    %c0_275 = arith.constant 0 : index
    %c4_276 = arith.constant 4 : index
    %c1_277 = arith.constant 1 : index
    %c48_278 = arith.constant 48 : index
    %163 = vector.load %arg16[%c0_275, %c4_276, %c1_277, %c48_278] : memref<1x16x16x80xf32, #tpu.memory_space<vmem>>, vector<1x8x8x16xf32>
    tpu.vector_store %arg16[%c0_275, %c4_276, %c1_277, %c48_278], %162 {strides = array<i32>} : memref<1x16x16x80xf32, #tpu.memory_space<vmem>>, vector<1x8x8x16xf32>,
    %c0_279 = arith.constant 0 : index
    %c0_280 = arith.constant 0 : index
    %c0_281 = arith.constant 0 : index
    %c0_282 = arith.constant 0 : index
    %164 = vector.load %arg9[%c0_279, %c0_280, %c0_281, %c0_282] : memref<1x8x8x16xf32, #tpu.memory_space<vmem>>, vector<1x8x8x16xf32>
    %c0_283 = arith.constant 0 : index
    %c4_284 = arith.constant 4 : index
    %c0_285 = arith.constant 0 : index
    %c64_286 = arith.constant 64 : index
    %165 = vector.load %arg16[%c0_283, %c4_284, %c0_285, %c64_286] : memref<1x16x16x80xf32, #tpu.memory_space<vmem>>, vector<1x8x8x16xf32>
    tpu.vector_store %arg16[%c0_283, %c4_284, %c0_285, %c64_286], %164 {strides = array<i32>} : memref<1x16x16x80xf32, #tpu.memory_space<vmem>>, vector<1x8x8x16xf32>,
    %c0_287 = arith.constant 0 : index
    %c0_288 = arith.constant 0 : index
    %c0_289 = arith.constant 0 : index
    %c0_290 = arith.constant 0 : index
    %166 = vector.load %arg16[%c0_287, %c0_288, %c0_289, %c0_290] : memref<1x16x16x80xf32, #tpu.memory_space<vmem>>, vector<1x16x16x80xf32>
    %167 = vector.shape_cast %166 : vector<1x16x16x80xf32> to vector<256x80xf32>
    %c416 = arith.constant 416 : index
    %c0_291 = arith.constant 0 : index
    %168 = vector.load %arg2[%c416, %c0_291] : memref<536x160xf32, #tpu.memory_space<vmem>>, vector<80x40xf32>
    %cst_292 = arith.constant dense<0.000000e+00> : vector<256x40xf32>
    %169 = tpu.matmul %167, %168, %cst_292 {dimension_numbers = #tpu.dot_dimension_numbers<[1], [0], [0], [1], [0, 0, 1, 1], [], []>} : vector<256x80xf32>, vector<80x40xf32>, vector<256x40xf32> -> vector<256x40xf32>
    %170 = vector.shape_cast %169 : vector<256x40xf32> to vector<1x16x16x40xf32>
    %171 = vector.extract_strided_slice %170 {offsets = [0, 0, 0, 0], sizes = [1, 12, 16, 8], strides = [1, 1, 1, 1]} : vector<1x16x16x40xf32> to vector<1x12x16x8xf32>
    %172 = vector.extract_strided_slice %170 {offsets = [0, 1, 0, 8], sizes = [1, 12, 16, 8], strides = [1, 1, 1, 1]} : vector<1x16x16x40xf32> to vector<1x12x16x8xf32>
    %173 = arith.addf %171, %172 : vector<1x12x16x8xf32>
    %174 = vector.extract_strided_slice %170 {offsets = [0, 2, 0, 16], sizes = [1, 12, 16, 8], strides = [1, 1, 1, 1]} : vector<1x16x16x40xf32> to vector<1x12x16x8xf32>
    %175 = arith.addf %173, %174 : vector<1x12x16x8xf32>
    %176 = vector.extract_strided_slice %170 {offsets = [0, 3, 0, 24], sizes = [1, 12, 16, 8], strides = [1, 1, 1, 1]} : vector<1x16x16x40xf32> to vector<1x12x16x8xf32>
    %177 = arith.addf %175, %176 : vector<1x12x16x8xf32>
    %178 = vector.extract_strided_slice %170 {offsets = [0, 4, 0, 32], sizes = [1, 12, 16, 8], strides = [1, 1, 1, 1]} : vector<1x16x16x40xf32> to vector<1x12x16x8xf32>
    %179 = arith.addf %177, %178 : vector<1x12x16x8xf32>
    %c5 = arith.constant 5 : index
    %c0_293 = arith.constant 0 : index
    %180 = vector.load %arg3[%c5, %c0_293] : memref<8x32xf32, #tpu.memory_space<vmem>>, vector<1x8xf32>
    %181 = vector.shape_cast %180 : vector<1x8xf32> to vector<8xf32>
    %182 = vector.shape_cast %181 : vector<8xf32> to vector<1x1x1x8xf32>
    %183 = vector.broadcast %182 : vector<1x1x1x8xf32> to vector<1x12x16x8xf32>
    %184 = arith.addf %179, %183 : vector<1x12x16x8xf32>
    %cst_294 = arith.constant 0.000000e+00 : f32
    %185 = vector.broadcast %cst_294 : f32 to vector<1x12x16x8xf32>
    %186 = arith.maximumf %184, %185 : vector<1x12x16x8xf32>
    %c0_295 = arith.constant 0 : index
    %c0_296 = arith.constant 0 : index
    %c0_297 = arith.constant 0 : index
    %c0_298 = arith.constant 0 : index
    %187 = vector.load %arg10[%c0_295, %c0_296, %c0_297, %c0_298] : memref<1x12x16x8xf32, #tpu.memory_space<vmem>>, vector<1x12x16x8xf32>
    tpu.vector_store %arg10[%c0_295, %c0_296, %c0_297, %c0_298], %186 {strides = array<i32>} : memref<1x12x16x8xf32, #tpu.memory_space<vmem>>, vector<1x12x16x8xf32>,
    %c0_299 = arith.constant 0 : index
    %c0_300 = arith.constant 0 : index
    %c0_301 = arith.constant 0 : index
    %c0_302 = arith.constant 0 : index
    %188 = vector.load %arg10[%c0_299, %c0_300, %c0_301, %c0_302] : memref<1x12x16x8xf32, #tpu.memory_space<vmem>>, vector<1x12x8x8xf32>
    %c0_303 = arith.constant 0 : index
    %c0_304 = arith.constant 0 : index
    %c0_305 = arith.constant 0 : index
    %c0_306 = arith.constant 0 : index
    %189 = vector.load %arg17[%c0_303, %c0_304, %c0_305, %c0_306] : memref<1x12x8x40xf32, #tpu.memory_space<vmem>>, vector<1x12x8x8xf32>
    tpu.vector_store %arg17[%c0_303, %c0_304, %c0_305, %c0_306], %188 {strides = array<i32>} : memref<1x12x8x40xf32, #tpu.memory_space<vmem>>, vector<1x12x8x8xf32>,
    %c0_307 = arith.constant 0 : index
    %c0_308 = arith.constant 0 : index
    %c1_309 = arith.constant 1 : index
    %c0_310 = arith.constant 0 : index
    %190 = vector.load %arg10[%c0_307, %c0_308, %c1_309, %c0_310] : memref<1x12x16x8xf32, #tpu.memory_space<vmem>>, vector<1x12x8x8xf32>
    %c0_311 = arith.constant 0 : index
    %c0_312 = arith.constant 0 : index
    %c0_313 = arith.constant 0 : index
    %c8_314 = arith.constant 8 : index
    %191 = vector.load %arg17[%c0_311, %c0_312, %c0_313, %c8_314] : memref<1x12x8x40xf32, #tpu.memory_space<vmem>>, vector<1x12x8x8xf32>
    tpu.vector_store %arg17[%c0_311, %c0_312, %c0_313, %c8_314], %190 {strides = array<i32>} : memref<1x12x8x40xf32, #tpu.memory_space<vmem>>, vector<1x12x8x8xf32>,
    %c0_315 = arith.constant 0 : index
    %c0_316 = arith.constant 0 : index
    %c2_317 = arith.constant 2 : index
    %c0_318 = arith.constant 0 : index
    %192 = vector.load %arg10[%c0_315, %c0_316, %c2_317, %c0_318] : memref<1x12x16x8xf32, #tpu.memory_space<vmem>>, vector<1x12x8x8xf32>
    %c0_319 = arith.constant 0 : index
    %c0_320 = arith.constant 0 : index
    %c0_321 = arith.constant 0 : index
    %c16_322 = arith.constant 16 : index
    %193 = vector.load %arg17[%c0_319, %c0_320, %c0_321, %c16_322] : memref<1x12x8x40xf32, #tpu.memory_space<vmem>>, vector<1x12x8x8xf32>
    tpu.vector_store %arg17[%c0_319, %c0_320, %c0_321, %c16_322], %192 {strides = array<i32>} : memref<1x12x8x40xf32, #tpu.memory_space<vmem>>, vector<1x12x8x8xf32>,
    %c0_323 = arith.constant 0 : index
    %c0_324 = arith.constant 0 : index
    %c3_325 = arith.constant 3 : index
    %c0_326 = arith.constant 0 : index
    %194 = vector.load %arg10[%c0_323, %c0_324, %c3_325, %c0_326] : memref<1x12x16x8xf32, #tpu.memory_space<vmem>>, vector<1x12x8x8xf32>
    %c0_327 = arith.constant 0 : index
    %c0_328 = arith.constant 0 : index
    %c0_329 = arith.constant 0 : index
    %c24_330 = arith.constant 24 : index
    %195 = vector.load %arg17[%c0_327, %c0_328, %c0_329, %c24_330] : memref<1x12x8x40xf32, #tpu.memory_space<vmem>>, vector<1x12x8x8xf32>
    tpu.vector_store %arg17[%c0_327, %c0_328, %c0_329, %c24_330], %194 {strides = array<i32>} : memref<1x12x8x40xf32, #tpu.memory_space<vmem>>, vector<1x12x8x8xf32>,
    %c0_331 = arith.constant 0 : index
    %c0_332 = arith.constant 0 : index
    %c4_333 = arith.constant 4 : index
    %c0_334 = arith.constant 0 : index
    %196 = vector.load %arg10[%c0_331, %c0_332, %c4_333, %c0_334] : memref<1x12x16x8xf32, #tpu.memory_space<vmem>>, vector<1x12x8x8xf32>
    %c0_335 = arith.constant 0 : index
    %c0_336 = arith.constant 0 : index
    %c0_337 = arith.constant 0 : index
    %c32_338 = arith.constant 32 : index
    %197 = vector.load %arg17[%c0_335, %c0_336, %c0_337, %c32_338] : memref<1x12x8x40xf32, #tpu.memory_space<vmem>>, vector<1x12x8x8xf32>
    tpu.vector_store %arg17[%c0_335, %c0_336, %c0_337, %c32_338], %196 {strides = array<i32>} : memref<1x12x8x40xf32, #tpu.memory_space<vmem>>, vector<1x12x8x8xf32>,
    %c0_339 = arith.constant 0 : index
    %c0_340 = arith.constant 0 : index
    %c0_341 = arith.constant 0 : index
    %c0_342 = arith.constant 0 : index
    %198 = vector.load %arg17[%c0_339, %c0_340, %c0_341, %c0_342] : memref<1x12x8x40xf32, #tpu.memory_space<vmem>>, vector<1x12x8x40xf32>
    %199 = vector.shape_cast %198 : vector<1x12x8x40xf32> to vector<96x40xf32>
    %c496 = arith.constant 496 : index
    %c0_343 = arith.constant 0 : index
    %200 = vector.load %arg2[%c496, %c0_343] : memref<536x160xf32, #tpu.memory_space<vmem>>, vector<40x15xf32>
    %cst_344 = arith.constant dense<0.000000e+00> : vector<96x15xf32>
    %201 = tpu.matmul %199, %200, %cst_344 {dimension_numbers = #tpu.dot_dimension_numbers<[1], [0], [0], [1], [0, 0, 1, 1], [], []>} : vector<96x40xf32>, vector<40x15xf32>, vector<96x15xf32> -> vector<96x15xf32>
    %202 = vector.shape_cast %201 : vector<96x15xf32> to vector<1x12x8x15xf32>
    %203 = vector.extract_strided_slice %202 {offsets = [0, 0, 0, 0], sizes = [1, 8, 8, 3], strides = [1, 1, 1, 1]} : vector<1x12x8x15xf32> to vector<1x8x8x3xf32>
    %204 = vector.extract_strided_slice %202 {offsets = [0, 1, 0, 3], sizes = [1, 8, 8, 3], strides = [1, 1, 1, 1]} : vector<1x12x8x15xf32> to vector<1x8x8x3xf32>
    %205 = arith.addf %203, %204 : vector<1x8x8x3xf32>
    %206 = vector.extract_strided_slice %202 {offsets = [0, 2, 0, 6], sizes = [1, 8, 8, 3], strides = [1, 1, 1, 1]} : vector<1x12x8x15xf32> to vector<1x8x8x3xf32>
    %207 = arith.addf %205, %206 : vector<1x8x8x3xf32>
    %208 = vector.extract_strided_slice %202 {offsets = [0, 3, 0, 9], sizes = [1, 8, 8, 3], strides = [1, 1, 1, 1]} : vector<1x12x8x15xf32> to vector<1x8x8x3xf32>
    %209 = arith.addf %207, %208 : vector<1x8x8x3xf32>
    %210 = vector.extract_strided_slice %202 {offsets = [0, 4, 0, 12], sizes = [1, 8, 8, 3], strides = [1, 1, 1, 1]} : vector<1x12x8x15xf32> to vector<1x8x8x3xf32>
    %211 = arith.addf %209, %210 : vector<1x8x8x3xf32>
    %c6 = arith.constant 6 : index
    %c0_345 = arith.constant 0 : index
    %212 = vector.load %arg3[%c6, %c0_345] : memref<8x32xf32, #tpu.memory_space<vmem>>, vector<1x3xf32>
    %213 = vector.shape_cast %212 : vector<1x3xf32> to vector<3xf32>
    %214 = vector.shape_cast %213 : vector<3xf32> to vector<1x1x1x3xf32>
    %215 = vector.broadcast %214 : vector<1x1x1x3xf32> to vector<1x8x8x3xf32>
    %216 = arith.addf %211, %215 : vector<1x8x8x3xf32>
    %cst_346 = arith.constant 0.000000e+00 : f32
    %217 = vector.broadcast %cst_346 : f32 to vector<1x8x8x3xf32>
    %218 = arith.maximumf %216, %217 : vector<1x8x8x3xf32>
    %c0_347 = arith.constant 0 : index
    %c0_348 = arith.constant 0 : index
    %c0_349 = arith.constant 0 : index
    %c0_350 = arith.constant 0 : index
    %219 = vector.load %arg4[%c0_347, %c0_348, %c0_349, %c0_350] : memref<1x8x8x3xf32, #tpu.memory_space<vmem>>, vector<1x8x8x3xf32>
    tpu.vector_store %arg4[%c0_347, %c0_348, %c0_349, %c0_350], %218 {strides = array<i32>} : memref<1x8x8x3xf32, #tpu.memory_space<vmem>>, vector<1x8x8x3xf32>,
    return
  }
  func.func @transform_0(%arg0: i32) -> (i32, i32, i32, i32) {
    %c0_i32 = arith.constant 0 : i32
    %c0_i32_0 = arith.constant 0 : i32
    %c0_i32_1 = arith.constant 0 : i32
    %c0_i32_2 = arith.constant 0 : i32
    return %arg0, %c0_i32, %c0_i32_0, %c0_i32_1 : i32, i32, i32, i32
  }
  func.func @transform_1(%arg0: i32) -> (i32, i32) {
    %c0_i32 = arith.constant 0 : i32
    %c0_i32_0 = arith.constant 0 : i32
    %c0_i32_1 = arith.constant 0 : i32
    return %c0_i32, %c0_i32_0 : i32, i32
  }
  func.func @transform_2(%arg0: i32) -> (i32, i32) {
    %c0_i32 = arith.constant 0 : i32
    %c0_i32_0 = arith.constant 0 : i32
    %c0_i32_1 = arith.constant 0 : i32
    return %c0_i32, %c0_i32_0 : i32, i32
  }
  func.func @transform_3(%arg0: i32) -> (i32, i32, i32, i32) {
    %c0_i32 = arith.constant 0 : i32
    %c0_i32_0 = arith.constant 0 : i32
    %c0_i32_1 = arith.constant 0 : i32
    %c0_i32_2 = arith.constant 0 : i32
    return %arg0, %c0_i32, %c0_i32_0, %c0_i32_1 : i32, i32, i32, i32
  }
}

</mosaic_0001>

<bundles_post_ra>
// kernel: forward_pallas.1
= control target key start
LH: loop header
LB: loop body
LE: loop exit
PB: predicated region body
PF: predicated region fallthrough
CT: control target
= control target key end

     0   :  { %s7372_s12 = smov 0   ;;  %s10297_s0 = inlined_call_operand.vmem [shape: f32[2,18,18,32], index: 0, kind: input, shape index: {}]   ;;  %s10298_s1 = inlined_call_operand.vmem [shape: f32[536,160], index: 1, kind: input, shape index: {}]   ;;  %s10299_s2 = inlined_call_operand.vmem [shape: f32[8,32], index: 2, kind: input, shape index: {}]   ;;  %s10300_s3 = inlined_call_operand.vmem [shape: f32[2,8,8,3], index: 3, kind: output, shape index: {}]  }
   0x1 LB: > { %s6599_s13 = sadd.s32 4294967295, %s7333_s12   ;;  %p6603_p0 = scmp.ge.s32.totalorder %s7333_s12, 1  ;;  %s7333_s12 = sphi %s7372_s12, %s13_s12  }
   0x2   : > { %p137_p1 = scmp.lt.s32.totalorder %s7333_s12, 3 }
   0x4   : > { %p138_p2 = pnand %p6603_p0, %p137_p1 }
   0x5   : > { %p161_p3 = scmp.lt.s32.totalorder (!%p138_p2), %s6599_s13, 1  ;;  %v714_v0 = vld [vmem:[%s10298_s1] sm:$0xff] (!%p138_p2)  ;;  %v715_v1 = vld [vmem:[%s10298_s1 + $0x10] sm:$0xff] (!%p138_p2)  ;;  %s7335_s7 = smov (!%p138_p2), 32   ;;  %vm207_vm0 = vcmask (!%p138_p2), 261120   ;;  %vm424_vm1 = vcmask (!%p138_p2), 523520  }
   0x6   : > { %141 = sbr.rel (%p138_p2) target bundleno = 3708 (0xe7c), region = 32  ;;  %v716_v2 = vld [vmem:[%s10298_s1 + $0x20] sm:$0xff] (!%p138_p2)  ;;  %v7182_v3 = vpack.c.bf16 (!%p138_p2), %v715_v1, %v714_v0  ;;  %v717_v4 = vld [vmem:[%s10298_s1 + $0x30] sm:$0xff] (!%p138_p2)  ;;  %s7336_s8 = smov (!%p138_p2), 64   ;;  %vm641_vm2 = vcmask (!%p138_p2), 785920   ;;  %vm726_vm3 = vcmask (!%p138_p2), 785408  }
   0x7   : > { %v7186_v5 = vpack.c.bf16 (!%p138_p2), %v717_v4, %v716_v2  ;;  %v718_v6 = vld [vmem:[%s10298_s1 + $0x40] sm:$0xff] (!%p138_p2)  ;;  %v719_v7 = vld [vmem:[%s10298_s1 + $0x50] sm:$0xff] (!%p138_p2)  ;;  %s7337_s19 = smov (!%p138_p2), 120   ;;  %s7338_s20 = smov (!%p138_p2), 112   ;;  %vm1439_vm4 = vcmask (!%p138_p2), 64512   ;;  %vm1505_vm5 = vcmask (!%p138_p2), 60416  }
   0x8   : > { %7183 = vmatprep.subr.bf16.mxu0 (!%p138_p2), %v7182_v3  ;;  %v7190_v8 = vpack.c.bf16 (!%p138_p2), %v719_v7, %v718_v6  ;;  %v720_v9 = vld [vmem:[%s10298_s1 + $0x60] sm:$0xff] (!%p138_p2)  ;;  %v721_v12 = vld [vmem:[%s10298_s1 + $0x70] sm:$0xff] (!%p138_p2)  ;;  %s7339_s23 = smov (!%p138_p2), 8   ;;  %s7340_s28 = smov (!%p138_p2), 16   ;;  %vm1699_vm6 = vcmask (!%p138_p2), 126016   ;;  %vm1893_vm7 = vcmask (!%p138_p2), 191616  }
   0x9   : > { %7185 = vmatpush3.bf16.msra.mxu0 (!%p138_p2), %v7182_v3  ;;  %v7194_v15 = vpack.c.bf16 (!%p138_p2), %v721_v12, %v720_v9  ;;  %v722_v16 = vld [vmem:[%s10298_s1 + $0x80] sm:$0xff] (!%p138_p2)  ;;  %v723_v17 = vld [vmem:[%s10298_s1 + $0x90] sm:$0xff] (!%p138_p2)  ;;  %s7341_s6 = smov (!%p138_p2), 24   ;;  %vm1697_vm8 = vcmask (!%p138_p2), 130112   ;;  %vm2087_vm9 = vcmask (!%p138_p2), 257216   ;;  %vm1891_vm10 = vcmask (!%p138_p2), 195712  }
   0xa   : > { %7187 = vmatprep.subr.bf16.mxu0 (!%p138_p2), %v7186_v5  ;;  %v7198_v20 = vpack.c.bf16 (!%p138_p2), %v723_v17, %v722_v16  ;;  %v724_v21 = vld [vmem:[%s10298_s1 + $0xa0] sm:$0xff] (!%p138_p2)  ;;  %v725_v22 = vld [vmem:[%s10298_s1 + $0xb0] sm:$0xff] (!%p138_p2)  ;;  %vm2281_vm11 = vcmask (!%p138_p2), 322816   ;;  %vm2085_vm12 = vcmask (!%p138_p2), 261312   ;;  %vm2279_vm13 = vcmask (!%p138_p2), 326912   ;;  %s7342_s11 = smov (!%p138_p2), 104  }
   0xb   : > { %v7202_v25 = vpack.c.bf16 (!%p138_p2), %v725_v22, %v724_v21  ;;  %vm2350_vm14 = vcmask (!%p138_p2), 326656   ;;  %s7343_s14 = smov (!%p138_p2), 96   ;;  %s7344_s4 = smov (!%p138_p2), 80   ;;  %vm3813_vm15 = vcmask (!%p138_p2), 130048  }
   0xc   : > { %s7346_s27 = smov (!%p138_p2), 48  }
   0xd   : > { %s10302_s13 = smov (!%p161_p3, %s6599_s13), 1  ;;  %7189 = vmatpush3.bf16.msra.mxu0 %v7186_v5 }
   0xe   : > { %s7300_s26 = smul.u32 432, %s10302_s13  ;;  %7191 = vmatprep.subr.bf16.mxu0 %v7190_v8  ;;  %s6760_s30 = sshll.u32 %s10302_s13, 6 }
   0xf   : > { %s10264_s10 = scalar_lea.vmem %s10300_s3, %s6760_s30 }
  0x10   : > { %s7404_s29 = scalar_lea.vmem %s10297_s0, %s7300_s26 }
  0x11   : > { %v244_v10 = vld [vmem:[%s7404_s29 + $0x1] sm:$0xff]  ;;  %v245_v13 = vld [vmem:[%s7404_s29 + $0x9] sm:$0xff]  ;;  %v246_v18 = vld [vmem:[%s7404_s29 + $0x19] sm:$0xff]  ;;  %7193 = vmatpush3.bf16.msra.mxu0 %v7190_v8 }
  0x12   : > { %v461_v11 = vld [vmem:[%s7404_s29 + $0x2] sm:$0xff]  ;;  %316 = vrot.lane.b32.xlu0 %v244_v10, %s7335_s7  ;;  %v462_v14 = vld [vmem:[%s7404_s29 + $0xa] sm:$0xff]  ;;  %7195 = vmatprep.subr.bf16.mxu0 %v7194_v15  ;;  %v463_v23 = vld [vmem:[%s7404_s29 + $0x1a] sm:$0xff] }
  0x13   : > { %533 = vrot.lane.b32.xlu1 %v461_v11, %s7336_s8  ;;  %v247_v19 = vld [vmem:[%s7404_s29 + $0x21] sm:$0xff]  ;;  %v248_v26 = vld [vmem:[%s7404_s29 + $0x31] sm:$0xff]  ;;  %v249_v27 = vld [vmem:[%s7404_s29 + $0x39] sm:$0xff] }
  0x14   : > { %v464_v24 = vld [vmem:[%s7404_s29 + $0x22] sm:$0xff]  ;;  %v465_v28 = vld [vmem:[%s7404_s29 + $0x32] sm:$0xff]  ;;  %v466_v29 = vld [vmem:[%s7404_s29 + $0x3a] sm:$0xff] }
  0x15   : > { %7197 = vmatpush3.bf16.msra.mxu0 %v7194_v15  ;;  %v171_v30 = vld [vmem:[%s7404_s29] sm:$0xff]  ;;  %v250_v31 = vld [vmem:[%s7404_s29 + $0x49] sm:$0xff]  ;;  %v251_v32 = vld [vmem:[%s7404_s29 + $0x51] sm:$0xff] }
  0x16   : > { %318 = vrot.lane.b32.xlu0 %v245_v13, %s7335_s7  ;;  %7199 = vmatprep.subr.bf16.mxu0 %v7198_v20  ;;  %208 = vst.msk [vmem:[#allocation8] sm:$0xff] %vm207_vm0, %v171_v30  ;;  %v172_v33 = vld [vmem:[%s7404_s29 + $0x8] sm:$0xff]  ;;  %v173_v34 = vld [vmem:[%s7404_s29 + $0x18] sm:$0xff]  ;;  %v174_v35 = vld [vmem:[%s7404_s29 + $0x20] sm:$0xff] }
  0x17   : > { %535 = vrot.lane.b32.xlu1 %v462_v14, %s7336_s8  ;;  %209 = vst.msk [vmem:[#allocation8 + $0x8] sm:$0xff] %vm207_vm0, %v172_v33  ;;  %210 = vst.msk [vmem:[#allocation8 + $0x10] sm:$0xff] %vm207_vm0, %v173_v34  ;;  %v175_v36 = vld [vmem:[%s7404_s29 + $0x30] sm:$0xff]  ;;  %v176_v39 = vld [vmem:[%s7404_s29 + $0x38] sm:$0xff] }
  0x18   : > { %211 = vst.msk [vmem:[#allocation8 + $0x18] sm:$0xff] %vm207_vm0, %v174_v35  ;;  %v467_v37 = vld [vmem:[%s7404_s29 + $0x4a] sm:$0xff]  ;;  %v468_v38 = vld [vmem:[%s7404_s29 + $0x52] sm:$0xff]  ;;  %212 = vst.msk [vmem:[#allocation8 + $0x20] sm:$0xff] %vm207_vm0, %v175_v36 }
  0x19   : > { %7201 = vmatpush3.bf16.msra.mxu0 %v7198_v20  ;;  %213 = vst.msk [vmem:[#allocation8 + $0x28] sm:$0xff] %vm207_vm0, %v176_v39  ;;  %v177_v40 = vld [vmem:[%s7404_s29 + $0x48] sm:$0xff]  ;;  %v178_v42 = vld [vmem:[%s7404_s29 + $0x50] sm:$0xff]  ;;  %v179_v43 = vld [vmem:[%s7404_s29 + $0x60] sm:$0xff] }
  0x1a   : > { %320 = vrot.lane.b32.xlu0 %v246_v18, %s7335_s7  ;;  %7203 = vmatprep.subr.bf16.mxu0 %v7202_v25  ;;  %v252_v41 = vld [vmem:[%s7404_s29 + $0x61] sm:$0xff]  ;;  %214 = vst.msk [vmem:[#allocation8 + $0x30] sm:$0xff] %vm207_vm0, %v177_v40  ;;  %215 = vst.msk [vmem:[#allocation8 + $0x38] sm:$0xff] %vm207_vm0, %v178_v42  ;;  %v253_v45 = vld [vmem:[%s7404_s29 + $0x69] sm:$0xff] }
  0x1b   : > { %322 = vrot.lane.b32.xlu1 %v247_v19, %s7335_s7  ;;  %v180_v44 = vld [vmem:[%s7404_s29 + $0x68] sm:$0xff]  ;;  %216 = vst.msk [vmem:[#allocation8 + $0x40] sm:$0xff] %vm207_vm0, %v179_v43  ;;  %v181_v46 = vld [vmem:[%s7404_s29 + $0x78] sm:$0xff]  ;;  %v182_v47 = vld [vmem:[%s7404_s29 + $0x80] sm:$0xff] }
  0x1c   : > { %217 = vst.msk [vmem:[#allocation8 + $0x48] sm:$0xff] %vm207_vm0, %v180_v44  ;;  %218 = vst.msk [vmem:[#allocation8 + $0x50] sm:$0xff] %vm207_vm0, %v181_v46  ;;  %v469_v48 = vld [vmem:[%s7404_s29 + $0x62] sm:$0xff]  ;;  %v470_v49 = vld [vmem:[%s7404_s29 + $0x6a] sm:$0xff] }
  0x1d   : > { %7205 = vmatpush3.bf16.msra.mxu0 %v7202_v25  ;;  %219 = vst.msk [vmem:[#allocation8 + $0x58] sm:$0xff] %vm207_vm0, %v182_v47  ;;  %v183_v50 = vld [vmem:[%s7404_s29 + $0x90] sm:$0xff]  ;;  %v184_v51 = vld [vmem:[%s7404_s29 + $0x98] sm:$0xff]  ;;  %v255_v53 = vld [vmem:[%s7404_s29 + $0x81] sm:$0xff] }
  0x1e   : > { %537 = vrot.lane.b32.xlu0 %v463_v23, %s7336_s8  ;;  %220 = vst.msk [vmem:[#allocation8 + $0x60] sm:$0xff] %vm207_vm0, %v183_v50  ;;  %221 = vst.msk [vmem:[#allocation8 + $0x68] sm:$0xff] %vm207_vm0, %v184_v51  ;;  %v254_v52 = vld [vmem:[%s7404_s29 + $0x79] sm:$0xff]  ;;  %v472_v55 = vld [vmem:[%s7404_s29 + $0x82] sm:$0xff] }
  0x1f   : > { %539 = vrot.lane.b32.xlu1 %v464_v24, %s7336_s8  ;;  %v471_v54 = vld [vmem:[%s7404_s29 + $0x7a] sm:$0xff]  ;;  %v185_v56 = vld [vmem:[%s7404_s29 + $0xa8] sm:$0xff]  ;;  %v186_v57 = vld [vmem:[%s7404_s29 + $0xb0] sm:$0xff] }
  0x20   : > { %222 = vst.msk [vmem:[#allocation8 + $0x70] sm:$0xff] %vm207_vm0, %v185_v56  ;;  %223 = vst.msk [vmem:[#allocation8 + $0x78] sm:$0xff] %vm207_vm0, %v186_v57  ;;  %v256_v58 = vld [vmem:[%s7404_s29 + $0x91] sm:$0xff]  ;;  %v257_v59 = vld [vmem:[%s7404_s29 + $0x99] sm:$0xff] }
  0x21   : > { %v473_v60 = vld [vmem:[%s7404_s29 + $0x92] sm:$0xff]  ;;  %v474_v61 = vld [vmem:[%s7404_s29 + $0x9a] sm:$0xff]  ;;  %v188_v63 = vld [vmem:[%s7404_s29 + $0xc8] sm:$0xff] }
  0x22   : > { %324 = vrot.lane.b32.xlu0 %v248_v26, %s7335_s7  ;;  %v187_v62 = vld [vmem:[%s7404_s29 + $0xc0] sm:$0xff]  ;;  %225 = vst.msk [vmem:[#allocation8 + $0x88] sm:$0xff] %vm207_vm0, %v188_v63  ;;  %v258_v0 = vld [vmem:[%s7404_s29 + $0xa9] sm:$0xff]  ;;  %v259_v1 = vld [vmem:[%s7404_s29 + $0xb1] sm:$0xff] }
  0x23   : > { %326 = vrot.lane.b32.xlu1 %v249_v27, %s7335_s7  ;;  %224 = vst.msk [vmem:[#allocation8 + $0x80] sm:$0xff] %vm207_vm0, %v187_v62  ;;  %v475_v2 = vld [vmem:[%s7404_s29 + $0xaa] sm:$0xff]  ;;  %v476_v3 = vld [vmem:[%s7404_s29 + $0xb2] sm:$0xff]  ;;  %v190_v5 = vld [vmem:[%s7404_s29 + $0xe0] sm:$0xff] }
  0x24   : > { %v189_v4 = vld [vmem:[%s7404_s29 + $0xd8] sm:$0xff]  ;;  %227 = vst.msk [vmem:[#allocation8 + $0x98] sm:$0xff] %vm207_vm0, %v190_v5  ;;  %v260_v6 = vld [vmem:[%s7404_s29 + $0xc1] sm:$0xff]  ;;  %v261_v7 = vld [vmem:[%s7404_s29 + $0xc9] sm:$0xff] }
  0x25   : > { %226 = vst.msk [vmem:[#allocation8 + $0x90] sm:$0xff] %vm207_vm0, %v189_v4  ;;  %v477_v8 = vld [vmem:[%s7404_s29 + $0xc2] sm:$0xff]  ;;  %v478_v9 = vld [vmem:[%s7404_s29 + $0xca] sm:$0xff]  ;;  %v192_v11 = vld [vmem:[%s7404_s29 + $0xf8] sm:$0xff] }
  0x26   : > { %541 = vrot.lane.b32.xlu0 %v465_v28, %s7336_s8  ;;  %v191_v10 = vld [vmem:[%s7404_s29 + $0xf0] sm:$0xff]  ;;  %229 = vst.msk [vmem:[#allocation8 + $0xa8] sm:$0xff] %vm207_vm0, %v192_v11  ;;  %v262_v12 = vld [vmem:[%s7404_s29 + $0xd9] sm:$0xff]  ;;  %v263_v13 = vld [vmem:[%s7404_s29 + $0xe1] sm:$0xff] }
  0x27   : > { %543 = vrot.lane.b32.xlu1 %v466_v29, %s7336_s8  ;;  %228 = vst.msk [vmem:[#allocation8 + $0xa0] sm:$0xff] %vm207_vm0, %v191_v10  ;;  %v479_v14 = vld [vmem:[%s7404_s29 + $0xda] sm:$0xff]  ;;  %v480_v15 = vld [vmem:[%s7404_s29 + $0xe2] sm:$0xff]  ;;  %v194_v17 = vld [vmem:[%s7404_s29 + $0x110] sm:$0xff] }
  0x28   : > { %v193_v16 = vld [vmem:[%s7404_s29 + $0x108] sm:$0xff]  ;;  %231 = vst.msk [vmem:[#allocation8 + $0xb8] sm:$0xff] %vm207_vm0, %v194_v17  ;;  %v264_v18 = vld [vmem:[%s7404_s29 + $0xf1] sm:$0xff]  ;;  %v265_v19 = vld [vmem:[%s7404_s29 + $0xf9] sm:$0xff] }
  0x29   : > { %230 = vst.msk [vmem:[#allocation8 + $0xb0] sm:$0xff] %vm207_vm0, %v193_v16  ;;  %v481_v20 = vld [vmem:[%s7404_s29 + $0xf2] sm:$0xff]  ;;  %v482_v21 = vld [vmem:[%s7404_s29 + $0xfa] sm:$0xff]  ;;  %v196_v23 = vld [vmem:[%s7404_s29 + $0x128] sm:$0xff] }
  0x2a   : > { %328 = vrot.lane.b32.xlu0 %v250_v31, %s7335_s7  ;;  %v195_v22 = vld [vmem:[%s7404_s29 + $0x120] sm:$0xff]  ;;  %233 = vst.msk [vmem:[#allocation8 + $0xc8] sm:$0xff] %vm207_vm0, %v196_v23  ;;  %v266_v24 = vld [vmem:[%s7404_s29 + $0x109] sm:$0xff]  ;;  %v267_v25 = vld [vmem:[%s7404_s29 + $0x111] sm:$0xff] }
  0x2b   : > { %330 = vrot.lane.b32.xlu1 %v251_v32, %s7335_s7  ;;  %232 = vst.msk [vmem:[#allocation8 + $0xc0] sm:$0xff] %vm207_vm0, %v195_v22  ;;  %v483_v26 = vld [vmem:[%s7404_s29 + $0x10a] sm:$0xff]  ;;  %v484_v27 = vld [vmem:[%s7404_s29 + $0x112] sm:$0xff]  ;;  %v198_v29 = vld [vmem:[%s7404_s29 + $0x140] sm:$0xff] }
  0x2c   : > { %v197_v28 = vld [vmem:[%s7404_s29 + $0x138] sm:$0xff]  ;;  %235 = vst.msk [vmem:[#allocation8 + $0xd8] sm:$0xff] %vm207_vm0, %v198_v29  ;;  %v268_v30 = vld [vmem:[%s7404_s29 + $0x121] sm:$0xff]  ;;  %v269_v31 = vld [vmem:[%s7404_s29 + $0x129] sm:$0xff] }
  0x2d   : > { %234 = vst.msk [vmem:[#allocation8 + $0xd0] sm:$0xff] %vm207_vm0, %v197_v28  ;;  %v485_v32 = vld [vmem:[%s7404_s29 + $0x122] sm:$0xff]  ;;  %v486_v33 = vld [vmem:[%s7404_s29 + $0x12a] sm:$0xff]  ;;  %v200_v35 = vld [vmem:[%s7404_s29 + $0x158] sm:$0xff] }
  0x2e   : > { %545 = vrot.lane.b32.xlu0 %v467_v37, %s7336_s8  ;;  %v199_v34 = vld [vmem:[%s7404_s29 + $0x150] sm:$0xff]  ;;  %237 = vst.msk [vmem:[#allocation8 + $0xe8] sm:$0xff] %vm207_vm0, %v200_v35  ;;  %v270_v36 = vld [vmem:[%s7404_s29 + $0x139] sm:$0xff]  ;;  %v271_v37 = vld [vmem:[%s7404_s29 + $0x141] sm:$0xff] }
  0x2f   : > { %547 = vrot.lane.b32.xlu1 %v468_v38, %s7336_s8  ;;  %236 = vst.msk [vmem:[#allocation8 + $0xe0] sm:$0xff] %vm207_vm0, %v199_v34  ;;  %v487_v38 = vld [vmem:[%s7404_s29 + $0x13a] sm:$0xff]  ;;  %v488_v39 = vld [vmem:[%s7404_s29 + $0x142] sm:$0xff]  ;;  %v272_v42 = vld [vmem:[%s7404_s29 + $0x151] sm:$0xff] }
  0x30   : > { %v201_v40 = vld [vmem:[%s7404_s29 + $0x168] sm:$0xff]  ;;  %v273_v43 = vld [vmem:[%s7404_s29 + $0x159] sm:$0xff]  ;;  %v275_v51 = vld [vmem:[%s7404_s29 + $0x171] sm:$0xff] }
  0x31   : > { %238 = vst.msk [vmem:[#allocation8 + $0xf0] sm:$0xff] %vm207_vm0, %v201_v40  ;;  %v489_v44 = vld [vmem:[%s7404_s29 + $0x152] sm:$0xff]  ;;  %v274_v50 = vld [vmem:[%s7404_s29 + $0x169] sm:$0xff]  ;;  %v279_v11 = vld [vmem:[%s7404_s29 + $0x1a1] sm:$0xff] }
  0x32   : > { %332 = vrot.lane.b32.xlu0 %v252_v41, %s7335_s7  ;;  %v202_v41 = vld [vmem:[%s7404_s29 + $0x170] sm:$0xff] }
  0x33   : > { %334 = vrot.lane.b32.xlu1 %v253_v45, %s7335_s7  ;;  %239 = vst.msk [vmem:[#allocation8 + $0xf8] sm:$0xff] %vm207_vm0, %v202_v41  ;;  %v490_v45 = vld [vmem:[%s7404_s29 + $0x15a] sm:$0xff]  ;;  %v492_v57 = vld [vmem:[%s7404_s29 + $0x172] sm:$0xff]  ;;  %v494_v5 = vld [vmem:[%s7404_s29 + $0x18a] sm:$0xff] }
  0x36   : > { %549 = vrot.lane.b32.xlu0 %v469_v48, %s7336_s8  ;;  %v203_v48 = vld [vmem:[%s7404_s29 + $0x180] sm:$0xff] }
  0x37   : > { %551 = vrot.lane.b32.xlu1 %v470_v49, %s7336_s8  ;;  %240 = vst.msk [vmem:[#allocation8 + $0x100] sm:$0xff] %vm207_vm0, %v203_v48  ;;  %v204_v49 = vld [vmem:[%s7404_s29 + $0x188] sm:$0xff] }
  0x38   : > { %241 = vst.msk [vmem:[#allocation8 + $0x108] sm:$0xff] %vm207_vm0, %v204_v49 }
  0x3a   : > { %336 = vrot.lane.b32.xlu0 %v254_v52, %s7335_s7 }
  0x3b   : > { %338 = vrot.lane.b32.xlu1 %v255_v53, %s7335_s7 }
  0x3e   : > { %553 = vrot.lane.b32.xlu0 %v471_v54, %s7336_s8  ;;  %v491_v54 = vld [vmem:[%s7404_s29 + $0x16a] sm:$0xff] }
  0x3f   : > { %555 = vrot.lane.b32.xlu1 %v472_v55, %s7336_s8 }
  0x42   : > { %340 = vrot.lane.b32.xlu0 %v256_v58, %s7335_s7  ;;  %v205_v58 = vld [vmem:[%s7404_s29 + $0x198] sm:$0xff] }
  0x43   : > { %342 = vrot.lane.b32.xlu1 %v257_v59, %s7335_s7  ;;  %242 = vst.msk [vmem:[#allocation8 + $0x110] sm:$0xff] %vm207_vm0, %v205_v58 }
  0x46   : > { %557 = vrot.lane.b32.xlu0 %v473_v60, %s7336_s8  ;;  %v206_v60 = vld [vmem:[%s7404_s29 + $0x1a0] sm:$0xff] }
  0x47   : > { %559 = vrot.lane.b32.xlu1 %v474_v61, %s7336_s8  ;;  %243 = vst.msk [vmem:[#allocation8 + $0x118] sm:$0xff] %vm207_vm0, %v206_v60  ;;  %v276_v61 = vld [vmem:[%s7404_s29 + $0x181] sm:$0xff] }
  0x4a   : > { %344 = vrot.lane.b32.xlu0 %v258_v0, %s7335_s7  ;;  %v277_v0 = vld [vmem:[%s7404_s29 + $0x189] sm:$0xff] }
  0x4b   : > { %346 = vrot.lane.b32.xlu1 %v259_v1, %s7335_s7 }
  0x4e   : > { %561 = vrot.lane.b32.xlu0 %v475_v2, %s7336_s8  ;;  %v493_v2 = vld [vmem:[%s7404_s29 + $0x182] sm:$0xff] }
  0x4f   : > { %563 = vrot.lane.b32.xlu1 %v476_v3, %s7336_s8 }
  0x52   : > { %348 = vrot.lane.b32.xlu0 %v260_v6, %s7335_s7  ;;  %v278_v6 = vld [vmem:[%s7404_s29 + $0x199] sm:$0xff] }
  0x53   : > { %350 = vrot.lane.b32.xlu1 %v261_v7, %s7335_s7 }
  0x56   : > { %565 = vrot.lane.b32.xlu0 %v477_v8, %s7336_s8 }
  0x57   : > { %567 = vrot.lane.b32.xlu1 %v478_v9, %s7336_s8 }
  0x5a   : > { %352 = vrot.lane.b32.xlu0 %v262_v12, %s7335_s7  ;;  %v495_v12 = vld [vmem:[%s7404_s29 + $0x19a] sm:$0xff] }
  0x5b   : > { %354 = vrot.lane.b32.xlu1 %v263_v13, %s7335_s7 }
  0x5e   : > { %569 = vrot.lane.b32.xlu0 %v479_v14, %s7336_s8 }
  0x5f   : > { %571 = vrot.lane.b32.xlu1 %v480_v15, %s7336_s8  ;;  %v496_v15 = vld [vmem:[%s7404_s29 + $0x1a2] sm:$0xff] }
  0x62   : > { %356 = vrot.lane.b32.xlu0 %v264_v18, %s7335_s7 }
  0x63   : > { %358 = vrot.lane.b32.xlu1 %v265_v19, %s7335_s7 }
  0x66   : > { %573 = vrot.lane.b32.xlu0 %v481_v20, %s7336_s8 }
  0x67   : > { %575 = vrot.lane.b32.xlu1 %v482_v21, %s7336_s8 }
  0x6a   : > { %360 = vrot.lane.b32.xlu0 %v266_v24, %s7335_s7 }
  0x6b   : > { %362 = vrot.lane.b32.xlu1 %v267_v25, %s7335_s7 }
  0x6e   : > { %577 = vrot.lane.b32.xlu0 %v483_v26, %s7336_s8 }
  0x6f   : > { %579 = vrot.lane.b32.xlu1 %v484_v27, %s7336_s8 }
  0x72   : > { %364 = vrot.lane.b32.xlu0 %v268_v30, %s7335_s7 }
  0x73   : > { %366 = vrot.lane.b32.xlu1 %v269_v31, %s7335_s7 }
  0x76   : > { %581 = vrot.lane.b32.xlu0 %v485_v32, %s7336_s8 }
  0x77   : > { %583 = vrot.lane.b32.xlu1 %v486_v33, %s7336_s8 }
  0x7a   : > { %368 = vrot.lane.b32.xlu0 %v270_v36, %s7335_s7 }
  0x7b   : > { %370 = vrot.lane.b32.xlu1 %v271_v37, %s7335_s7 }
  0x7e   : > { %585 = vrot.lane.b32.xlu0 %v487_v38, %s7336_s8 }
  0x7f   : > { %587 = vrot.lane.b32.xlu1 %v488_v39, %s7336_s8 }
  0x82   : > { %372 = vrot.lane.b32.xlu0 %v272_v42, %s7335_s7 }
  0x83   : > { %374 = vrot.lane.b32.xlu1 %v273_v43, %s7335_s7 }
  0x84   : > { %v317_v46 = vpop.permute.xlu0 %316 }
  0x85   : > { %v534_v47 = vpop.permute.xlu1 %533  ;;  %425 = vst.msk [vmem:[#allocation8] sm:$0xff] %vm424_vm1, %v317_v46 }
  0x86   : > { %642 = vst.msk [vmem:[#allocation8] sm:$0xff] %vm641_vm2, %v534_v47  ;;  %589 = vrot.lane.b32.xlu0 %v489_v44, %s7336_s8 }
  0x87   : > { %591 = vrot.lane.b32.xlu1 %v490_v45, %s7336_s8 }
  0x88   : > { %v319_v52 = vpop.permute.xlu0 %318 }
  0x89   : > { %v536_v53 = vpop.permute.xlu1 %535  ;;  %426 = vst.msk [vmem:[#allocation8 + $0x8] sm:$0xff] %vm424_vm1, %v319_v52 }
  0x8a   : > { %643 = vst.msk [vmem:[#allocation8 + $0x8] sm:$0xff] %vm641_vm2, %v536_v53  ;;  %376 = vrot.lane.b32.xlu0 %v274_v50, %s7335_s7 }
  0x8b   : > { %378 = vrot.lane.b32.xlu1 %v275_v51, %s7335_s7 }
  0x8c   : > { %v321_v55 = vpop.permute.xlu0 %320 }
  0x8d   : > { %v323_v56 = vpop.permute.xlu1 %322  ;;  %427 = vst.msk [vmem:[#allocation8 + $0x10] sm:$0xff] %vm424_vm1, %v321_v55  ;;  %v678_v59 = vld [vmem:[#allocation8] sm:$0xff] }
  0x8e   : > { %428 = vst.msk [vmem:[#allocation8 + $0x18] sm:$0xff] %vm424_vm1, %v323_v56  ;;  %593 = vrot.lane.b32.xlu0 %v491_v54, %s7336_s8  ;;  %6946 = vmatprep.mubr.msk.f32.mxu0 %vm726_vm3, %v678_v59 }
  0x8f   : > { %595 = vrot.lane.b32.xlu1 %v492_v57, %s7336_s8 }
  0x90   : > { %v538_v62 = vpop.permute.xlu0 %537 }
  0x91   : > { %v540_v63 = vpop.permute.xlu1 %539  ;;  %644 = vst.msk [vmem:[#allocation8 + $0x10] sm:$0xff] %vm641_vm2, %v538_v62  ;;  %v679_v1 = vld [vmem:[#allocation8 + $0x8] sm:$0xff] }
  0x92   : > { %645 = vst.msk [vmem:[#allocation8 + $0x18] sm:$0xff] %vm641_vm2, %v540_v63  ;;  %380 = vrot.lane.b32.xlu0 %v276_v61, %s7335_s7  ;;  %6947 = vmatmul.mubr.msk.f32.vlgmr.msra.gmra.mrb[0].mxu0 %vm726_vm3, %v679_v1 }
  0x93   : > { %382 = vrot.lane.b32.xlu1 %v277_v0, %s7335_s7 }
  0x94   : > { %v325_v3 = vpop.permute.xlu0 %324 }
  0x95   : > { %v327_v4 = vpop.permute.xlu1 %326  ;;  %429 = vst.msk [vmem:[#allocation8 + $0x20] sm:$0xff] %vm424_vm1, %v325_v3 }
  0x96   : > { %430 = vst.msk [vmem:[#allocation8 + $0x28] sm:$0xff] %vm424_vm1, %v327_v4  ;;  %597 = vrot.lane.b32.xlu0 %v493_v2, %s7336_s8 }
  0x97   : > { %599 = vrot.lane.b32.xlu1 %v494_v5, %s7336_s8 }
  0x98   : > { %v542_v7 = vpop.permute.xlu0 %541  ;;  %v680_v9 = vld [vmem:[#allocation8 + $0x10] sm:$0xff] }
  0x99   : > { %v544_v8 = vpop.permute.xlu1 %543  ;;  %v681_v10 = vld [vmem:[#allocation8 + $0x18] sm:$0xff]  ;;  %646 = vst.msk [vmem:[#allocation8 + $0x20] sm:$0xff] %vm641_vm2, %v542_v7  ;;  %6949 = vmatprep.mubr.msk.f32.mxu0 %vm726_vm3, %v680_v9 }
  0x9a   : > { %647 = vst.msk [vmem:[#allocation8 + $0x28] sm:$0xff] %vm641_vm2, %v544_v8  ;;  %384 = vrot.lane.b32.xlu0 %v278_v6, %s7335_s7  ;;  %6950 = vmatmul.mubr.msk.f32.gmra.mrb[2].mxu0 %vm726_vm3, %v681_v10 }
  0x9b   : > { %386 = vrot.lane.b32.xlu1 %v279_v11, %s7335_s7 }
  0x9c   : > { %v329_v13 = vpop.permute.xlu0 %328 }
  0x9d   : > { %v331_v14 = vpop.permute.xlu1 %330  ;;  %431 = vst.msk [vmem:[#allocation8 + $0x30] sm:$0xff] %vm424_vm1, %v329_v13 }
  0x9e   : > { %432 = vst.msk [vmem:[#allocation8 + $0x38] sm:$0xff] %vm424_vm1, %v331_v14  ;;  %601 = vrot.lane.b32.xlu0 %v495_v12, %s7336_s8 }
  0x9f   : > { %603 = vrot.lane.b32.xlu1 %v496_v15, %s7336_s8 }
  0xa0   : > { %v546_v16 = vpop.permute.xlu0 %545  ;;  %v682_v18 = vld [vmem:[#allocation8 + $0x20] sm:$0xff] }
  0xa1   : > { %v548_v17 = vpop.permute.xlu1 %547  ;;  %v683_v19 = vld [vmem:[#allocation8 + $0x28] sm:$0xff]  ;;  %648 = vst.msk [vmem:[#allocation8 + $0x30] sm:$0xff] %vm641_vm2, %v546_v16  ;;  %6952 = vmatprep.mubr.msk.f32.mxu0 %vm726_vm3, %v682_v18 }
  0xa2   : > { %649 = vst.msk [vmem:[#allocation8 + $0x38] sm:$0xff] %vm641_vm2, %v548_v17  ;;  %6953 = vmatmul.mubr.msk.f32.gmra.mrb[4].mxu0 %vm726_vm3, %v683_v19 }
  0xa4   : > { %v333_v20 = vpop.permute.xlu0 %332 }
  0xa5   : > { %v335_v21 = vpop.permute.xlu1 %334  ;;  %433 = vst.msk [vmem:[#allocation8 + $0x40] sm:$0xff] %vm424_vm1, %v333_v20 }
  0xa6   : > { %434 = vst.msk [vmem:[#allocation8 + $0x48] sm:$0xff] %vm424_vm1, %v335_v21 }
  0xa8   : > { %v550_v22 = vpop.permute.xlu0 %549  ;;  %v684_v24 = vld [vmem:[#allocation8 + $0x30] sm:$0xff] }
  0xa9   : > { %v552_v23 = vpop.permute.xlu1 %551  ;;  %v685_v25 = vld [vmem:[#allocation8 + $0x38] sm:$0xff]  ;;  %650 = vst.msk [vmem:[#allocation8 + $0x40] sm:$0xff] %vm641_vm2, %v550_v22  ;;  %6955 = vmatprep.mubr.msk.f32.mxu0 %vm726_vm3, %v684_v24 }
  0xaa   : > { %651 = vst.msk [vmem:[#allocation8 + $0x48] sm:$0xff] %vm641_vm2, %v552_v23  ;;  %6956 = vmatmul.mubr.msk.f32.gmra.mrb[6].mxu0 %vm726_vm3, %v685_v25 }
  0xac   : > { %v337_v26 = vpop.permute.xlu0 %336 }
  0xad   : > { %v339_v27 = vpop.permute.xlu1 %338  ;;  %435 = vst.msk [vmem:[#allocation8 + $0x50] sm:$0xff] %vm424_vm1, %v337_v26 }
  0xae   : > { %436 = vst.msk [vmem:[#allocation8 + $0x58] sm:$0xff] %vm424_vm1, %v339_v27 }
  0xb0   : > { %v554_v28 = vpop.permute.xlu0 %553  ;;  %v686_v30 = vld [vmem:[#allocation8 + $0x40] sm:$0xff] }
  0xb1   : > { %v556_v29 = vpop.permute.xlu1 %555  ;;  %v687_v31 = vld [vmem:[#allocation8 + $0x48] sm:$0xff]  ;;  %652 = vst.msk [vmem:[#allocation8 + $0x50] sm:$0xff] %vm641_vm2, %v554_v28  ;;  %6958 = vmatprep.mubr.msk.f32.mxu0 %vm726_vm3, %v686_v30 }
  0xb2   : > { %653 = vst.msk [vmem:[#allocation8 + $0x58] sm:$0xff] %vm641_vm2, %v556_v29  ;;  %6959 = vmatmul.mubr.msk.f32.gmra.mrb[8].mxu0 %vm726_vm3, %v687_v31 }
  0xb4   : > { %v341_v32 = vpop.permute.xlu0 %340 }
  0xb5   : > { %v343_v33 = vpop.permute.xlu1 %342  ;;  %437 = vst.msk [vmem:[#allocation8 + $0x60] sm:$0xff] %vm424_vm1, %v341_v32 }
  0xb6   : > { %438 = vst.msk [vmem:[#allocation8 + $0x68] sm:$0xff] %vm424_vm1, %v343_v33 }
  0xb8   : > { %v558_v34 = vpop.permute.xlu0 %557  ;;  %v688_v36 = vld [vmem:[#allocation8 + $0x50] sm:$0xff] }
  0xb9   : > { %v560_v35 = vpop.permute.xlu1 %559  ;;  %v689_v37 = vld [vmem:[#allocation8 + $0x58] sm:$0xff]  ;;  %654 = vst.msk [vmem:[#allocation8 + $0x60] sm:$0xff] %vm641_vm2, %v558_v34  ;;  %6961 = vmatprep.mubr.msk.f32.mxu0 %vm726_vm3, %v688_v36 }
  0xba   : > { %655 = vst.msk [vmem:[#allocation8 + $0x68] sm:$0xff] %vm641_vm2, %v560_v35  ;;  %6962 = vmatmul.mubr.msk.f32.gmra.mrb[10].mxu0 %vm726_vm3, %v689_v37 }
  0xbc   : > { %v345_v38 = vpop.permute.xlu0 %344 }
  0xbd   : > { %v347_v39 = vpop.permute.xlu1 %346  ;;  %439 = vst.msk [vmem:[#allocation8 + $0x70] sm:$0xff] %vm424_vm1, %v345_v38 }
  0xbe   : > { %440 = vst.msk [vmem:[#allocation8 + $0x78] sm:$0xff] %vm424_vm1, %v347_v39 }
  0xc0   : > { %v562_v40 = vpop.permute.xlu0 %561  ;;  %v690_v42 = vld [vmem:[#allocation8 + $0x60] sm:$0xff] }
  0xc1   : > { %v564_v41 = vpop.permute.xlu1 %563  ;;  %v691_v43 = vld [vmem:[#allocation8 + $0x68] sm:$0xff]  ;;  %656 = vst.msk [vmem:[#allocation8 + $0x70] sm:$0xff] %vm641_vm2, %v562_v40  ;;  %6964 = vmatprep.mubr.msk.f32.mxu0 %vm726_vm3, %v690_v42 }
  0xc2   : > { %657 = vst.msk [vmem:[#allocation8 + $0x78] sm:$0xff] %vm641_vm2, %v564_v41  ;;  %6965 = vmatmul.mubr.msk.f32.gmra.mrb[12].mxu0 %vm726_vm3, %v691_v43 }
  0xc4   : > { %v349_v44 = vpop.permute.xlu0 %348 }
  0xc5   : > { %v351_v45 = vpop.permute.xlu1 %350  ;;  %441 = vst.msk [vmem:[#allocation8 + $0x80] sm:$0xff] %vm424_vm1, %v349_v44 }
  0xc6   : > { %442 = vst.msk [vmem:[#allocation8 + $0x88] sm:$0xff] %vm424_vm1, %v351_v45 }
  0xc8   : > { %v566_v46 = vpop.permute.xlu0 %565  ;;  %v692_v48 = vld [vmem:[#allocation8 + $0x70] sm:$0xff] }
  0xc9   : > { %v568_v47 = vpop.permute.xlu1 %567  ;;  %v693_v49 = vld [vmem:[#allocation8 + $0x78] sm:$0xff]  ;;  %658 = vst.msk [vmem:[#allocation8 + $0x80] sm:$0xff] %vm641_vm2, %v566_v46  ;;  %6967 = vmatprep.mubr.msk.f32.mxu0 %vm726_vm3, %v692_v48 }
  0xca   : > { %659 = vst.msk [vmem:[#allocation8 + $0x88] sm:$0xff] %vm641_vm2, %v568_v47  ;;  %6968 = vmatmul.mubr.msk.f32.gmra.mrb[14].mxu0 %vm726_vm3, %v693_v49 }
  0xcc   : > { %v353_v50 = vpop.permute.xlu0 %352 }
  0xcd   : > { %v355_v51 = vpop.permute.xlu1 %354  ;;  %443 = vst.msk [vmem:[#allocation8 + $0x90] sm:$0xff] %vm424_vm1, %v353_v50 }
  0xce   : > { %444 = vst.msk [vmem:[#allocation8 + $0x98] sm:$0xff] %vm424_vm1, %v355_v51 }
  0xd0   : > { %v570_v52 = vpop.permute.xlu0 %569  ;;  %v694_v54 = vld [vmem:[#allocation8 + $0x80] sm:$0xff] }
  0xd1   : > { %v572_v53 = vpop.permute.xlu1 %571  ;;  %v695_v55 = vld [vmem:[#allocation8 + $0x88] sm:$0xff]  ;;  %660 = vst.msk [vmem:[#allocation8 + $0x90] sm:$0xff] %vm641_vm2, %v570_v52  ;;  %6970 = vmatprep.mubr.msk.f32.mxu0 %vm726_vm3, %v694_v54 }
  0xd2   : > { %661 = vst.msk [vmem:[#allocation8 + $0x98] sm:$0xff] %vm641_vm2, %v572_v53  ;;  %6971 = vmatmul.mubr.msk.f32.gmra.mrb[16].mxu0 %vm726_vm3, %v695_v55 }
  0xd4   : > { %v357_v56 = vpop.permute.xlu0 %356 }
  0xd5   : > { %v359_v57 = vpop.permute.xlu1 %358  ;;  %445 = vst.msk [vmem:[#allocation8 + $0xa0] sm:$0xff] %vm424_vm1, %v357_v56 }
  0xd6   : > { %446 = vst.msk [vmem:[#allocation8 + $0xa8] sm:$0xff] %vm424_vm1, %v359_v57 }
  0xd8   : > { %v574_v58 = vpop.permute.xlu0 %573  ;;  %v696_v60 = vld [vmem:[#allocation8 + $0x90] sm:$0xff] }
  0xd9   : > { %v576_v59 = vpop.permute.xlu1 %575  ;;  %v697_v61 = vld [vmem:[#allocation8 + $0x98] sm:$0xff]  ;;  %662 = vst.msk [vmem:[#allocation8 + $0xa0] sm:$0xff] %vm641_vm2, %v574_v58  ;;  %6973 = vmatprep.mubr.msk.f32.mxu0 %vm726_vm3, %v696_v60 }
  0xda   : > { %663 = vst.msk [vmem:[#allocation8 + $0xa8] sm:$0xff] %vm641_vm2, %v576_v59  ;;  %6974 = vmatmul.mubr.msk.f32.gmra.mrb[18].mxu0 %vm726_vm3, %v697_v61 }
  0xdc   : > { %v361_v62 = vpop.permute.xlu0 %360 }
  0xdd   : > { %v363_v63 = vpop.permute.xlu1 %362  ;;  %447 = vst.msk [vmem:[#allocation8 + $0xb0] sm:$0xff] %vm424_vm1, %v361_v62 }
  0xde   : > { %448 = vst.msk [vmem:[#allocation8 + $0xb8] sm:$0xff] %vm424_vm1, %v363_v63 }
  0xe0   : > { %v578_v0 = vpop.permute.xlu0 %577  ;;  %v698_v2 = vld [vmem:[#allocation8 + $0xa0] sm:$0xff] }
  0xe1   : > { %v580_v1 = vpop.permute.xlu1 %579  ;;  %v699_v3 = vld [vmem:[#allocation8 + $0xa8] sm:$0xff]  ;;  %664 = vst.msk [vmem:[#allocation8 + $0xb0] sm:$0xff] %vm641_vm2, %v578_v0  ;;  %6976 = vmatprep.mubr.msk.f32.mxu0 %vm726_vm3, %v698_v2 }
  0xe2   : > { %665 = vst.msk [vmem:[#allocation8 + $0xb8] sm:$0xff] %vm641_vm2, %v580_v1  ;;  %6977 = vmatmul.mubr.msk.f32.gmra.mrb[20].mxu0 %vm726_vm3, %v699_v3 }
  0xe4   : > { %v365_v4 = vpop.permute.xlu0 %364 }
  0xe5   : > { %v367_v5 = vpop.permute.xlu1 %366  ;;  %449 = vst.msk [vmem:[#allocation8 + $0xc0] sm:$0xff] %vm424_vm1, %v365_v4 }
  0xe6   : > { %450 = vst.msk [vmem:[#allocation8 + $0xc8] sm:$0xff] %vm424_vm1, %v367_v5 }
  0xe8   : > { %v582_v6 = vpop.permute.xlu0 %581  ;;  %v700_v8 = vld [vmem:[#allocation8 + $0xb0] sm:$0xff] }
  0xe9   : > { %v584_v7 = vpop.permute.xlu1 %583  ;;  %v701_v9 = vld [vmem:[#allocation8 + $0xb8] sm:$0xff]  ;;  %666 = vst.msk [vmem:[#allocation8 + $0xc0] sm:$0xff] %vm641_vm2, %v582_v6  ;;  %6979 = vmatprep.mubr.msk.f32.mxu0 %vm726_vm3, %v700_v8 }
  0xea   : > { %667 = vst.msk [vmem:[#allocation8 + $0xc8] sm:$0xff] %vm641_vm2, %v584_v7  ;;  %6980 = vmatmul.mubr.msk.f32.gmra.mrb[22].mxu0 %vm726_vm3, %v701_v9 }
  0xec   : > { %v369_v10 = vpop.permute.xlu0 %368 }
  0xed   : > { %v371_v11 = vpop.permute.xlu1 %370  ;;  %451 = vst.msk [vmem:[#allocation8 + $0xd0] sm:$0xff] %vm424_vm1, %v369_v10 }
  0xee   : > { %452 = vst.msk [vmem:[#allocation8 + $0xd8] sm:$0xff] %vm424_vm1, %v371_v11 }
  0xf0   : > { %v586_v12 = vpop.permute.xlu0 %585  ;;  %v702_v14 = vld [vmem:[#allocation8 + $0xc0] sm:$0xff] }
  0xf1   : > { %v588_v13 = vpop.permute.xlu1 %587  ;;  %v703_v15 = vld [vmem:[#allocation8 + $0xc8] sm:$0xff]  ;;  %668 = vst.msk [vmem:[#allocation8 + $0xd0] sm:$0xff] %vm641_vm2, %v586_v12  ;;  %6982 = vmatprep.mubr.msk.f32.mxu0 %vm726_vm3, %v702_v14 }
  0xf2   : > { %669 = vst.msk [vmem:[#allocation8 + $0xd8] sm:$0xff] %vm641_vm2, %v588_v13  ;;  %6983 = vmatmul.mubr.msk.f32.gmra.mrb[24].mxu0 %vm726_vm3, %v703_v15 }
  0xf4   : > { %v373_v16 = vpop.permute.xlu0 %372 }
  0xf5   : > { %v375_v17 = vpop.permute.xlu1 %374  ;;  %453 = vst.msk [vmem:[#allocation8 + $0xe0] sm:$0xff] %vm424_vm1, %v373_v16  ;;  %v7935_v16 = vld [vmem:[%s10299_s2] ss:$0 sm:$0xff] }
  0xf6   : > { %454 = vst.msk [vmem:[#allocation8 + $0xe8] sm:$0xff] %vm424_vm1, %v375_v17 }
  0xf8   : > { %v590_v18 = vpop.permute.xlu0 %589  ;;  %v704_v20 = vld [vmem:[#allocation8 + $0xd0] sm:$0xff] }
  0xf9   : > { %v592_v19 = vpop.permute.xlu1 %591  ;;  %v705_v21 = vld [vmem:[#allocation8 + $0xd8] sm:$0xff]  ;;  %670 = vst.msk [vmem:[#allocation8 + $0xe0] sm:$0xff] %vm641_vm2, %v590_v18  ;;  %6985 = vmatprep.mubr.msk.f32.mxu0 %vm726_vm3, %v704_v20 }
  0xfa   : > { %671 = vst.msk [vmem:[#allocation8 + $0xe8] sm:$0xff] %vm641_vm2, %v592_v19  ;;  %6986 = vmatmul.mubr.msk.f32.gmra.mrb[26].mxu0 %vm726_vm3, %v705_v21 }
  0xfc   : > { %v377_v22 = vpop.permute.xlu0 %376 }
  0xfd   : > { %v379_v23 = vpop.permute.xlu1 %378  ;;  %455 = vst.msk [vmem:[#allocation8 + $0xf0] sm:$0xff] %vm424_vm1, %v377_v22 }
  0xfe   : > { %456 = vst.msk [vmem:[#allocation8 + $0xf8] sm:$0xff] %vm424_vm1, %v379_v23 }
 0x100   : > { %v594_v24 = vpop.permute.xlu0 %593  ;;  %v706_v25 = vld [vmem:[#allocation8 + $0xe0] sm:$0xff] }
 0x101   : > { %v707_v26 = vld [vmem:[#allocation8 + $0xe8] sm:$0xff]  ;;  %672 = vst.msk [vmem:[#allocation8 + $0xf0] sm:$0xff] %vm641_vm2, %v594_v24  ;;  %v596_v27 = vpop.permute.xlu1 %595  ;;  %6988 = vmatprep.mubr.msk.f32.mxu0 %vm726_vm3, %v706_v25 }
 0x102   : > { %673 = vst.msk [vmem:[#allocation8 + $0xf8] sm:$0xff] %vm641_vm2, %v596_v27  ;;  %6989 = vmatmul.mubr.msk.f32.gmra.mrb[28].mxu0 %vm726_vm3, %v707_v26 }
 0x104   : > { %v381_v28 = vpop.permute.xlu0 %380 }
 0x105   : > { %457 = vst.msk [vmem:[#allocation8 + $0x100] sm:$0xff] %vm424_vm1, %v381_v28  ;;  %v383_v29 = vpop.permute.xlu1 %382 }
 0x106   : > { %458 = vst.msk [vmem:[#allocation8 + $0x108] sm:$0xff] %vm424_vm1, %v383_v29 }
 0x108   : > { %v598_v30 = vpop.permute.xlu0 %597  ;;  %v708_v31 = vld [vmem:[#allocation8 + $0xf0] sm:$0xff] }
 0x109   : > { %674 = vst.msk [vmem:[#allocation8 + $0x100] sm:$0xff] %vm641_vm2, %v598_v30  ;;  %v600_v32 = vpop.permute.xlu1 %599  ;;  %6991 = vmatprep.mubr.msk.f32.mxu0 %vm726_vm3, %v708_v31  ;;  %v709_v33 = vld [vmem:[#allocation8 + $0xf8] sm:$0xff] }
 0x10a   : > { %675 = vst.msk [vmem:[#allocation8 + $0x108] sm:$0xff] %vm641_vm2, %v600_v32  ;;  %6992 = vmatmul.mubr.msk.f32.gmra.mrb[30].mxu0 %vm726_vm3, %v709_v33 }
 0x10c   : > { %v385_v34 = vpop.permute.xlu0 %384 }
 0x10d   : > { %459 = vst.msk [vmem:[#allocation8 + $0x110] sm:$0xff] %vm424_vm1, %v385_v34  ;;  %v387_v35 = vpop.permute.xlu1 %386 }
 0x10e   : > { %460 = vst.msk [vmem:[#allocation8 + $0x118] sm:$0xff] %vm424_vm1, %v387_v35  ;;  %vm3830_vm1 = vcmask 125952  }
 0x110   : > { %v602_v36 = vpop.permute.xlu0 %601  ;;  %v710_v37 = vld [vmem:[#allocation8 + $0x100] sm:$0xff] }
 0x111   : > { %676 = vst.msk [vmem:[#allocation8 + $0x110] sm:$0xff] %vm641_vm2, %v602_v36  ;;  %v604_v38 = vpop.permute.xlu1 %603  ;;  %6994 = vmatprep.mubr.msk.f32.mxu0 %vm726_vm3, %v710_v37  ;;  %v711_v39 = vld [vmem:[#allocation8 + $0x108] sm:$0xff] }
 0x112   : > { %677 = vst.msk [vmem:[#allocation8 + $0x118] sm:$0xff] %vm641_vm2, %v604_v38  ;;  %6995 = vmatmul.mubr.msk.f32.gmra.mrb[32].mxu0 %vm726_vm3, %v711_v39  ;;  %vm4063_vm2 = vcmask 654336  }
 0x118   : > { %v712_v40 = vld [vmem:[#allocation8 + $0x110] sm:$0xff] }
 0x119   : > { %6997 = vmatprep.mubr.msk.f32.mxu0 %vm726_vm3, %v712_v40  ;;  %v713_v41 = vld [vmem:[#allocation8 + $0x118] sm:$0xff] }
 0x11a   : > { %6998 = vmatmul.mubr.msk.f32.gmra.mrb[34].mxu0 %vm726_vm3, %v713_v41  ;;  %vm3879_vm3 = vcmask 257152  }
 0x165   : > { %v7748_v42 = vpop.f32.mrb[0].mxu0 }
 0x166   : > { %v7750_v43 = vpop.f32.mrb[1].mxu0 }
 0x16d   : > { %v7752_v44 = vpop.f32.mrb[2].mxu0 }
 0x16e   : > { %1114 = vrot.lane.b32.xlu1 %v7752_v44, %s7337_s19  ;;  %v7756_v45 = vpop.f32.mrb[3].mxu0 }
 0x16f   : > { %1112 = vrot.lane.b32.xlu0 %v7756_v45, %s7337_s19 }
 0x175   : > { %v7760_v46 = vpop.f32.mrb[4].mxu0 }
 0x176   : > { %1244 = vrot.lane.b32.xlu1 %v7760_v46, %s7338_s20  ;;  %v7764_v47 = vpop.f32.mrb[5].mxu0 }
 0x177   : > { %1242 = vrot.lane.b32.xlu0 %v7764_v47, %s7338_s20 }
 0x17a   : > { %1118 = vrot.lane.b32.xlu1 %v7760_v46, %s7337_s19 }
 0x17b   : > { %1116 = vrot.lane.b32.xlu0 %v7764_v47, %s7337_s19 }
 0x17d   : > { %v7772_v48 = vpop.f32.mrb[6].mxu0 }
 0x17e   : > { %1248 = vrot.lane.b32.xlu1 %v7772_v48, %s7338_s20  ;;  %v7776_v49 = vpop.f32.mrb[7].mxu0 }
 0x17f   : > { %1246 = vrot.lane.b32.xlu0 %v7776_v49, %s7338_s20 }
 0x182   : > { %1122 = vrot.lane.b32.xlu1 %v7772_v48, %s7337_s19 }
 0x183   : > { %1120 = vrot.lane.b32.xlu0 %v7776_v49, %s7337_s19 }
 0x185   : > { %v7784_v50 = vpop.f32.mrb[8].mxu0 }
 0x186   : > { %1252 = vrot.lane.b32.xlu1 %v7784_v50, %s7338_s20  ;;  %v7788_v51 = vpop.f32.mrb[9].mxu0 }
 0x187   : > { %1250 = vrot.lane.b32.xlu0 %v7788_v51, %s7338_s20 }
 0x18a   : > { %1126 = vrot.lane.b32.xlu1 %v7784_v50, %s7337_s19 }
 0x18b   : > { %1124 = vrot.lane.b32.xlu0 %v7788_v51, %s7337_s19 }
 0x18d   : > { %v7796_v52 = vpop.f32.mrb[10].mxu0 }
 0x18e   : > { %1256 = vrot.lane.b32.xlu1 %v7796_v52, %s7338_s20  ;;  %v7800_v53 = vpop.f32.mrb[11].mxu0 }
 0x18f   : > { %1254 = vrot.lane.b32.xlu0 %v7800_v53, %s7338_s20 }
 0x192   : > { %1130 = vrot.lane.b32.xlu1 %v7796_v52, %s7337_s19 }
 0x193   : > { %1128 = vrot.lane.b32.xlu0 %v7800_v53, %s7337_s19 }
 0x195   : > { %v7808_v54 = vpop.f32.mrb[12].mxu0 }
 0x196   : > { %1260 = vrot.lane.b32.xlu1 %v7808_v54, %s7338_s20  ;;  %v7812_v55 = vpop.f32.mrb[13].mxu0 }
 0x197   : > { %1258 = vrot.lane.b32.xlu0 %v7812_v55, %s7338_s20 }
 0x19a   : > { %1134 = vrot.lane.b32.xlu1 %v7808_v54, %s7337_s19 }
 0x19b   : > { %1132 = vrot.lane.b32.xlu0 %v7812_v55, %s7337_s19 }
 0x19d   : > { %v7820_v56 = vpop.f32.mrb[14].mxu0 }
 0x19e   : > { %1264 = vrot.lane.b32.xlu1 %v7820_v56, %s7338_s20  ;;  %v7824_v57 = vpop.f32.mrb[15].mxu0 }
 0x19f   : > { %1262 = vrot.lane.b32.xlu0 %v7824_v57, %s7338_s20 }
 0x1a2   : > { %1138 = vrot.lane.b32.xlu1 %v7820_v56, %s7337_s19 }
 0x1a3   : > { %1136 = vrot.lane.b32.xlu0 %v7824_v57, %s7337_s19 }
 0x1a5   : > { %v7832_v58 = vpop.f32.mrb[16].mxu0 }
 0x1a6   : > { %1268 = vrot.lane.b32.xlu1 %v7832_v58, %s7338_s20  ;;  %v7836_v59 = vpop.f32.mrb[17].mxu0 }
 0x1a7   : > { %1266 = vrot.lane.b32.xlu0 %v7836_v59, %s7338_s20 }
 0x1aa   : > { %1142 = vrot.lane.b32.xlu1 %v7832_v58, %s7337_s19 }
 0x1ab   : > { %1140 = vrot.lane.b32.xlu0 %v7836_v59, %s7337_s19 }
 0x1ad   : > { %v7844_v60 = vpop.f32.mrb[18].mxu0 }
 0x1ae   : > { %1272 = vrot.lane.b32.xlu1 %v7844_v60, %s7338_s20  ;;  %v7848_v61 = vpop.f32.mrb[19].mxu0 }
 0x1af   : > { %1270 = vrot.lane.b32.xlu0 %v7848_v61, %s7338_s20 }
 0x1b2   : > { %1146 = vrot.lane.b32.xlu1 %v7844_v60, %s7337_s19 }
 0x1b3   : > { %1144 = vrot.lane.b32.xlu0 %v7848_v61, %s7337_s19 }
 0x1b5   : > { %v7856_v62 = vpop.f32.mrb[20].mxu0 }
 0x1b6   : > { %1276 = vrot.lane.b32.xlu1 %v7856_v62, %s7338_s20  ;;  %v7860_v63 = vpop.f32.mrb[21].mxu0 }
 0x1b7   : > { %1274 = vrot.lane.b32.xlu0 %v7860_v63, %s7338_s20 }
 0x1ba   : > { %1150 = vrot.lane.b32.xlu1 %v7856_v62, %s7337_s19 }
 0x1bb   : > { %1148 = vrot.lane.b32.xlu0 %v7860_v63, %s7337_s19 }
 0x1bd   : > { %v7868_v0 = vpop.f32.mrb[22].mxu0 }
 0x1be   : > { %1280 = vrot.lane.b32.xlu1 %v7868_v0, %s7338_s20  ;;  %v7872_v1 = vpop.f32.mrb[23].mxu0 }
 0x1bf   : > { %1278 = vrot.lane.b32.xlu0 %v7872_v1, %s7338_s20 }
 0x1c2   : > { %1154 = vrot.lane.b32.xlu1 %v7868_v0, %s7337_s19 }
 0x1c3   : > { %1152 = vrot.lane.b32.xlu0 %v7872_v1, %s7337_s19 }
 0x1c5   : > { %v7880_v2 = vpop.f32.mrb[24].mxu0 }
 0x1c6   : > { %1284 = vrot.lane.b32.xlu1 %v7880_v2, %s7338_s20  ;;  %v7884_v3 = vpop.f32.mrb[25].mxu0 }
 0x1c7   : > { %1282 = vrot.lane.b32.xlu0 %v7884_v3, %s7338_s20 }
 0x1ca   : > { %1158 = vrot.lane.b32.xlu1 %v7880_v2, %s7337_s19 }
 0x1cb   : > { %1156 = vrot.lane.b32.xlu0 %v7884_v3, %s7337_s19 }
 0x1cd   : > { %v7892_v4 = vpop.f32.mrb[26].mxu0 }
 0x1ce   : > { %1288 = vrot.lane.b32.xlu1 %v7892_v4, %s7338_s20  ;;  %v7896_v5 = vpop.f32.mrb[27].mxu0 }
 0x1cf   : > { %1286 = vrot.lane.b32.xlu0 %v7896_v5, %s7338_s20 }
 0x1d2   : > { %1162 = vrot.lane.b32.xlu1 %v7892_v4, %s7337_s19 }
 0x1d3   : > { %1160 = vrot.lane.b32.xlu0 %v7896_v5, %s7337_s19 }
 0x1d5   : > { %v7904_v6 = vpop.f32.mrb[28].mxu0 }
 0x1d6   : > { %1292 = vrot.lane.b32.xlu1 %v7904_v6, %s7338_s20  ;;  %v7908_v7 = vpop.f32.mrb[29].mxu0 }
 0x1d7   : > { %1290 = vrot.lane.b32.xlu0 %v7908_v7, %s7338_s20 }
 0x1da   : > { %1166 = vrot.lane.b32.xlu1 %v7904_v6, %s7337_s19 }
 0x1db   : > { %1164 = vrot.lane.b32.xlu0 %v7908_v7, %s7337_s19 }
 0x1dd   : > { %v7916_v8 = vpop.f32.mrb[30].mxu0 }
 0x1de   : > { %1296 = vrot.lane.b32.xlu1 %v7916_v8, %s7338_s20  ;;  %v7920_v9 = vpop.f32.mrb[31].mxu0 }
 0x1df   : > { %1294 = vrot.lane.b32.xlu0 %v7920_v9, %s7338_s20 }
 0x1e0   : > { %v1115_v10 = vpop.permute.xlu1 %1114 }
 0x1e1   : > { %v1113_v11 = vpop.permute.xlu0 %1112  ;;  %v1209_v14 = vadd.f32 %v7748_v42, %v1115_v10 }
 0x1e2   : > { %1170 = vrot.lane.b32.xlu1 %v7916_v8, %s7337_s19  ;;  %v1208_v15 = vadd.f32 %v1113_v11, %v7750_v43 }
 0x1e3   : > { %1168 = vrot.lane.b32.xlu0 %v7920_v9, %s7337_s19 }
 0x1e5   : > { %v6996_v12 = vpop.f32.mrb[32].mxu0 }
 0x1e6   : > { %1300 = vrot.lane.b32.xlu1 %v6996_v12, %s7338_s20  ;;  %v1061_v13 = vpop.f32.mrb[33].mxu0 }
 0x1e7   : > { %1298 = vrot.lane.b32.xlu0 %v1061_v13, %s7338_s20 }
 0x1e8   : > { %v1245_v17 = vpop.permute.xlu1 %1244 }
 0x1e9   : > { %v1339_v18 = vadd.f32 %v1245_v17, %v1209_v14  ;;  %v1243_v19 = vpop.permute.xlu0 %1242  ;;  %v2345_v14 = vld [vmem:[%s10298_s1 + $0xc0] sm:$0xff] }
 0x1ea   : > { %v1338_v20 = vadd.f32 %v1243_v19, %v1208_v15  ;;  %1174 = vrot.lane.b32.xlu1 %v6996_v12, %s7337_s19 }
 0x1eb   : > { %v1376_v21 = vadd.f32 %v7935_v16, %v1339_v18  ;;  %1172 = vrot.lane.b32.xlu0 %v1061_v13, %s7337_s19 }
 0x1ec   : > { %v1375_v22 = vadd.f32 %v7935_v16, %v1338_v20  ;;  %v1119_v23 = vpop.permute.xlu1 %1118  ;;  %v2347_v20 = vld [vmem:[%s10298_s1 + $0xe0] sm:$0xff] }
 0x1ed   : > { %v1408_v24 = vmax.f32 %v1376_v21, 0.0  ;;  %v1117_v25 = vpop.permute.xlu0 %1116  ;;  %v6999_v26 = vpop.f32.mrb[34].mxu0  ;;  %v1211_v29 = vadd.f32 %v7752_v44, %v1119_v23  ;;  %v2348_v21 = vld [vmem:[%s10298_s1 + $0xf0] sm:$0xff] }
 0x1ee   : > { %v1407_v27 = vmax.f32 %v1375_v22, 0.0  ;;  %1304 = vrot.lane.b32.xlu1 %v6999_v26, %s7338_s20  ;;  %v1071_v28 = vpop.f32.mrb[35].mxu0  ;;  %v1210_v30 = vadd.f32 %v1117_v25, %v7756_v45 }
 0x1ef   : > { %1441 = vst.msk [vmem:[#allocation2 + $0x8] sm:$0xff] %vm1439_vm4, %v1408_v24  ;;  %1302 = vrot.lane.b32.xlu0 %v1071_v28, %s7338_s20  ;;  %v7210_v24 = vpack.c.bf16 %v2348_v21, %v2347_v20 }
 0x1f0   : > { %1440 = vst.msk [vmem:[#allocation2] sm:$0xff] %vm1439_vm4, %v1407_v27  ;;  %v1249_v31 = vpop.permute.xlu1 %1248 }
 0x1f1   : > { %v1341_v32 = vadd.f32 %v1249_v31, %v1211_v29  ;;  %v1247_v33 = vpop.permute.xlu0 %1246 }
 0x1f2   : > { %v1340_v34 = vadd.f32 %v1247_v33, %v1210_v30 }
 0x1f3   : > { %v1378_v35 = vadd.f32 %v7935_v16, %v1341_v32 }
 0x1f4   : > { %v1377_v36 = vadd.f32 %v7935_v16, %v1340_v34  ;;  %v1123_v37 = vpop.permute.xlu1 %1122 }
 0x1f5   : > { %v1410_v38 = vmax.f32 %v1378_v35, 0.0  ;;  %v1121_v39 = vpop.permute.xlu0 %1120  ;;  %v1213_v43 = vadd.f32 %v7760_v46, %v1123_v37 }
 0x1f6   : > { %v1409_v40 = vmax.f32 %v1377_v36, 0.0  ;;  %v1538_v41 = vld [vmem:[#allocation2 + $0x9] sm:$0xf]  ;;  %v1212_v44 = vadd.f32 %v1121_v39, %v7764_v47  ;;  %v2346_v47 = vld [vmem:[%s10298_s1 + $0xd0] sm:$0xff]  ;;  %v2349_v36 = vld [vmem:[%s10298_s1 + $0x100] sm:$0xff] }
 0x1f7   : > { %v2120_v42 = vld [vmem:[#allocation2 + $0xc] sm:$0xf]  ;;  %1443 = vst.msk [vmem:[#allocation2 + $0x18] sm:$0xff] %vm1439_vm4, %v1410_v38  ;;  %1603 = vrot.lane.b32.xlu1 %v1538_v41, %s7339_s23  ;;  %v1473_v12 = vld [vmem:[#allocation2 + $0x8] sm:$0xf]  ;;  %v1472_v13 = vld [vmem:[#allocation2] sm:$0xff]  ;;  %v7206_v19 = vpack.c.bf16 %v2346_v47, %v2345_v14 }
 0x1f8   : > { %2185 = vrot.lane.b32.xlu0 %v2120_v42, %s7335_s7  ;;  %1442 = vst.msk [vmem:[#allocation2 + $0x10] sm:$0xff] %vm1439_vm4, %v1409_v40  ;;  %v1253_v45 = vpop.permute.xlu1 %1252  ;;  %v1732_v15 = vld [vmem:[#allocation2 + $0xa] sm:$0xf]  ;;  %v1537_v17 = vld [vmem:[#allocation2 + $0x1] sm:$0xff]  ;;  %1504 = vst.msk [vmem:[#allocation9] sm:$0xff] %vm1439_vm4, %v1472_v13 }
 0x1f9   : > { %v1343_v10 = vadd.f32 %v1253_v45, %v1213_v43  ;;  %v1251_v11 = vpop.permute.xlu0 %1250  ;;  %1506 = vst.msk [vmem:[#allocation9 + $0x8] sm:$0xf] %vm1505_vm5, %v1473_v12  ;;  %7207 = vmatprep.subr.bf16.mxu1 %v7206_v19  ;;  %v1926_v28 = vld [vmem:[#allocation2 + $0xb] sm:$0xf]  ;;  %v1731_v29 = vld [vmem:[#allocation2 + $0x2] sm:$0xff] }
 0x1fa   : > { %v1342_v46 = vadd.f32 %v1251_v11, %v1212_v44  ;;  %7209 = vmatpush3.bf16.msra.mxu1 %v7206_v19  ;;  %v1925_v39 = vld [vmem:[#allocation2 + $0x3] sm:$0xff] }
 0x1fb   : > { %v1380_v18 = vadd.f32 %v7935_v16, %v1343_v10  ;;  %1797 = vrot.lane.b32.xlu1 %v1732_v15, %s7340_s28  ;;  %7211 = vmatprep.subr.bf16.mxu1 %v7210_v24  ;;  %v2119_v10 = vld [vmem:[#allocation2 + $0x4] sm:$0xff] }
 0x1fc   : > { %1601 = vrot.lane.b32.xlu0 %v1537_v17, %s7339_s23  ;;  %v1379_v22 = vadd.f32 %v7935_v16, %v1342_v46  ;;  %v1127_v23 = vpop.permute.xlu1 %1126 }
 0x1fd   : > { %v1412_v25 = vmax.f32 %v1380_v18, 0.0  ;;  %v1125_v26 = vpop.permute.xlu0 %1124  ;;  %v1215_v30 = vadd.f32 %v7772_v48, %v1127_v23 }
 0x1fe   : > { %v1411_v27 = vmax.f32 %v1379_v22, 0.0  ;;  %v1214_v31 = vadd.f32 %v1125_v26, %v7776_v49  ;;  %v1475_v35 = vld [vmem:[#allocation2 + $0x18] sm:$0xf]  ;;  %7213 = vmatpush3.bf16.msra.mxu1 %v7210_v24  ;;  %v2122_v19 = vld [vmem:[#allocation2 + $0x1c] sm:$0xf] }
 0x1ff   : > { %1445 = vst.msk [vmem:[#allocation2 + $0x28] sm:$0xff] %vm1439_vm4, %v1412_v25  ;;  %1991 = vrot.lane.b32.xlu1 %v1926_v28, %s7341_s6  ;;  %v1474_v37 = vld [vmem:[#allocation2 + $0x10] sm:$0xff]  ;;  %v1540_v38 = vld [vmem:[#allocation2 + $0x19] sm:$0xf]  ;;  %7008 = vmatprep.subr.mxu1 %v2349_v36 }
 0x200   : > { %1795 = vrot.lane.b32.xlu0 %v1731_v29, %s7340_s28  ;;  %1444 = vst.msk [vmem:[#allocation2 + $0x20] sm:$0xff] %vm1439_vm4, %v1411_v27  ;;  %v1257_v32 = vpop.permute.xlu1 %1256  ;;  %1507 = vst.msk [vmem:[#allocation9 + $0x10] sm:$0xff] %vm1439_vm4, %v1474_v37  ;;  %v1734_v45 = vld [vmem:[#allocation2 + $0x1a] sm:$0xf]  ;;  %v1539_v24 = vld [vmem:[#allocation2 + $0x11] sm:$0xff] }
 0x201   : > { %v1345_v33 = vadd.f32 %v1257_v32, %v1215_v30  ;;  %v1255_v34 = vpop.permute.xlu0 %1254  ;;  %1508 = vst.msk [vmem:[#allocation9 + $0x18] sm:$0xf] %vm1505_vm5, %v1475_v35  ;;  %v1928_v18 = vld [vmem:[#allocation2 + $0x1b] sm:$0xf]  ;;  %v1733_v25 = vld [vmem:[#allocation2 + $0x12] sm:$0xff] }
 0x202   : > { %v1344_v48 = vadd.f32 %v1255_v34, %v1214_v31  ;;  %7009 = vmatpush3.msra.mxu1 %v2349_v36  ;;  %v1927_v35 = vld [vmem:[#allocation2 + $0x13] sm:$0xff] }
 0x203   : > { %v1382_v49 = vadd.f32 %v7935_v16, %v1345_v33  ;;  %1607 = vrot.lane.b32.xlu1 %v1540_v38, %s7339_s23 }
 0x204   : > { %1989 = vrot.lane.b32.xlu0 %v1925_v39, %s7341_s6  ;;  %v1381_v40 = vadd.f32 %v7935_v16, %v1344_v48  ;;  %v1131_v41 = vpop.permute.xlu1 %1130 }
 0x205   : > { %v1414_v42 = vmax.f32 %v1382_v49, 0.0  ;;  %v1129_v43 = vpop.permute.xlu0 %1128  ;;  %v1217_v11 = vadd.f32 %v7784_v50, %v1131_v41  ;;  %v2121_v49 = vld [vmem:[#allocation2 + $0x14] sm:$0xff] }
 0x206   : > { %v1413_v44 = vmax.f32 %v1381_v40, 0.0  ;;  %v1216_v12 = vadd.f32 %v1129_v43, %v7788_v51  ;;  %v1477_v15 = vld [vmem:[#allocation2 + $0x28] sm:$0xf] }
 0x207   : > { %1447 = vst.msk [vmem:[#allocation2 + $0x38] sm:$0xff] %vm1439_vm4, %v1414_v42  ;;  %1801 = vrot.lane.b32.xlu1 %v1734_v45, %s7340_s28  ;;  %v1476_v17 = vld [vmem:[#allocation2 + $0x20] sm:$0xff]  ;;  %v1542_v34 = vld [vmem:[#allocation2 + $0x29] sm:$0xf] }
 0x208   : > { %2183 = vrot.lane.b32.xlu0 %v2119_v10, %s7335_s7  ;;  %1446 = vst.msk [vmem:[#allocation2 + $0x30] sm:$0xff] %vm1439_vm4, %v1413_v44  ;;  %v1261_v13 = vpop.permute.xlu1 %1260  ;;  %1509 = vst.msk [vmem:[#allocation9 + $0x20] sm:$0xff] %vm1439_vm4, %v1476_v17  ;;  %v1736_v39 = vld [vmem:[#allocation2 + $0x2a] sm:$0xf] }
 0x209   : > { %v1347_v14 = vadd.f32 %v1261_v13, %v1217_v11  ;;  %v1259_v46 = vpop.permute.xlu0 %1258  ;;  %1510 = vst.msk [vmem:[#allocation9 + $0x28] sm:$0xf] %vm1505_vm5, %v1477_v15  ;;  %v2124_v13 = vld [vmem:[#allocation2 + $0x2c] sm:$0xf] }
 0x20a   : > { %v1346_v47 = vadd.f32 %v1259_v46, %v1216_v12  ;;  %v1930_v12 = vld [vmem:[#allocation2 + $0x2b] sm:$0xf] }
 0x20b   : > { %v1384_v50 = vadd.f32 %v7935_v16, %v1347_v14  ;;  %1995 = vrot.lane.b32.xlu1 %v1928_v18, %s7341_s6  ;;  %v1735_v18 = vld [vmem:[#allocation2 + $0x22] sm:$0xff] }
 0x20c   : > { %2189 = vrot.lane.b32.xlu0 %v2122_v19, %s7335_s7  ;;  %v1383_v51 = vadd.f32 %v7935_v16, %v1346_v47  ;;  %v1135_v20 = vpop.permute.xlu1 %1134  ;;  %v1541_v47 = vld [vmem:[#allocation2 + $0x21] sm:$0xff] }
 0x20d   : > { %v1416_v21 = vmax.f32 %v1384_v50, 0.0  ;;  %v1133_v22 = vpop.permute.xlu0 %1132  ;;  %v1219_v26 = vadd.f32 %v7796_v52, %v1135_v20 }
 0x20e   : > { %v1415_v23 = vmax.f32 %v1383_v51, 0.0  ;;  %v1218_v27 = vadd.f32 %v1133_v22, %v7800_v53  ;;  %v1479_v31 = vld [vmem:[#allocation2 + $0x38] sm:$0xf] }
 0x20f   : > { %1449 = vst.msk [vmem:[#allocation2 + $0x48] sm:$0xff] %vm1439_vm4, %v1416_v21  ;;  %1605 = vrot.lane.b32.xlu1 %v1539_v24, %s7339_s23  ;;  %v1478_v32 = vld [vmem:[#allocation2 + $0x30] sm:$0xff] }
 0x210   : > { %1799 = vrot.lane.b32.xlu0 %v1733_v25, %s7340_s28  ;;  %1448 = vst.msk [vmem:[#allocation2 + $0x40] sm:$0xff] %vm1439_vm4, %v1415_v23  ;;  %v1265_v28 = vpop.permute.xlu1 %1264  ;;  %1511 = vst.msk [vmem:[#allocation9 + $0x30] sm:$0xff] %vm1439_vm4, %v1478_v32  ;;  %v1544_v25 = vld [vmem:[#allocation2 + $0x39] sm:$0xf]  ;;  %v2123_v32 = vld [vmem:[#allocation2 + $0x24] sm:$0xff] }
 0x211   : > { %v1349_v29 = vadd.f32 %v1265_v28, %v1219_v26  ;;  %v1263_v30 = vpop.permute.xlu0 %1262  ;;  %1512 = vst.msk [vmem:[#allocation9 + $0x38] sm:$0xf] %vm1505_vm5, %v1479_v31  ;;  %v1929_v26 = vld [vmem:[#allocation2 + $0x23] sm:$0xff]  ;;  %v1738_v31 = vld [vmem:[#allocation2 + $0x3a] sm:$0xf] }
 0x212   : > { %v1348_v33 = vadd.f32 %v1263_v30, %v1218_v27 }
 0x213   : > { %v1386_v52 = vadd.f32 %v7935_v16, %v1349_v29  ;;  %1611 = vrot.lane.b32.xlu1 %v1542_v34, %s7339_s23 }
 0x214   : > { %1993 = vrot.lane.b32.xlu0 %v1927_v35, %s7341_s6  ;;  %v1385_v53 = vadd.f32 %v7935_v16, %v1348_v33  ;;  %v1139_v36 = vpop.permute.xlu1 %1138 }
 0x215   : > { %v1418_v37 = vmax.f32 %v1386_v52, 0.0  ;;  %v1137_v48 = vpop.permute.xlu0 %1136  ;;  %v1221_v40 = vadd.f32 %v7808_v54, %v1139_v36 }
 0x216   : > { %v1417_v38 = vmax.f32 %v1385_v53, 0.0  ;;  %v1220_v41 = vadd.f32 %v1137_v48, %v7812_v55  ;;  %v1481_v45 = vld [vmem:[#allocation2 + $0x48] sm:$0xf] }
 0x217   : > { %1451 = vst.msk [vmem:[#allocation2 + $0x58] sm:$0xff] %vm1439_vm4, %v1418_v37  ;;  %1805 = vrot.lane.b32.xlu1 %v1736_v39, %s7340_s28  ;;  %v1480_v10 = vld [vmem:[#allocation2 + $0x40] sm:$0xff]  ;;  %v2126_v39 = vld [vmem:[#allocation2 + $0x3c] sm:$0xf] }
 0x218   : > { %2187 = vrot.lane.b32.xlu0 %v2121_v49, %s7335_s7  ;;  %1450 = vst.msk [vmem:[#allocation2 + $0x50] sm:$0xff] %vm1439_vm4, %v1417_v38  ;;  %v1269_v42 = vpop.permute.xlu1 %1268  ;;  %1513 = vst.msk [vmem:[#allocation9 + $0x40] sm:$0xff] %vm1439_vm4, %v1480_v10  ;;  %v1932_v38 = vld [vmem:[#allocation2 + $0x3b] sm:$0xf] }
 0x219   : > { %v1351_v43 = vadd.f32 %v1269_v42, %v1221_v40  ;;  %v1267_v44 = vpop.permute.xlu0 %1266  ;;  %1514 = vst.msk [vmem:[#allocation9 + $0x48] sm:$0xf] %vm1505_vm5, %v1481_v45 }
 0x21a   : > { %v1350_v11 = vadd.f32 %v1267_v44, %v1220_v41  ;;  %v1737_v44 = vld [vmem:[#allocation2 + $0x32] sm:$0xff] }
 0x21b   : > { %v1388_v54 = vadd.f32 %v7935_v16, %v1351_v43  ;;  %1999 = vrot.lane.b32.xlu1 %v1930_v12, %s7341_s6  ;;  %v1543_v43 = vld [vmem:[#allocation2 + $0x31] sm:$0xff] }
 0x21c   : > { %2193 = vrot.lane.b32.xlu0 %v2124_v13, %s7335_s7  ;;  %v1387_v55 = vadd.f32 %v7935_v16, %v1350_v11  ;;  %v1143_v14 = vpop.permute.xlu1 %1142 }
 0x21d   : > { %v1420_v46 = vmax.f32 %v1388_v54, 0.0  ;;  %v1141_v15 = vpop.permute.xlu0 %1140  ;;  %v1223_v19 = vadd.f32 %v7820_v56, %v1143_v14 }
 0x21e   : > { %v1419_v17 = vmax.f32 %v1387_v55, 0.0  ;;  %v1222_v50 = vadd.f32 %v1141_v15, %v7824_v57  ;;  %v1483_v22 = vld [vmem:[#allocation2 + $0x58] sm:$0xf] }
 0x21f   : > { %1453 = vst.msk [vmem:[#allocation2 + $0x68] sm:$0xff] %vm1439_vm4, %v1420_v46  ;;  %1609 = vrot.lane.b32.xlu1 %v1541_v47, %s7339_s23  ;;  %v1482_v23 = vld [vmem:[#allocation2 + $0x50] sm:$0xff]  ;;  %v1546_v46 = vld [vmem:[#allocation2 + $0x49] sm:$0xf] }
 0x220   : > { %1803 = vrot.lane.b32.xlu0 %v1735_v18, %s7340_s28  ;;  %1452 = vst.msk [vmem:[#allocation2 + $0x60] sm:$0xff] %vm1439_vm4, %v1419_v17  ;;  %v1273_v51 = vpop.permute.xlu1 %1272  ;;  %1515 = vst.msk [vmem:[#allocation9 + $0x50] sm:$0xff] %vm1439_vm4, %v1482_v23  ;;  %v1931_v15 = vld [vmem:[#allocation2 + $0x33] sm:$0xff] }
 0x221   : > { %v1353_v20 = vadd.f32 %v1273_v51, %v1223_v19  ;;  %v1271_v21 = vpop.permute.xlu0 %1270  ;;  %1516 = vst.msk [vmem:[#allocation9 + $0x58] sm:$0xf] %vm1505_vm5, %v1483_v22  ;;  %v2125_v51 = vld [vmem:[#allocation2 + $0x34] sm:$0xff] }
 0x222   : > { %v1352_v24 = vadd.f32 %v1271_v21, %v1222_v50  ;;  %v1740_v50 = vld [vmem:[#allocation2 + $0x4a] sm:$0xf] }
 0x223   : > { %v1390_v56 = vadd.f32 %v7935_v16, %v1353_v20  ;;  %1615 = vrot.lane.b32.xlu1 %v1544_v25, %s7339_s23 }
 0x224   : > { %1997 = vrot.lane.b32.xlu0 %v1929_v26, %s7341_s6  ;;  %v1389_v57 = vadd.f32 %v7935_v16, %v1352_v24  ;;  %v1147_v27 = vpop.permute.xlu1 %1146 }
 0x225   : > { %v1422_v28 = vmax.f32 %v1390_v56, 0.0  ;;  %v1145_v29 = vpop.permute.xlu0 %1144  ;;  %v1225_v33 = vadd.f32 %v7832_v58, %v1147_v27  ;;  %v2128_v27 = vld [vmem:[#allocation2 + $0x4c] sm:$0xf] }
 0x226   : > { %v1421_v30 = vmax.f32 %v1389_v57, 0.0  ;;  %v1224_v34 = vadd.f32 %v1145_v29, %v7836_v59  ;;  %v1485_v36 = vld [vmem:[#allocation2 + $0x68] sm:$0xf] }
 0x227   : > { %1455 = vst.msk [vmem:[#allocation2 + $0x78] sm:$0xff] %vm1439_vm4, %v1422_v28  ;;  %1809 = vrot.lane.b32.xlu1 %v1738_v31, %s7340_s28  ;;  %v1484_v37 = vld [vmem:[#allocation2 + $0x60] sm:$0xff]  ;;  %v1934_v57 = vld [vmem:[#allocation2 + $0x4b] sm:$0xf] }
 0x228   : > { %2191 = vrot.lane.b32.xlu0 %v2123_v32, %s7335_s7  ;;  %1454 = vst.msk [vmem:[#allocation2 + $0x70] sm:$0xff] %vm1439_vm4, %v1421_v30  ;;  %v1277_v35 = vpop.permute.xlu1 %1276  ;;  %1517 = vst.msk [vmem:[#allocation9 + $0x60] sm:$0xff] %vm1439_vm4, %v1484_v37  ;;  %v1545_v32 = vld [vmem:[#allocation2 + $0x41] sm:$0xff] }
 0x229   : > { %v1355_v52 = vadd.f32 %v1277_v35, %v1225_v33  ;;  %v1275_v53 = vpop.permute.xlu0 %1274  ;;  %1518 = vst.msk [vmem:[#allocation9 + $0x68] sm:$0xf] %vm1505_vm5, %v1485_v36  ;;  %v1739_v33 = vld [vmem:[#allocation2 + $0x42] sm:$0xff] }
 0x22a   : > { %v1354_v48 = vadd.f32 %v1275_v53, %v1224_v34 }
 0x22b   : > { %v1392_v58 = vadd.f32 %v7935_v16, %v1355_v52  ;;  %2003 = vrot.lane.b32.xlu1 %v1932_v38, %s7341_s6 }
 0x22c   : > { %2197 = vrot.lane.b32.xlu0 %v2126_v39, %s7335_s7  ;;  %v1391_v59 = vadd.f32 %v7935_v16, %v1354_v48  ;;  %v1151_v49 = vpop.permute.xlu1 %1150  ;;  %v1548_v39 = vld [vmem:[#allocation2 + $0x59] sm:$0xf] }
 0x22d   : > { %v1424_v40 = vmax.f32 %v1392_v58, 0.0  ;;  %v1149_v41 = vpop.permute.xlu0 %1148  ;;  %v1227_v45 = vadd.f32 %v7844_v60, %v1151_v49  ;;  %v1933_v58 = vld [vmem:[#allocation2 + $0x43] sm:$0xff] }
 0x22e   : > { %v1423_v42 = vmax.f32 %v1391_v59, 0.0  ;;  %v1226_v10 = vadd.f32 %v1149_v41, %v7848_v61  ;;  %v1487_v54 = vld [vmem:[#allocation2 + $0x78] sm:$0xf] }
 0x22f   : > { %1457 = vst.msk [vmem:[#allocation2 + $0x88] sm:$0xff] %vm1439_vm4, %v1424_v40  ;;  %1613 = vrot.lane.b32.xlu1 %v1543_v43, %s7339_s23  ;;  %v1486_v55 = vld [vmem:[#allocation2 + $0x70] sm:$0xff]  ;;  %v2127_v43 = vld [vmem:[#allocation2 + $0x44] sm:$0xff] }
 0x230   : > { %1807 = vrot.lane.b32.xlu0 %v1737_v44, %s7340_s28  ;;  %1456 = vst.msk [vmem:[#allocation2 + $0x80] sm:$0xff] %vm1439_vm4, %v1423_v42  ;;  %v1281_v11 = vpop.permute.xlu1 %1280  ;;  %1519 = vst.msk [vmem:[#allocation9 + $0x70] sm:$0xff] %vm1439_vm4, %v1486_v55  ;;  %v1742_v42 = vld [vmem:[#allocation2 + $0x5a] sm:$0xf] }
 0x231   : > { %v1357_v12 = vadd.f32 %v1281_v11, %v1227_v45  ;;  %v1279_v13 = vpop.permute.xlu0 %1278  ;;  %1520 = vst.msk [vmem:[#allocation9 + $0x78] sm:$0xf] %vm1505_vm5, %v1487_v54 }
 0x232   : > { %v1356_v14 = vadd.f32 %v1279_v13, %v1226_v10 }
 0x233   : > { %v1394_v60 = vadd.f32 %v7935_v16, %v1357_v12  ;;  %1619 = vrot.lane.b32.xlu1 %v1546_v46, %s7339_s23  ;;  %v2130_v46 = vld [vmem:[#allocation2 + $0x5c] sm:$0xf] }
 0x234   : > { %2001 = vrot.lane.b32.xlu0 %v1931_v15, %s7341_s6  ;;  %v1393_v61 = vadd.f32 %v7935_v16, %v1356_v14  ;;  %v1155_v17 = vpop.permute.xlu1 %1154  ;;  %v1936_v14 = vld [vmem:[#allocation2 + $0x5b] sm:$0xf] }
 0x235   : > { %v1426_v47 = vmax.f32 %v1394_v60, 0.0  ;;  %v1153_v18 = vpop.permute.xlu0 %1152  ;;  %v1229_v20 = vadd.f32 %v7856_v62, %v1155_v17 }
 0x236   : > { %v1425_v19 = vmax.f32 %v1393_v61, 0.0  ;;  %v1228_v21 = vadd.f32 %v1153_v18, %v7860_v63  ;;  %v1489_v25 = vld [vmem:[#allocation2 + $0x88] sm:$0xf]  ;;  %v1741_v18 = vld [vmem:[#allocation2 + $0x52] sm:$0xff] }
 0x237   : > { %1459 = vst.msk [vmem:[#allocation2 + $0x98] sm:$0xff] %vm1439_vm4, %v1426_v47  ;;  %1813 = vrot.lane.b32.xlu1 %v1740_v50, %s7340_s28  ;;  %v1488_v26 = vld [vmem:[#allocation2 + $0x80] sm:$0xff]  ;;  %v1547_v47 = vld [vmem:[#allocation2 + $0x51] sm:$0xff] }
 0x238   : > { %2195 = vrot.lane.b32.xlu0 %v2125_v51, %s7335_s7  ;;  %1458 = vst.msk [vmem:[#allocation2 + $0x90] sm:$0xff] %vm1439_vm4, %v1425_v19  ;;  %v1285_v22 = vpop.permute.xlu1 %1284  ;;  %1521 = vst.msk [vmem:[#allocation9 + $0x80] sm:$0xff] %vm1439_vm4, %v1488_v26  ;;  %v1935_v26 = vld [vmem:[#allocation2 + $0x53] sm:$0xff] }
 0x239   : > { %v1359_v23 = vadd.f32 %v1285_v22, %v1229_v20  ;;  %v1283_v24 = vpop.permute.xlu0 %1282  ;;  %1522 = vst.msk [vmem:[#allocation9 + $0x88] sm:$0xf] %vm1505_vm5, %v1489_v25  ;;  %v1550_v25 = vld [vmem:[#allocation2 + $0x69] sm:$0xf] }
 0x23a   : > { %v1358_v56 = vadd.f32 %v1283_v24, %v1228_v21 }
 0x23b   : > { %v1396_v62 = vadd.f32 %v7935_v16, %v1359_v23  ;;  %2007 = vrot.lane.b32.xlu1 %v1934_v57, %s7341_s6 }
 0x23c   : > { %2201 = vrot.lane.b32.xlu0 %v2128_v27, %s7335_s7  ;;  %v1395_v63 = vadd.f32 %v7935_v16, %v1358_v56  ;;  %v1159_v28 = vpop.permute.xlu1 %1158 }
 0x23d   : > { %v1428_v29 = vmax.f32 %v1396_v62, 0.0  ;;  %v1157_v30 = vpop.permute.xlu0 %1156  ;;  %v1231_v34 = vadd.f32 %v7868_v0, %v1159_v28  ;;  %v2129_v28 = vld [vmem:[#allocation2 + $0x54] sm:$0xff] }
 0x23e   : > { %v1427_v31 = vmax.f32 %v1395_v63, 0.0  ;;  %v1230_v35 = vadd.f32 %v1157_v30, %v7872_v1  ;;  %v1491_v37 = vld [vmem:[#allocation2 + $0x98] sm:$0xf]  ;;  %v1744_v63 = vld [vmem:[#allocation2 + $0x6a] sm:$0xf] }
 0x23f   : > { %1461 = vst.msk [vmem:[#allocation2 + $0xa8] sm:$0xff] %vm1439_vm4, %v1428_v29  ;;  %1617 = vrot.lane.b32.xlu1 %v1545_v32, %s7339_s23  ;;  %v1490_v48 = vld [vmem:[#allocation2 + $0x90] sm:$0xff] }
 0x240   : > { %1811 = vrot.lane.b32.xlu0 %v1739_v33, %s7340_s28  ;;  %1460 = vst.msk [vmem:[#allocation2 + $0xa0] sm:$0xff] %vm1439_vm4, %v1427_v31  ;;  %v1289_v52 = vpop.permute.xlu1 %1288  ;;  %1523 = vst.msk [vmem:[#allocation9 + $0x90] sm:$0xff] %vm1439_vm4, %v1490_v48 }
 0x241   : > { %v1361_v53 = vadd.f32 %v1289_v52, %v1231_v34  ;;  %v1287_v36 = vpop.permute.xlu0 %1286  ;;  %1524 = vst.msk [vmem:[#allocation9 + $0x98] sm:$0xf] %vm1505_vm5, %v1491_v37 }
 0x242   : > { %v1360_v38 = vadd.f32 %v1287_v36, %v1230_v35  ;;  %v2132_v36 = vld [vmem:[#allocation2 + $0x6c] sm:$0xf] }
 0x243   : > { %v1398_v0 = vadd.f32 %v7935_v16, %v1361_v53  ;;  %1623 = vrot.lane.b32.xlu1 %v1548_v39, %s7339_s23  ;;  %v1938_v53 = vld [vmem:[#allocation2 + $0x6b] sm:$0xf] }
 0x244   : > { %2005 = vrot.lane.b32.xlu0 %v1933_v58, %s7341_s6  ;;  %v1397_v1 = vadd.f32 %v7935_v16, %v1360_v38  ;;  %v1163_v59 = vpop.permute.xlu1 %1162  ;;  %v1549_v58 = vld [vmem:[#allocation2 + $0x61] sm:$0xff] }
 0x245   : > { %v1430_v49 = vmax.f32 %v1398_v0, 0.0  ;;  %v1161_v40 = vpop.permute.xlu0 %1160  ;;  %v1233_v44 = vadd.f32 %v7880_v2, %v1163_v59  ;;  %v1743_v0 = vld [vmem:[#allocation2 + $0x62] sm:$0xff] }
 0x246   : > { %v1429_v41 = vmax.f32 %v1397_v1, 0.0  ;;  %v1232_v45 = vadd.f32 %v1161_v40, %v7884_v3  ;;  %v1493_v13 = vld [vmem:[#allocation2 + $0xa8] sm:$0xf] }
 0x247   : > { %1463 = vst.msk [vmem:[#allocation2 + $0xb8] sm:$0xff] %vm1439_vm4, %v1430_v49  ;;  %1817 = vrot.lane.b32.xlu1 %v1742_v42, %s7340_s28  ;;  %v1492_v54 = vld [vmem:[#allocation2 + $0xa0] sm:$0xff] }
 0x248   : > { %2199 = vrot.lane.b32.xlu0 %v2127_v43, %s7335_s7  ;;  %1462 = vst.msk [vmem:[#allocation2 + $0xb0] sm:$0xff] %vm1439_vm4, %v1429_v41  ;;  %v1293_v10 = vpop.permute.xlu1 %1292  ;;  %1525 = vst.msk [vmem:[#allocation9 + $0xa0] sm:$0xff] %vm1439_vm4, %v1492_v54  ;;  %v2131_v54 = vld [vmem:[#allocation2 + $0x64] sm:$0xff] }
 0x249   : > { %v1363_v11 = vadd.f32 %v1293_v10, %v1233_v44  ;;  %v1291_v12 = vpop.permute.xlu0 %1290  ;;  %1526 = vst.msk [vmem:[#allocation9 + $0xa8] sm:$0xf] %vm1505_vm5, %v1493_v13  ;;  %v1937_v10 = vld [vmem:[#allocation2 + $0x63] sm:$0xff]  ;;  %v1746_v13 = vld [vmem:[#allocation2 + $0x7a] sm:$0xf] }
 0x24a   : > { %v1362_v55 = vadd.f32 %v1291_v12, %v1232_v45  ;;  %v1552_v45 = vld [vmem:[#allocation2 + $0x79] sm:$0xf] }
 0x24b   : > { %v1400_v2 = vadd.f32 %v7935_v16, %v1363_v11  ;;  %2011 = vrot.lane.b32.xlu1 %v1936_v14, %s7341_s6 }
 0x24c   : > { %2205 = vrot.lane.b32.xlu0 %v2130_v46, %s7335_s7  ;;  %v1399_v3 = vadd.f32 %v7935_v16, %v1362_v55  ;;  %v1167_v15 = vpop.permute.xlu1 %1166 }
 0x24d   : > { %v1432_v60 = vmax.f32 %v1400_v2, 0.0  ;;  %v1165_v61 = vpop.permute.xlu0 %1164  ;;  %v1235_v19 = vadd.f32 %v7892_v4, %v1167_v15 }
 0x24e   : > { %v1431_v17 = vmax.f32 %v1399_v3, 0.0  ;;  %v1234_v50 = vadd.f32 %v1165_v61, %v7896_v5  ;;  %v1495_v22 = vld [vmem:[#allocation2 + $0xb8] sm:$0xf]  ;;  %v2134_v3 = vld [vmem:[#allocation2 + $0x7c] sm:$0xf] }
 0x24f   : > { %1465 = vst.msk [vmem:[#allocation2 + $0xc8] sm:$0xff] %vm1439_vm4, %v1432_v60  ;;  %1621 = vrot.lane.b32.xlu1 %v1547_v47, %s7339_s23  ;;  %v1494_v23 = vld [vmem:[#allocation2 + $0xb0] sm:$0xff] }
 0x250   : > { %1815 = vrot.lane.b32.xlu0 %v1741_v18, %s7340_s28  ;;  %1464 = vst.msk [vmem:[#allocation2 + $0xc0] sm:$0xff] %vm1439_vm4, %v1431_v17  ;;  %v1297_v51 = vpop.permute.xlu1 %1296  ;;  %1527 = vst.msk [vmem:[#allocation9 + $0xb0] sm:$0xff] %vm1439_vm4, %v1494_v23  ;;  %v1551_v61 = vld [vmem:[#allocation2 + $0x71] sm:$0xff]  ;;  %v1748_v23 = vld [vmem:[#allocation2 + $0x8a] sm:$0xf] }
 0x251   : > { %v1365_v20 = vadd.f32 %v1297_v51, %v1235_v19  ;;  %v1295_v21 = vpop.permute.xlu0 %1294  ;;  %1528 = vst.msk [vmem:[#allocation9 + $0xb8] sm:$0xf] %vm1505_vm5, %v1495_v22  ;;  %v1745_v17 = vld [vmem:[#allocation2 + $0x72] sm:$0xff]  ;;  %v1554_v51 = vld [vmem:[#allocation2 + $0x89] sm:$0xf] }
 0x252   : > { %v1364_v24 = vadd.f32 %v1295_v21, %v1234_v50 }
 0x253   : > { %v1402_v4 = vadd.f32 %v7935_v16, %v1365_v20  ;;  %1627 = vrot.lane.b32.xlu1 %v1550_v25, %s7339_s23  ;;  %v1939_v20 = vld [vmem:[#allocation2 + $0x73] sm:$0xff] }
 0x254   : > { %2009 = vrot.lane.b32.xlu0 %v1935_v26, %s7341_s6  ;;  %v1401_v5 = vadd.f32 %v7935_v16, %v1364_v24  ;;  %v1171_v56 = vpop.permute.xlu1 %1170  ;;  %v2133_v24 = vld [vmem:[#allocation2 + $0x74] sm:$0xff] }
 0x255   : > { %v1434_v57 = vmax.f32 %v1402_v4, 0.0  ;;  %v1169_v27 = vpop.permute.xlu0 %1168  ;;  %v1237_v29 = vadd.f32 %v7904_v6, %v1171_v56  ;;  %v1942_v4 = vld [vmem:[#allocation2 + $0x8b] sm:$0xf] }
 0x256   : > { %v1433_v62 = vmax.f32 %v1401_v5, 0.0  ;;  %v1236_v30 = vadd.f32 %v1169_v27, %v7908_v7  ;;  %v1497_v34 = vld [vmem:[#allocation2 + $0xc8] sm:$0xf]  ;;  %v2136_v5 = vld [vmem:[#allocation2 + $0x8c] sm:$0xf] }
 0x257   : > { %1467 = vst.msk [vmem:[#allocation2 + $0xd8] sm:$0xff] %vm1439_vm4, %v1434_v57  ;;  %1821 = vrot.lane.b32.xlu1 %v1744_v63, %s7340_s28  ;;  %v1496_v35 = vld [vmem:[#allocation2 + $0xc0] sm:$0xff] }
 0x258   : > { %2203 = vrot.lane.b32.xlu0 %v2129_v28, %s7335_s7  ;;  %1466 = vst.msk [vmem:[#allocation2 + $0xd0] sm:$0xff] %vm1439_vm4, %v1433_v62  ;;  %v1301_v31 = vpop.permute.xlu1 %1300  ;;  %1529 = vst.msk [vmem:[#allocation9 + $0xc0] sm:$0xff] %vm1439_vm4, %v1496_v35  ;;  %v1553_v27 = vld [vmem:[#allocation2 + $0x81] sm:$0xff]  ;;  %v1750_v35 = vld [vmem:[#allocation2 + $0x9a] sm:$0xf] }
 0x259   : > { %v1367_v32 = vadd.f32 %v1301_v31, %v1237_v29  ;;  %v1299_v33 = vpop.permute.xlu0 %1298  ;;  %1530 = vst.msk [vmem:[#allocation9 + $0xc8] sm:$0xf] %vm1505_vm5, %v1497_v34  ;;  %v1747_v62 = vld [vmem:[#allocation2 + $0x82] sm:$0xff] }
 0x25a   : > { %v1366_v52 = vadd.f32 %v1299_v33, %v1236_v30  ;;  %v1556_v30 = vld [vmem:[#allocation2 + $0x99] sm:$0xf]  ;;  %v1941_v31 = vld [vmem:[#allocation2 + $0x83] sm:$0xff] }
 0x25b   : > { %v1404_v6 = vadd.f32 %v7935_v16, %v1367_v32  ;;  %2015 = vrot.lane.b32.xlu1 %v1938_v53, %s7341_s6 }
 0x25c   : > { %2209 = vrot.lane.b32.xlu0 %v2132_v36, %s7335_s7  ;;  %v1403_v7 = vadd.f32 %v7935_v16, %v1366_v52  ;;  %v1175_v37 = vpop.permute.xlu1 %1174  ;;  %v2135_v52 = vld [vmem:[#allocation2 + $0x84] sm:$0xff] }
 0x25d   : > { %v1436_v48 = vmax.f32 %v1404_v6, 0.0  ;;  %v1173_v38 = vpop.permute.xlu0 %1172  ;;  %v1239_v1 = vadd.f32 %v7916_v8, %v1175_v37  ;;  %v1944_v6 = vld [vmem:[#allocation2 + $0x9b] sm:$0xf] }
 0x25e   : > { %v1435_v39 = vmax.f32 %v1403_v7, 0.0  ;;  %v1238_v59 = vadd.f32 %v1173_v38, %v7920_v9  ;;  %v1499_v42 = vld [vmem:[#allocation2 + $0xd8] sm:$0xf]  ;;  %v2138_v7 = vld [vmem:[#allocation2 + $0x9c] sm:$0xf] }
 0x25f   : > { %1469 = vst.msk [vmem:[#allocation2 + $0xe8] sm:$0xff] %vm1439_vm4, %v1436_v48  ;;  %1625 = vrot.lane.b32.xlu1 %v1549_v58, %s7339_s23  ;;  %v1498_v43 = vld [vmem:[#allocation2 + $0xd0] sm:$0xff] }
 0x260   : > { %1819 = vrot.lane.b32.xlu0 %v1743_v0, %s7340_s28  ;;  %1468 = vst.msk [vmem:[#allocation2 + $0xe0] sm:$0xff] %vm1439_vm4, %v1435_v39  ;;  %v1305_v49 = vpop.permute.xlu1 %1304  ;;  %1531 = vst.msk [vmem:[#allocation9 + $0xd0] sm:$0xff] %vm1439_vm4, %v1498_v43  ;;  %v1555_v38 = vld [vmem:[#allocation2 + $0x91] sm:$0xff]  ;;  %v1752_v43 = vld [vmem:[#allocation2 + $0xaa] sm:$0xf] }
 0x261   : > { %v1369_v40 = vadd.f32 %v1305_v49, %v1239_v1  ;;  %v1303_v41 = vpop.permute.xlu0 %1302  ;;  %1532 = vst.msk [vmem:[#allocation9 + $0xd8] sm:$0xf] %vm1505_vm5, %v1499_v42  ;;  %v1749_v39 = vld [vmem:[#allocation2 + $0x92] sm:$0xff] }
 0x262   : > { %v1368_v44 = vadd.f32 %v1303_v41, %v1238_v59  ;;  %v1558_v59 = vld [vmem:[#allocation2 + $0xa9] sm:$0xf]  ;;  %v1943_v49 = vld [vmem:[#allocation2 + $0x93] sm:$0xff] }
 0x263   : > { %v1406_v8 = vadd.f32 %v7935_v16, %v1369_v40  ;;  %1631 = vrot.lane.b32.xlu1 %v1552_v45, %s7339_s23 }
 0x264   : > { %2013 = vrot.lane.b32.xlu0 %v1937_v10, %s7341_s6  ;;  %v1405_v9 = vadd.f32 %v7935_v16, %v1368_v44  ;;  %v1940_v16 = vld [vmem:[#allocation2 + $0x7b] sm:$0xf] }
 0x265   : > { %v1438_v11 = vmax.f32 %v1406_v8, 0.0  ;;  %v2137_v44 = vld [vmem:[#allocation2 + $0x94] sm:$0xff]  ;;  %v1946_v8 = vld [vmem:[#allocation2 + $0xab] sm:$0xf] }
 0x266   : > { %v1437_v12 = vmax.f32 %v1405_v9, 0.0  ;;  %v1501_v46 = vld [vmem:[#allocation2 + $0xe8] sm:$0xf]  ;;  %v2140_v9 = vld [vmem:[#allocation2 + $0xac] sm:$0xf] }
 0x267   : > { %1471 = vst.msk [vmem:[#allocation2 + $0xf8] sm:$0xff] %vm1439_vm4, %v1438_v11  ;;  %1825 = vrot.lane.b32.xlu1 %v1746_v13, %s7340_s28  ;;  %v1500_v2 = vld [vmem:[#allocation2 + $0xe0] sm:$0xff] }
 0x268   : > { %2207 = vrot.lane.b32.xlu0 %v2131_v54, %s7335_s7  ;;  %1470 = vst.msk [vmem:[#allocation2 + $0xf0] sm:$0xff] %vm1439_vm4, %v1437_v12  ;;  %1533 = vst.msk [vmem:[#allocation9 + $0xe0] sm:$0xff] %vm1439_vm4, %v1500_v2  ;;  %v1557_v13 = vld [vmem:[#allocation2 + $0xa1] sm:$0xff]  ;;  %v1560_v2 = vld [vmem:[#allocation2 + $0xb9] sm:$0xf] }
 0x269   : > { %v1604_v55 = vpop.permute.xlu1 %1603  ;;  %1534 = vst.msk [vmem:[#allocation9 + $0xe8] sm:$0xf] %vm1505_vm5, %v1501_v46  ;;  %v1751_v54 = vld [vmem:[#allocation2 + $0xa2] sm:$0xff] }
 0x26a   : > { %v2186_v14 = vpop.permute.xlu0 %2185  ;;  %1700 = vst.msk [vmem:[#allocation9 + $0x8] sm:$0xf] %vm1699_vm6, %v1604_v55 }
 0x26b   : > { %2019 = vrot.lane.b32.xlu1 %v1940_v16, %s7341_s6  ;;  %v1945_v16 = vld [vmem:[#allocation2 + $0xa3] sm:$0xff] }
 0x26c   : > { %2213 = vrot.lane.b32.xlu0 %v2134_v3, %s7335_s7 }
 0x26d   : > { %v1798_v15 = vpop.permute.xlu1 %1797 }
 0x26e   : > { %v1602_v60 = vpop.permute.xlu0 %1601  ;;  %1894 = vst.msk [vmem:[#allocation9 + $0x8] sm:$0xf] %vm1893_vm7, %v1798_v15  ;;  %v1503_v47 = vld [vmem:[#allocation2 + $0xf8] sm:$0xf] }
 0x26f   : > { %1698 = vst.msk [vmem:[#allocation9] sm:$0xff] %vm1697_vm8, %v1602_v60  ;;  %1629 = vrot.lane.b32.xlu1 %v1551_v61, %s7339_s23  ;;  %v1502_v50 = vld [vmem:[#allocation2 + $0xf0] sm:$0xff]  ;;  %v1754_v61 = vld [vmem:[#allocation2 + $0xba] sm:$0xf] }
 0x270   : > { %1823 = vrot.lane.b32.xlu0 %v1745_v17, %s7340_s28  ;;  %1536 = vst.msk [vmem:[#allocation9 + $0xf8] sm:$0xf] %vm1505_vm5, %v1503_v47  ;;  %v2139_v17 = vld [vmem:[#allocation2 + $0xa4] sm:$0xff]  ;;  %vm3928_vm5 = vcmask 388352  }
 0x271   : > { %v1992_v18 = vpop.permute.xlu1 %1991  ;;  %1535 = vst.msk [vmem:[#allocation9 + $0xf0] sm:$0xff] %vm1439_vm4, %v1502_v50  ;;  %v2142_v50 = vld [vmem:[#allocation2 + $0xbc] sm:$0xf] }
 0x272   : > { %v1796_v19 = vpop.permute.xlu0 %1795  ;;  %2088 = vst.msk [vmem:[#allocation9 + $0x8] sm:$0xf] %vm2087_vm9, %v1992_v18 }
 0x273   : > { %1892 = vst.msk [vmem:[#allocation9] sm:$0xff] %vm1891_vm10, %v1796_v19  ;;  %1635 = vrot.lane.b32.xlu1 %v1554_v51, %s7339_s23  ;;  %v1948_v19 = vld [vmem:[#allocation2 + $0xbb] sm:$0xf] }
 0x274   : > { %2282 = vst.msk [vmem:[#allocation9 + $0x8] sm:$0xf] %vm2281_vm11, %v2186_v14  ;;  %2017 = vrot.lane.b32.xlu0 %v1939_v20, %s7341_s6 }
 0x275   : > { %v1608_v21 = vpop.permute.xlu1 %1607 }
 0x276   : > { %v1990_v22 = vpop.permute.xlu0 %1989  ;;  %1702 = vst.msk [vmem:[#allocation9 + $0x18] sm:$0xf] %vm1699_vm6, %v1608_v21  ;;  %v1559_v21 = vld [vmem:[#allocation2 + $0xb1] sm:$0xff] }
 0x277   : > { %2086 = vst.msk [vmem:[#allocation9] sm:$0xff] %vm2085_vm12, %v1990_v22  ;;  %1829 = vrot.lane.b32.xlu1 %v1748_v23, %s7340_s28  ;;  %v1753_v22 = vld [vmem:[#allocation2 + $0xb2] sm:$0xff] }
 0x278   : > { %2211 = vrot.lane.b32.xlu0 %v2133_v24, %s7335_s7 }
 0x279   : > { %v1802_v25 = vpop.permute.xlu1 %1801 }
 0x27a   : > { %v2184_v26 = vpop.permute.xlu0 %2183  ;;  %1896 = vst.msk [vmem:[#allocation9 + $0x18] sm:$0xf] %vm1893_vm7, %v1802_v25 }
 0x27b   : > { %2280 = vst.msk [vmem:[#allocation9] sm:$0xff] %vm2279_vm13, %v2184_v26  ;;  %2023 = vrot.lane.b32.xlu1 %v1942_v4, %s7341_s6  ;;  %v2314_v32 = vld [vmem:[#allocation9 + $0x8] sm:$0xff]  ;;  %v1947_v4 = vld [vmem:[#allocation2 + $0xb3] sm:$0xff] }
 0x27c   : > { %2217 = vrot.lane.b32.xlu0 %v2136_v5, %s7335_s7  ;;  %v1562_v26 = vld [vmem:[#allocation2 + $0xc9] sm:$0xf] }
 0x27d   : > { %v1996_v56 = vpop.permute.xlu1 %1995 }
 0x27e   : > { %v2190_v57 = vpop.permute.xlu0 %2189  ;;  %2090 = vst.msk [vmem:[#allocation9 + $0x18] sm:$0xf] %vm2087_vm9, %v1996_v56 }
 0x27f   : > { %2284 = vst.msk [vmem:[#allocation9 + $0x18] sm:$0xf] %vm2281_vm11, %v2190_v57  ;;  %1633 = vrot.lane.b32.xlu1 %v1553_v27, %s7339_s23  ;;  %v1756_v27 = vld [vmem:[#allocation2 + $0xca] sm:$0xf] }
 0x280   : > { %1827 = vrot.lane.b32.xlu0 %v1747_v62, %s7340_s28  ;;  %v2141_v62 = vld [vmem:[#allocation2 + $0xb4] sm:$0xff] }
 0x281   : > { %v1606_v63 = vpop.permute.xlu1 %1605 }
 0x282   : > { %v1800_v28 = vpop.permute.xlu0 %1799  ;;  %v2313_v29 = vld [vmem:[#allocation9] sm:$0xff]  ;;  %1701 = vst.msk [vmem:[#allocation9 + $0x10] sm:$0xff] %vm1697_vm8, %v1606_v63 }
 0x283   : > { %7010 = vmatprep.mubr.msk.f32.mxu1 %vm2350_vm14, %v2313_v29  ;;  %1895 = vst.msk [vmem:[#allocation9 + $0x10] sm:$0xff] %vm1891_vm10, %v1800_v28  ;;  %1639 = vrot.lane.b32.xlu1 %v1556_v30, %s7339_s23  ;;  %v1950_v29 = vld [vmem:[#allocation2 + $0xcb] sm:$0xf] }
 0x284   : > { %2021 = vrot.lane.b32.xlu0 %v1941_v31, %s7341_s6  ;;  %7011 = vmatmul.mubr.msk.f32.vlgmr.msra.gmra.mrb[0].mxu1 %vm2350_vm14, %v2314_v32  ;;  %v2144_v30 = vld [vmem:[#allocation2 + $0xcc] sm:$0xf] }
 0x285   : > { %v1612_v33 = vpop.permute.xlu1 %1611 }
 0x286   : > { %v1994_v34 = vpop.permute.xlu0 %1993  ;;  %1704 = vst.msk [vmem:[#allocation9 + $0x28] sm:$0xf] %vm1699_vm6, %v1612_v33  ;;  %v2316_v40 = vld [vmem:[#allocation9 + $0x18] sm:$0xff]  ;;  %v1561_v33 = vld [vmem:[#allocation2 + $0xc1] sm:$0xff] }
 0x287   : > { %2089 = vst.msk [vmem:[#allocation9 + $0x10] sm:$0xff] %vm2085_vm12, %v1994_v34  ;;  %1833 = vrot.lane.b32.xlu1 %v1750_v35, %s7340_s28  ;;  %v1755_v34 = vld [vmem:[#allocation2 + $0xc2] sm:$0xff] }
 0x288   : > { %2215 = vrot.lane.b32.xlu0 %v2135_v52, %s7335_s7 }
 0x289   : > { %v1806_v53 = vpop.permute.xlu1 %1805 }
 0x28a   : > { %v2188_v36 = vpop.permute.xlu0 %2187  ;;  %1898 = vst.msk [vmem:[#allocation9 + $0x28] sm:$0xf] %vm1893_vm7, %v1806_v53 }
 0x28b   : > { %2283 = vst.msk [vmem:[#allocation9 + $0x10] sm:$0xff] %vm2279_vm13, %v2188_v36  ;;  %2027 = vrot.lane.b32.xlu1 %v1944_v6, %s7341_s6  ;;  %v1564_v36 = vld [vmem:[#allocation2 + $0xd9] sm:$0xf]  ;;  %v1949_v6 = vld [vmem:[#allocation2 + $0xc3] sm:$0xff] }
 0x28c   : > { %2221 = vrot.lane.b32.xlu0 %v2138_v7, %s7335_s7 }
 0x28d   : > { %v2000_v37 = vpop.permute.xlu1 %1999 }
 0x28e   : > { %v2194_v48 = vpop.permute.xlu0 %2193  ;;  %2092 = vst.msk [vmem:[#allocation9 + $0x28] sm:$0xf] %vm2087_vm9, %v2000_v37 }
 0x28f   : > { %2286 = vst.msk [vmem:[#allocation9 + $0x28] sm:$0xf] %vm2281_vm11, %v2194_v48  ;;  %1637 = vrot.lane.b32.xlu1 %v1555_v38, %s7339_s23  ;;  %v1758_v38 = vld [vmem:[#allocation2 + $0xda] sm:$0xf] }
 0x290   : > { %1831 = vrot.lane.b32.xlu0 %v1749_v39, %s7340_s28  ;;  %v2143_v39 = vld [vmem:[#allocation2 + $0xc4] sm:$0xff] }
 0x291   : > { %v1610_v58 = vpop.permute.xlu1 %1609 }
 0x292   : > { %v1804_v0 = vpop.permute.xlu0 %1803  ;;  %v2315_v1 = vld [vmem:[#allocation9 + $0x10] sm:$0xff]  ;;  %1703 = vst.msk [vmem:[#allocation9 + $0x20] sm:$0xff] %vm1697_vm8, %v1610_v58 }
 0x293   : > { %7013 = vmatprep.mubr.msk.f32.mxu1 %vm2350_vm14, %v2315_v1  ;;  %1897 = vst.msk [vmem:[#allocation9 + $0x20] sm:$0xff] %vm1891_vm10, %v1804_v0  ;;  %1643 = vrot.lane.b32.xlu1 %v1558_v59, %s7339_s23  ;;  %v1952_v1 = vld [vmem:[#allocation2 + $0xdb] sm:$0xf] }
 0x294   : > { %2025 = vrot.lane.b32.xlu0 %v1943_v49, %s7341_s6  ;;  %7014 = vmatmul.mubr.msk.f32.gmra.mrb[2].mxu1 %vm2350_vm14, %v2316_v40  ;;  %v2146_v59 = vld [vmem:[#allocation2 + $0xdc] sm:$0xf] }
 0x295   : > { %v1616_v41 = vpop.permute.xlu1 %1615 }
 0x296   : > { %v1998_v42 = vpop.permute.xlu0 %1997  ;;  %1706 = vst.msk [vmem:[#allocation9 + $0x38] sm:$0xf] %vm1699_vm6, %v1616_v41  ;;  %v2318_v3 = vld [vmem:[#allocation9 + $0x28] sm:$0xff]  ;;  %v1563_v41 = vld [vmem:[#allocation2 + $0xd1] sm:$0xff] }
 0x297   : > { %2091 = vst.msk [vmem:[#allocation9 + $0x20] sm:$0xff] %vm2085_vm12, %v1998_v42  ;;  %1837 = vrot.lane.b32.xlu1 %v1752_v43, %s7340_s28  ;;  %v1757_v42 = vld [vmem:[#allocation2 + $0xd2] sm:$0xff] }
 0x298   : > { %2219 = vrot.lane.b32.xlu0 %v2137_v44, %s7335_s7 }
 0x299   : > { %v1810_v45 = vpop.permute.xlu1 %1809 }
 0x29a   : > { %v2192_v10 = vpop.permute.xlu0 %2191  ;;  %1900 = vst.msk [vmem:[#allocation9 + $0x38] sm:$0xf] %vm1893_vm7, %v1810_v45 }
 0x29b   : > { %2285 = vst.msk [vmem:[#allocation9 + $0x20] sm:$0xff] %vm2279_vm13, %v2192_v10  ;;  %2031 = vrot.lane.b32.xlu1 %v1946_v8, %s7341_s6  ;;  %v1566_v10 = vld [vmem:[#allocation2 + $0xe9] sm:$0xf]  ;;  %v1951_v8 = vld [vmem:[#allocation2 + $0xd3] sm:$0xff] }
 0x29c   : > { %2225 = vrot.lane.b32.xlu0 %v2140_v9, %s7335_s7 }
 0x29d   : > { %v2004_v11 = vpop.permute.xlu1 %2003 }
 0x29e   : > { %v2198_v12 = vpop.permute.xlu0 %2197  ;;  %2094 = vst.msk [vmem:[#allocation9 + $0x38] sm:$0xf] %vm2087_vm9, %v2004_v11 }
 0x29f   : > { %2288 = vst.msk [vmem:[#allocation9 + $0x38] sm:$0xf] %vm2281_vm11, %v2198_v12  ;;  %1641 = vrot.lane.b32.xlu1 %v1557_v13, %s7339_s23  ;;  %v1760_v13 = vld [vmem:[#allocation2 + $0xea] sm:$0xf] }
 0x2a0   : > { %1835 = vrot.lane.b32.xlu0 %v1751_v54, %s7340_s28  ;;  %v2145_v54 = vld [vmem:[#allocation2 + $0xd4] sm:$0xff] }
 0x2a1   : > { %v1614_v55 = vpop.permute.xlu1 %1613 }
 0x2a2   : > { %v1808_v14 = vpop.permute.xlu0 %1807  ;;  %v2317_v46 = vld [vmem:[#allocation9 + $0x20] sm:$0xff]  ;;  %1705 = vst.msk [vmem:[#allocation9 + $0x30] sm:$0xff] %vm1697_vm8, %v1614_v55 }
 0x2a3   : > { %7016 = vmatprep.mubr.msk.f32.mxu1 %vm2350_vm14, %v2317_v46  ;;  %1899 = vst.msk [vmem:[#allocation9 + $0x30] sm:$0xff] %vm1891_vm10, %v1808_v14  ;;  %1647 = vrot.lane.b32.xlu1 %v1560_v2, %s7339_s23  ;;  %v1954_v46 = vld [vmem:[#allocation2 + $0xeb] sm:$0xf] }
 0x2a4   : > { %2029 = vrot.lane.b32.xlu0 %v1945_v16, %s7341_s6  ;;  %7017 = vmatmul.mubr.msk.f32.gmra.mrb[4].mxu1 %vm2350_vm14, %v2318_v3  ;;  %v2148_v2 = vld [vmem:[#allocation2 + $0xec] sm:$0xf] }
 0x2a5   : > { %v1620_v15 = vpop.permute.xlu1 %1619 }
 0x2a6   : > { %v2002_v60 = vpop.permute.xlu0 %2001  ;;  %1708 = vst.msk [vmem:[#allocation9 + $0x48] sm:$0xf] %vm1699_vm6, %v1620_v15  ;;  %v2320_v5 = vld [vmem:[#allocation9 + $0x38] sm:$0xff]  ;;  %v1565_v15 = vld [vmem:[#allocation2 + $0xe1] sm:$0xff] }
 0x2a7   : > { %2093 = vst.msk [vmem:[#allocation9 + $0x30] sm:$0xff] %vm2085_vm12, %v2002_v60  ;;  %1841 = vrot.lane.b32.xlu1 %v1754_v61, %s7340_s28  ;;  %v1759_v60 = vld [vmem:[#allocation2 + $0xe2] sm:$0xff] }
 0x2a8   : > { %2223 = vrot.lane.b32.xlu0 %v2139_v17, %s7335_s7 }
 0x2a9   : > { %v1814_v47 = vpop.permute.xlu1 %1813 }
 0x2aa   : > { %v2196_v18 = vpop.permute.xlu0 %2195  ;;  %1902 = vst.msk [vmem:[#allocation9 + $0x48] sm:$0xf] %vm1893_vm7, %v1814_v47 }
 0x2ab   : > { %2287 = vst.msk [vmem:[#allocation9 + $0x30] sm:$0xff] %vm2279_vm13, %v2196_v18  ;;  %2035 = vrot.lane.b32.xlu1 %v1948_v19, %s7341_s6  ;;  %v1568_v18 = vld [vmem:[#allocation2 + $0xf9] sm:$0xf]  ;;  %v1953_v19 = vld [vmem:[#allocation2 + $0xe3] sm:$0xff] }
 0x2ac   : > { %2229 = vrot.lane.b32.xlu0 %v2142_v50, %s7335_s7 }
 0x2ad   : > { %v2008_v51 = vpop.permute.xlu1 %2007 }
 0x2ae   : > { %v2202_v20 = vpop.permute.xlu0 %2201  ;;  %2096 = vst.msk [vmem:[#allocation9 + $0x48] sm:$0xf] %vm2087_vm9, %v2008_v51 }
 0x2af   : > { %2290 = vst.msk [vmem:[#allocation9 + $0x48] sm:$0xf] %vm2281_vm11, %v2202_v20  ;;  %1645 = vrot.lane.b32.xlu1 %v1559_v21, %s7339_s23  ;;  %v1762_v21 = vld [vmem:[#allocation2 + $0xfa] sm:$0xf] }
 0x2b0   : > { %1839 = vrot.lane.b32.xlu0 %v1753_v22, %s7340_s28  ;;  %v2147_v22 = vld [vmem:[#allocation2 + $0xe4] sm:$0xff] }
 0x2b1   : > { %v1618_v23 = vpop.permute.xlu1 %1617 }
 0x2b2   : > { %v1812_v24 = vpop.permute.xlu0 %1811  ;;  %v2319_v25 = vld [vmem:[#allocation9 + $0x30] sm:$0xff]  ;;  %1707 = vst.msk [vmem:[#allocation9 + $0x40] sm:$0xff] %vm1697_vm8, %v1618_v23 }
 0x2b3   : > { %7019 = vmatprep.mubr.msk.f32.mxu1 %vm2350_vm14, %v2319_v25  ;;  %1901 = vst.msk [vmem:[#allocation9 + $0x40] sm:$0xff] %vm1891_vm10, %v1812_v24  ;;  %1651 = vrot.lane.b32.xlu1 %v1562_v26, %s7339_s23  ;;  %v1956_v25 = vld [vmem:[#allocation2 + $0xfb] sm:$0xf]  ;;  %v1761_v26 = vld [vmem:[#allocation2 + $0xf2] sm:$0xff] }
 0x2b4   : > { %2033 = vrot.lane.b32.xlu0 %v1947_v4, %s7341_s6  ;;  %7020 = vmatmul.mubr.msk.f32.gmra.mrb[6].mxu1 %vm2350_vm14, %v2320_v5 }
 0x2b5   : > { %v1624_v56 = vpop.permute.xlu1 %1623 }
 0x2b6   : > { %v2006_v57 = vpop.permute.xlu0 %2005  ;;  %1710 = vst.msk [vmem:[#allocation9 + $0x58] sm:$0xf] %vm1699_vm6, %v1624_v56  ;;  %v2322_v7 = vld [vmem:[#allocation9 + $0x48] sm:$0xff]  ;;  %v1567_v56 = vld [vmem:[#allocation2 + $0xf1] sm:$0xff] }
 0x2b7   : > { %2095 = vst.msk [vmem:[#allocation9 + $0x40] sm:$0xff] %vm2085_vm12, %v2006_v57  ;;  %1845 = vrot.lane.b32.xlu1 %v1756_v27, %s7340_s28  ;;  %v1955_v57 = vld [vmem:[#allocation2 + $0xf3] sm:$0xff] }
 0x2b8   : > { %2227 = vrot.lane.b32.xlu0 %v2141_v62, %s7335_s7 }
 0x2b9   : > { %v1818_v63 = vpop.permute.xlu1 %1817 }
 0x2ba   : > { %v2200_v28 = vpop.permute.xlu0 %2199  ;;  %1904 = vst.msk [vmem:[#allocation9 + $0x58] sm:$0xf] %vm1893_vm7, %v1818_v63 }
 0x2bb   : > { %2289 = vst.msk [vmem:[#allocation9 + $0x40] sm:$0xff] %vm2279_vm13, %v2200_v28  ;;  %2039 = vrot.lane.b32.xlu1 %v1950_v29, %s7341_s6  ;;  %v2150_v28 = vld [vmem:[#allocation2 + $0xfc] sm:$0xf]  ;;  %v2149_v29 = vld [vmem:[#allocation2 + $0xf4] sm:$0xff] }
 0x2bc   : > { %2233 = vrot.lane.b32.xlu0 %v2144_v30, %s7335_s7 }
 0x2bd   : > { %v2012_v31 = vpop.permute.xlu1 %2011 }
 0x2be   : > { %v2206_v32 = vpop.permute.xlu0 %2205  ;;  %2098 = vst.msk [vmem:[#allocation9 + $0x58] sm:$0xf] %vm2087_vm9, %v2012_v31 }
 0x2bf   : > { %2292 = vst.msk [vmem:[#allocation9 + $0x58] sm:$0xf] %vm2281_vm11, %v2206_v32  ;;  %1649 = vrot.lane.b32.xlu1 %v1561_v33, %s7339_s23 }
 0x2c0   : > { %1843 = vrot.lane.b32.xlu0 %v1755_v34, %s7340_s28 }
 0x2c1   : > { %v1622_v35 = vpop.permute.xlu1 %1621 }
 0x2c2   : > { %v1816_v52 = vpop.permute.xlu0 %1815  ;;  %v2321_v53 = vld [vmem:[#allocation9 + $0x40] sm:$0xff]  ;;  %1709 = vst.msk [vmem:[#allocation9 + $0x50] sm:$0xff] %vm1697_vm8, %v1622_v35 }
 0x2c3   : > { %7022 = vmatprep.mubr.msk.f32.mxu1 %vm2350_vm14, %v2321_v53  ;;  %1903 = vst.msk [vmem:[#allocation9 + $0x50] sm:$0xff] %vm1891_vm10, %v1816_v52  ;;  %1655 = vrot.lane.b32.xlu1 %v1564_v36, %s7339_s23 }
 0x2c4   : > { %2037 = vrot.lane.b32.xlu0 %v1949_v6, %s7341_s6  ;;  %7023 = vmatmul.mubr.msk.f32.gmra.mrb[8].mxu1 %vm2350_vm14, %v2322_v7 }
 0x2c5   : > { %v1628_v37 = vpop.permute.xlu1 %1627 }
 0x2c6   : > { %v2010_v48 = vpop.permute.xlu0 %2009  ;;  %1712 = vst.msk [vmem:[#allocation9 + $0x68] sm:$0xf] %vm1699_vm6, %v1628_v37  ;;  %v2324_v9 = vld [vmem:[#allocation9 + $0x58] sm:$0xff] }
 0x2c7   : > { %2097 = vst.msk [vmem:[#allocation9 + $0x50] sm:$0xff] %vm2085_vm12, %v2010_v48  ;;  %1849 = vrot.lane.b32.xlu1 %v1758_v38, %s7340_s28 }
 0x2c8   : > { %2231 = vrot.lane.b32.xlu0 %v2143_v39, %s7335_s7 }
 0x2c9   : > { %v1822_v58 = vpop.permute.xlu1 %1821 }
 0x2ca   : > { %v2204_v0 = vpop.permute.xlu0 %2203  ;;  %1906 = vst.msk [vmem:[#allocation9 + $0x68] sm:$0xf] %vm1893_vm7, %v1822_v58 }
 0x2cb   : > { %2291 = vst.msk [vmem:[#allocation9 + $0x50] sm:$0xff] %vm2279_vm13, %v2204_v0  ;;  %2043 = vrot.lane.b32.xlu1 %v1952_v1, %s7341_s6 }
 0x2cc   : > { %2237 = vrot.lane.b32.xlu0 %v2146_v59, %s7335_s7 }
 0x2cd   : > { %v2016_v49 = vpop.permute.xlu1 %2015 }
 0x2ce   : > { %v2210_v40 = vpop.permute.xlu0 %2209  ;;  %2100 = vst.msk [vmem:[#allocation9 + $0x68] sm:$0xf] %vm2087_vm9, %v2016_v49 }
 0x2cf   : > { %2294 = vst.msk [vmem:[#allocation9 + $0x68] sm:$0xf] %vm2281_vm11, %v2210_v40  ;;  %1653 = vrot.lane.b32.xlu1 %v1563_v41, %s7339_s23 }
 0x2d0   : > { %1847 = vrot.lane.b32.xlu0 %v1757_v42, %s7340_s28 }
 0x2d1   : > { %v1626_v43 = vpop.permute.xlu1 %1625 }
 0x2d2   : > { %v1820_v44 = vpop.permute.xlu0 %1819  ;;  %v2323_v45 = vld [vmem:[#allocation9 + $0x50] sm:$0xff]  ;;  %1711 = vst.msk [vmem:[#allocation9 + $0x60] sm:$0xff] %vm1697_vm8, %v1626_v43 }
 0x2d3   : > { %7025 = vmatprep.mubr.msk.f32.mxu1 %vm2350_vm14, %v2323_v45  ;;  %1905 = vst.msk [vmem:[#allocation9 + $0x60] sm:$0xff] %vm1891_vm10, %v1820_v44  ;;  %1659 = vrot.lane.b32.xlu1 %v1566_v10, %s7339_s23 }
 0x2d4   : > { %2041 = vrot.lane.b32.xlu0 %v1951_v8, %s7341_s6  ;;  %7026 = vmatmul.mubr.msk.f32.gmra.mrb[10].mxu1 %vm2350_vm14, %v2324_v9 }
 0x2d5   : > { %v1632_v11 = vpop.permute.xlu1 %1631 }
 0x2d6   : > { %v2014_v12 = vpop.permute.xlu0 %2013  ;;  %1714 = vst.msk [vmem:[#allocation9 + $0x78] sm:$0xf] %vm1699_vm6, %v1632_v11  ;;  %v2326_v50 = vld [vmem:[#allocation9 + $0x68] sm:$0xff] }
 0x2d7   : > { %2099 = vst.msk [vmem:[#allocation9 + $0x60] sm:$0xff] %vm2085_vm12, %v2014_v12  ;;  %1853 = vrot.lane.b32.xlu1 %v1760_v13, %s7340_s28 }
 0x2d8   : > { %2235 = vrot.lane.b32.xlu0 %v2145_v54, %s7335_s7 }
 0x2d9   : > { %v1826_v55 = vpop.permute.xlu1 %1825 }
 0x2da   : > { %v2208_v14 = vpop.permute.xlu0 %2207  ;;  %1908 = vst.msk [vmem:[#allocation9 + $0x78] sm:$0xf] %vm1893_vm7, %v1826_v55 }
 0x2db   : > { %2293 = vst.msk [vmem:[#allocation9 + $0x60] sm:$0xff] %vm2279_vm13, %v2208_v14  ;;  %2047 = vrot.lane.b32.xlu1 %v1954_v46, %s7341_s6 }
 0x2dc   : > { %2241 = vrot.lane.b32.xlu0 %v2148_v2, %s7335_s7 }
 0x2dd   : > { %v2020_v16 = vpop.permute.xlu1 %2019 }
 0x2de   : > { %v2214_v3 = vpop.permute.xlu0 %2213  ;;  %2102 = vst.msk [vmem:[#allocation9 + $0x78] sm:$0xf] %vm2087_vm9, %v2020_v16 }
 0x2df   : > { %2296 = vst.msk [vmem:[#allocation9 + $0x78] sm:$0xf] %vm2281_vm11, %v2214_v3  ;;  %1657 = vrot.lane.b32.xlu1 %v1565_v15, %s7339_s23 }
 0x2e0   : > { %1851 = vrot.lane.b32.xlu0 %v1759_v60, %s7340_s28 }
 0x2e1   : > { %v1630_v61 = vpop.permute.xlu1 %1629 }
 0x2e2   : > { %v1824_v17 = vpop.permute.xlu0 %1823  ;;  %v2325_v47 = vld [vmem:[#allocation9 + $0x60] sm:$0xff]  ;;  %1713 = vst.msk [vmem:[#allocation9 + $0x70] sm:$0xff] %vm1697_vm8, %v1630_v61 }
 0x2e3   : > { %7028 = vmatprep.mubr.msk.f32.mxu1 %vm2350_vm14, %v2325_v47  ;;  %1907 = vst.msk [vmem:[#allocation9 + $0x70] sm:$0xff] %vm1891_vm10, %v1824_v17  ;;  %1663 = vrot.lane.b32.xlu1 %v1568_v18, %s7339_s23 }
 0x2e4   : > { %2045 = vrot.lane.b32.xlu0 %v1953_v19, %s7341_s6  ;;  %7029 = vmatmul.mubr.msk.f32.gmra.mrb[12].mxu1 %vm2350_vm14, %v2326_v50 }
 0x2e5   : > { %v1636_v51 = vpop.permute.xlu1 %1635 }
 0x2e6   : > { %v2018_v20 = vpop.permute.xlu0 %2017  ;;  %1716 = vst.msk [vmem:[#allocation9 + $0x88] sm:$0xf] %vm1699_vm6, %v1636_v51  ;;  %v2328_v30 = vld [vmem:[#allocation9 + $0x78] sm:$0xff] }
 0x2e7   : > { %2101 = vst.msk [vmem:[#allocation9 + $0x70] sm:$0xff] %vm2085_vm12, %v2018_v20  ;;  %1857 = vrot.lane.b32.xlu1 %v1762_v21, %s7340_s28 }
 0x2e8   : > { %2239 = vrot.lane.b32.xlu0 %v2147_v22, %s7335_s7 }
 0x2e9   : > { %v1830_v23 = vpop.permute.xlu1 %1829 }
 0x2ea   : > { %v2212_v24 = vpop.permute.xlu0 %2211  ;;  %1910 = vst.msk [vmem:[#allocation9 + $0x88] sm:$0xf] %vm1893_vm7, %v1830_v23 }
 0x2eb   : > { %2295 = vst.msk [vmem:[#allocation9 + $0x70] sm:$0xff] %vm2279_vm13, %v2212_v24  ;;  %2051 = vrot.lane.b32.xlu1 %v1956_v25, %s7341_s6 }
 0x2ec   : > { %1855 = vrot.lane.b32.xlu0 %v1761_v26, %s7340_s28 }
 0x2ed   : > { %v2024_v4 = vpop.permute.xlu1 %2023 }
 0x2ee   : > { %v2218_v5 = vpop.permute.xlu0 %2217  ;;  %2104 = vst.msk [vmem:[#allocation9 + $0x88] sm:$0xf] %vm2087_vm9, %v2024_v4 }
 0x2ef   : > { %2298 = vst.msk [vmem:[#allocation9 + $0x88] sm:$0xf] %vm2281_vm11, %v2218_v5  ;;  %1661 = vrot.lane.b32.xlu1 %v1567_v56, %s7339_s23 }
 0x2f0   : > { %2049 = vrot.lane.b32.xlu0 %v1955_v57, %s7341_s6 }
 0x2f1   : > { %v1634_v27 = vpop.permute.xlu1 %1633 }
 0x2f2   : > { %v1828_v62 = vpop.permute.xlu0 %1827  ;;  %v2327_v63 = vld [vmem:[#allocation9 + $0x70] sm:$0xff]  ;;  %1715 = vst.msk [vmem:[#allocation9 + $0x80] sm:$0xff] %vm1697_vm8, %v1634_v27 }
 0x2f3   : > { %7031 = vmatprep.mubr.msk.f32.mxu1 %vm2350_vm14, %v2327_v63  ;;  %1909 = vst.msk [vmem:[#allocation9 + $0x80] sm:$0xff] %vm1891_vm10, %v1828_v62  ;;  %2245 = vrot.lane.b32.xlu1 %v2150_v28, %s7335_s7 }
 0x2f4   : > { %2243 = vrot.lane.b32.xlu0 %v2149_v29, %s7335_s7  ;;  %7032 = vmatmul.mubr.msk.f32.gmra.mrb[14].mxu1 %vm2350_vm14, %v2328_v30 }
 0x2f5   : > { %v1640_v31 = vpop.permute.xlu1 %1639 }
 0x2f6   : > { %v2022_v32 = vpop.permute.xlu0 %2021  ;;  %1718 = vst.msk [vmem:[#allocation9 + $0x98] sm:$0xf] %vm1699_vm6, %v1640_v31  ;;  %v2330_v7 = vld [vmem:[#allocation9 + $0x88] sm:$0xff] }
 0x2f7   : > { %2103 = vst.msk [vmem:[#allocation9 + $0x80] sm:$0xff] %vm2085_vm12, %v2022_v32 }
 0x2f9   : > { %v1834_v33 = vpop.permute.xlu1 %1833 }
 0x2fa   : > { %v2216_v34 = vpop.permute.xlu0 %2215  ;;  %1912 = vst.msk [vmem:[#allocation9 + $0x98] sm:$0xf] %vm1893_vm7, %v1834_v33 }
 0x2fb   : > { %2297 = vst.msk [vmem:[#allocation9 + $0x80] sm:$0xff] %vm2279_vm13, %v2216_v34 }
 0x2fd   : > { %v2028_v35 = vpop.permute.xlu1 %2027 }
 0x2fe   : > { %v2222_v52 = vpop.permute.xlu0 %2221  ;;  %2106 = vst.msk [vmem:[#allocation9 + $0x98] sm:$0xf] %vm2087_vm9, %v2028_v35 }
 0x2ff   : > { %2300 = vst.msk [vmem:[#allocation9 + $0x98] sm:$0xf] %vm2281_vm11, %v2222_v52 }
 0x301   : > { %v1638_v53 = vpop.permute.xlu1 %1637 }
 0x302   : > { %v1832_v36 = vpop.permute.xlu0 %1831  ;;  %v2329_v6 = vld [vmem:[#allocation9 + $0x80] sm:$0xff]  ;;  %1717 = vst.msk [vmem:[#allocation9 + $0x90] sm:$0xff] %vm1697_vm8, %v1638_v53 }
 0x303   : > { %7034 = vmatprep.mubr.msk.f32.mxu1 %vm2350_vm14, %v2329_v6  ;;  %1911 = vst.msk [vmem:[#allocation9 + $0x90] sm:$0xff] %vm1891_vm10, %v1832_v36 }
 0x304   : > { %7035 = vmatmul.mubr.msk.f32.gmra.mrb[16].mxu1 %vm2350_vm14, %v2330_v7 }
 0x305   : > { %v1644_v37 = vpop.permute.xlu1 %1643 }
 0x306   : > { %v2026_v48 = vpop.permute.xlu0 %2025  ;;  %1720 = vst.msk [vmem:[#allocation9 + $0xa8] sm:$0xf] %vm1699_vm6, %v1644_v37  ;;  %v2332_v40 = vld [vmem:[#allocation9 + $0x98] sm:$0xff] }
 0x307   : > { %2105 = vst.msk [vmem:[#allocation9 + $0x90] sm:$0xff] %vm2085_vm12, %v2026_v48 }
 0x309   : > { %v1838_v38 = vpop.permute.xlu1 %1837 }
 0x30a   : > { %v2220_v39 = vpop.permute.xlu0 %2219  ;;  %1914 = vst.msk [vmem:[#allocation9 + $0xa8] sm:$0xf] %vm1893_vm7, %v1838_v38 }
 0x30b   : > { %2299 = vst.msk [vmem:[#allocation9 + $0x90] sm:$0xff] %vm2279_vm13, %v2220_v39 }
 0x30d   : > { %v2032_v58 = vpop.permute.xlu1 %2031 }
 0x30e   : > { %v2226_v0 = vpop.permute.xlu0 %2225  ;;  %2108 = vst.msk [vmem:[#allocation9 + $0xa8] sm:$0xf] %vm2087_vm9, %v2032_v58 }
 0x30f   : > { %2302 = vst.msk [vmem:[#allocation9 + $0xa8] sm:$0xf] %vm2281_vm11, %v2226_v0 }
 0x311   : > { %v1642_v1 = vpop.permute.xlu1 %1641 }
 0x312   : > { %v1836_v59 = vpop.permute.xlu0 %1835  ;;  %v2331_v49 = vld [vmem:[#allocation9 + $0x90] sm:$0xff]  ;;  %1719 = vst.msk [vmem:[#allocation9 + $0xa0] sm:$0xff] %vm1697_vm8, %v1642_v1 }
 0x313   : > { %7037 = vmatprep.mubr.msk.f32.mxu1 %vm2350_vm14, %v2331_v49  ;;  %1913 = vst.msk [vmem:[#allocation9 + $0xa0] sm:$0xff] %vm1891_vm10, %v1836_v59 }
 0x314   : > { %7038 = vmatmul.mubr.msk.f32.gmra.mrb[18].mxu1 %vm2350_vm14, %v2332_v40 }
 0x315   : > { %v1648_v41 = vpop.permute.xlu1 %1647 }
 0x316   : > { %v2030_v42 = vpop.permute.xlu0 %2029  ;;  %1722 = vst.msk [vmem:[#allocation9 + $0xb8] sm:$0xf] %vm1699_vm6, %v1648_v41  ;;  %v2334_v12 = vld [vmem:[#allocation9 + $0xa8] sm:$0xff] }
 0x317   : > { %2107 = vst.msk [vmem:[#allocation9 + $0xa0] sm:$0xff] %vm2085_vm12, %v2030_v42 }
 0x319   : > { %v1842_v43 = vpop.permute.xlu1 %1841 }
 0x31a   : > { %v2224_v44 = vpop.permute.xlu0 %2223  ;;  %1916 = vst.msk [vmem:[#allocation9 + $0xb8] sm:$0xf] %vm1893_vm7, %v1842_v43 }
 0x31b   : > { %2301 = vst.msk [vmem:[#allocation9 + $0xa0] sm:$0xff] %vm2279_vm13, %v2224_v44 }
 0x31d   : > { %v2036_v45 = vpop.permute.xlu1 %2035 }
 0x31e   : > { %v2230_v10 = vpop.permute.xlu0 %2229  ;;  %2110 = vst.msk [vmem:[#allocation9 + $0xb8] sm:$0xf] %vm2087_vm9, %v2036_v45 }
 0x31f   : > { %2304 = vst.msk [vmem:[#allocation9 + $0xb8] sm:$0xf] %vm2281_vm11, %v2230_v10 }
 0x321   : > { %v1646_v8 = vpop.permute.xlu1 %1645 }
 0x322   : > { %v1840_v9 = vpop.permute.xlu0 %1839  ;;  %v2333_v11 = vld [vmem:[#allocation9 + $0xa0] sm:$0xff]  ;;  %1721 = vst.msk [vmem:[#allocation9 + $0xb0] sm:$0xff] %vm1697_vm8, %v1646_v8 }
 0x323   : > { %7040 = vmatprep.mubr.msk.f32.mxu1 %vm2350_vm14, %v2333_v11  ;;  %1915 = vst.msk [vmem:[#allocation9 + $0xb0] sm:$0xff] %vm1891_vm10, %v1840_v9 }
 0x324   : > { %7041 = vmatmul.mubr.msk.f32.gmra.mrb[20].mxu1 %vm2350_vm14, %v2334_v12 }
 0x325   : > { %v1652_v13 = vpop.permute.xlu1 %1651 }
 0x326   : > { %v2034_v54 = vpop.permute.xlu0 %2033  ;;  %1724 = vst.msk [vmem:[#allocation9 + $0xc8] sm:$0xf] %vm1699_vm6, %v1652_v13  ;;  %v2336_v60 = vld [vmem:[#allocation9 + $0xb8] sm:$0xff] }
 0x327   : > { %2109 = vst.msk [vmem:[#allocation9 + $0xb0] sm:$0xff] %vm2085_vm12, %v2034_v54 }
 0x329   : > { %v1846_v55 = vpop.permute.xlu1 %1845 }
 0x32a   : > { %v2228_v14 = vpop.permute.xlu0 %2227  ;;  %1918 = vst.msk [vmem:[#allocation9 + $0xc8] sm:$0xf] %vm1893_vm7, %v1846_v55 }
 0x32b   : > { %2303 = vst.msk [vmem:[#allocation9 + $0xb0] sm:$0xff] %vm2279_vm13, %v2228_v14 }
 0x32d   : > { %v2040_v46 = vpop.permute.xlu1 %2039 }
 0x32e   : > { %v2234_v2 = vpop.permute.xlu0 %2233  ;;  %2112 = vst.msk [vmem:[#allocation9 + $0xc8] sm:$0xf] %vm2087_vm9, %v2040_v46 }
 0x32f   : > { %2306 = vst.msk [vmem:[#allocation9 + $0xc8] sm:$0xf] %vm2281_vm11, %v2234_v2 }
 0x331   : > { %v1650_v16 = vpop.permute.xlu1 %1649 }
 0x332   : > { %v1844_v3 = vpop.permute.xlu0 %1843  ;;  %v2335_v15 = vld [vmem:[#allocation9 + $0xb0] sm:$0xff]  ;;  %1723 = vst.msk [vmem:[#allocation9 + $0xc0] sm:$0xff] %vm1697_vm8, %v1650_v16 }
 0x333   : > { %7043 = vmatprep.mubr.msk.f32.mxu1 %vm2350_vm14, %v2335_v15  ;;  %1917 = vst.msk [vmem:[#allocation9 + $0xc0] sm:$0xff] %vm1891_vm10, %v1844_v3 }
 0x334   : > { %7044 = vmatmul.mubr.msk.f32.gmra.mrb[22].mxu1 %vm2350_vm14, %v2336_v60 }
 0x335   : > { %v1656_v61 = vpop.permute.xlu1 %1655 }
 0x336   : > { %v2038_v17 = vpop.permute.xlu0 %2037  ;;  %1726 = vst.msk [vmem:[#allocation9 + $0xd8] sm:$0xf] %vm1699_vm6, %v1656_v61  ;;  %v2338_v22 = vld [vmem:[#allocation9 + $0xc8] sm:$0xff] }
 0x337   : > { %2111 = vst.msk [vmem:[#allocation9 + $0xc0] sm:$0xff] %vm2085_vm12, %v2038_v17 }
 0x339   : > { %v1850_v47 = vpop.permute.xlu1 %1849 }
 0x33a   : > { %v2232_v18 = vpop.permute.xlu0 %2231  ;;  %1920 = vst.msk [vmem:[#allocation9 + $0xd8] sm:$0xf] %vm1893_vm7, %v1850_v47 }
 0x33b   : > { %2305 = vst.msk [vmem:[#allocation9 + $0xc0] sm:$0xff] %vm2279_vm13, %v2232_v18 }
 0x33d   : > { %v2044_v19 = vpop.permute.xlu1 %2043 }
 0x33e   : > { %v2238_v50 = vpop.permute.xlu0 %2237  ;;  %2114 = vst.msk [vmem:[#allocation9 + $0xd8] sm:$0xf] %vm2087_vm9, %v2044_v19 }
 0x33f   : > { %2308 = vst.msk [vmem:[#allocation9 + $0xd8] sm:$0xf] %vm2281_vm11, %v2238_v50 }
 0x341   : > { %v1654_v51 = vpop.permute.xlu1 %1653 }
 0x342   : > { %v1848_v20 = vpop.permute.xlu0 %1847  ;;  %v2337_v21 = vld [vmem:[#allocation9 + $0xc0] sm:$0xff]  ;;  %1725 = vst.msk [vmem:[#allocation9 + $0xd0] sm:$0xff] %vm1697_vm8, %v1654_v51 }
 0x343   : > { %7046 = vmatprep.mubr.msk.f32.mxu1 %vm2350_vm14, %v2337_v21  ;;  %1919 = vst.msk [vmem:[#allocation9 + $0xd0] sm:$0xff] %vm1891_vm10, %v1848_v20 }
 0x344   : > { %7047 = vmatmul.mubr.msk.f32.gmra.mrb[24].mxu1 %vm2350_vm14, %v2338_v22 }
 0x345   : > { %v1660_v23 = vpop.permute.xlu1 %1659 }
 0x346   : > { %v2042_v24 = vpop.permute.xlu0 %2041  ;;  %1728 = vst.msk [vmem:[#allocation9 + $0xe8] sm:$0xf] %vm1699_vm6, %v1660_v23  ;;  %v2340_v62 = vld [vmem:[#allocation9 + $0xd8] sm:$0xff] }
 0x347   : > { %2113 = vst.msk [vmem:[#allocation9 + $0xd0] sm:$0xff] %vm2085_vm12, %v2042_v24 }
 0x349   : > { %v1854_v25 = vpop.permute.xlu1 %1853 }
 0x34a   : > { %v2236_v26 = vpop.permute.xlu0 %2235  ;;  %1922 = vst.msk [vmem:[#allocation9 + $0xe8] sm:$0xf] %vm1893_vm7, %v1854_v25 }
 0x34b   : > { %2307 = vst.msk [vmem:[#allocation9 + $0xd0] sm:$0xff] %vm2279_vm13, %v2236_v26 }
 0x34d   : > { %v2048_v4 = vpop.permute.xlu1 %2047 }
 0x34e   : > { %v2242_v5 = vpop.permute.xlu0 %2241  ;;  %2116 = vst.msk [vmem:[#allocation9 + $0xe8] sm:$0xf] %vm2087_vm9, %v2048_v4 }
 0x34f   : > { %2310 = vst.msk [vmem:[#allocation9 + $0xe8] sm:$0xf] %vm2281_vm11, %v2242_v5 }
 0x351   : > { %v1658_v56 = vpop.permute.xlu1 %1657 }
 0x352   : > { %v1852_v57 = vpop.permute.xlu0 %1851  ;;  %v2339_v27 = vld [vmem:[#allocation9 + $0xd0] sm:$0xff]  ;;  %1727 = vst.msk [vmem:[#allocation9 + $0xe0] sm:$0xff] %vm1697_vm8, %v1658_v56 }
 0x353   : > { %7049 = vmatprep.mubr.msk.f32.mxu1 %vm2350_vm14, %v2339_v27  ;;  %1921 = vst.msk [vmem:[#allocation9 + $0xe0] sm:$0xff] %vm1891_vm10, %v1852_v57  ;;  %v8587_v27 = vld [vmem:[%s10299_s2 + $0x1] ss:$0 sm:$0xff] }
 0x354   : > { %7050 = vmatmul.mubr.msk.f32.gmra.mrb[26].mxu1 %vm2350_vm14, %v2340_v62 }
 0x355   : > { %v1664_v63 = vpop.permute.xlu1 %1663 }
 0x356   : > { %v2046_v28 = vpop.permute.xlu0 %2045  ;;  %1730 = vst.msk [vmem:[#allocation9 + $0xf8] sm:$0xf] %vm1699_vm6, %v1664_v63  ;;  %v2342_v36 = vld [vmem:[#allocation9 + $0xe8] sm:$0xff]  ;;  %vm3977_vm6 = vcmask 519552  }
 0x357   : > { %2115 = vst.msk [vmem:[#allocation9 + $0xe0] sm:$0xff] %vm2085_vm12, %v2046_v28  ;;  %v8358_v29 = vpop.f32.mrb[0].mxu1 }
 0x358   : > { %v8360_v30 = vpop.f32.mrb[1].mxu1 }
 0x359   : > { %v1858_v31 = vpop.permute.xlu1 %1857 }
 0x35a   : > { %v2240_v32 = vpop.permute.xlu0 %2239  ;;  %1924 = vst.msk [vmem:[#allocation9 + $0xf8] sm:$0xf] %vm1893_vm7, %v1858_v31  ;;  %vm4026_vm7 = vcmask 650752  }
 0x35b   : > { %2309 = vst.msk [vmem:[#allocation9 + $0xe0] sm:$0xff] %vm2279_vm13, %v2240_v32 }
 0x35d   : > { %v2052_v33 = vpop.permute.xlu1 %2051 }
 0x35e   : > { %v1856_v34 = vpop.permute.xlu0 %1855  ;;  %2118 = vst.msk [vmem:[#allocation9 + $0xf8] sm:$0xf] %vm2087_vm9, %v2052_v33  ;;  %vm4408_vm9 = vcmask 257024  }
 0x361   : > { %v1662_v35 = vpop.permute.xlu1 %1661 }
 0x362   : > { %v2050_v52 = vpop.permute.xlu0 %2049  ;;  %v2341_v53 = vld [vmem:[#allocation9 + $0xe0] sm:$0xff]  ;;  %1729 = vst.msk [vmem:[#allocation9 + $0xf0] sm:$0xff] %vm1697_vm8, %v1662_v35 }
 0x363   : > { %7052 = vmatprep.mubr.msk.f32.mxu1 %vm2350_vm14, %v2341_v53  ;;  %1923 = vst.msk [vmem:[#allocation9 + $0xf0] sm:$0xff] %vm1891_vm10, %v1856_v34 }
 0x364   : > { %7053 = vmatmul.mubr.msk.f32.gmra.mrb[28].mxu1 %vm2350_vm14, %v2342_v36  ;;  %2117 = vst.msk [vmem:[#allocation9 + $0xf0] sm:$0xff] %vm2085_vm12, %v2050_v52 }
 0x365   : > { %v2246_v6 = vpop.permute.xlu1 %2245 }
 0x366   : > { %v2244_v7 = vpop.permute.xlu0 %2243  ;;  %2312 = vst.msk [vmem:[#allocation9 + $0xf8] sm:$0xf] %vm2281_vm11, %v2246_v6  ;;  %vm4312_vm11 = vcmask 261124  }
 0x367   : > { %2311 = vst.msk [vmem:[#allocation9 + $0xf0] sm:$0xff] %vm2279_vm13, %v2244_v7  ;;  %v8372_v37 = vpop.f32.mrb[2].mxu1 }
 0x368   : > { %2698 = vrot.lane.b32.xlu1 %v8372_v37, %s7337_s19  ;;  %v8376_v48 = vpop.f32.mrb[3].mxu1 }
 0x369   : > { %2696 = vrot.lane.b32.xlu0 %v8376_v48, %s7337_s19 }
 0x36d   : > { %v2344_v39 = vld [vmem:[#allocation9 + $0xf8] sm:$0xff] }
 0x36e   : > { %v2343_v38 = vld [vmem:[#allocation9 + $0xf0] sm:$0xff] }
 0x36f   : > { %7055 = vmatprep.mubr.msk.f32.mxu1 %vm2350_vm14, %v2343_v38 }
 0x370   : > { %7056 = vmatmul.mubr.msk.f32.gmra.mrb[30].mxu1 %vm2350_vm14, %v2344_v39 }
 0x377   : > { %v8382_v58 = vpop.f32.mrb[4].mxu1 }
 0x378   : > { %2702 = vrot.lane.b32.xlu1 %v8382_v58, %s7337_s19  ;;  %v8386_v0 = vpop.f32.mrb[5].mxu1 }
 0x379   : > { %2700 = vrot.lane.b32.xlu0 %v8386_v0, %s7337_s19 }
 0x37c   : > { %2796 = vrot.lane.b32.xlu1 %v8382_v58, %s7338_s20 }
 0x37d   : > { %2794 = vrot.lane.b32.xlu0 %v8386_v0, %s7338_s20 }
 0x387   : > { %v8394_v1 = vpop.f32.mrb[6].mxu1 }
 0x388   : > { %2800 = vrot.lane.b32.xlu1 %v8394_v1, %s7338_s20  ;;  %v8398_v59 = vpop.f32.mrb[7].mxu1 }
 0x389   : > { %2798 = vrot.lane.b32.xlu0 %v8398_v59, %s7338_s20 }
 0x38c   : > { %2706 = vrot.lane.b32.xlu1 %v8394_v1, %s7337_s19 }
 0x38d   : > { %2704 = vrot.lane.b32.xlu0 %v8398_v59, %s7337_s19 }
 0x390   : > { %2894 = vrot.lane.b32.xlu1 %v8394_v1, %s7342_s11 }
 0x391   : > { %2892 = vrot.lane.b32.xlu0 %v8398_v59, %s7342_s11 }
 0x397   : > { %v8410_v49 = vpop.f32.mrb[8].mxu1 }
 0x398   : > { %2710 = vrot.lane.b32.xlu1 %v8410_v49, %s7337_s19  ;;  %v8414_v40 = vpop.f32.mrb[9].mxu1 }
 0x399   : > { %2708 = vrot.lane.b32.xlu0 %v8414_v40, %s7337_s19 }
 0x39c   : > { %2898 = vrot.lane.b32.xlu1 %v8410_v49, %s7342_s11 }
 0x39d   : > { %2896 = vrot.lane.b32.xlu0 %v8414_v40, %s7342_s11 }
 0x3a0   : > { %2804 = vrot.lane.b32.xlu1 %v8410_v49, %s7338_s20 }
 0x3a1   : > { %2802 = vrot.lane.b32.xlu0 %v8414_v40, %s7338_s20 }
 0x3a4   : > { %2992 = vrot.lane.b32.xlu1 %v8410_v49, %s7343_s14 }
 0x3a5   : > { %2990 = vrot.lane.b32.xlu0 %v8414_v40, %s7343_s14 }
 0x3a7   : > { %v8430_v41 = vpop.f32.mrb[10].mxu1 }
 0x3a8   : > { %2808 = vrot.lane.b32.xlu1 %v8430_v41, %s7338_s20  ;;  %v8434_v42 = vpop.f32.mrb[11].mxu1 }
 0x3a9   : > { %2806 = vrot.lane.b32.xlu0 %v8434_v42, %s7338_s20 }
 0x3ac   : > { %2996 = vrot.lane.b32.xlu1 %v8430_v41, %s7343_s14 }
 0x3ad   : > { %2994 = vrot.lane.b32.xlu0 %v8434_v42, %s7343_s14 }
 0x3b0   : > { %2714 = vrot.lane.b32.xlu1 %v8430_v41, %s7337_s19 }
 0x3b1   : > { %2712 = vrot.lane.b32.xlu0 %v8434_v42, %s7337_s19 }
 0x3b4   : > { %2902 = vrot.lane.b32.xlu1 %v8430_v41, %s7342_s11 }
 0x3b5   : > { %2900 = vrot.lane.b32.xlu0 %v8434_v42, %s7342_s11 }
 0x3b7   : > { %v8450_v43 = vpop.f32.mrb[12].mxu1 }
 0x3b8   : > { %2718 = vrot.lane.b32.xlu1 %v8450_v43, %s7337_s19  ;;  %v8454_v44 = vpop.f32.mrb[13].mxu1 }
 0x3b9   : > { %2716 = vrot.lane.b32.xlu0 %v8454_v44, %s7337_s19 }
 0x3bc   : > { %2906 = vrot.lane.b32.xlu1 %v8450_v43, %s7342_s11 }
 0x3bd   : > { %2904 = vrot.lane.b32.xlu0 %v8454_v44, %s7342_s11 }
 0x3c0   : > { %2812 = vrot.lane.b32.xlu1 %v8450_v43, %s7338_s20 }
 0x3c1   : > { %2810 = vrot.lane.b32.xlu0 %v8454_v44, %s7338_s20 }
 0x3c4   : > { %3000 = vrot.lane.b32.xlu1 %v8450_v43, %s7343_s14 }
 0x3c5   : > { %2998 = vrot.lane.b32.xlu0 %v8454_v44, %s7343_s14 }
 0x3c7   : > { %v8470_v45 = vpop.f32.mrb[14].mxu1 }
 0x3c8   : > { %2816 = vrot.lane.b32.xlu1 %v8470_v45, %s7338_s20  ;;  %v8474_v10 = vpop.f32.mrb[15].mxu1 }
 0x3c9   : > { %2814 = vrot.lane.b32.xlu0 %v8474_v10, %s7338_s20 }
 0x3cc   : > { %3004 = vrot.lane.b32.xlu1 %v8470_v45, %s7343_s14 }
 0x3cd   : > { %3002 = vrot.lane.b32.xlu0 %v8474_v10, %s7343_s14 }
 0x3d0   : > { %2910 = vrot.lane.b32.xlu1 %v8470_v45, %s7342_s11 }
 0x3d1   : > { %2908 = vrot.lane.b32.xlu0 %v8474_v10, %s7342_s11 }
 0x3d4   : > { %2722 = vrot.lane.b32.xlu1 %v8470_v45, %s7337_s19 }
 0x3d5   : > { %2720 = vrot.lane.b32.xlu0 %v8474_v10, %s7337_s19 }
 0x3d7   : > { %v8490_v8 = vpop.f32.mrb[16].mxu1 }
 0x3d8   : > { %v8492_v9 = vpop.f32.mrb[17].mxu1  ;;  %2914 = vrot.lane.b32.xlu1 %v8490_v8, %s7342_s11 }
 0x3d9   : > { %2912 = vrot.lane.b32.xlu0 %v8492_v9, %s7342_s11 }
 0x3da   : > { %v2699_v13 = vpop.permute.xlu1 %2698 }
 0x3db   : > { %v2697_v54 = vpop.permute.xlu0 %2696  ;;  %v2769_v23 = vadd.f32 %v8358_v29, %v2699_v13 }
 0x3dc   : > { %3008 = vrot.lane.b32.xlu1 %v8490_v8, %s7343_s14  ;;  %v2768_v24 = vadd.f32 %v2697_v54, %v8360_v30 }
 0x3dd   : > { %3006 = vrot.lane.b32.xlu0 %v8492_v9, %s7343_s14 }
 0x3e0   : > { %2726 = vrot.lane.b32.xlu1 %v8490_v8, %s7337_s19 }
 0x3e1   : > { %2724 = vrot.lane.b32.xlu0 %v8492_v9, %s7337_s19 }
 0x3e4   : > { %2820 = vrot.lane.b32.xlu1 %v8490_v8, %s7338_s20 }
 0x3e5   : > { %2818 = vrot.lane.b32.xlu0 %v8492_v9, %s7338_s20 }
 0x3e7   : > { %v8510_v11 = vpop.f32.mrb[18].mxu1 }
 0x3e8   : > { %v8512_v12 = vpop.f32.mrb[19].mxu1  ;;  %3012 = vrot.lane.b32.xlu1 %v8510_v11, %s7343_s14 }
 0x3e9   : > { %3010 = vrot.lane.b32.xlu0 %v8512_v12, %s7343_s14 }
 0x3ea   : > { %v2703_v55 = vpop.permute.xlu1 %2702 }
 0x3eb   : > { %v2701_v14 = vpop.permute.xlu0 %2700  ;;  %v2771_v32 = vadd.f32 %v8372_v37, %v2703_v55 }
 0x3ec   : > { %2824 = vrot.lane.b32.xlu1 %v8510_v11, %s7338_s20  ;;  %v2770_v34 = vadd.f32 %v2701_v14, %v8376_v48 }
 0x3ed   : > { %2822 = vrot.lane.b32.xlu0 %v8512_v12, %s7338_s20 }
 0x3ee   : > { %v2797_v46 = vpop.permute.xlu1 %2796 }
 0x3ef   : > { %v2795_v16 = vpop.permute.xlu0 %2794  ;;  %v2867_v26 = vadd.f32 %v2797_v46, %v2769_v23 }
 0x3f0   : > { %2918 = vrot.lane.b32.xlu1 %v8510_v11, %s7342_s11  ;;  %v2866_v5 = vadd.f32 %v2795_v16, %v2768_v24 }
 0x3f1   : > { %2916 = vrot.lane.b32.xlu0 %v8512_v12, %s7342_s11 }
 0x3f4   : > { %2730 = vrot.lane.b32.xlu1 %v8510_v11, %s7337_s19 }
 0x3f5   : > { %2728 = vrot.lane.b32.xlu0 %v8512_v12, %s7337_s19 }
 0x3f7   : > { %v8530_v2 = vpop.f32.mrb[20].mxu1 }
 0x3f8   : > { %v8532_v3 = vpop.f32.mrb[21].mxu1  ;;  %2922 = vrot.lane.b32.xlu1 %v8530_v2, %s7342_s11 }
 0x3f9   : > { %2920 = vrot.lane.b32.xlu0 %v8532_v3, %s7342_s11 }
 0x3fa   : > { %v2801_v15 = vpop.permute.xlu1 %2800 }
 0x3fb   : > { %v2799_v60 = vpop.permute.xlu0 %2798  ;;  %v2869_v53 = vadd.f32 %v2801_v15, %v2771_v32 }
 0x3fc   : > { %3016 = vrot.lane.b32.xlu1 %v8530_v2, %s7343_s14  ;;  %v2868_v7 = vadd.f32 %v2799_v60, %v2770_v34  ;;  %v3487_v34 = vld [vmem:[%s10298_s1 + $0x110] sm:$0xff] }
 0x3fd   : > { %3014 = vrot.lane.b32.xlu0 %v8532_v3, %s7343_s14 }
 0x3fe   : > { %v8542_v61 = vpop.permute.xlu1 %2706 }
 0x3ff   : > { %v8546_v17 = vpop.permute.xlu0 %2704 }
 0x400   : > { %2734 = vrot.lane.b32.xlu1 %v8530_v2, %s7337_s19 }
 0x401   : > { %2732 = vrot.lane.b32.xlu0 %v8532_v3, %s7337_s19 }
 0x402   : > { %v2895_v47 = vpop.permute.xlu1 %2894 }
 0x403   : > { %v2893_v19 = vpop.permute.xlu0 %2892  ;;  %v2965_v56 = vadd.f32 %v2895_v47, %v2867_v26 }
 0x404   : > { %2828 = vrot.lane.b32.xlu1 %v8530_v2, %s7338_s20  ;;  %v2964_v57 = vadd.f32 %v2893_v19, %v2866_v5 }
 0x405   : > { %2826 = vrot.lane.b32.xlu0 %v8532_v3, %s7338_s20 }
 0x407   : > { %v8554_v18 = vpop.f32.mrb[22].mxu1 }
 0x408   : > { %v8556_v50 = vpop.f32.mrb[23].mxu1  ;;  %3020 = vrot.lane.b32.xlu1 %v8554_v18, %s7343_s14 }
 0x409   : > { %3018 = vrot.lane.b32.xlu0 %v8556_v50, %s7343_s14 }
 0x40a   : > { %v8562_v51 = vpop.permute.xlu1 %2710 }
 0x40b   : > { %v8564_v20 = vpop.permute.xlu0 %2708 }
 0x40c   : > { %2832 = vrot.lane.b32.xlu1 %v8554_v18, %s7338_s20 }
 0x40d   : > { %2830 = vrot.lane.b32.xlu0 %v8556_v50, %s7338_s20 }
 0x40e   : > { %v2899_v21 = vpop.permute.xlu1 %2898 }
 0x40f   : > { %v2897_v22 = vpop.permute.xlu0 %2896  ;;  %v2967_v39 = vadd.f32 %v2899_v21, %v2869_v53 }
 0x410   : > { %2926 = vrot.lane.b32.xlu1 %v8554_v18, %s7342_s11  ;;  %v2966_v37 = vadd.f32 %v2897_v22, %v2868_v7 }
 0x411   : > { %2924 = vrot.lane.b32.xlu0 %v8556_v50, %s7342_s11 }
 0x412   : > { %v8576_v25 = vpop.permute.xlu1 %2804 }
 0x413   : > { %v8578_v4 = vpop.permute.xlu0 %2802 }
 0x414   : > { %2738 = vrot.lane.b32.xlu1 %v8554_v18, %s7337_s19 }
 0x415   : > { %2736 = vrot.lane.b32.xlu0 %v8556_v50, %s7337_s19 }
 0x416   : > { %v2993_v62 = vpop.permute.xlu1 %2992 }
 0x417   : > { %v7048_v63 = vpop.f32.mrb[24].mxu1  ;;  %v3063_v28 = vadd.f32 %v2993_v62, %v2965_v56  ;;  %v2991_v29 = vpop.permute.xlu0 %2990 }
 0x418   : > { %v2633_v30 = vpop.f32.mrb[25].mxu1  ;;  %v3062_v31 = vadd.f32 %v2991_v29, %v2964_v57  ;;  %2930 = vrot.lane.b32.xlu1 %v7048_v63, %s7342_s11 }
 0x419   : > { %v3092_v33 = vadd.f32 %v8587_v27, %v3063_v28  ;;  %2928 = vrot.lane.b32.xlu0 %v2633_v30, %s7342_s11  ;;  %v2772_v28 = vadd.f32 %v8546_v17, %v8386_v0 }
 0x41a   : > { %v3091_v35 = vadd.f32 %v8587_v27, %v3062_v31  ;;  %v8595_v52 = vpop.permute.xlu1 %2808 }
 0x41b   : > { %v3116_v36 = vmax.f32 %v3092_v33, 0.0  ;;  %v8597_v6 = vpop.permute.xlu0 %2806  ;;  %v2870_v32 = vadd.f32 %v8578_v4, %v2772_v28  ;;  %v2775_v4 = vadd.f32 %v8394_v1, %v8562_v51 }
 0x41c   : > { %v3115_v38 = vmax.f32 %v3091_v35, 0.0  ;;  %3024 = vrot.lane.b32.xlu1 %v7048_v63, %s7343_s14 }
 0x41d   : > { %3140 = vst.msk [vmem:[#allocation3 + $0x8] sm:$0xff] %vm1439_vm4, %v3116_v36  ;;  %3022 = vrot.lane.b32.xlu0 %v2633_v30, %s7343_s14 }
 0x41e   : > { %3139 = vst.msk [vmem:[#allocation3] sm:$0xff] %vm1439_vm4, %v3115_v38  ;;  %v2997_v48 = vpop.permute.xlu1 %2996 }
 0x41f   : > { %v3065_v13 = vadd.f32 %v2997_v48, %v2967_v39  ;;  %v2995_v54 = vpop.permute.xlu0 %2994  ;;  %v2774_v39 = vadd.f32 %v8564_v20, %v8398_v59 }
 0x420   : > { %v3064_v55 = vadd.f32 %v2995_v54, %v2966_v37  ;;  %2742 = vrot.lane.b32.xlu1 %v7048_v63, %s7337_s19 }
 0x421   : > { %v3094_v14 = vadd.f32 %v8587_v27, %v3065_v13  ;;  %2740 = vrot.lane.b32.xlu0 %v2633_v30, %s7337_s19  ;;  %v2873_v13 = vadd.f32 %v8595_v52, %v2775_v4 }
 0x422   : > { %v3093_v46 = vadd.f32 %v8587_v27, %v3064_v55  ;;  %v8607_v16 = vpop.permute.xlu1 %2714 }
 0x423   : > { %v3118_v15 = vmax.f32 %v3094_v14, 0.0  ;;  %v8609_v60 = vpop.permute.xlu0 %2712  ;;  %v2872_v14 = vadd.f32 %v8597_v6, %v2774_v39 }
 0x424   : > { %v3117_v47 = vmax.f32 %v3093_v46, 0.0  ;;  %2836 = vrot.lane.b32.xlu1 %v7048_v63, %s7338_s20  ;;  %v2773_v63 = vadd.f32 %v8382_v58, %v8542_v61  ;;  %v3488_v58 = vld [vmem:[%s10298_s1 + $0x120] sm:$0xff] }
 0x425   : > { %3142 = vst.msk [vmem:[#allocation3 + $0x18] sm:$0xff] %vm1439_vm4, %v3118_v15  ;;  %2834 = vrot.lane.b32.xlu0 %v2633_v30, %s7338_s20  ;;  %v3163_v22 = vld [vmem:[#allocation3] sm:$0xff]  ;;  %v7214_v17 = vpack.c.bf16 %v3488_v58, %v3487_v34 }
 0x426   : > { %3141 = vst.msk [vmem:[#allocation3 + $0x10] sm:$0xff] %vm1439_vm4, %v3117_v47  ;;  %v2903_v19 = vpop.permute.xlu1 %2902  ;;  %3175 = vst.msk [vmem:[#allocation10] sm:$0xff] %vm1439_vm4, %v3163_v22  ;;  %v2871_v30 = vadd.f32 %v8576_v25, %v2773_v63 }
 0x427   : > { %v7051_v21 = vpop.f32.mrb[26].mxu1  ;;  %v2901_v23 = vpop.permute.xlu0 %2900  ;;  %7215 = vmatprep.subr.bf16.mxu1 %v7214_v17 }
 0x428   : > { %v2643_v24 = vpop.f32.mrb[27].mxu1  ;;  %3028 = vrot.lane.b32.xlu1 %v7051_v21, %s7343_s14  ;;  %v2969_v33 = vadd.f32 %v2903_v19, %v2871_v30  ;;  %v2968_v61 = vadd.f32 %v2901_v23, %v2870_v32  ;;  %7217 = vmatpush3.bf16.msra.mxu1 %v7214_v17  ;;  %v3187_v30 = vld [vmem:[#allocation3 + $0x1] sm:$0xff]  ;;  %v2777_v32 = vadd.f32 %v8410_v49, %v8607_v16 }
 0x429   : > { %3026 = vrot.lane.b32.xlu0 %v2643_v24, %s7343_s14 }
 0x42a   : > { %v8618_v26 = vpop.permute.xlu1 %2718 }
 0x42b   : > { %v8620_v5 = vpop.permute.xlu0 %2716 }
 0x42c   : > { %2840 = vrot.lane.b32.xlu1 %v7051_v21, %s7338_s20 }
 0x42d   : > { %2838 = vrot.lane.b32.xlu0 %v2643_v24, %s7338_s20  ;;  %v3164_v57 = vld [vmem:[#allocation3 + $0x10] sm:$0xff] }
 0x42e   : > { %v2907_v56 = vpop.permute.xlu1 %2906  ;;  %3176 = vst.msk [vmem:[#allocation10 + $0x8] sm:$0xff] %vm1439_vm4, %v3164_v57  ;;  %v3260_v58 = vld [vmem:[#allocation3 + $0x12] sm:$0xff] }
 0x42f   : > { %v2905_v62 = vpop.permute.xlu0 %2904  ;;  %v2971_v51 = vadd.f32 %v2907_v56, %v2873_v13 }
 0x430   : > { %2934 = vrot.lane.b32.xlu1 %v7051_v21, %s7342_s11  ;;  %v2970_v59 = vadd.f32 %v2905_v62, %v2872_v14  ;;  %v3188_v62 = vld [vmem:[#allocation3 + $0x11] sm:$0xff] }
 0x431   : > { %2932 = vrot.lane.b32.xlu0 %v2643_v24, %s7342_s11 }
 0x432   : > { %v8631_v29 = vpop.permute.xlu1 %2812 }
 0x433   : > { %v8634_v31 = vpop.permute.xlu0 %2810 }
 0x436   : > { %v3001_v35 = vpop.permute.xlu1 %3000 }
 0x437   : > { %v7054_v0 = vpop.f32.mrb[28].mxu1  ;;  %v3067_v53 = vadd.f32 %v3001_v35, %v2969_v33  ;;  %v2999_v36 = vpop.permute.xlu0 %2998  ;;  %v2776_v33 = vadd.f32 %v8609_v60, %v8414_v40  ;;  %v3490_v35 = vld [vmem:[%s10298_s1 + $0x140] sm:$0xff] }
 0x438   : > { %2938 = vrot.lane.b32.xlu1 %v7054_v0, %s7342_s11  ;;  %v2653_v25 = vpop.f32.mrb[29].mxu1  ;;  %v3066_v7 = vadd.f32 %v2999_v36, %v2968_v61  ;;  %v3489_v61 = vld [vmem:[%s10298_s1 + $0x130] sm:$0xff] }
 0x439   : > { %2936 = vrot.lane.b32.xlu0 %v2653_v25, %s7342_s11  ;;  %v3096_v38 = vadd.f32 %v8587_v27, %v3067_v53  ;;  %v3259_v53 = vld [vmem:[#allocation3 + $0x2] sm:$0xff]  ;;  %v7218_v49 = vpack.c.bf16 %v3490_v35, %v3489_v61  ;;  %v2874_v16 = vadd.f32 %v8634_v31, %v2776_v33  ;;  %v3491_v31 = vld [vmem:[%s10298_s1 + $0x150] sm:$0xff] }
 0x43a   : > { %v3095_v37 = vadd.f32 %v8587_v27, %v3066_v7  ;;  %v8651_v48 = vpop.permute.xlu1 %2816 }
 0x43b   : > { %v3120_v54 = vmax.f32 %v3096_v38, 0.0  ;;  %v8654_v55 = vpop.permute.xlu0 %2814  ;;  %7219 = vmatprep.subr.bf16.mxu1 %v7218_v49 }
 0x43c   : > { %3032 = vrot.lane.b32.xlu1 %v7054_v0, %s7343_s14  ;;  %v3119_v1 = vmax.f32 %v3095_v37, 0.0  ;;  %v2875_v0 = vadd.f32 %v8631_v29, %v2777_v32  ;;  %7221 = vmatpush3.bf16.msra.mxu1 %v7218_v49  ;;  %v3331_v29 = vld [vmem:[#allocation3 + $0x3] sm:$0xff] }
 0x43d   : > { %3030 = vrot.lane.b32.xlu0 %v2653_v25, %s7343_s14  ;;  %3144 = vst.msk [vmem:[#allocation3 + $0x28] sm:$0xff] %vm1439_vm4, %v3120_v54  ;;  %v3332_v25 = vld [vmem:[#allocation3 + $0x13] sm:$0xff]  ;;  %7066 = vmatprep.subr.mxu1 %v3491_v31 }
 0x43e   : > { %3143 = vst.msk [vmem:[#allocation3 + $0x20] sm:$0xff] %vm1439_vm4, %v3119_v1  ;;  %v3005_v20 = vpop.permute.xlu1 %3004 }
 0x43f   : > { %v3069_v46 = vadd.f32 %v3005_v20, %v2971_v51  ;;  %v3003_v15 = vpop.permute.xlu0 %3002 }
 0x440   : > { %v3068_v52 = vadd.f32 %v3003_v15, %v2970_v59  ;;  %7067 = vmatpush3.msra.mxu1 %v3491_v31  ;;  %v3403_v59 = vld [vmem:[#allocation3 + $0x4] sm:$0xff]  ;;  %v2778_v15 = vadd.f32 %v8620_v5, %v8434_v42 }
 0x441   : > { %v3098_v47 = vadd.f32 %v8587_v27, %v3069_v46  ;;  %v2779_v46 = vadd.f32 %v8430_v41, %v8618_v26 }
 0x442   : > { %v3097_v19 = vadd.f32 %v8587_v27, %v3068_v52  ;;  %v2911_v21 = vpop.permute.xlu1 %2910 }
 0x443   : > { %v7057_v22 = vpop.f32.mrb[30].mxu1  ;;  %v3122_v6 = vmax.f32 %v3098_v47, 0.0  ;;  %v2909_v23 = vpop.permute.xlu0 %2908  ;;  %v2973_v40 = vadd.f32 %v2911_v21, %v2875_v0 }
 0x444   : > { %3036 = vrot.lane.b32.xlu1 %v7057_v22, %s7343_s14  ;;  %v2663_v24 = vpop.f32.mrb[31].mxu1  ;;  %v3121_v56 = vmax.f32 %v3097_v19, 0.0  ;;  %v2972_v60 = vadd.f32 %v2909_v23, %v2874_v16  ;;  %v2877_v19 = vadd.f32 %v8651_v48, %v2779_v46  ;;  %v3404_v22 = vld [vmem:[#allocation3 + $0x14] sm:$0xff] }
 0x445   : > { %3034 = vrot.lane.b32.xlu0 %v2663_v24, %s7343_s14  ;;  %3146 = vst.msk [vmem:[#allocation3 + $0x38] sm:$0xff] %vm1439_vm4, %v3122_v6  ;;  %v3165_v63 = vld [vmem:[#allocation3 + $0x20] sm:$0xff]  ;;  %v2876_v6 = vadd.f32 %v8654_v55, %v2778_v15 }
 0x446   : > { %3145 = vst.msk [vmem:[#allocation3 + $0x30] sm:$0xff] %vm1439_vm4, %v3121_v56  ;;  %v8667_v57 = vpop.permute.xlu1 %2722  ;;  %3177 = vst.msk [vmem:[#allocation10 + $0x10] sm:$0xff] %vm1439_vm4, %v3165_v63  ;;  %v3189_v14 = vld [vmem:[#allocation3 + $0x21] sm:$0xff] }
 0x447   : > { %v8669_v28 = vpop.permute.xlu0 %2720  ;;  %v3261_v5 = vld [vmem:[#allocation3 + $0x22] sm:$0xff] }
 0x448   : > { %3213 = vrot.lane.b32.xlu1 %v3188_v62, %s7339_s23 }
 0x449   : > { %3211 = vrot.lane.b32.xlu0 %v3187_v30, %s7339_s23 }
 0x44a   : > { %v2915_v34 = vpop.permute.xlu1 %2914 }
 0x44b   : > { %v2913_v17 = vpop.permute.xlu0 %2912  ;;  %v2975_v41 = vadd.f32 %v2915_v34, %v2877_v19 }
 0x44c   : > { %3285 = vrot.lane.b32.xlu1 %v3260_v58, %s7340_s28  ;;  %v2974_v26 = vadd.f32 %v2913_v17, %v2876_v6  ;;  %v3333_v58 = vld [vmem:[#allocation3 + $0x23] sm:$0xff] }
 0x44d   : > { %3283 = vrot.lane.b32.xlu0 %v3259_v53, %s7340_s28  ;;  %v3166_v7 = vld [vmem:[#allocation3 + $0x30] sm:$0xff]  ;;  %v3405_v53 = vld [vmem:[#allocation3 + $0x24] sm:$0xff] }
 0x44e   : > { %v3009_v36 = vpop.permute.xlu1 %3008  ;;  %3178 = vst.msk [vmem:[#allocation10 + $0x18] sm:$0xff] %vm1439_vm4, %v3166_v7  ;;  %v3190_v47 = vld [vmem:[#allocation3 + $0x31] sm:$0xff] }
 0x44f   : > { %v3071_v4 = vadd.f32 %v3009_v36, %v2973_v40  ;;  %v3007_v38 = vpop.permute.xlu0 %3006  ;;  %v3262_v24 = vld [vmem:[#allocation3 + $0x32] sm:$0xff] }
 0x450   : > { %3357 = vrot.lane.b32.xlu1 %v3332_v25, %s7341_s6  ;;  %v3070_v39 = vadd.f32 %v3007_v38, %v2972_v60  ;;  %v3334_v55 = vld [vmem:[#allocation3 + $0x33] sm:$0xff]  ;;  %v2781_v60 = vadd.f32 %v8450_v43, %v8667_v57  ;;  %v2780_v25 = vadd.f32 %v8669_v28, %v8454_v44 }
 0x451   : > { %3355 = vrot.lane.b32.xlu0 %v3331_v29, %s7341_s6  ;;  %v3100_v37 = vadd.f32 %v8587_v27, %v3071_v4  ;;  %v3406_v40 = vld [vmem:[#allocation3 + $0x34] sm:$0xff] }
 0x452   : > { %v3099_v13 = vadd.f32 %v8587_v27, %v3070_v39  ;;  %v8696_v54 = vpop.permute.xlu1 %2726 }
 0x453   : > { %v3124_v1 = vmax.f32 %v3100_v37, 0.0  ;;  %v8698_v51 = vpop.permute.xlu0 %2724 }
 0x454   : > { %3215 = vrot.lane.b32.xlu1 %v3189_v14, %s7339_s23  ;;  %v3123_v20 = vmax.f32 %v3099_v13, 0.0 }
 0x455   : > { %3427 = vrot.lane.b32.xlu0 %v3403_v59, %s7335_s7  ;;  %3148 = vst.msk [vmem:[#allocation3 + $0x48] sm:$0xff] %vm1439_vm4, %v3124_v1 }
 0x456   : > { %3147 = vst.msk [vmem:[#allocation3 + $0x40] sm:$0xff] %vm1439_vm4, %v3123_v20  ;;  %v2821_v52 = vpop.permute.xlu1 %2820 }
 0x457   : > { %v2819_v21 = vpop.permute.xlu0 %2818  ;;  %v2879_v38 = vadd.f32 %v2821_v52, %v2781_v60 }
 0x458   : > { %3217 = vrot.lane.b32.xlu1 %v3190_v47, %s7339_s23  ;;  %v2878_v39 = vadd.f32 %v2819_v21, %v2780_v25 }
 0x459   : > { %3429 = vrot.lane.b32.xlu0 %v3404_v22, %s7335_s7  ;;  %v2783_v22 = vadd.f32 %v8470_v45, %v8696_v54 }
 0x45a   : > { %v3013_v23 = vpop.permute.xlu1 %3012 }
 0x45b   : > { %v3073_v56 = vadd.f32 %v3013_v23, %v2975_v41  ;;  %v3011_v42 = vpop.permute.xlu0 %3010  ;;  %v2782_v41 = vadd.f32 %v8698_v51, %v8474_v10 }
 0x45c   : > { %3289 = vrot.lane.b32.xlu1 %v3262_v24, %s7340_s28  ;;  %v3072_v62 = vadd.f32 %v3011_v42, %v2974_v26 }
 0x45d   : > { %3287 = vrot.lane.b32.xlu0 %v3261_v5, %s7340_s28  ;;  %v3102_v48 = vadd.f32 %v8587_v27, %v3073_v56  ;;  %v3167_v32 = vld [vmem:[#allocation3 + $0x40] sm:$0xff] }
 0x45e   : > { %v3101_v63 = vadd.f32 %v8587_v27, %v3072_v62  ;;  %v2825_v30 = vpop.permute.xlu1 %2824  ;;  %3179 = vst.msk [vmem:[#allocation10 + $0x20] sm:$0xff] %vm1439_vm4, %v3167_v32  ;;  %v3191_v0 = vld [vmem:[#allocation3 + $0x41] sm:$0xff] }
 0x45f   : > { %v3126_v33 = vmax.f32 %v3102_v48, 0.0  ;;  %v2823_v34 = vpop.permute.xlu0 %2822  ;;  %v3263_v31 = vld [vmem:[#allocation3 + $0x42] sm:$0xff]  ;;  %v2881_v23 = vadd.f32 %v2825_v30, %v2783_v22 }
 0x460   : > { %3361 = vrot.lane.b32.xlu1 %v3334_v55, %s7341_s6  ;;  %v3125_v61 = vmax.f32 %v3101_v63, 0.0  ;;  %v3335_v28 = vld [vmem:[#allocation3 + $0x43] sm:$0xff]  ;;  %v2880_v56 = vadd.f32 %v2823_v34, %v2782_v41 }
 0x461   : > { %3359 = vrot.lane.b32.xlu0 %v3333_v58, %s7341_s6  ;;  %3150 = vst.msk [vmem:[#allocation3 + $0x58] sm:$0xff] %vm1439_vm4, %v3126_v33  ;;  %v3407_v19 = vld [vmem:[#allocation3 + $0x44] sm:$0xff] }
 0x462   : > { %3149 = vst.msk [vmem:[#allocation3 + $0x50] sm:$0xff] %vm1439_vm4, %v3125_v61  ;;  %v2919_v35 = vpop.permute.xlu1 %2918 }
 0x463   : > { %v2917_v17 = vpop.permute.xlu0 %2916  ;;  %v2977_v37 = vadd.f32 %v2919_v35, %v2879_v38 }
 0x464   : > { %3219 = vrot.lane.b32.xlu1 %v3191_v0, %s7339_s23  ;;  %v2976_v14 = vadd.f32 %v2917_v17, %v2878_v39 }
 0x465   : > { %3431 = vrot.lane.b32.xlu0 %v3405_v53, %s7335_s7 }
 0x466   : > { %v8723_v49 = vpop.permute.xlu1 %2730 }
 0x467   : > { %v8725_v16 = vpop.permute.xlu0 %2728 }
 0x468   : > { %v2784_v25 = vadd.f32 %v8725_v16, %v8492_v9 }
 0x469   : > { %3433 = vrot.lane.b32.xlu0 %v3406_v40, %s7335_s7  ;;  %v3192_v36 = vld [vmem:[#allocation3 + $0x51] sm:$0xff]  ;;  %v2785_v40 = vadd.f32 %v8490_v8, %v8723_v49 }
 0x46a   : > { %v2923_v7 = vpop.permute.xlu1 %2922  ;;  %3221 = vrot.lane.b32.xlu1 %v3192_v36, %s7339_s23  ;;  %v3168_v4 = vld [vmem:[#allocation3 + $0x50] sm:$0xff] }
 0x46b   : > { %v2921_v29 = vpop.permute.xlu0 %2920  ;;  %3180 = vst.msk [vmem:[#allocation10 + $0x28] sm:$0xff] %vm1439_vm4, %v3168_v4  ;;  %v3264_v13 = vld [vmem:[#allocation3 + $0x52] sm:$0xff]  ;;  %v2979_v42 = vadd.f32 %v2923_v7, %v2881_v23 }
 0x46c   : > { %v3336_v20 = vld [vmem:[#allocation3 + $0x53] sm:$0xff]  ;;  %v2978_v5 = vadd.f32 %v2921_v29, %v2880_v56 }
 0x46d   : > { %3291 = vrot.lane.b32.xlu0 %v3263_v31, %s7340_s28  ;;  %v3408_v6 = vld [vmem:[#allocation3 + $0x54] sm:$0xff] }
 0x46e   : > { %v3017_v43 = vpop.permute.xlu1 %3016  ;;  %3293 = vrot.lane.b32.xlu1 %v3264_v13, %s7340_s28 }
 0x46f   : > { %v3075_v57 = vadd.f32 %v3017_v43, %v2977_v37  ;;  %v3015_v44 = vpop.permute.xlu0 %3014 }
 0x470   : > { %v3074_v1 = vadd.f32 %v3015_v44, %v2976_v14 }
 0x471   : > { %3363 = vrot.lane.b32.xlu0 %v3335_v28, %s7341_s6  ;;  %v3104_v59 = vadd.f32 %v8587_v27, %v3075_v57 }
 0x472   : > { %v3103_v46 = vadd.f32 %v8587_v27, %v3074_v1  ;;  %v8739_v15 = vpop.permute.xlu1 %2734  ;;  %3365 = vrot.lane.b32.xlu1 %v3336_v20, %s7341_s6 }
 0x473   : > { %v3128_v52 = vmax.f32 %v3104_v59, 0.0  ;;  %v8742_v47 = vpop.permute.xlu0 %2732  ;;  %v2787_v20 = vadd.f32 %v8510_v11, %v8739_v15 }
 0x474   : > { %v3127_v21 = vmax.f32 %v3103_v46, 0.0 }
 0x475   : > { %3435 = vrot.lane.b32.xlu0 %v3407_v19, %s7335_s7  ;;  %3152 = vst.msk [vmem:[#allocation3 + $0x68] sm:$0xff] %vm1439_vm4, %v3128_v52  ;;  %v2786_v52 = vadd.f32 %v8742_v47, %v8512_v12 }
 0x476   : > { %3151 = vst.msk [vmem:[#allocation3 + $0x60] sm:$0xff] %vm1439_vm4, %v3127_v21  ;;  %v2829_v26 = vpop.permute.xlu1 %2828  ;;  %3437 = vrot.lane.b32.xlu1 %v3408_v6, %s7335_s7 }
 0x477   : > { %v2827_v24 = vpop.permute.xlu0 %2826  ;;  %v2883_v38 = vadd.f32 %v2829_v26, %v2785_v40 }
 0x478   : > { %v2882_v31 = vadd.f32 %v2827_v24, %v2784_v25 }
 0x47a   : > { %v3021_v62 = vpop.permute.xlu1 %3020 }
 0x47b   : > { %v3077_v48 = vadd.f32 %v3021_v62, %v2979_v42  ;;  %v3019_v63 = vpop.permute.xlu0 %3018 }
 0x47c   : > { %v3076_v45 = vadd.f32 %v3019_v63, %v2978_v5 }
 0x47d   : > { %v3106_v54 = vadd.f32 %v8587_v27, %v3077_v48  ;;  %v3193_v55 = vld [vmem:[#allocation3 + $0x61] sm:$0xff] }
 0x47e   : > { %v3105_v32 = vadd.f32 %v8587_v27, %v3076_v45  ;;  %v2833_v10 = vpop.permute.xlu1 %2832  ;;  %3223 = vrot.lane.b32.xlu0 %v3193_v55, %s7339_s23  ;;  %v3169_v51 = vld [vmem:[#allocation3 + $0x60] sm:$0xff] }
 0x47f   : > { %v3130_v33 = vmax.f32 %v3106_v54, 0.0  ;;  %v2831_v58 = vpop.permute.xlu0 %2830  ;;  %3181 = vst.msk [vmem:[#allocation10 + $0x30] sm:$0xff] %vm1439_vm4, %v3169_v51  ;;  %v3265_v34 = vld [vmem:[#allocation3 + $0x62] sm:$0xff]  ;;  %v2885_v21 = vadd.f32 %v2833_v10, %v2787_v20 }
 0x480   : > { %v3129_v30 = vmax.f32 %v3105_v32, 0.0  ;;  %v3337_v0 = vld [vmem:[#allocation3 + $0x63] sm:$0xff]  ;;  %v2884_v6 = vadd.f32 %v2831_v58, %v2786_v52 }
 0x481   : > { %3154 = vst.msk [vmem:[#allocation3 + $0x78] sm:$0xff] %vm1439_vm4, %v3130_v33  ;;  %v3409_v60 = vld [vmem:[#allocation3 + $0x64] sm:$0xff] }
 0x482   : > { %3153 = vst.msk [vmem:[#allocation3 + $0x70] sm:$0xff] %vm1439_vm4, %v3129_v30  ;;  %v2927_v61 = vpop.permute.xlu1 %2926  ;;  %3295 = vrot.lane.b32.xlu0 %v3265_v34, %s7340_s28 }
 0x483   : > { %v2925_v35 = vpop.permute.xlu0 %2924  ;;  %v2981_v39 = vadd.f32 %v2927_v61, %v2883_v38 }
 0x484   : > { %v2980_v13 = vadd.f32 %v2925_v35, %v2882_v31 }
 0x486   : > { %v8759_v17 = vpop.permute.xlu1 %2738  ;;  %3367 = vrot.lane.b32.xlu0 %v3337_v0, %s7341_s6 }
 0x487   : > { %v8762_v53 = vpop.permute.xlu0 %2736  ;;  %v2789_v10 = vadd.f32 %v8530_v2, %v8759_v17 }
 0x488   : > { %v2788_v51 = vadd.f32 %v8762_v53, %v8532_v3 }
 0x489   : > { %v3194_v36 = vld [vmem:[#allocation3 + $0x71] sm:$0xff] }
 0x48a   : > { %v2931_v7 = vpop.permute.xlu1 %2930  ;;  %3439 = vrot.lane.b32.xlu0 %v3409_v60, %s7335_s7  ;;  %3225 = vrot.lane.b32.xlu1 %v3194_v36, %s7339_s23  ;;  %v3170_v4 = vld [vmem:[#allocation3 + $0x70] sm:$0xff] }
 0x48b   : > { %v2929_v29 = vpop.permute.xlu0 %2928  ;;  %3182 = vst.msk [vmem:[#allocation10 + $0x38] sm:$0xff] %vm1439_vm4, %v3170_v4  ;;  %v3266_v37 = vld [vmem:[#allocation3 + $0x72] sm:$0xff]  ;;  %v2983_v41 = vadd.f32 %v2931_v7, %v2885_v21 }
 0x48c   : > { %v3338_v43 = vld [vmem:[#allocation3 + $0x73] sm:$0xff]  ;;  %v2982_v26 = vadd.f32 %v2929_v29, %v2884_v6 }
 0x48d   : > { %v3410_v46 = vld [vmem:[#allocation3 + $0x74] sm:$0xff] }
 0x48e   : > { %v3025_v8 = vpop.permute.xlu1 %3024  ;;  %3297 = vrot.lane.b32.xlu1 %v3266_v37, %s7340_s28 }
 0x48f   : > { %v3079_v49 = vadd.f32 %v3025_v8, %v2981_v39  ;;  %v3023_v14 = vpop.permute.xlu0 %3022 }
 0x490   : > { %v3078_v9 = vadd.f32 %v3023_v14, %v2980_v13 }
 0x491   : > { %v3108_v16 = vadd.f32 %v8587_v27, %v3079_v49 }
 0x492   : > { %v3107_v57 = vadd.f32 %v8587_v27, %v3078_v9  ;;  %v2743_v44 = vpop.permute.xlu1 %2742  ;;  %3369 = vrot.lane.b32.xlu1 %v3338_v43, %s7341_s6 }
 0x493   : > { %v3132_v28 = vmax.f32 %v3108_v16, 0.0  ;;  %v2741_v1 = vpop.permute.xlu0 %2740  ;;  %v2791_v25 = vadd.f32 %v8554_v18, %v2743_v44 }
 0x494   : > { %v3131_v59 = vmax.f32 %v3107_v57, 0.0  ;;  %v2790_v4 = vadd.f32 %v2741_v1, %v8556_v50 }
 0x495   : > { %3156 = vst.msk [vmem:[#allocation3 + $0x88] sm:$0xff] %vm1439_vm4, %v3132_v28 }
 0x496   : > { %3155 = vst.msk [vmem:[#allocation3 + $0x80] sm:$0xff] %vm1439_vm4, %v3131_v59  ;;  %v2837_v19 = vpop.permute.xlu1 %2836  ;;  %3441 = vrot.lane.b32.xlu1 %v3410_v46, %s7335_s7 }
 0x497   : > { %v2835_v22 = vpop.permute.xlu0 %2834  ;;  %v2887_v34 = vadd.f32 %v2837_v19, %v2789_v10 }
 0x498   : > { %v2886_v0 = vadd.f32 %v2835_v22, %v2788_v51 }
 0x49a   : > { %v3029_v23 = vpop.permute.xlu1 %3028 }
 0x49b   : > { %v3081_v24 = vadd.f32 %v3029_v23, %v2983_v41  ;;  %v3027_v56 = vpop.permute.xlu0 %3026 }
 0x49c   : > { %v3080_v11 = vadd.f32 %v3027_v56, %v2982_v26 }
 0x49d   : > { %v3110_v15 = vadd.f32 %v8587_v27, %v3081_v24  ;;  %v3195_v42 = vld [vmem:[#allocation3 + $0x81] sm:$0xff] }
 0x49e   : > { %v3109_v5 = vadd.f32 %v8587_v27, %v3080_v11  ;;  %3227 = vrot.lane.b32.xlu0 %v3195_v42, %s7339_s23  ;;  %v3171_v12 = vld [vmem:[#allocation3 + $0x80] sm:$0xff]  ;;  %v2841_v62 = vpop.permute.xlu1 %2840 }
 0x49f   : > { %v3134_v47 = vmax.f32 %v3110_v15, 0.0  ;;  %3183 = vst.msk [vmem:[#allocation10 + $0x40] sm:$0xff] %vm1439_vm4, %v3171_v12  ;;  %v2839_v63 = vpop.permute.xlu0 %2838  ;;  %v3267_v45 = vld [vmem:[#allocation3 + $0x82] sm:$0xff]  ;;  %v2889_v31 = vadd.f32 %v2841_v62, %v2791_v25 }
 0x4a0   : > { %v3133_v48 = vmax.f32 %v3109_v5, 0.0  ;;  %v3339_v55 = vld [vmem:[#allocation3 + $0x83] sm:$0xff]  ;;  %v2888_v37 = vadd.f32 %v2839_v63, %v2790_v4 }
 0x4a1   : > { %3158 = vst.msk [vmem:[#allocation3 + $0x98] sm:$0xff] %vm1439_vm4, %v3134_v47  ;;  %v3411_v58 = vld [vmem:[#allocation3 + $0x84] sm:$0xff] }
 0x4a2   : > { %3157 = vst.msk [vmem:[#allocation3 + $0x90] sm:$0xff] %vm1439_vm4, %v3133_v48  ;;  %3299 = vrot.lane.b32.xlu0 %v3267_v45, %s7340_s28  ;;  %v2935_v54 = vpop.permute.xlu1 %2934 }
 0x4a3   : > { %v2933_v32 = vpop.permute.xlu0 %2932  ;;  %v2985_v40 = vadd.f32 %v2935_v54, %v2887_v34 }
 0x4a4   : > { %v2984_v60 = vadd.f32 %v2933_v32, %v2886_v0 }
 0x4a6   : > { %3371 = vrot.lane.b32.xlu0 %v3339_v55, %s7341_s6 }
 0x4a9   : > { %v3196_v30 = vld [vmem:[#allocation3 + $0x91] sm:$0xff] }
 0x4aa   : > { %v2939_v33 = vpop.permute.xlu1 %2938  ;;  %3443 = vrot.lane.b32.xlu0 %v3411_v58, %s7335_s7  ;;  %3229 = vrot.lane.b32.xlu1 %v3196_v30, %s7339_s23  ;;  %v3172_v35 = vld [vmem:[#allocation3 + $0x90] sm:$0xff] }
 0x4ab   : > { %v2937_v61 = vpop.permute.xlu0 %2936  ;;  %3184 = vst.msk [vmem:[#allocation10 + $0x48] sm:$0xff] %vm1439_vm4, %v3172_v35  ;;  %v3268_v2 = vld [vmem:[#allocation3 + $0x92] sm:$0xff]  ;;  %v2987_v8 = vadd.f32 %v2939_v33, %v2889_v31 }
 0x4ac   : > { %v3340_v29 = vld [vmem:[#allocation3 + $0x93] sm:$0xff]  ;;  %v2986_v49 = vadd.f32 %v2937_v61, %v2888_v37 }
 0x4ad   : > { %v3412_v14 = vld [vmem:[#allocation3 + $0x94] sm:$0xff] }
 0x4ae   : > { %v3033_v36 = vpop.permute.xlu1 %3032  ;;  %3301 = vrot.lane.b32.xlu1 %v3268_v2, %s7340_s28 }
 0x4af   : > { %v3083_v17 = vadd.f32 %v3033_v36, %v2985_v40  ;;  %v3031_v3 = vpop.permute.xlu0 %3030 }
 0x4b0   : > { %v3082_v53 = vadd.f32 %v3031_v3, %v2984_v60 }
 0x4b1   : > { %v3112_v7 = vadd.f32 %v8587_v27, %v3083_v17 }
 0x4b2   : > { %v3111_v38 = vadd.f32 %v8587_v27, %v3082_v53  ;;  %3373 = vrot.lane.b32.xlu1 %v3340_v29, %s7341_s6 }
 0x4b3   : > { %v3136_v39 = vmax.f32 %v3112_v7, 0.0 }
 0x4b4   : > { %v3135_v13 = vmax.f32 %v3111_v38, 0.0 }
 0x4b5   : > { %3160 = vst.msk [vmem:[#allocation3 + $0xa8] sm:$0xff] %vm1439_vm4, %v3136_v39 }
 0x4b6   : > { %3159 = vst.msk [vmem:[#allocation3 + $0xa0] sm:$0xff] %vm1439_vm4, %v3135_v13  ;;  %v3037_v18 = vpop.permute.xlu1 %3036  ;;  %3445 = vrot.lane.b32.xlu1 %v3412_v14, %s7335_s7 }
 0x4b7   : > { %v3085_v9 = vadd.f32 %v3037_v18, %v2987_v8  ;;  %v3035_v50 = vpop.permute.xlu0 %3034 }
 0x4b8   : > { %v3084_v16 = vadd.f32 %v3035_v50, %v2986_v49 }
 0x4b9   : > { %v3114_v43 = vadd.f32 %v8587_v27, %v3085_v9 }
 0x4ba   : > { %v3113_v57 = vadd.f32 %v8587_v27, %v3084_v16  ;;  %v3214_v44 = vpop.permute.xlu1 %3213 }
 0x4bb   : > { %v3138_v28 = vmax.f32 %v3114_v43, 0.0  ;;  %3248 = vst.msk [vmem:[#allocation10 + $0x8] sm:$0xff] %vm1697_vm8, %v3214_v44  ;;  %v3212_v1 = vpop.permute.xlu0 %3211 }
 0x4bc   : > { %v3137_v59 = vmax.f32 %v3113_v57, 0.0  ;;  %3247 = vst.msk [vmem:[#allocation10] sm:$0xff] %vm1697_vm8, %v3212_v1 }
 0x4bd   : > { %3162 = vst.msk [vmem:[#allocation3 + $0xb8] sm:$0xff] %vm1439_vm4, %v3138_v28  ;;  %v3197_v20 = vld [vmem:[#allocation3 + $0xa1] sm:$0xff] }
 0x4be   : > { %3161 = vst.msk [vmem:[#allocation3 + $0xb0] sm:$0xff] %vm1439_vm4, %v3137_v59  ;;  %v3286_v46 = vpop.permute.xlu1 %3285  ;;  %3231 = vrot.lane.b32.xlu0 %v3197_v20, %s7339_s23  ;;  %v3173_v52 = vld [vmem:[#allocation3 + $0xa0] sm:$0xff] }
 0x4bf   : > { %3320 = vst.msk [vmem:[#allocation10 + $0x8] sm:$0xff] %vm1891_vm10, %v3286_v46  ;;  %v3284_v27 = vpop.permute.xlu0 %3283  ;;  %v3269_v19 = vld [vmem:[#allocation3 + $0xa2] sm:$0xff] }
 0x4c0   : > { %3185 = vst.msk [vmem:[#allocation10 + $0x50] sm:$0xff] %vm1439_vm4, %v3173_v52  ;;  %v3341_v6 = vld [vmem:[#allocation3 + $0xa3] sm:$0xff] }
 0x4c1   : > { %3319 = vst.msk [vmem:[#allocation10] sm:$0xff] %vm1891_vm10, %v3284_v27  ;;  %v3413_v56 = vld [vmem:[#allocation3 + $0xa4] sm:$0xff] }
 0x4c2   : > { %v3358_v21 = vpop.permute.xlu1 %3357  ;;  %3303 = vrot.lane.b32.xlu0 %v3269_v19, %s7340_s28 }
 0x4c3   : > { %3392 = vst.msk [vmem:[#allocation10 + $0x8] sm:$0xff] %vm2085_vm12, %v3358_v21  ;;  %v3356_v22 = vpop.permute.xlu0 %3355 }
 0x4c4   : > { %3391 = vst.msk [vmem:[#allocation10] sm:$0xff] %vm2085_vm12, %v3356_v22 }
 0x4c5   : > { %v3198_v41 = vld [vmem:[#allocation3 + $0xb1] sm:$0xff] }
 0x4c6   : > { %v3216_v26 = vpop.permute.xlu1 %3215  ;;  %3375 = vrot.lane.b32.xlu0 %v3341_v6, %s7341_s6  ;;  %3233 = vrot.lane.b32.xlu1 %v3198_v41, %s7339_s23  ;;  %v3174_v23 = vld [vmem:[#allocation3 + $0xb0] sm:$0xff] }
 0x4c7   : > { %3249 = vst.msk [vmem:[#allocation10 + $0x10] sm:$0xff] %vm1697_vm8, %v3216_v26  ;;  %v3428_v24 = vpop.permute.xlu0 %3427  ;;  %v3270_v11 = vld [vmem:[#allocation3 + $0xb2] sm:$0xff] }
 0x4c8   : > { %3186 = vst.msk [vmem:[#allocation10 + $0x58] sm:$0xff] %vm1439_vm4, %v3174_v23  ;;  %v3342_v5 = vld [vmem:[#allocation3 + $0xb3] sm:$0xff] }
 0x4c9   : > { %3463 = vst.msk [vmem:[#allocation10] sm:$0xff] %vm2279_vm13, %v3428_v24  ;;  %v3414_v48 = vld [vmem:[#allocation3 + $0xb4] sm:$0xff] }
 0x4ca   : > { %v3218_v15 = vpop.permute.xlu1 %3217  ;;  %3447 = vrot.lane.b32.xlu0 %v3413_v56, %s7335_s7  ;;  %3305 = vrot.lane.b32.xlu1 %v3270_v11, %s7340_s28 }
 0x4cb   : > { %3250 = vst.msk [vmem:[#allocation10 + $0x18] sm:$0xff] %vm1697_vm8, %v3218_v15  ;;  %v3430_v42 = vpop.permute.xlu0 %3429 }
 0x4cc   : > { %3464 = vst.msk [vmem:[#allocation10 + $0x8] sm:$0xff] %vm2279_vm13, %v3430_v42 }
 0x4ce   : > { %v3290_v12 = vpop.permute.xlu1 %3289  ;;  %3377 = vrot.lane.b32.xlu1 %v3342_v5, %s7341_s6  ;;  %v4044_v5 = vld [vmem:[%s10298_s1 + $0x168] sm:$0xff] }
 0x4cf   : > { %3322 = vst.msk [vmem:[#allocation10 + $0x18] sm:$0xff] %vm1891_vm10, %v3290_v12  ;;  %v3288_v47 = vpop.permute.xlu0 %3287  ;;  %v4046_v12 = vld [vmem:[%s10298_s1 + $0x178] sm:$0xff] }
 0x4d0   : > { %v3475_v62 = vld [vmem:[#allocation10] sm:$0xff]  ;;  %3321 = vst.msk [vmem:[#allocation10 + $0x10] sm:$0xff] %vm1891_vm10, %v3288_v47 }
 0x4d1   : > { %7068 = vmatprep.mubr.msk.f32.mxu1 %vm2350_vm14, %v3475_v62  ;;  %v4043_v47 = vld [vmem:[%s10298_s1 + $0x160] sm:$0xff]  ;;  %v7222_v62 = vpack.c.bf16 %v4046_v12, %v4044_v5  ;;  %v7345_v5 = vmov 0.0  }
 0x4d2   : > { %v3362_v63 = vpop.permute.xlu1 %3361  ;;  %3449 = vrot.lane.b32.xlu1 %v3414_v48, %s7335_s7  ;;  %v4045_v48 = vld [vmem:[%s10298_s1 + $0x170] sm:$0xff]  ;;  %4152 = vmatprep.mubr.f32.mxu0 %v7345_v5  ;;  %4271 = vst [vmem:[#allocation12] sm:$0xff] %v7345_v5  ;;  %4272 = vst.msk [vmem:[#allocation12 + $0x8] sm:$0xff] %vm207_vm0, %v7345_v5 }
 0x4d3   : > { %3394 = vst.msk [vmem:[#allocation10 + $0x18] sm:$0xff] %vm2085_vm12, %v3362_v63  ;;  %v3360_v45 = vpop.permute.xlu0 %3359  ;;  %v3476_v54 = vld [vmem:[#allocation10 + $0x8] sm:$0xff]  ;;  %v7224_v63 = vpack.c.bf16 %v4045_v48, %v4043_v47  ;;  %7223 = vmatprep.subr.bf16.mxu0 %v7222_v62  ;;  %4279 = vst [vmem:[#allocation12 + $0x40] sm:$0xff] %v7345_v5 }
 0x4d4   : > { %3393 = vst.msk [vmem:[#allocation10 + $0x10] sm:$0xff] %vm2085_vm12, %v3360_v45  ;;  %7069 = vmatmul.mubr.msk.f32.vlgmr.msra.gmra.mrb[32].mxu1 %vm2350_vm14, %v3476_v54  ;;  %v4048_v54 = vld [vmem:[%s10298_s1 + $0x188] sm:$0xff]  ;;  %4281 = vst [vmem:[#allocation12 + $0x50] sm:$0xff] %v7345_v5 }
 0x4d5   : > { %7225 = vmatpush1.bf16.msra.mxu0 %v7224_v63  ;;  %4274 = vst.msk [vmem:[#allocation12 + $0x18] sm:$0xff] %vm207_vm0, %v7345_v5  ;;  %4276 = vst.msk [vmem:[#allocation12 + $0x28] sm:$0xff] %vm207_vm0, %v7345_v5 }
 0x4d6   : > { %v3220_v55 = vpop.permute.xlu1 %3219  ;;  %4278 = vst.msk [vmem:[#allocation12 + $0x38] sm:$0xff] %vm207_vm0, %v7345_v5  ;;  %4280 = vst.msk [vmem:[#allocation12 + $0x48] sm:$0xff] %vm207_vm0, %v7345_v5 }
 0x4d7   : > { %3251 = vst.msk [vmem:[#allocation10 + $0x20] sm:$0xff] %vm1697_vm8, %v3220_v55  ;;  %v3432_v32 = vpop.permute.xlu0 %3431  ;;  %v4050_v55 = vld [vmem:[%s10298_s1 + $0x198] sm:$0xff]  ;;  %4283 = vst [vmem:[#allocation12 + $0x60] sm:$0xff] %v7345_v5 }
 0x4d8   : > { %3465 = vst.msk [vmem:[#allocation10 + $0x10] sm:$0xff] %vm2279_vm13, %v3432_v32  ;;  %4285 = vst [vmem:[#allocation12 + $0x70] sm:$0xff] %v7345_v5 }
 0x4d9   : > { %4282 = vst.msk [vmem:[#allocation12 + $0x58] sm:$0xff] %vm207_vm0, %v7345_v5  ;;  %4284 = vst.msk [vmem:[#allocation12 + $0x68] sm:$0xff] %vm207_vm0, %v7345_v5 }
 0x4da   : > { %4286 = vst.msk [vmem:[#allocation12 + $0x78] sm:$0xff] %vm207_vm0, %v7345_v5  ;;  %4288 = vst.msk [vmem:[#allocation12 + $0x88] sm:$0xff] %vm207_vm0, %v7345_v5 }
 0x4db   : > { %v3434_v10 = vpop.permute.xlu0 %3433  ;;  %4290 = vst.msk [vmem:[#allocation12 + $0x98] sm:$0xff] %vm207_vm0, %v7345_v5  ;;  %4292 = vst.msk [vmem:[#allocation12 + $0xa8] sm:$0xff] %vm207_vm0, %v7345_v5 }
 0x4dc   : > { %3466 = vst.msk [vmem:[#allocation10 + $0x18] sm:$0xff] %vm2279_vm13, %v3434_v10  ;;  %v3222_v51 = vpop.permute.xlu1 %3221  ;;  %v7226_v10 = vpack.c.bf16 %v4050_v55, %v4048_v54 }
 0x4dd   : > { %3252 = vst.msk [vmem:[#allocation10 + $0x28] sm:$0xff] %vm1697_vm8, %v3222_v51 }
 0x4de   : > { %7227 = vmatprep.subr.bf16.mxu0 %v7226_v10  ;;  %4294 = vst.msk [vmem:[#allocation12 + $0xb8] sm:$0xff] %vm207_vm0, %v7345_v5 }
 0x4df   : > { %v3292_v33 = vpop.permute.xlu0 %3291  ;;  %v3477_v58 = vld [vmem:[#allocation10 + $0x10] sm:$0xff]  ;;  %4786 = vst.msk [vmem:[#allocation13] sm:$0xff] %vm4063_vm2, %v7345_v5  ;;  %4787 = vst.msk [vmem:[#allocation13 + $0x8] sm:$0xff] %vm4063_vm2, %v7345_v5 }
 0x4e0   : > { %3323 = vst.msk [vmem:[#allocation10 + $0x20] sm:$0xff] %vm1891_vm10, %v3292_v33  ;;  %7071 = vmatprep.mubr.msk.f32.mxu1 %vm2350_vm14, %v3477_v58  ;;  %v3294_v30 = vpop.permute.xlu1 %3293  ;;  %v4047_v33 = vld [vmem:[%s10298_s1 + $0x180] sm:$0xff]  ;;  %v4049_v58 = vld [vmem:[%s10298_s1 + $0x190] sm:$0xff] }
 0x4e1   : > { %3324 = vst.msk [vmem:[#allocation10 + $0x28] sm:$0xff] %vm1891_vm10, %v3294_v30  ;;  %v4052_v30 = vld [vmem:[%s10298_s1 + $0x1a8] sm:$0xff] }
 0x4e2   : > { %4788 = vst.msk [vmem:[#allocation13 + $0x10] sm:$0xff] %vm4063_vm2, %v7345_v5  ;;  %4789 = vst.msk [vmem:[#allocation13 + $0x18] sm:$0xff] %vm4063_vm2, %v7345_v5 }
 0x4e3   : > { %v3364_v34 = vpop.permute.xlu0 %3363  ;;  %v3478_v61 = vld [vmem:[#allocation10 + $0x18] sm:$0xff]  ;;  %4790 = vst.msk [vmem:[#allocation13 + $0x20] sm:$0xff] %vm4063_vm2, %v7345_v5  ;;  %4791 = vst.msk [vmem:[#allocation13 + $0x28] sm:$0xff] %vm4063_vm2, %v7345_v5 }
 0x4e4   : > { %3395 = vst.msk [vmem:[#allocation10 + $0x20] sm:$0xff] %vm2085_vm12, %v3364_v34  ;;  %7072 = vmatmul.mubr.msk.f32.gmra.mrb[34].mxu1 %vm2350_vm14, %v3478_v61  ;;  %v3366_v35 = vpop.permute.xlu1 %3365  ;;  %v7228_v34 = vpack.c.bf16 %v4049_v58, %v4047_v33  ;;  %v4054_v61 = vld [vmem:[%s10298_s1 + $0x1b8] sm:$0xff] }
 0x4e5   : > { %3396 = vst.msk [vmem:[#allocation10 + $0x28] sm:$0xff] %vm2085_vm12, %v3366_v35  ;;  %v4051_v35 = vld [vmem:[%s10298_s1 + $0x1a0] sm:$0xff] }
 0x4e6   : > { %7229 = vmatpush1.bf16.msra.mxu0 %v7228_v34  ;;  %4792 = vst.msk [vmem:[#allocation13 + $0x30] sm:$0xff] %vm4063_vm2, %v7345_v5  ;;  %4793 = vst.msk [vmem:[#allocation13 + $0x38] sm:$0xff] %vm4063_vm2, %v7345_v5 }
 0x4e7   : > { %v3436_v0 = vpop.permute.xlu0 %3435  ;;  %4794 = vst.msk [vmem:[#allocation13 + $0x40] sm:$0xff] %vm4063_vm2, %v7345_v5  ;;  %4795 = vst.msk [vmem:[#allocation13 + $0x48] sm:$0xff] %vm4063_vm2, %v7345_v5 }
 0x4e8   : > { %3467 = vst.msk [vmem:[#allocation10 + $0x20] sm:$0xff] %vm2279_vm13, %v3436_v0  ;;  %v3438_v40 = vpop.permute.xlu1 %3437  ;;  %v4053_v0 = vld [vmem:[%s10298_s1 + $0x1b0] sm:$0xff] }
 0x4e9   : > { %3468 = vst.msk [vmem:[#allocation10 + $0x28] sm:$0xff] %vm2279_vm13, %v3438_v40  ;;  %v7230_v40 = vpack.c.bf16 %v4054_v61, %v4052_v30 }
 0x4ea   : > { %4796 = vst.msk [vmem:[#allocation13 + $0x50] sm:$0xff] %vm4063_vm2, %v7345_v5  ;;  %4797 = vst.msk [vmem:[#allocation13 + $0x58] sm:$0xff] %vm4063_vm2, %v7345_v5 }
 0x4eb   : > { %7231 = vmatprep.subr.bf16.mxu0 %v7230_v40  ;;  %4798 = vst.msk [vmem:[#allocation13 + $0x60] sm:$0xff] %vm4063_vm2, %v7345_v5  ;;  %4799 = vst.msk [vmem:[#allocation13 + $0x68] sm:$0xff] %vm4063_vm2, %v7345_v5 }
 0x4ec   : > { %4800 = vst.msk [vmem:[#allocation13 + $0x70] sm:$0xff] %vm4063_vm2, %v7345_v5  ;;  %4801 = vst.msk [vmem:[#allocation13 + $0x78] sm:$0xff] %vm4063_vm2, %v7345_v5 }
 0x4ed   : > { %4802 = vst.msk [vmem:[#allocation13 + $0x80] sm:$0xff] %vm4063_vm2, %v7345_v5  ;;  %4803 = vst.msk [vmem:[#allocation13 + $0x88] sm:$0xff] %vm4063_vm2, %v7345_v5 }
 0x4ee   : > { %4804 = vst.msk [vmem:[#allocation13 + $0x90] sm:$0xff] %vm4063_vm2, %v7345_v5  ;;  %4805 = vst.msk [vmem:[#allocation13 + $0x98] sm:$0xff] %vm4063_vm2, %v7345_v5 }
 0x4ef   : > { %v3479_v60 = vld [vmem:[#allocation10 + $0x20] sm:$0xff]  ;;  %4806 = vst.msk [vmem:[#allocation13 + $0xa0] sm:$0xff] %vm4063_vm2, %v7345_v5  ;;  %4807 = vst.msk [vmem:[#allocation13 + $0xa8] sm:$0xff] %vm4063_vm2, %v7345_v5 }
 0x4f0   : > { %7074 = vmatprep.mubr.msk.f32.mxu1 %vm2350_vm14, %v3479_v60  ;;  %v3224_v36 = vpop.permute.xlu0 %3223  ;;  %v3480_v2 = vld [vmem:[#allocation10 + $0x28] sm:$0xff]  ;;  %4808 = vst.msk [vmem:[#allocation13 + $0xb0] sm:$0xff] %vm4063_vm2, %v7345_v5  ;;  %4809 = vst.msk [vmem:[#allocation13 + $0xb8] sm:$0xff] %vm4063_vm2, %v7345_v5 }
 0x4f1   : > { %3253 = vst.msk [vmem:[#allocation10 + $0x30] sm:$0xff] %vm1697_vm8, %v3224_v36  ;;  %7075 = vmatmul.mubr.msk.f32.gmra.mrb[36].mxu1 %vm2350_vm14, %v3480_v2  ;;  %v7232_v36 = vpack.c.bf16 %v4053_v0, %v4051_v35 }
 0x4f2   : > { %4810 = vst.msk [vmem:[#allocation13 + $0xc0] sm:$0xff] %vm4063_vm2, %v7345_v5  ;;  %4811 = vst.msk [vmem:[#allocation13 + $0xc8] sm:$0xff] %vm4063_vm2, %v7345_v5 }
 0x4f3   : > { %7233 = vmatpush1.bf16.msra.mxu0 %v7232_v36  ;;  %4812 = vst.msk [vmem:[#allocation13 + $0xd0] sm:$0xff] %vm4063_vm2, %v7345_v5  ;;  %4813 = vst.msk [vmem:[#allocation13 + $0xd8] sm:$0xff] %vm4063_vm2, %v7345_v5 }
 0x4f4   : > { %v3296_v17 = vpop.permute.xlu0 %3295  ;;  %4814 = vst.msk [vmem:[#allocation13 + $0xe0] sm:$0xff] %vm4063_vm2, %v7345_v5  ;;  %4815 = vst.msk [vmem:[#allocation13 + $0xe8] sm:$0xff] %vm4063_vm2, %v7345_v5 }
 0x4f5   : > { %3325 = vst.msk [vmem:[#allocation10 + $0x30] sm:$0xff] %vm1891_vm10, %v3296_v17 }
 0x4f6   : > { %4816 = vst.msk [vmem:[#allocation13 + $0xf0] sm:$0xff] %vm4063_vm2, %v7345_v5  ;;  %4817 = vst.msk [vmem:[#allocation13 + $0xf8] sm:$0xff] %vm4063_vm2, %v7345_v5 }
 0x4f8   : > { %v3368_v3 = vpop.permute.xlu0 %3367 }
 0x4f9   : > { %3397 = vst.msk [vmem:[#allocation10 + $0x30] sm:$0xff] %vm2085_vm12, %v3368_v3 }
 0x4fc   : > { %v3226_v53 = vpop.permute.xlu1 %3225  ;;  %v3440_v25 = vpop.permute.xlu0 %3439 }
 0x4fd   : > { %3254 = vst.msk [vmem:[#allocation10 + $0x38] sm:$0xff] %vm1697_vm8, %v3226_v53 }
 0x4fe   : > { %3469 = vst.msk [vmem:[#allocation10 + $0x30] sm:$0xff] %vm2279_vm13, %v3440_v25 }
 0x500   : > { %v3298_v7 = vpop.permute.xlu1 %3297 }
 0x501   : > { %3326 = vst.msk [vmem:[#allocation10 + $0x38] sm:$0xff] %vm1891_vm10, %v3298_v7 }
 0x504   : > { %v3370_v4 = vpop.permute.xlu1 %3369 }
 0x505   : > { %v3481_v38 = vld [vmem:[#allocation10 + $0x30] sm:$0xff]  ;;  %3398 = vst.msk [vmem:[#allocation10 + $0x38] sm:$0xff] %vm2085_vm12, %v3370_v4 }
 0x506   : > { %7077 = vmatprep.mubr.msk.f32.mxu1 %vm2350_vm14, %v3481_v38 }
 0x508   : > { %v3442_v29 = vpop.permute.xlu1 %3441 }
 0x509   : > { %3470 = vst.msk [vmem:[#allocation10 + $0x38] sm:$0xff] %vm2279_vm13, %v3442_v29  ;;  %v8995_v29 = vld [vmem:[%s10299_s2 + $0x2] ss:$0 sm:$0xff] }
 0x510   : > { %v3228_v31 = vpop.permute.xlu0 %3227  ;;  %v3482_v39 = vld [vmem:[#allocation10 + $0x38] sm:$0xff] }
 0x511   : > { %3255 = vst.msk [vmem:[#allocation10 + $0x40] sm:$0xff] %vm1697_vm8, %v3228_v31  ;;  %7078 = vmatmul.mubr.msk.f32.gmra.mrb[38].mxu1 %vm2350_vm14, %v3482_v39 }
 0x514   : > { %v3300_v37 = vpop.permute.xlu0 %3299 }
 0x515   : > { %3327 = vst.msk [vmem:[#allocation10 + $0x40] sm:$0xff] %vm1891_vm10, %v3300_v37 }
 0x518   : > { %v3372_v13 = vpop.permute.xlu0 %3371 }
 0x519   : > { %3399 = vst.msk [vmem:[#allocation10 + $0x40] sm:$0xff] %vm2085_vm12, %v3372_v13 }
 0x51c   : > { %v3230_v8 = vpop.permute.xlu1 %3229  ;;  %v3444_v49 = vpop.permute.xlu0 %3443 }
 0x51d   : > { %3256 = vst.msk [vmem:[#allocation10 + $0x48] sm:$0xff] %vm1697_vm8, %v3230_v8 }
 0x51e   : > { %3471 = vst.msk [vmem:[#allocation10 + $0x40] sm:$0xff] %vm2279_vm13, %v3444_v49 }
 0x520   : > { %v3302_v18 = vpop.permute.xlu1 %3301 }
 0x521   : > { %3328 = vst.msk [vmem:[#allocation10 + $0x48] sm:$0xff] %vm1891_vm10, %v3302_v18 }
 0x524   : > { %v3374_v14 = vpop.permute.xlu1 %3373 }
 0x525   : > { %v3483_v9 = vld [vmem:[#allocation10 + $0x40] sm:$0xff]  ;;  %3400 = vst.msk [vmem:[#allocation10 + $0x48] sm:$0xff] %vm2085_vm12, %v3374_v14  ;;  %v4056_v14 = vld [vmem:[%s10298_s1 + $0x1c8] sm:$0xff] }
 0x526   : > { %7080 = vmatprep.mubr.msk.f32.mxu1 %vm2350_vm14, %v3483_v9  ;;  %v4058_v9 = vld [vmem:[%s10298_s1 + $0x1d8] sm:$0xff] }
 0x528   : > { %v3446_v50 = vpop.permute.xlu1 %3445 }
 0x529   : > { %3472 = vst.msk [vmem:[#allocation10 + $0x48] sm:$0xff] %vm2279_vm13, %v3446_v50 }
 0x530   : > { %v3232_v16 = vpop.permute.xlu0 %3231  ;;  %v3484_v43 = vld [vmem:[#allocation10 + $0x48] sm:$0xff] }
 0x531   : > { %3257 = vst.msk [vmem:[#allocation10 + $0x50] sm:$0xff] %vm1697_vm8, %v3232_v16  ;;  %7081 = vmatmul.mubr.msk.f32.gmra.mrb[40].mxu1 %vm2350_vm14, %v3484_v43  ;;  %v7234_v16 = vpack.c.bf16 %v4058_v9, %v4056_v14  ;;  %v4055_v43 = vld [vmem:[%s10298_s1 + $0x1c0] sm:$0xff] }
 0x533   : > { %7235 = vmatprep.subr.bf16.mxu0 %v7234_v16 }
 0x534   : > { %v3304_v57 = vpop.permute.xlu0 %3303 }
 0x535   : > { %3329 = vst.msk [vmem:[#allocation10 + $0x50] sm:$0xff] %vm1891_vm10, %v3304_v57  ;;  %v4057_v57 = vld [vmem:[%s10298_s1 + $0x1d0] sm:$0xff] }
 0x538   : > { %v3234_v44 = vpop.permute.xlu1 %3233  ;;  %v3376_v28 = vpop.permute.xlu0 %3375 }
 0x539   : > { %3258 = vst.msk [vmem:[#allocation10 + $0x58] sm:$0xff] %vm1697_vm8, %v3234_v44  ;;  %v7236_v44 = vpack.c.bf16 %v4057_v57, %v4055_v43 }
 0x53a   : > { %3401 = vst.msk [vmem:[#allocation10 + $0x50] sm:$0xff] %vm2085_vm12, %v3376_v28 }
 0x53b   : > { %7237 = vmatpush1.bf16.msra.mxu0 %v7236_v44 }
 0x53c   : > { %v3306_v1 = vpop.permute.xlu1 %3305  ;;  %v3448_v59 = vpop.permute.xlu0 %3447 }
 0x53d   : > { %3330 = vst.msk [vmem:[#allocation10 + $0x58] sm:$0xff] %vm1891_vm10, %v3306_v1 }
 0x53e   : > { %3473 = vst.msk [vmem:[#allocation10 + $0x50] sm:$0xff] %vm2279_vm13, %v3448_v59  ;;  %v4060_v59 = vld [vmem:[%s10298_s1 + $0x1e8] sm:$0xff] }
 0x540   : > { %v3378_v20 = vpop.permute.xlu1 %3377 }
 0x541   : > { %3402 = vst.msk [vmem:[#allocation10 + $0x58] sm:$0xff] %vm2085_vm12, %v3378_v20  ;;  %v4062_v20 = vld [vmem:[%s10298_s1 + $0x1f8] sm:$0xff] }
 0x544   : > { %v3450_v46 = vpop.permute.xlu1 %3449 }
 0x545   : > { %v3485_v52 = vld [vmem:[#allocation10 + $0x50] sm:$0xff]  ;;  %3474 = vst.msk [vmem:[#allocation10 + $0x58] sm:$0xff] %vm2279_vm13, %v3450_v46  ;;  %v4059_v46 = vld [vmem:[%s10298_s1 + $0x1e0] sm:$0xff] }
 0x546   : > { %7083 = vmatprep.mubr.msk.f32.mxu1 %vm2350_vm14, %v3485_v52 }
 0x54c   : > { %v3486_v27 = vld [vmem:[#allocation10 + $0x58] sm:$0xff] }
 0x54d   : > { %7084 = vmatmul.mubr.msk.f32.gmra.mrb[42].mxu1 %vm2350_vm14, %v3486_v27  ;;  %v7238_v27 = vpack.c.bf16 %v4062_v20, %v4060_v59 }
 0x54f   : > { %7239 = vmatprep.subr.bf16.mxu0 %v7238_v27 }
 0x5a7   : > { %v8880_v19 = vpop.f32.mrb[32].mxu1 }
 0x5a8   : > { %3661 = vrot.lane.b32.xlu0 %v8880_v19, %s7338_s20  ;;  %v8884_v21 = vpop.f32.mrb[33].mxu1 }
 0x5b7   : > { %v8886_v22 = vpop.f32.mrb[34].mxu1 }
 0x5b8   : > { %3696 = vrot.lane.b32.xlu0 %v8886_v22, %s7343_s14  ;;  %3727 = vrot.lane.b32.xlu1 %v8886_v22, %s7344_s4  ;;  %v8892_v6 = vpop.f32.mrb[35].mxu1 }
 0x5bc   : > { %3665 = vrot.lane.b32.xlu0 %v8886_v22, %s7338_s20  ;;  %3694 = vrot.lane.b32.xlu1 %v8892_v6, %s7343_s14 }
 0x5c0   : > { %3663 = vrot.lane.b32.xlu0 %v8892_v6, %s7338_s20 }
 0x5c4   : > { %v8900_v41 = vpop.f32.mrb[36].mxu1 }
 0x5c5   : > { %3700 = vrot.lane.b32.xlu0 %v8900_v41, %s7343_s14  ;;  %3762 = vrot.lane.b32.xlu1 %v8900_v41, %s7336_s8  ;;  %v8906_v26 = vpop.f32.mrb[37].mxu1 }
 0x5c9   : > { %3669 = vrot.lane.b32.xlu0 %v8900_v41, %s7338_s20  ;;  %3731 = vrot.lane.b32.xlu1 %v8900_v41, %s7344_s4 }
 0x5cd   : > { %3698 = vrot.lane.b32.xlu0 %v8906_v26, %s7343_s14  ;;  %3760 = vrot.lane.b32.xlu1 %v8906_v26, %s7336_s8 }
 0x5d1   : > { %3667 = vrot.lane.b32.xlu0 %v8906_v26, %s7338_s20  ;;  %3729 = vrot.lane.b32.xlu1 %v8906_v26, %s7344_s4 }
 0x5e4   : > { %v8920_v23 = vpop.f32.mrb[38].mxu1 }
 0x5e5   : > { %3704 = vrot.lane.b32.xlu0 %v8920_v23, %s7343_s14  ;;  %3766 = vrot.lane.b32.xlu1 %v8920_v23, %s7336_s8  ;;  %v8926_v24 = vpop.f32.mrb[39].mxu1 }
 0x5e9   : > { %3673 = vrot.lane.b32.xlu0 %v8920_v23, %s7338_s20  ;;  %3735 = vrot.lane.b32.xlu1 %v8920_v23, %s7344_s4 }
 0x5ed   : > { %3702 = vrot.lane.b32.xlu0 %v8926_v24, %s7343_s14  ;;  %3764 = vrot.lane.b32.xlu1 %v8926_v24, %s7336_s8 }
 0x5f1   : > { %3671 = vrot.lane.b32.xlu0 %v8926_v24, %s7338_s20  ;;  %3733 = vrot.lane.b32.xlu1 %v8926_v24, %s7344_s4 }
 0x604   : > { %v7082_v56 = vpop.f32.mrb[40].mxu1 }
 0x605   : > { %v3634_v11 = vpop.f32.mrb[41].mxu1 }
 0x606   : > { %3706 = vrot.lane.b32.xlu0 %v3634_v11, %s7343_s14  ;;  %3768 = vrot.lane.b32.xlu1 %v3634_v11, %s7336_s8 }
 0x60a   : > { %3739 = vrot.lane.b32.xlu0 %v7082_v56, %s7344_s4  ;;  %3737 = vrot.lane.b32.xlu1 %v3634_v11, %s7344_s4 }
 0x60e   : > { %3708 = vrot.lane.b32.xlu0 %v7082_v56, %s7343_s14  ;;  %3770 = vrot.lane.b32.xlu1 %v7082_v56, %s7336_s8 }
 0x61a   : > { %v3662_v45 = vpop.permute.xlu0 %3661 }
 0x61b   : > { %v3685_v3 = vadd.f32 %v3662_v45, %v8884_v21 }
 0x620   : > { %v7085_v15 = vpop.f32.mrb[42].mxu1 }
 0x621   : > { %3774 = vrot.lane.b32.xlu0 %v7085_v15, %s7336_s8  ;;  %v3644_v42 = vpop.f32.mrb[43].mxu1 }
 0x622   : > { %3772 = vrot.lane.b32.xlu1 %v3644_v42, %s7336_s8 }
 0x626   : > { %3675 = vrot.lane.b32.xlu1 %v3634_v11, %s7338_s20 }
 0x62a   : > { %3741 = vrot.lane.b32.xlu1 %v3644_v42, %s7344_s4  ;;  %v3728_v32 = vpop.permute.xlu1 %3727  ;;  %v3697_v51 = vpop.permute.xlu0 %3696 }
 0x62e   : > { %v3695_v60 = vpop.permute.xlu1 %3694  ;;  %v8986_v2 = vpop.permute.xlu0 %3665 }
 0x62f   : > { %v3718_v53 = vadd.f32 %v3695_v60, %v3685_v3  ;;  %v3687_v55 = vadd.f32 %v8986_v2, %v8892_v6 }
 0x631   : > { %v3751_v38 = vadd.f32 %v3728_v32, %v3718_v53 }
 0x632   : > { %v3664_v25 = vpop.permute.xlu0 %3663 }
 0x633   : > { %v3686_v4 = vadd.f32 %v8880_v19, %v3664_v25  ;;  %v4061_v19 = vld [vmem:[%s10298_s1 + $0x1f0] sm:$0xff] }
 0x634   : > { %v7240_v21 = vpack.c.bf16 %v4061_v19, %v4059_v46 }
 0x635   : > { %v3719_v13 = vadd.f32 %v3697_v51, %v3686_v4 }
 0x636   : > { %7241 = vmatpush1.bf16.msra.mxu0 %v7240_v21 }
 0x637   : > { %v3763_v17 = vpop.permute.xlu1 %3762  ;;  %v9012_v1 = vpop.permute.xlu0 %3700 }
 0x63b   : > { %v8989_v7 = vpop.permute.xlu1 %3731  ;;  %v9029_v42 = vpop.permute.xlu0 %3669 }
 0x63f   : > { %v3761_v31 = vpop.permute.xlu1 %3760  ;;  %v3699_v48 = vpop.permute.xlu0 %3698 }
 0x640   : > { %v3784_v39 = vadd.f32 %v3761_v31, %v3751_v38  ;;  %v3720_v51 = vadd.f32 %v3699_v48, %v3687_v55  ;;  %v3689_v31 = vadd.f32 %v9029_v42, %v8906_v26 }
 0x642   : > { %v3797_v37 = vadd.f32 %v8995_v29, %v3784_v39  ;;  %v3753_v34 = vadd.f32 %v8989_v7, %v3720_v51 }
 0x643   : > { %v3730_v8 = vpop.permute.xlu1 %3729  ;;  %v3668_v33 = vpop.permute.xlu0 %3667 }
 0x644   : > { %v3805_v49 = vmax.f32 %v3797_v37, 0.0  ;;  %v3752_v18 = vadd.f32 %v3730_v8, %v3719_v13  ;;  %v3688_v30 = vadd.f32 %v8886_v22, %v3668_v33 }
 0x646   : > { %3814 = vst.msk [vmem:[#allocation4] sm:$0xff] %vm3813_vm15, %v3805_v49  ;;  %v3785_v50 = vadd.f32 %v3763_v17, %v3752_v18  ;;  %v3721_v40 = vadd.f32 %v9012_v1, %v3688_v30 }
 0x648   : > { %v3798_v28 = vadd.f32 %v8995_v29, %v3785_v50 }
 0x64a   : > { %v3806_v52 = vmax.f32 %v3798_v28, 0.0 }
 0x64c   : > { %3815 = vst.msk [vmem:[#allocation4 + $0x8] sm:$0xff] %vm3813_vm15, %v3806_v52 }
 0x64d   : > { %v3888_v56 = vld [vmem:[#allocation4 + $0x2] sm:$0xf] }
 0x64e   : > { %v3839_v11 = vld [vmem:[#allocation4 + $0x1] sm:$0xf]  ;;  %3904 = vrot.lane.b32.xlu1 %v3888_v56, %s7335_s7 }
 0x64f   : > { %3855 = vrot.lane.b32.xlu0 %v3839_v11, %s7340_s28  ;;  %v3822_v15 = vld [vmem:[#allocation4] sm:$0xf]  ;;  %v3986_v12 = vld [vmem:[#allocation4 + $0x4] sm:$0xf] }
 0x650   : > { %3831 = vst.msk [vmem:[#allocation11] sm:$0xf] %vm3830_vm1, %v3822_v15  ;;  %v3937_v47 = vld [vmem:[#allocation4 + $0x3] sm:$0xf] }
 0x652   : > { %4002 = vrot.lane.b32.xlu1 %v3986_v12, %s7336_s8 }
 0x653   : > { %3953 = vrot.lane.b32.xlu0 %v3937_v47, %s7346_s27  ;;  %v3823_v62 = vld [vmem:[#allocation4 + $0x8] sm:$0xf]  ;;  %v3987_v32 = vld [vmem:[#allocation4 + $0xc] sm:$0xf] }
 0x654   : > { %v3938_v63 = vld [vmem:[#allocation4 + $0xb] sm:$0xf]  ;;  %3832 = vst.msk [vmem:[#allocation11 + $0x8] sm:$0xf] %vm3830_vm1, %v3823_v62 }
 0x655   : > { %v3840_v45 = vld [vmem:[#allocation4 + $0x9] sm:$0xf] }
 0x656   : > { %3955 = vrot.lane.b32.xlu1 %v3938_v63, %s7346_s27  ;;  %v3889_v10 = vld [vmem:[#allocation4 + $0xa] sm:$0xf] }
 0x657   : > { %3857 = vrot.lane.b32.xlu0 %v3840_v45, %s7340_s28  ;;  %v3767_v54 = vpop.permute.xlu1 %3766  ;;  %v3705_v60 = vpop.permute.xlu0 %3704 }
 0x65a   : > { %4004 = vrot.lane.b32.xlu1 %v3987_v32, %s7336_s8 }
 0x65b   : > { %3906 = vrot.lane.b32.xlu0 %v3889_v10, %s7335_s7  ;;  %v3736_v58 = vpop.permute.xlu1 %3735  ;;  %v3674_v53 = vpop.permute.xlu0 %3673 }
 0x65c   : > { %v3691_v12 = vadd.f32 %v3674_v53, %v8926_v24 }
 0x65f   : > { %v3765_v61 = vpop.permute.xlu1 %3764  ;;  %v3703_v38 = vpop.permute.xlu0 %3702 }
 0x660   : > { %v3786_v35 = vadd.f32 %v3765_v61, %v3753_v34  ;;  %v3722_v13 = vadd.f32 %v3703_v38, %v3689_v31 }
 0x662   : > { %v3799_v0 = vadd.f32 %v8995_v29, %v3786_v35  ;;  %v3755_v9 = vadd.f32 %v3736_v58, %v3722_v13 }
 0x663   : > { %v3734_v6 = vpop.permute.xlu1 %3733  ;;  %v3672_v14 = vpop.permute.xlu0 %3671 }
 0x664   : > { %v3807_v36 = vmax.f32 %v3799_v0, 0.0  ;;  %v3754_v2 = vadd.f32 %v3734_v6, %v3721_v40  ;;  %v3690_v26 = vadd.f32 %v8900_v41, %v3672_v14 }
 0x666   : > { %3816 = vst.msk [vmem:[#allocation4 + $0x10] sm:$0xff] %vm3813_vm15, %v3807_v36  ;;  %v3787_v17 = vadd.f32 %v3767_v54, %v3754_v2  ;;  %v3723_v59 = vadd.f32 %v3705_v60, %v3690_v26 }
 0x668   : > { %v3800_v3 = vadd.f32 %v8995_v29, %v3787_v17 }
 0x66a   : > { %v3808_v25 = vmax.f32 %v3800_v3, 0.0 }
 0x66c   : > { %3817 = vst.msk [vmem:[#allocation4 + $0x18] sm:$0xff] %vm3813_vm15, %v3808_v25 }
 0x66d   : > { %v3939_v22 = vld [vmem:[#allocation4 + $0x13] sm:$0xf] }
 0x66e   : > { %v3841_v7 = vld [vmem:[#allocation4 + $0x11] sm:$0xf]  ;;  %3957 = vrot.lane.b32.xlu1 %v3939_v22, %s7346_s27 }
 0x66f   : > { %3859 = vrot.lane.b32.xlu0 %v3841_v7, %s7340_s28  ;;  %v3824_v4 = vld [vmem:[#allocation4 + $0x10] sm:$0xf]  ;;  %v3988_v39 = vld [vmem:[#allocation4 + $0x14] sm:$0xf] }
 0x670   : > { %3833 = vst.msk [vmem:[#allocation11 + $0x10] sm:$0xf] %vm3830_vm1, %v3824_v4  ;;  %v3890_v37 = vld [vmem:[#allocation4 + $0x12] sm:$0xf] }
 0x672   : > { %4006 = vrot.lane.b32.xlu1 %v3988_v39, %s7336_s8 }
 0x673   : > { %3908 = vrot.lane.b32.xlu0 %v3890_v37, %s7335_s7  ;;  %v3825_v8 = vld [vmem:[#allocation4 + $0x18] sm:$0xf]  ;;  %v3989_v43 = vld [vmem:[#allocation4 + $0x1c] sm:$0xf] }
 0x674   : > { %v3891_v49 = vld [vmem:[#allocation4 + $0x1a] sm:$0xf]  ;;  %3834 = vst.msk [vmem:[#allocation11 + $0x18] sm:$0xf] %vm3830_vm1, %v3825_v8 }
 0x675   : > { %v3842_v18 = vld [vmem:[#allocation4 + $0x19] sm:$0xf] }
 0x676   : > { %3910 = vrot.lane.b32.xlu1 %v3891_v49, %s7335_s7  ;;  %v3940_v57 = vld [vmem:[#allocation4 + $0x1b] sm:$0xf] }
 0x677   : > { %3861 = vrot.lane.b32.xlu0 %v3842_v18, %s7340_s28 }
 0x678   : > { %v3769_v50 = vpop.permute.xlu1 %3768  ;;  %v3707_v11 = vpop.permute.xlu0 %3706 }
 0x679   : > { %v3788_v16 = vadd.f32 %v3769_v50, %v3755_v9  ;;  %v3724_v45 = vadd.f32 %v3707_v11, %v3691_v12 }
 0x67a   : > { %4008 = vrot.lane.b32.xlu1 %v3989_v43, %s7336_s8 }
 0x67b   : > { %3959 = vrot.lane.b32.xlu0 %v3940_v57, %s7346_s27  ;;  %v3801_v44 = vadd.f32 %v8995_v29, %v3788_v16 }
 0x67c   : > { %v3738_v28 = vpop.permute.xlu1 %3737  ;;  %v3740_v48 = vpop.permute.xlu0 %3739 }
 0x67d   : > { %v3809_v1 = vmax.f32 %v3801_v44, 0.0  ;;  %v3756_v20 = vadd.f32 %v3738_v28, %v3723_v59  ;;  %v3757_v54 = vadd.f32 %v3740_v48, %v3724_v45 }
 0x67f   : > { %3818 = vst.msk [vmem:[#allocation4 + $0x20] sm:$0xff] %vm3813_vm15, %v3809_v1 }
 0x680   : > { %v3771_v46 = vpop.permute.xlu1 %3770  ;;  %v3709_v34 = vpop.permute.xlu0 %3708 }
 0x681   : > { %v3789_v52 = vadd.f32 %v3771_v46, %v3756_v20 }
 0x683   : > { %v3802_v27 = vadd.f32 %v8995_v29, %v3789_v52 }
 0x685   : > { %v3810_v41 = vmax.f32 %v3802_v27, 0.0 }
 0x686   : > { %v3892_v19 = vld [vmem:[#allocation4 + $0x22] sm:$0xf] }
 0x687   : > { %v3843_v21 = vld [vmem:[#allocation4 + $0x21] sm:$0xf]  ;;  %3819 = vst.msk [vmem:[#allocation4 + $0x28] sm:$0xff] %vm3813_vm15, %v3810_v41  ;;  %3912 = vrot.lane.b32.xlu1 %v3892_v19, %s7335_s7 }
 0x688   : > { %3863 = vrot.lane.b32.xlu0 %v3843_v21, %s7340_s28  ;;  %v3826_v56 = vld [vmem:[#allocation4 + $0x20] sm:$0xf]  ;;  %v3990_v15 = vld [vmem:[#allocation4 + $0x24] sm:$0xf] }
 0x689   : > { %3835 = vst.msk [vmem:[#allocation11 + $0x20] sm:$0xf] %vm3830_vm1, %v3826_v56  ;;  %v3941_v42 = vld [vmem:[#allocation4 + $0x23] sm:$0xf] }
 0x68b   : > { %4010 = vrot.lane.b32.xlu1 %v3990_v15, %s7336_s8 }
 0x68c   : > { %3961 = vrot.lane.b32.xlu0 %v3941_v42, %s7346_s27 }
 0x68e   : > { %v3893_v47 = vld [vmem:[#allocation4 + $0x2a] sm:$0xf] }
 0x68f   : > { %v3844_v62 = vld [vmem:[#allocation4 + $0x29] sm:$0xf]  ;;  %3914 = vrot.lane.b32.xlu1 %v3893_v47, %s7335_s7 }
 0x690   : > { %3865 = vrot.lane.b32.xlu0 %v3844_v62, %s7340_s28  ;;  %v3827_v63 = vld [vmem:[#allocation4 + $0x28] sm:$0xf]  ;;  %v3991_v55 = vld [vmem:[#allocation4 + $0x2c] sm:$0xf] }
 0x691   : > { %3836 = vst.msk [vmem:[#allocation11 + $0x28] sm:$0xf] %vm3830_vm1, %v3827_v63  ;;  %v3942_v32 = vld [vmem:[#allocation4 + $0x2b] sm:$0xf] }
 0x693   : > { %4012 = vrot.lane.b32.xlu1 %v3991_v55, %s7336_s8  ;;  %v3775_v40 = vpop.permute.xlu0 %3774 }
 0x694   : > { %3963 = vrot.lane.b32.xlu0 %v3942_v32, %s7346_s27  ;;  %v3773_v10 = vpop.permute.xlu1 %3772 }
 0x695   : > { %v3790_v24 = vadd.f32 %v3773_v10, %v3757_v54 }
 0x697   : > { %v3803_v51 = vadd.f32 %v8995_v29, %v3790_v24  ;;  %v4437_v24 = vld [vmem:[%s10298_s1 + $0x200] sm:$0xff] }
 0x698   : > { %v3676_v33 = vpop.permute.xlu1 %3675 }
 0x699   : > { %v3811_v58 = vmax.f32 %v3803_v51, 0.0  ;;  %v3692_v30 = vadd.f32 %v8920_v23, %v3676_v33  ;;  %v4438_v51 = vld [vmem:[%s10298_s1 + $0x210] sm:$0xff]  ;;  %v7347_v33 = vmov 0.0|0.0  }
 0x69a   : > { %7242 = vmatprep.subr.bf16.mxu1 %v7347_v33 }
 0x69b   : > { %3820 = vst.msk [vmem:[#allocation4 + $0x30] sm:$0xff] %vm3813_vm15, %v3811_v58  ;;  %v3725_v61 = vadd.f32 %v3709_v34, %v3692_v30  ;;  %v7243_v58 = vpack.c.bf16 %v4438_v51, %v4437_v24  ;;  %v4439_v30 = vld [vmem:[%s10298_s1 + $0x220] sm:$0xff]  ;;  %v4440_v34 = vld [vmem:[%s10298_s1 + $0x230] sm:$0xff] }
 0x69c   : > { %v3742_v35 = vpop.permute.xlu1 %3741 }
 0x69d   : > { %v3758_v0 = vadd.f32 %v3742_v35, %v3725_v61  ;;  %7244 = vmatpush1.bf16.msra.mxu1 %v7243_v58  ;;  %v4441_v61 = vld [vmem:[%s10298_s1 + $0x240] sm:$0xff]  ;;  %v7246_v35 = vpack.c.bf16 %v4440_v34, %v4439_v30 }
 0x69e   : > { %7245 = vmatprep.subr.bf16.mxu1 %v7347_v33 }
 0x69f   : > { %v3791_v6 = vadd.f32 %v3775_v40, %v3758_v0  ;;  %v4442_v0 = vld [vmem:[%s10298_s1 + $0x250] sm:$0xff] }
 0x6a1   : > { %v3804_v60 = vadd.f32 %v8995_v29, %v3791_v6  ;;  %7247 = vmatpush1.bf16.msra.mxu1 %v7246_v35  ;;  %v7249_v6 = vpack.c.bf16 %v4442_v0, %v4441_v61 }
 0x6a2   : > { %v3894_v36 = vld [vmem:[#allocation4 + $0x32] sm:$0xf]  ;;  %7248 = vmatprep.subr.bf16.mxu1 %v7347_v33 }
 0x6a3   : > { %v3845_v2 = vld [vmem:[#allocation4 + $0x31] sm:$0xf]  ;;  %v3812_v17 = vmax.f32 %v3804_v60, 0.0  ;;  %3916 = vrot.lane.b32.xlu1 %v3894_v36, %s7335_s7  ;;  %v4443_v36 = vld [vmem:[%s10298_s1 + $0x260] sm:$0xff] }
 0x6a4   : > { %3867 = vrot.lane.b32.xlu0 %v3845_v2, %s7340_s28  ;;  %v3828_v3 = vld [vmem:[#allocation4 + $0x30] sm:$0xf]  ;;  %v3992_v23 = vld [vmem:[#allocation4 + $0x34] sm:$0xf] }
 0x6a5   : > { %3837 = vst.msk [vmem:[#allocation11 + $0x30] sm:$0xf] %vm3830_vm1, %v3828_v3  ;;  %v3943_v53 = vld [vmem:[#allocation4 + $0x33] sm:$0xf]  ;;  %7250 = vmatpush1.bf16.msra.mxu1 %v7249_v6  ;;  %v4445_v3 = vld [vmem:[%s10298_s1 + $0x280] sm:$0xff] }
 0x6a6   : > { %3821 = vst.msk [vmem:[#allocation4 + $0x38] sm:$0xff] %vm3813_vm15, %v3812_v17  ;;  %v4444_v2 = vld [vmem:[%s10298_s1 + $0x270] sm:$0xff]  ;;  %7251 = vmatprep.subr.bf16.mxu1 %v7347_v33 }
 0x6a7   : > { %4014 = vrot.lane.b32.xlu1 %v3992_v23, %s7336_s8  ;;  %v7252_v17 = vpack.c.bf16 %v4444_v2, %v4443_v36  ;;  %v4446_v23 = vld [vmem:[%s10298_s1 + $0x290] sm:$0xff] }
 0x6a8   : > { %3965 = vrot.lane.b32.xlu0 %v3943_v53, %s7346_s27  ;;  %v7255_v53 = vpack.c.bf16 %v4446_v23, %v4445_v3 }
 0x6a9   : > { %7253 = vmatpush1.bf16.msra.mxu1 %v7252_v17 }
 0x6aa   : > { %7254 = vmatprep.subr.bf16.mxu1 %v7347_v33 }
 0x6ad   : > { %v3895_v25 = vld [vmem:[#allocation4 + $0x3a] sm:$0xf]  ;;  %7256 = vmatpush1.bf16.msra.mxu1 %v7255_v53 }
 0x6ae   : > { %v3846_v29 = vld [vmem:[#allocation4 + $0x39] sm:$0xf]  ;;  %3918 = vrot.lane.b32.xlu1 %v3895_v25, %s7335_s7  ;;  %7257 = vmatprep.subr.bf16.mxu1 %v7347_v33 }
 0x6af   : > { %3869 = vrot.lane.b32.xlu0 %v3846_v29, %s7340_s28  ;;  %v3829_v22 = vld [vmem:[#allocation4 + $0x38] sm:$0xf]  ;;  %v3993_v7 = vld [vmem:[#allocation4 + $0x3c] sm:$0xf]  ;;  %v4447_v29 = vld [vmem:[%s10298_s1 + $0x2a0] sm:$0xff] }
 0x6b0   : > { %3838 = vst.msk [vmem:[#allocation11 + $0x38] sm:$0xf] %vm3830_vm1, %v3829_v22  ;;  %v3944_v4 = vld [vmem:[#allocation4 + $0x3b] sm:$0xf]  ;;  %v4448_v22 = vld [vmem:[%s10298_s1 + $0x2b0] sm:$0xff]  ;;  %vm4341_vm1 = vcmask 522499  }
 0x6b2   : > { %4016 = vrot.lane.b32.xlu1 %v3993_v7, %s7336_s8 }
 0x6b3   : > { %3967 = vrot.lane.b32.xlu0 %v3944_v4, %s7346_s27  ;;  %v7258_v4 = vpack.c.bf16 %v4448_v22, %v4447_v29 }
 0x6b5   : > { %7259 = vmatpush1.bf16.msra.mxu1 %v7258_v4 }
 0x6b6   : > { %7260 = vmatprep.subr.bf16.mxu1 %v7347_v33 }
 0x6c0   : > { %v3905_v38 = vpop.permute.xlu1 %3904 }
 0x6c1   : > { %v3856_v31 = vpop.permute.xlu0 %3855 }
 0x6c2   : > { %3880 = vst.msk [vmem:[#allocation11] sm:$0xf] %vm3879_vm3, %v3856_v31  ;;  %v4450_v31 = vld [vmem:[%s10298_s1 + $0x2d0] sm:$0xff] }
 0x6c3   : > { %3929 = vst.msk [vmem:[#allocation11] sm:$0xf] %vm3928_vm5, %v3905_v38  ;;  %v4449_v38 = vld [vmem:[%s10298_s1 + $0x2c0] sm:$0xff] }
 0x6c4   : > { %v4003_v39 = vpop.permute.xlu1 %4002 }
 0x6c5   : > { %v3954_v37 = vpop.permute.xlu0 %3953 }
 0x6c6   : > { %3978 = vst.msk [vmem:[#allocation11] sm:$0xf] %vm3977_vm6, %v3954_v37  ;;  %v4451_v37 = vld [vmem:[%s10298_s1 + $0x2e0] sm:$0xff] }
 0x6c7   : > { %4027 = vst.msk [vmem:[#allocation11] sm:$0xf] %vm4026_vm7, %v4003_v39  ;;  %v7261_v39 = vpack.c.bf16 %v4450_v31, %v4449_v38 }
 0x6c8   : > { %v3956_v13 = vpop.permute.xlu1 %3955 }
 0x6c9   : > { %v3858_v8 = vpop.permute.xlu0 %3857  ;;  %7262 = vmatpush1.bf16.msra.mxu1 %v7261_v39 }
 0x6ca   : > { %3881 = vst.msk [vmem:[#allocation11 + $0x8] sm:$0xf] %vm3879_vm3, %v3858_v8  ;;  %7263 = vmatprep.subr.bf16.mxu1 %v7347_v33 }
 0x6cc   : > { %v4005_v14 = vpop.permute.xlu1 %4004 }
 0x6cd   : > { %v3907_v49 = vpop.permute.xlu0 %3906 }
 0x6ce   : > { %3930 = vst.msk [vmem:[#allocation11 + $0x8] sm:$0xf] %vm3928_vm5, %v3907_v49  ;;  %v4035_v18 = vld [vmem:[#allocation11] sm:$0xff] }
 0x6cf   : > { %3979 = vst.msk [vmem:[#allocation11 + $0x8] sm:$0xf] %vm3977_vm6, %v3956_v13  ;;  %6690 = vmatmul.mubr.msk.f32.vlgmr.msra.gmra.mrb[36].mxu0 %vm4063_vm2, %v4035_v18  ;;  %v4452_v13 = vld [vmem:[%s10298_s1 + $0x2f0] sm:$0xff]  ;;  %v4453_v49 = vld [vmem:[%s10298_s1 + $0x300] sm:$0xff] }
 0x6d0   : > { %4028 = vst.msk [vmem:[#allocation11 + $0x8] sm:$0xf] %vm4026_vm7, %v4005_v14  ;;  %4157 = vmatprep.mubr.f32.mxu0 %v7345_v5  ;;  %v7264_v8 = vpack.c.bf16 %v4452_v13, %v4451_v37  ;;  %v4454_v18 = vld [vmem:[%s10298_s1 + $0x310] sm:$0xff] }
 0x6d1   : > { %v7267_v14 = vpack.c.bf16 %v4454_v18, %v4453_v49 }
 0x6d2   : > { %7265 = vmatpush1.bf16.msra.mxu1 %v7264_v8 }
 0x6d3   : > { %7266 = vmatprep.subr.bf16.mxu1 %v7347_v33 }
 0x6d6   : > { %7268 = vmatpush1.bf16.msra.mxu1 %v7267_v14 }
 0x6d7   : > { %v4036_v9 = vld [vmem:[#allocation11 + $0x8] sm:$0xff]  ;;  %7269 = vmatprep.subr.bf16.mxu1 %v7347_v33 }
 0x6d8   : > { %6691 = vmatmul.mubr.msk.f32.gmra.mrb[38].mxu0 %vm4063_vm2, %v4036_v9  ;;  %v4455_v9 = vld [vmem:[%s10298_s1 + $0x320] sm:$0xff] }
 0x6d9   : > { %4162 = vmatprep.mubr.f32.mxu0 %v7345_v5 }
 0x6e0   : > { %v3958_v50 = vpop.permute.xlu1 %3957 }
 0x6e1   : > { %v3860_v26 = vpop.permute.xlu0 %3859 }
 0x6e2   : > { %3882 = vst.msk [vmem:[#allocation11 + $0x10] sm:$0xf] %vm3879_vm3, %v3860_v26 }
 0x6e4   : > { %v4007_v16 = vpop.permute.xlu1 %4006 }
 0x6e5   : > { %v3909_v43 = vpop.permute.xlu0 %3908 }
 0x6e6   : > { %3931 = vst.msk [vmem:[#allocation11 + $0x10] sm:$0xf] %vm3928_vm5, %v3909_v43 }
 0x6e7   : > { %3980 = vst.msk [vmem:[#allocation11 + $0x10] sm:$0xf] %vm3977_vm6, %v3958_v50  ;;  %v4456_v50 = vld [vmem:[%s10298_s1 + $0x330] sm:$0xff] }
 0x6e8   : > { %4029 = vst.msk [vmem:[#allocation11 + $0x10] sm:$0xf] %vm4026_vm7, %v4007_v16  ;;  %v3911_v57 = vpop.permute.xlu1 %3910  ;;  %v7270_v26 = vpack.c.bf16 %v4456_v50, %v4455_v9 }
 0x6e9   : > { %v3862_v44 = vpop.permute.xlu0 %3861 }
 0x6ea   : > { %3883 = vst.msk [vmem:[#allocation11 + $0x18] sm:$0xf] %vm3879_vm3, %v3862_v44  ;;  %7271 = vmatpush1.bf16.msra.mxu1 %v7270_v26  ;;  %v4416_v44 = vld [vmem:[#allocation12 + $0x18] sm:$0xff] }
 0x6eb   : > { %3932 = vst.msk [vmem:[#allocation11 + $0x18] sm:$0xf] %vm3928_vm5, %v3911_v57  ;;  %v4414_v57 = vld [vmem:[#allocation12 + $0x8] sm:$0xff] }
 0x6ec   : > { %v4009_v28 = vpop.permute.xlu1 %4008  ;;  %6699 = vmatprep.mubr.msk.f32.mxu1 %vm207_vm0, %v4414_v57 }
 0x6ed   : > { %v3960_v1 = vpop.permute.xlu0 %3959  ;;  %4558 = vmatmul.mubr.f32.vlgmr.msra.gmra.mrb[44].mxu1 %v7345_v5 }
 0x6ee   : > { %3981 = vst.msk [vmem:[#allocation11 + $0x18] sm:$0xf] %vm3977_vm6, %v3960_v1  ;;  %6700 = vmatprep.mubr.msk.f32.mxu1 %vm207_vm0, %v4416_v44  ;;  %v4418_v1 = vld [vmem:[#allocation12 + $0x28] sm:$0xff] }
 0x6ef   : > { %4030 = vst.msk [vmem:[#allocation11 + $0x18] sm:$0xf] %vm4026_vm7, %v4009_v28  ;;  %v4037_v59 = vld [vmem:[#allocation11 + $0x10] sm:$0xff] }
 0x6f0   : > { %6692 = vmatmul.mubr.msk.f32.gmra.mrb[40].mxu0 %vm4063_vm2, %v4037_v59 }
 0x6f1   : > { %4167 = vmatprep.mubr.f32.mxu0 %v7345_v5  ;;  %4563 = vmatmul.mubr.f32.gmra.mrb[46].mxu1 %v7345_v5 }
 0x6f2   : > { %6701 = vmatprep.mubr.msk.f32.mxu1 %vm207_vm0, %v4418_v1 }
 0x6f5   : > { %4568 = vmatmul.mubr.f32.gmra.mrb[48].mxu1 %v7345_v5 }
 0x6f6   : > { %v4038_v20 = vld [vmem:[#allocation11 + $0x18] sm:$0xff] }
 0x6f7   : > { %6693 = vmatmul.mubr.msk.f32.gmra.mrb[42].mxu0 %vm4063_vm2, %v4038_v20  ;;  %v4420_v20 = vld [vmem:[#allocation12 + $0x38] sm:$0xff] }
 0x6f8   : > { %4172 = vmatprep.mubr.f32.mxu0 %v7345_v5  ;;  %6702 = vmatprep.mubr.msk.f32.mxu1 %vm207_vm0, %v4420_v20 }
 0x6f9   : > { %v3913_v46 = vpop.permute.xlu1 %3912  ;;  %4573 = vmatmul.mubr.f32.gmra.mrb[50].mxu1 %v7345_v5 }
 0x6fa   : > { %v3864_v52 = vpop.permute.xlu0 %3863 }
 0x6fb   : > { %3884 = vst.msk [vmem:[#allocation11 + $0x20] sm:$0xf] %vm3879_vm3, %v3864_v52 }
 0x6fc   : > { %3933 = vst.msk [vmem:[#allocation11 + $0x20] sm:$0xf] %vm3928_vm5, %v3913_v46 }
 0x6fd   : > { %v4011_v27 = vpop.permute.xlu1 %4010 }
 0x6fe   : > { %v3962_v41 = vpop.permute.xlu0 %3961 }
 0x6ff   : > { %3982 = vst.msk [vmem:[#allocation11 + $0x20] sm:$0xf] %vm3977_vm6, %v3962_v41 }
 0x700   : > { %4031 = vst.msk [vmem:[#allocation11 + $0x20] sm:$0xf] %vm4026_vm7, %v4011_v27 }
 0x701   : > { %v3915_v19 = vpop.permute.xlu1 %3914 }
 0x702   : > { %v3866_v21 = vpop.permute.xlu0 %3865 }
 0x703   : > { %3885 = vst.msk [vmem:[#allocation11 + $0x28] sm:$0xf] %vm3879_vm3, %v3866_v21 }
 0x704   : > { %3934 = vst.msk [vmem:[#allocation11 + $0x28] sm:$0xf] %vm3928_vm5, %v3915_v19 }
 0x705   : > { %v4013_v56 = vpop.permute.xlu1 %4012 }
 0x706   : > { %v3964_v11 = vpop.permute.xlu0 %3963 }
 0x707   : > { %3983 = vst.msk [vmem:[#allocation11 + $0x28] sm:$0xf] %vm3977_vm6, %v3964_v11  ;;  %v4039_v15 = vld [vmem:[#allocation11 + $0x20] sm:$0xff] }
 0x708   : > { %4032 = vst.msk [vmem:[#allocation11 + $0x28] sm:$0xf] %vm4026_vm7, %v4013_v56  ;;  %6694 = vmatmul.mubr.msk.f32.gmra.mrb[44].mxu0 %vm4063_vm2, %v4039_v15 }
 0x709   : > { %4178 = vmatprep.mubr.f32.mxu0 %v7345_v5 }
 0x70f   : > { %v4040_v42 = vld [vmem:[#allocation11 + $0x28] sm:$0xff] }
 0x710   : > { %6695 = vmatmul.mubr.msk.f32.gmra.mrb[46].mxu0 %vm4063_vm2, %v4040_v42 }
 0x711   : > { %4184 = vmatprep.mubr.f32.mxu0 %v7345_v5 }
 0x715   : > { %v3917_v12 = vpop.permute.xlu1 %3916 }
 0x716   : > { %v3868_v47 = vpop.permute.xlu0 %3867 }
 0x717   : > { %3886 = vst.msk [vmem:[#allocation11 + $0x30] sm:$0xf] %vm3879_vm3, %v3868_v47 }
 0x718   : > { %3935 = vst.msk [vmem:[#allocation11 + $0x30] sm:$0xf] %vm3928_vm5, %v3917_v12 }
 0x719   : > { %v4015_v62 = vpop.permute.xlu1 %4014 }
 0x71a   : > { %v3966_v48 = vpop.permute.xlu0 %3965 }
 0x71b   : > { %3984 = vst.msk [vmem:[#allocation11 + $0x30] sm:$0xf] %vm3977_vm6, %v3966_v48  ;;  %v9332_v48 = vld [vmem:[%s10299_s2 + $0x3] ss:$0 sm:$0xff] }
 0x71c   : > { %4033 = vst.msk [vmem:[#allocation11 + $0x30] sm:$0xf] %vm4026_vm7, %v4015_v62 }
 0x720   : > { %v3919_v63 = vpop.permute.xlu1 %3918 }
 0x721   : > { %v3870_v45 = vpop.permute.xlu0 %3869 }
 0x722   : > { %3887 = vst.msk [vmem:[#allocation11 + $0x38] sm:$0xf] %vm3879_vm3, %v3870_v45  ;;  %vm4370_vm3 = vcmask 783874  }
 0x723   : > { %3936 = vst.msk [vmem:[#allocation11 + $0x38] sm:$0xf] %vm3928_vm5, %v3919_v63  ;;  %v4041_v54 = vld [vmem:[#allocation11 + $0x30] sm:$0xff]  ;;  %vm4399_vm5 = vcmask 1045249  }
 0x724   : > { %v4017_v55 = vpop.permute.xlu1 %4016  ;;  %6696 = vmatmul.mubr.msk.f32.gmra.mrb[48].mxu0 %vm4063_vm2, %v4041_v54 }
 0x725   : > { %v3968_v32 = vpop.permute.xlu0 %3967  ;;  %4190 = vmatprep.mubr.f32.mxu0 %v7345_v5 }
 0x726   : > { %3985 = vst.msk [vmem:[#allocation11 + $0x38] sm:$0xf] %vm3977_vm6, %v3968_v32  ;;  %vm4973_vm6 = vcmask 523648  }
 0x727   : > { %4034 = vst.msk [vmem:[#allocation11 + $0x38] sm:$0xf] %vm4026_vm7, %v4017_v55  ;;  %vm5022_vm7 = vcmask 654848  }
 0x72e   : > { %v4042_v10 = vld [vmem:[#allocation11 + $0x38] sm:$0xff] }
 0x72f   : > { %6697 = vmatmul.mubr.msk.f32.gmra.mrb[50].mxu0 %vm4063_vm2, %v4042_v10 }
 0x7a2   : > { %v9250_v40 = vpop.f32.mrb[36].mxu0 }
 0x7a3   : > { %v4156_v60 = vpop.f32.mrb[37].mxu0 }
 0x7ab   : > { %v9264_v25 = vpop.f32.mrb[38].mxu0 }
 0x7ac   : > { %4200 = vrot.lane.b32.xlu0 %v9264_v25, %s7343_s14  ;;  %v4161_v7 = vpop.f32.mrb[39].mxu0 }
 0x7c3   : > { %v9298_v16 = vpop.f32.mrb[40].mxu0 }
 0x7c4   : > { %4202 = vrot.lane.b32.xlu0 %v9298_v16, %s7343_s14  ;;  %4217 = vrot.lane.b32.xlu1 %v9298_v16, %s7336_s8  ;;  %v4166_v43 = vpop.f32.mrb[41].mxu0 }
 0x7ca   : > { %v9307_v28 = vpop.f32.mrb[42].mxu0 }
 0x7cb   : > { %4219 = vrot.lane.b32.xlu0 %v9307_v28, %s7336_s8  ;;  %4234 = vrot.lane.b32.xlu1 %v9307_v28, %s7335_s7  ;;  %v4171_v59 = vpop.f32.mrb[43].mxu0 }
 0x7cf   : > { %4204 = vrot.lane.b32.xlu1 %v9307_v28, %s7343_s14 }
 0x7db   : > { %v4174_v46 = vpop.f32.mrb[44].mxu0 }
 0x7dc   : > { %4221 = vrot.lane.b32.xlu1 %v4174_v46, %s7336_s8  ;;  %4236 = vrot.lane.b32.xlu0 %v4174_v46, %s7335_s7  ;;  %v4176_v52 = vpop.f32.mrb[45].mxu0 }
 0x7e0   : > { %4206 = vrot.lane.b32.xlu0 %v4174_v46, %s7343_s14 }
 0x7e3   : > { %v4180_v27 = vpop.f32.mrb[46].mxu0 }
 0x7e4   : > { %4223 = vrot.lane.b32.xlu0 %v4180_v27, %s7336_s8  ;;  %4238 = vrot.lane.b32.xlu1 %v4180_v27, %s7335_s7  ;;  %v4182_v41 = vpop.f32.mrb[47].mxu0 }
 0x7f7   : > { %v4186_v19 = vpop.f32.mrb[48].mxu0 }
 0x7f8   : > { %4240 = vrot.lane.b32.xlu1 %v4186_v19, %s7335_s7  ;;  %v4188_v21 = vpop.f32.mrb[49].mxu0 }
 0x802   : > { %v4192_v56 = vpop.f32.mrb[50].mxu0 }
 0x803   : > { %v9326_v5 = vpop.f32.mrb[51].mxu0 }
 0x81e   : > { %v4201_v11 = vpop.permute.xlu0 %4200 }
 0x81f   : > { %v4212_v42 = vadd.f32 %v4201_v11, %v9250_v40 }
 0x836   : > { %v4218_v15 = vpop.permute.xlu1 %4217  ;;  %v4203_v55 = vpop.permute.xlu0 %4202 }
 0x837   : > { %v4229_v12 = vadd.f32 %v4218_v15, %v4212_v42  ;;  %v4213_v10 = vadd.f32 %v4203_v55, %v9264_v25 }
 0x83d   : > { %v4235_v47 = vpop.permute.xlu1 %4234  ;;  %v4220_v32 = vpop.permute.xlu0 %4219 }
 0x83e   : > { %v4246_v62 = vadd.f32 %v4235_v47, %v4229_v12  ;;  %v4230_v24 = vadd.f32 %v4220_v32, %v4213_v10 }
 0x840   : > { %v4250_v63 = vadd.f32 %v4246_v62, %v4176_v52 }
 0x841   : > { %v4205_v58 = vpop.permute.xlu1 %4204 }
 0x842   : > { %v4259_v45 = vadd.f32 %v9332_v48, %v4250_v63  ;;  %v4214_v3 = vadd.f32 %v4205_v58, %v9298_v16 }
 0x844   : > { %v4263_v54 = vmax.f32 %v4259_v45, 0.0 }
 0x846   : > { %4267 = vst.msk [vmem:[#allocation5] sm:$0xff] %vm207_vm0, %v4263_v54 }
 0x84d   : > { %v4346_v51 = vld [vmem:[#allocation5] sm:$0xf] }
 0x84e   : > { %v4317_v33 = vld [vmem:[#allocation5] sm:$0xf]  ;;  %v4237_v30 = vpop.permute.xlu0 %4236  ;;  %v4354_v34 = vrot.slane %v4346_v51, 6  ;;  %v4222_v2 = vpop.permute.xlu1 %4221 }
 0x84f   : > { %v4325_v61 = vrot.slane %v4317_v33, 5  ;;  %v4404_v35 = vld [vmem:[#allocation5] sm:$0xf]  ;;  %v4247_v0 = vadd.f32 %v4237_v30, %v4230_v24  ;;  %v4231_v53 = vadd.f32 %v4222_v2, %v4214_v3 }
 0x850   : > { %v4375_v40 = vld [vmem:[#allocation5] sm:$0xf]  ;;  %4409 = vst.msk [vmem:[#allocation12 + $0x48] sm:$0xf] %vm4408_vm9, %v4404_v35  ;;  %4358 = vrot.lane.b32.xlu1 %v4354_v34, %s7336_s8 }
 0x851   : > { %v4295_v6 = vld [vmem:[#allocation5] sm:$0xf]  ;;  %4329 = vrot.lane.b32.xlu0 %v4325_v61, %s7335_s7  ;;  %v4251_v36 = vadd.f32 %v4247_v0, %v4182_v41  ;;  %v4383_v17 = vrot.slane %v4375_v40, 7 }
 0x852   : > { %v4303_v60 = vrot.slane %v4295_v6, 4  ;;  %v4207_v13 = vpop.permute.xlu0 %4206 }
 0x853   : > { %v4260_v23 = vadd.f32 %v9332_v48, %v4251_v36  ;;  %v4215_v43 = vadd.f32 %v4207_v13, %v9307_v28  ;;  %v4434_v13 = vld [vmem:[#allocation12 + $0xa8] sm:$0xff] }
 0x854   : > { %4313 = vst.msk [vmem:[#allocation12 + $0x40] sm:$0xf0] %vm4312_vm11, %v4303_v60 }
 0x855   : > { %4387 = vrot.lane.b32.xlu0 %v4383_v17, %s7343_s14  ;;  %v4264_v25 = vmax.f32 %v4260_v23, 0.0 }
 0x856   : > { %v4239_v29 = vpop.permute.xlu1 %4238  ;;  %v4224_v16 = vpop.permute.xlu0 %4223 }
 0x857   : > { %v4422_v22 = vld [vmem:[#allocation12 + $0x48] sm:$0xff]  ;;  %4268 = vst.msk [vmem:[#allocation5 + $0x8] sm:$0xff] %vm207_vm0, %v4264_v25  ;;  %v4248_v7 = vadd.f32 %v4239_v29, %v4231_v53  ;;  %v4232_v46 = vadd.f32 %v4224_v16, %v4215_v43  ;;  %v5067_v16 = vld [vmem:[%s10298_s1 + $0x380] sm:$0xff]  ;;  %v5068_v43 = vld [vmem:[%s10298_s1 + $0x390] sm:$0xff] }
 0x858   : > { %6703 = vmatprep.mubr.msk.f32.mxu1 %vm207_vm0, %v4422_v22 }
 0x859   : > { %v4252_v4 = vadd.f32 %v4248_v7, %v4188_v21 }
 0x85b   : > { %v4261_v38 = vadd.f32 %v9332_v48, %v4252_v4 }
 0x85d   : > { %v4265_v31 = vmax.f32 %v4261_v38, 0.0  ;;  %v4430_v38 = vld [vmem:[#allocation12 + $0x88] sm:$0xff] }
 0x85e   : > { %v4347_v39 = vld [vmem:[#allocation5 + $0x8] sm:$0xf] }
 0x85f   : > { %v4318_v37 = vld [vmem:[#allocation5 + $0x8] sm:$0xf]  ;;  %4269 = vst.msk [vmem:[#allocation5 + $0x10] sm:$0xff] %vm207_vm0, %v4265_v31  ;;  %v4355_v8 = vrot.slane %v4347_v39, 6  ;;  %v4432_v39 = vld [vmem:[#allocation12 + $0x98] sm:$0xff] }
 0x860   : > { %v4326_v49 = vrot.slane %v4318_v37, 5  ;;  %v4405_v18 = vld [vmem:[#allocation5 + $0x8] sm:$0xf]  ;;  %v7326_v37 = vld [vmem:[#allocation12] sm:$0xff] }
 0x861   : > { %v4376_v14 = vld [vmem:[#allocation5 + $0x8] sm:$0xf]  ;;  %4410 = vst.msk [vmem:[#allocation12 + $0x58] sm:$0xf] %vm4408_vm9, %v4405_v18  ;;  %4360 = vrot.lane.b32.xlu0 %v4355_v8, %s7336_s8  ;;  %v4436_v8 = vld [vmem:[#allocation12 + $0xb8] sm:$0xff]  ;;  %v5064_v18 = vld [vmem:[%s10298_s1 + $0x350] sm:$0xff] }
 0x862   : > { %v4296_v9 = vld [vmem:[#allocation5 + $0x8] sm:$0xf]  ;;  %4331 = vrot.lane.b32.xlu1 %v4326_v49, %s7335_s7  ;;  %v4384_v26 = vrot.slane %v4376_v14, 7  ;;  %v5063_v49 = vld [vmem:[%s10298_s1 + $0x340] sm:$0xff] }
 0x863   : > { %v4304_v50 = vrot.slane %v4296_v9, 4  ;;  %v5065_v14 = vld [vmem:[%s10298_s1 + $0x360] sm:$0xff]  ;;  %v7272_v9 = vpack.c.bf16 %v5064_v18, %v5063_v49 }
 0x865   : > { %4314 = vst.msk [vmem:[#allocation12 + $0x50] sm:$0xf0] %vm4312_vm11, %v4304_v50  ;;  %v5066_v50 = vld [vmem:[%s10298_s1 + $0x370] sm:$0xff]  ;;  %7273 = vmatprep.subr.bf16.mxu0 %v7272_v9 }
 0x866   : > { %4389 = vrot.lane.b32.xlu1 %v4384_v26, %s7343_s14  ;;  %v4319_v57 = vld [vmem:[#allocation5 + $0x10] sm:$0xf]  ;;  %v7276_v26 = vpack.c.bf16 %v5066_v50, %v5065_v14  ;;  %7275 = vmatpush3.bf16.msra.mxu0 %v7272_v9 }
 0x867   : > { %v4348_v44 = vld [vmem:[#allocation5 + $0x10] sm:$0xf]  ;;  %v4327_v1 = vrot.slane %v4319_v57, 5  ;;  %v5031_v57 = vld [vmem:[#allocation13] sm:$0xff] }
 0x868   : > { %v4356_v59 = vrot.slane %v4348_v44, 6  ;;  %v4297_v20 = vld [vmem:[#allocation5 + $0x10] sm:$0xf]  ;;  %v4424_v40 = vld [vmem:[#allocation12 + $0x58] sm:$0xff]  ;;  %7106 = vmatprep.mubr.msk.f32.mxu0 %vm4063_vm2, %v5031_v57  ;;  %7277 = vmatprep.subr.bf16.mxu0 %v7276_v26  ;;  %v7280_v44 = vpack.c.bf16 %v5068_v43, %v5067_v16 }
 0x869   : > { %v4377_v52 = vld [vmem:[#allocation5 + $0x10] sm:$0xf]  ;;  %v4305_v27 = vrot.slane %v4297_v20, 4  ;;  %4333 = vrot.lane.b32.xlu0 %v4327_v1, %s7335_s7  ;;  %v5069_v1 = vld [vmem:[%s10298_s1 + $0x3a0] sm:$0xff] }
 0x86a   : > { %v4406_v41 = vld [vmem:[#allocation5 + $0x10] sm:$0xf]  ;;  %4362 = vrot.lane.b32.xlu1 %v4356_v59, %s7336_s8  ;;  %v4241_v19 = vpop.permute.xlu1 %4240  ;;  %v4385_v28 = vrot.slane %v4377_v52, 7  ;;  %7279 = vmatpush3.bf16.msra.mxu0 %v7276_v26 }
 0x86b   : > { %4411 = vst.msk [vmem:[#allocation12 + $0x68] sm:$0xf] %vm4408_vm9, %v4406_v41  ;;  %v4249_v21 = vadd.f32 %v4241_v19, %v4232_v46  ;;  %v5070_v59 = vld [vmem:[%s10298_s1 + $0x3b0] sm:$0xff]  ;;  %7281 = vmatprep.subr.bf16.mxu0 %v7280_v44  ;;  %v5071_v46 = vld [vmem:[%s10298_s1 + $0x3c0] sm:$0xff]  ;;  %v5032_v41 = vld [vmem:[#allocation13 + $0x8] sm:$0xff] }
 0x86c   : > { %4315 = vst.msk [vmem:[#allocation12 + $0x60] sm:$0xf0] %vm4312_vm11, %v4305_v27  ;;  %v7284_v20 = vpack.c.bf16 %v5070_v59, %v5069_v1  ;;  %v5072_v52 = vld [vmem:[%s10298_s1 + $0x3d0] sm:$0xff] }
 0x86d   : > { %v4253_v56 = vadd.f32 %v4249_v21, %v9326_v5  ;;  %4391 = vrot.lane.b32.xlu0 %v4385_v28, %s7343_s14  ;;  %v7288_v27 = vpack.c.bf16 %v5072_v52, %v5071_v46  ;;  %v5033_v19 = vld [vmem:[#allocation13 + $0x10] sm:$0xff]  ;;  %v5034_v21 = vld [vmem:[#allocation13 + $0x18] sm:$0xff]  ;;  %v5035_v28 = vld [vmem:[#allocation13 + $0x20] sm:$0xff] }
 0x86e   : > { %7283 = vmatpush3.bf16.msra.mxu0 %v7280_v44 }
 0x86f   : > { %v4262_v11 = vadd.f32 %v9332_v48, %v4253_v56  ;;  %v9367_v48 = vpop.f32.mrb[44].mxu1  ;;  %7285 = vmatprep.subr.bf16.mxu0 %v7284_v20  ;;  %v5036_v56 = vld [vmem:[#allocation13 + $0x28] sm:$0xff] }
 0x870   : > { %v4561_v32 = vpop.f32.mrb[45].mxu1 }
 0x871   : > { %v4266_v15 = vmax.f32 %v4262_v11, 0.0  ;;  %v9369_v10 = vpop.f32.mrb[46].mxu1  ;;  %v5037_v11 = vld [vmem:[#allocation13 + $0x30] sm:$0xff] }
 0x872   : > { %v4566_v24 = vpop.f32.mrb[47].mxu1  ;;  %v4426_v53 = vld [vmem:[#allocation12 + $0x68] sm:$0xff]  ;;  %7287 = vmatpush3.bf16.msra.mxu0 %v7284_v20 }
 0x873   : > { %4270 = vst.msk [vmem:[#allocation5 + $0x18] sm:$0xff] %vm207_vm0, %v4266_v15  ;;  %v9373_v51 = vpop.f32.mrb[48].mxu1  ;;  %7289 = vmatprep.subr.bf16.mxu0 %v7288_v27  ;;  %v5038_v15 = vld [vmem:[#allocation13 + $0x38] sm:$0xff] }
 0x874   : > { %v4571_v33 = vpop.f32.mrb[49].mxu1 }
 0x875   : > { %v9379_v58 = vpop.f32.mrb[50].mxu1 }
 0x876   : > { %v4576_v30 = vpop.f32.mrb[51].mxu1  ;;  %7291 = vmatpush3.bf16.msra.mxu0 %v7288_v27 }
 0x879   : > { %7107 = vmatmul.mubr.msk.f32.vlgmr.msra.gmra.mrb[52].mxu0 %vm4063_vm2, %v5032_v41 }
 0x87a   : > { %v4349_v42 = vld [vmem:[#allocation5 + $0x18] sm:$0xf]  ;;  %7109 = vmatprep.mubr.msk.f32.mxu0 %vm4063_vm2, %v5033_v19 }
 0x87b   : > { %v4320_v12 = vld [vmem:[#allocation5 + $0x18] sm:$0xf]  ;;  %v4357_v47 = vrot.slane %v4349_v42, 6 }
 0x87c   : > { %v4328_v62 = vrot.slane %v4320_v12, 5  ;;  %v4407_v63 = vld [vmem:[#allocation5 + $0x18] sm:$0xf] }
 0x87d   : > { %v4378_v45 = vld [vmem:[#allocation5 + $0x18] sm:$0xf]  ;;  %4412 = vst.msk [vmem:[#allocation12 + $0x78] sm:$0xf] %vm4408_vm9, %v4407_v63  ;;  %4364 = vrot.lane.b32.xlu0 %v4357_v47, %s7336_s8  ;;  %7110 = vmatmul.mubr.msk.f32.gmra.mrb[54].mxu0 %vm4063_vm2, %v5034_v21 }
 0x87e   : > { %v4298_v54 = vld [vmem:[#allocation5 + $0x18] sm:$0xf]  ;;  %4335 = vrot.lane.b32.xlu1 %v4328_v62, %s7335_s7  ;;  %v4386_v55 = vrot.slane %v4378_v45, 7  ;;  %7112 = vmatprep.mubr.msk.f32.mxu0 %vm4063_vm2, %v5035_v28 }
 0x87f   : > { %v4306_v5 = vrot.slane %v4298_v54, 4 }
 0x881   : > { %4316 = vst.msk [vmem:[#allocation12 + $0x70] sm:$0xf0] %vm4312_vm11, %v4306_v5  ;;  %4626 = vrot.lane.b32.xlu0 %v9369_v10, %s7338_s20  ;;  %7113 = vmatmul.mubr.msk.f32.gmra.mrb[56].mxu0 %vm4063_vm2, %v5036_v56 }
 0x882   : > { %4393 = vrot.lane.b32.xlu1 %v4386_v55, %s7343_s14  ;;  %7115 = vmatprep.mubr.msk.f32.mxu0 %vm4063_vm2, %v5037_v11 }
 0x884   : > { %v4428_v29 = vld [vmem:[#allocation12 + $0x78] sm:$0xff] }
 0x885   : > { %4628 = vrot.lane.b32.xlu0 %v9373_v51, %s7338_s20  ;;  %7116 = vmatmul.mubr.msk.f32.gmra.mrb[58].mxu0 %vm4063_vm2, %v5038_v15 }
 0x886   : > { %4659 = vrot.lane.b32.xlu1 %v9373_v51, %s7343_s14 }
 0x889   : > { %4661 = vrot.lane.b32.xlu0 %v9379_v58, %s7343_s14 }
 0x88a   : > { %4692 = vrot.lane.b32.xlu1 %v9379_v58, %s7344_s4 }
 0x88d   : > { %4630 = vrot.lane.b32.xlu0 %v9379_v58, %s7338_s20 }
 0x8c2   : > { %v4359_v34 = vpop.permute.xlu1 %4358 }
 0x8c3   : > { %v4330_v61 = vpop.permute.xlu0 %4329 }
 0x8c4   : > { %4342 = vst.msk [vmem:[#allocation12 + $0x40] sm:$0x78] %vm4341_vm1, %v4330_v61 }
 0x8c5   : > { %4371 = vst.msk [vmem:[#allocation12 + $0x40] sm:$0x3c] %vm4370_vm3, %v4359_v34 }
 0x8c7   : > { %v4388_v35 = vpop.permute.xlu0 %4387 }
 0x8c8   : > { %4400 = vst.msk [vmem:[#allocation12 + $0x40] sm:$0x1e] %vm4399_vm5, %v4388_v35 }
 0x8cf   : > { %v4421_v0 = vld [vmem:[#allocation12 + $0x40] sm:$0xff] }
 0x8d0   : > { %4578 = vmatmul.mubr.f32.gmra.mrb[52].mxu1 %v4421_v0 }
 0x8d1   : > { %6704 = vmatprep.mubr.msk.f32.mxu1 %vm207_vm0, %v4424_v40 }
 0x8d3   : > { %v4361_v60 = vpop.permute.xlu0 %4360 }
 0x8d4   : > { %v4332_v6 = vpop.permute.xlu1 %4331 }
 0x8d5   : > { %4343 = vst.msk [vmem:[#allocation12 + $0x50] sm:$0x78] %vm4341_vm1, %v4332_v6 }
 0x8d6   : > { %4372 = vst.msk [vmem:[#allocation12 + $0x50] sm:$0x3c] %vm4370_vm3, %v4361_v60 }
 0x8d8   : > { %v4390_v36 = vpop.permute.xlu1 %4389 }
 0x8d9   : > { %4401 = vst.msk [vmem:[#allocation12 + $0x50] sm:$0x1e] %vm4399_vm5, %v4390_v36 }
 0x8db   : > { %v4334_v17 = vpop.permute.xlu0 %4333 }
 0x8dc   : > { %v4363_v2 = vpop.permute.xlu1 %4362  ;;  %4344 = vst.msk [vmem:[#allocation12 + $0x60] sm:$0x78] %vm4341_vm1, %v4334_v17 }
 0x8dd   : > { %4373 = vst.msk [vmem:[#allocation12 + $0x60] sm:$0x3c] %vm4370_vm3, %v4363_v2 }
 0x8df   : > { %v4392_v3 = vpop.permute.xlu0 %4391 }
 0x8e0   : > { %v4423_v23 = vld [vmem:[#allocation12 + $0x50] sm:$0xff]  ;;  %4402 = vst.msk [vmem:[#allocation12 + $0x60] sm:$0x1e] %vm4399_vm5, %v4392_v3  ;;  %v9498_v3 = vld [vmem:[%s10299_s2 + $0x4] ss:$0 sm:$0xff] }
 0x8e1   : > { %4583 = vmatmul.mubr.f32.gmra.mrb[54].mxu1 %v4423_v23 }
 0x8e2   : > { %6705 = vmatprep.mubr.msk.f32.mxu1 %vm207_vm0, %v4426_v53 }
 0x8e7   : > { %v4425_v25 = vld [vmem:[#allocation12 + $0x60] sm:$0xff] }
 0x8e8   : > { %4588 = vmatmul.mubr.f32.gmra.mrb[56].mxu1 %v4425_v25 }
 0x8e9   : > { %6706 = vmatprep.mubr.msk.f32.mxu1 %vm207_vm0, %v4428_v29 }
 0x8ef   : > { %v4365_v7 = vpop.permute.xlu0 %4364 }
 0x8f0   : > { %v4336_v22 = vpop.permute.xlu1 %4335 }
 0x8f1   : > { %4345 = vst.msk [vmem:[#allocation12 + $0x70] sm:$0x78] %vm4341_vm1, %v4336_v22 }
 0x8f2   : > { %4374 = vst.msk [vmem:[#allocation12 + $0x70] sm:$0x3c] %vm4370_vm3, %v4365_v7 }
 0x8f3   : > { %v4627_v0 = vpop.permute.xlu0 %4626 }
 0x8f4   : > { %v4394_v4 = vpop.permute.xlu1 %4393  ;;  %v4650_v6 = vadd.f32 %v4627_v0, %v9367_v48 }
 0x8f5   : > { %4403 = vst.msk [vmem:[#allocation12 + $0x70] sm:$0x1e] %vm4399_vm5, %v4394_v4 }
 0x8f7   : > { %v4629_v36 = vpop.permute.xlu0 %4628 }
 0x8f8   : > { %v4660_v40 = vpop.permute.xlu1 %4659  ;;  %v4651_v48 = vadd.f32 %v4629_v36, %v9369_v10 }
 0x8f9   : > { %v4683_v60 = vadd.f32 %v4660_v40, %v4650_v6 }
 0x8fb   : > { %v4662_v25 = vpop.permute.xlu0 %4661 }
 0x8fc   : > { %v4427_v31 = vld [vmem:[#allocation12 + $0x70] sm:$0xff]  ;;  %v4693_v2 = vpop.permute.xlu1 %4692 }
 0x8fd   : > { %4593 = vmatmul.mubr.f32.gmra.mrb[58].mxu1 %v4427_v31  ;;  %v4716_v17 = vadd.f32 %v4693_v2, %v4683_v60  ;;  %v4684_v31 = vadd.f32 %v4662_v25, %v4651_v48 }
 0x8fe   : > { %6707 = vmatprep.mubr.msk.f32.mxu1 %vm207_vm0, %v4430_v38 }
 0x8ff   : > { %v4631_v7 = vpop.permute.xlu0 %4630 }
 0x900   : > { %v4652_v10 = vadd.f32 %v4631_v7, %v9373_v51 }
 0x901   : > { %4598 = vmatmul.mubr.f32.gmra.mrb[60].mxu1 %v7326_v37 }
 0x902   : > { %6708 = vmatprep.mubr.msk.f32.mxu1 %vm207_vm0, %v4432_v39 }
 0x905   : > { %4603 = vmatmul.mubr.f32.gmra.mrb[62].mxu1 %v7326_v37 }
 0x906   : > { %6709 = vmatprep.mubr.msk.f32.mxu1 %vm207_vm0, %v4434_v13 }
 0x909   : > { %4608 = vmatmul.mubr.f32.gmra.mrb[64].mxu1 %v7326_v37 }
 0x90a   : > { %6710 = vmatprep.mubr.msk.f32.mxu1 %vm207_vm0, %v4436_v8  ;;  %vm4875_vm0 = vcmask 261248  }
 0x90d   : > { %4613 = vmatmul.mubr.f32.gmra.mrb[66].mxu1 %v7326_v37 }
 0x9a3   : > { %v9444_v42 = vpop.f32.mrb[52].mxu1 }
 0x9a4   : > { %4663 = vrot.lane.b32.xlu0 %v9444_v42, %s7343_s14  ;;  %4725 = vrot.lane.b32.xlu1 %v9444_v42, %s7336_s8  ;;  %v4581_v12 = vpop.f32.mrb[53].mxu1 }
 0x9a8   : > { %4632 = vrot.lane.b32.xlu0 %v9444_v42, %s7338_s20  ;;  %4694 = vrot.lane.b32.xlu1 %v9444_v42, %s7344_s4 }
 0x9b4   : > { %v9454_v47 = vpop.f32.mrb[54].mxu1 }
 0x9b5   : > { %4665 = vrot.lane.b32.xlu0 %v9454_v47, %s7343_s14  ;;  %4727 = vrot.lane.b32.xlu1 %v9454_v47, %s7336_s8  ;;  %v4586_v62 = vpop.f32.mrb[55].mxu1 }
 0x9b9   : > { %4634 = vrot.lane.b32.xlu0 %v9454_v47, %s7338_s20  ;;  %4696 = vrot.lane.b32.xlu1 %v9454_v47, %s7344_s4 }
 0x9bb   : > { %v9464_v63 = vpop.f32.mrb[56].mxu1 }
 0x9bc   : > { %v4591_v45 = vpop.f32.mrb[57].mxu1 }
 0x9bd   : > { %4667 = vrot.lane.b32.xlu0 %v9464_v63, %s7343_s14  ;;  %4729 = vrot.lane.b32.xlu1 %v9464_v63, %s7336_s8 }
 0x9c1   : > { %4636 = vrot.lane.b32.xlu0 %v9464_v63, %s7338_s20  ;;  %4698 = vrot.lane.b32.xlu1 %v9464_v63, %s7344_s4 }
 0x9d0   : > { %v9474_v54 = vpop.f32.mrb[58].mxu1 }
 0x9d1   : > { %4669 = vrot.lane.b32.xlu0 %v9474_v54, %s7343_s14  ;;  %4731 = vrot.lane.b32.xlu1 %v9474_v54, %s7336_s8  ;;  %v4596_v5 = vpop.f32.mrb[59].mxu1 }
 0x9d4   : > { %v4599_v55 = vpop.f32.mrb[60].mxu1 }
 0x9d5   : > { %4638 = vrot.lane.b32.xlu0 %v9474_v54, %s7338_s20  ;;  %4700 = vrot.lane.b32.xlu1 %v9474_v54, %s7344_s4  ;;  %v4601_v32 = vpop.f32.mrb[61].mxu1 }
 0x9d8   : > { %v4604_v24 = vpop.f32.mrb[62].mxu1 }
 0x9d9   : > { %4671 = vrot.lane.b32.xlu0 %v4599_v55, %s7343_s14  ;;  %4733 = vrot.lane.b32.xlu1 %v4599_v55, %s7336_s8  ;;  %v4606_v33 = vpop.f32.mrb[63].mxu1 }
 0x9dc   : > { %v4609_v30 = vpop.f32.mrb[64].mxu1 }
 0x9dd   : > { %4640 = vrot.lane.b32.xlu0 %v4599_v55, %s7338_s20  ;;  %4702 = vrot.lane.b32.xlu1 %v4599_v55, %s7344_s4  ;;  %v4611_v34 = vpop.f32.mrb[65].mxu1 }
 0x9e0   : > { %v4614_v61 = vpop.f32.mrb[66].mxu1 }
 0x9e1   : > { %4673 = vrot.lane.b32.xlu0 %v4604_v24, %s7343_s14  ;;  %4735 = vrot.lane.b32.xlu1 %v4604_v24, %s7336_s8  ;;  %v4616_v35 = vpop.f32.mrb[67].mxu1 }
 0x9e5   : > { %4704 = vrot.lane.b32.xlu1 %v4604_v24, %s7344_s4  ;;  %4706 = vrot.lane.b32.xlu0 %v4609_v30, %s7344_s4 }
 0x9e9   : > { %4737 = vrot.lane.b32.xlu1 %v4609_v30, %s7336_s8 }
 0x9ed   : > { %4739 = vrot.lane.b32.xlu1 %v4614_v61, %s7336_s8 }
 0xa16   : > { %v4726_v23 = vpop.permute.xlu1 %4725  ;;  %v4664_v4 = vpop.permute.xlu0 %4663 }
 0xa17   : > { %v4749_v53 = vadd.f32 %v4726_v23, %v4716_v17  ;;  %v4685_v9 = vadd.f32 %v4664_v4, %v4652_v10 }
 0xa19   : > { %v4762_v29 = vadd.f32 %v9498_v3, %v4749_v53 }
 0xa1a   : > { %v4695_v38 = vpop.permute.xlu1 %4694  ;;  %v4633_v8 = vpop.permute.xlu0 %4632 }
 0xa1b   : > { %v4770_v22 = vmax.f32 %v4762_v29, 0.0  ;;  %v4717_v37 = vadd.f32 %v4695_v38, %v4684_v31  ;;  %v4653_v46 = vadd.f32 %v4633_v8, %v9379_v58  ;;  %v9537_v29 = vpop.f32.mrb[52].mxu0 }
 0xa1d   : > { %4778 = vst.msk [vmem:[#allocation6] sm:$0xff] %vm3813_vm15, %v4770_v22 }
 0xa24   : > { %v4884_v39 = vld [vmem:[#allocation6] sm:$0xff] }
 0xa25   : > { %4900 = vrot.lane.b32.xlu1 %v4884_v39, %s7335_s7  ;;  %4851 = vrot.lane.b32.xlu0 %v4884_v39, %s7340_s28  ;;  %4827 = vst.msk [vmem:[#allocation13 + $0x44] sm:$0xff] %vm3813_vm15, %v4884_v39 }
 0xa27   : > { %v4728_v13 = vpop.permute.xlu1 %4727  ;;  %v4666_v26 = vpop.permute.xlu0 %4665 }
 0xa28   : > { %v4750_v49 = vadd.f32 %v4728_v13, %v4717_v37  ;;  %v4686_v19 = vadd.f32 %v4666_v26, %v4653_v46 }
 0xa29   : > { %4998 = vrot.lane.b32.xlu1 %v4884_v39, %s7336_s8  ;;  %4949 = vrot.lane.b32.xlu0 %v4884_v39, %s7346_s27 }
 0xa2a   : > { %v4763_v18 = vadd.f32 %v9498_v3, %v4750_v49 }
 0xa2b   : > { %v4697_v14 = vpop.permute.xlu1 %4696  ;;  %v4635_v44 = vpop.permute.xlu0 %4634 }
 0xa2c   : > { %v4771_v50 = vmax.f32 %v4763_v18, 0.0  ;;  %v4718_v16 = vadd.f32 %v4697_v14, %v4685_v9  ;;  %v4654_v58 = vadd.f32 %v4635_v44, %v9444_v42 }
 0xa2e   : > { %4779 = vst.msk [vmem:[#allocation6 + $0x8] sm:$0xff] %vm3813_vm15, %v4771_v50 }
 0xa2f   : > { %v4730_v43 = vpop.permute.xlu1 %4729  ;;  %v4668_v51 = vpop.permute.xlu0 %4667 }
 0xa30   : > { %v4751_v57 = vadd.f32 %v4730_v43, %v4718_v16  ;;  %v4687_v45 = vadd.f32 %v4668_v51, %v4654_v58 }
 0xa32   : > { %v4764_v1 = vadd.f32 %v9498_v3, %v4751_v57 }
 0xa33   : > { %v4699_v27 = vpop.permute.xlu1 %4698  ;;  %v4637_v41 = vpop.permute.xlu0 %4636 }
 0xa34   : > { %v4772_v59 = vmax.f32 %v4764_v1, 0.0  ;;  %v4719_v21 = vadd.f32 %v4699_v27, %v4686_v19  ;;  %v4655_v30 = vadd.f32 %v4637_v41, %v9454_v47 }
 0xa35   : > { %v4885_v20 = vld [vmem:[#allocation6 + $0x8] sm:$0xff] }
 0xa36   : > { %4780 = vst.msk [vmem:[#allocation6 + $0x10] sm:$0xff] %vm3813_vm15, %v4772_v59  ;;  %4902 = vrot.lane.b32.xlu1 %v4885_v20, %s7335_s7  ;;  %4853 = vrot.lane.b32.xlu0 %v4885_v20, %s7340_s28  ;;  %4828 = vst.msk [vmem:[#allocation13 + $0x54] sm:$0xff] %vm3813_vm15, %v4885_v20 }
 0xa3a   : > { %5000 = vrot.lane.b32.xlu1 %v4885_v20, %s7336_s8  ;;  %4951 = vrot.lane.b32.xlu0 %v4885_v20, %s7346_s27 }
 0xa3d   : > { %v4886_v52 = vld [vmem:[#allocation6 + $0x10] sm:$0xff] }
 0xa3e   : > { %4904 = vrot.lane.b32.xlu1 %v4886_v52, %s7335_s7  ;;  %4855 = vrot.lane.b32.xlu0 %v4886_v52, %s7340_s28  ;;  %4829 = vst.msk [vmem:[#allocation13 + $0x64] sm:$0xff] %vm3813_vm15, %v4886_v52 }
 0xa42   : > { %5002 = vrot.lane.b32.xlu1 %v4886_v52, %s7336_s8  ;;  %4953 = vrot.lane.b32.xlu0 %v4886_v52, %s7346_s27 }
 0xa43   : > { %v4732_v28 = vpop.permute.xlu1 %4731  ;;  %v4670_v56 = vpop.permute.xlu0 %4669 }
 0xa44   : > { %v4752_v11 = vadd.f32 %v4732_v28, %v4719_v21  ;;  %v4688_v0 = vadd.f32 %v4670_v56, %v4655_v30 }
 0xa46   : > { %v4765_v15 = vadd.f32 %v9498_v3, %v4752_v11 }
 0xa47   : > { %v4701_v12 = vpop.permute.xlu1 %4700  ;;  %v4639_v62 = vpop.permute.xlu0 %4638 }
 0xa48   : > { %v4773_v5 = vmax.f32 %v4765_v15, 0.0  ;;  %v4720_v55 = vadd.f32 %v4701_v12, %v4687_v45  ;;  %v4656_v47 = vadd.f32 %v4639_v62, %v9464_v63  ;;  %v9544_v63 = vpop.f32.mrb[53].mxu0 }
 0xa49   : > { %v9546_v31 = vpop.f32.mrb[54].mxu0 }
 0xa4a   : > { %4781 = vst.msk [vmem:[#allocation6 + $0x18] sm:$0xff] %vm3813_vm15, %v4773_v5  ;;  %v9548_v13 = vpop.f32.mrb[55].mxu0 }
 0xa4b   : > { %v4734_v32 = vpop.permute.xlu1 %4733  ;;  %v4672_v24 = vpop.permute.xlu0 %4671 }
 0xa4c   : > { %v4753_v33 = vadd.f32 %v4734_v32, %v4720_v55  ;;  %v4689_v53 = vadd.f32 %v4672_v24, %v4656_v47  ;;  %v9553_v10 = vpop.f32.mrb[56].mxu0 }
 0xa4d   : > { %v9555_v9 = vpop.f32.mrb[57].mxu0 }
 0xa4e   : > { %v4766_v34 = vadd.f32 %v9498_v3, %v4753_v33  ;;  %v9565_v43 = vpop.f32.mrb[58].mxu0 }
 0xa4f   : > { %v4703_v61 = vpop.permute.xlu1 %4702  ;;  %v4641_v35 = vpop.permute.xlu0 %4640 }
 0xa50   : > { %v4774_v42 = vmax.f32 %v4766_v34, 0.0  ;;  %v4721_v6 = vadd.f32 %v4703_v61, %v4688_v0  ;;  %v4657_v7 = vadd.f32 %v4641_v35, %v9474_v54  ;;  %v9567_v57 = vpop.f32.mrb[59].mxu0 }
 0xa51   : > { %v4887_v40 = vld [vmem:[#allocation6 + $0x18] sm:$0xff] }
 0xa52   : > { %4782 = vst.msk [vmem:[#allocation6 + $0x20] sm:$0xff] %vm3813_vm15, %v4774_v42  ;;  %4906 = vrot.lane.b32.xlu1 %v4887_v40, %s7335_s7  ;;  %4857 = vrot.lane.b32.xlu0 %v4887_v40, %s7340_s28  ;;  %4830 = vst.msk [vmem:[#allocation13 + $0x74] sm:$0xff] %vm3813_vm15, %v4887_v40 }
 0xa53   : > { %v4736_v60 = vpop.permute.xlu1 %4735  ;;  %v4674_v2 = vpop.permute.xlu0 %4673 }
 0xa54   : > { %v4754_v36 = vadd.f32 %v4736_v60, %v4721_v6  ;;  %v4690_v39 = vadd.f32 %v4674_v2, %v4657_v7 }
 0xa56   : > { %v4767_v17 = vadd.f32 %v9498_v3, %v4754_v36  ;;  %5004 = vrot.lane.b32.xlu1 %v4887_v40, %s7336_s8  ;;  %4955 = vrot.lane.b32.xlu0 %v4887_v40, %s7346_s27 }
 0xa57   : > { %v4705_v23 = vpop.permute.xlu1 %4704  ;;  %v4707_v4 = vpop.permute.xlu0 %4706 }
 0xa58   : > { %v4775_v25 = vmax.f32 %v4767_v17, 0.0  ;;  %v4722_v48 = vadd.f32 %v4705_v23, %v4689_v53  ;;  %v4723_v54 = vadd.f32 %v4707_v4, %v4690_v39 }
 0xa59   : > { %v4888_v22 = vld [vmem:[#allocation6 + $0x20] sm:$0xff] }
 0xa5a   : > { %4783 = vst.msk [vmem:[#allocation6 + $0x28] sm:$0xff] %vm3813_vm15, %v4775_v25  ;;  %4908 = vrot.lane.b32.xlu1 %v4888_v22, %s7335_s7  ;;  %4859 = vrot.lane.b32.xlu0 %v4888_v22, %s7340_s28  ;;  %4831 = vst.msk [vmem:[#allocation13 + $0x84] sm:$0xff] %vm3813_vm15, %v4888_v22 }
 0xa5b   : > { %v4738_v38 = vpop.permute.xlu1 %4737 }
 0xa5c   : > { %v4755_v37 = vadd.f32 %v4738_v38, %v4722_v48 }
 0xa5e   : > { %v4768_v8 = vadd.f32 %v9498_v3, %v4755_v37  ;;  %5006 = vrot.lane.b32.xlu1 %v4888_v22, %s7336_s8  ;;  %4957 = vrot.lane.b32.xlu0 %v4888_v22, %s7346_s27 }
 0xa5f   : > { %v4740_v49 = vpop.permute.xlu1 %4739 }
 0xa60   : > { %v4776_v18 = vmax.f32 %v4768_v8, 0.0  ;;  %v4756_v14 = vadd.f32 %v4740_v49, %v4723_v54  ;;  %v5055_v8 = vld [vmem:[#allocation13 + $0xc0] sm:$0xff] }
 0xa61   : > { %v4889_v50 = vld [vmem:[#allocation6 + $0x28] sm:$0xff] }
 0xa62   : > { %4784 = vst.msk [vmem:[#allocation6 + $0x30] sm:$0xff] %vm3813_vm15, %v4776_v18  ;;  %v4769_v26 = vadd.f32 %v9498_v3, %v4756_v14  ;;  %4910 = vrot.lane.b32.xlu1 %v4889_v50, %s7335_s7  ;;  %4861 = vrot.lane.b32.xlu0 %v4889_v50, %s7340_s28  ;;  %4832 = vst.msk [vmem:[#allocation13 + $0x94] sm:$0xff] %vm3813_vm15, %v4889_v50  ;;  %v5056_v18 = vld [vmem:[#allocation13 + $0xc8] sm:$0xff]  ;;  %v5057_v14 = vld [vmem:[#allocation13 + $0xd0] sm:$0xff] }
 0xa64   : > { %v4777_v16 = vmax.f32 %v4769_v26, 0.0  ;;  %v5059_v26 = vld [vmem:[#allocation13 + $0xe0] sm:$0xff] }
 0xa66   : > { %4785 = vst.msk [vmem:[#allocation6 + $0x38] sm:$0xff] %vm3813_vm15, %v4777_v16  ;;  %5008 = vrot.lane.b32.xlu1 %v4889_v50, %s7336_s8  ;;  %4959 = vrot.lane.b32.xlu0 %v4889_v50, %s7346_s27  ;;  %v5058_v50 = vld [vmem:[#allocation13 + $0xd8] sm:$0xff]  ;;  %v5060_v16 = vld [vmem:[#allocation13 + $0xe8] sm:$0xff] }
 0xa69   : > { %v4890_v44 = vld [vmem:[#allocation6 + $0x30] sm:$0xff] }
 0xa6a   : > { %4912 = vrot.lane.b32.xlu1 %v4890_v44, %s7335_s7  ;;  %4863 = vrot.lane.b32.xlu0 %v4890_v44, %s7340_s28  ;;  %4833 = vst.msk [vmem:[#allocation13 + $0xa4] sm:$0xff] %vm3813_vm15, %v4890_v44 }
 0xa6d   : > { %v4891_v3 = vld [vmem:[#allocation6 + $0x38] sm:$0xff] }
 0xa6e   : > { %5010 = vrot.lane.b32.xlu1 %v4890_v44, %s7336_s8  ;;  %4961 = vrot.lane.b32.xlu0 %v4890_v44, %s7346_s27  ;;  %4834 = vst.msk [vmem:[#allocation13 + $0xb4] sm:$0xff] %vm3813_vm15, %v4891_v3  ;;  %vm4924_vm15 = vcmask 392448   ;;  %v5061_v44 = vld [vmem:[#allocation13 + $0xf0] sm:$0xff] }
 0xa72   : > { %4914 = vrot.lane.b32.xlu1 %v4891_v3, %s7335_s7  ;;  %4865 = vrot.lane.b32.xlu0 %v4891_v3, %s7340_s28 }
 0xa76   : > { %5012 = vrot.lane.b32.xlu1 %v4891_v3, %s7336_s8  ;;  %4963 = vrot.lane.b32.xlu0 %v4891_v3, %s7346_s27  ;;  %v5062_v3 = vld [vmem:[#allocation13 + $0xf8] sm:$0xff] }
 0xa7a   : > { %5420 = vrot.lane.b32.xlu1 %v9546_v31, %s7337_s19  ;;  %5418 = vrot.lane.b32.xlu0 %v9548_v13, %s7337_s19 }
 0xa7e   : > { %5424 = vrot.lane.b32.xlu1 %v9553_v10, %s7337_s19  ;;  %5422 = vrot.lane.b32.xlu0 %v9555_v9, %s7337_s19 }
 0xa82   : > { %5518 = vrot.lane.b32.xlu1 %v9553_v10, %s7338_s20  ;;  %5516 = vrot.lane.b32.xlu0 %v9555_v9, %s7338_s20 }
 0xa86   : > { %5522 = vrot.lane.b32.xlu1 %v9565_v43, %s7338_s20  ;;  %5520 = vrot.lane.b32.xlu0 %v9567_v57, %s7338_s20 }
 0xa8a   : > { %5428 = vrot.lane.b32.xlu1 %v9565_v43, %s7337_s19  ;;  %5426 = vrot.lane.b32.xlu0 %v9567_v57, %s7337_s19 }
 0xa8e   : > { %5616 = vrot.lane.b32.xlu1 %v9565_v43, %s7342_s11  ;;  %5614 = vrot.lane.b32.xlu0 %v9567_v57, %s7342_s11 }
 0xa97   : > { %v4901_v1 = vpop.permute.xlu1 %4900  ;;  %v4852_v59 = vpop.permute.xlu0 %4851 }
 0xa98   : > { %4876 = vst.msk [vmem:[#allocation13 + $0x43] sm:$0xff] %vm4875_vm0, %v4852_v59 }
 0xa99   : > { %4925 = vst.msk [vmem:[#allocation13 + $0x42] sm:$0xff] %vm4924_vm15, %v4901_v1 }
 0xa9b   : > { %v4999_v20 = vpop.permute.xlu1 %4998  ;;  %v4950_v51 = vpop.permute.xlu0 %4949 }
 0xa9c   : > { %4974 = vst.msk [vmem:[#allocation13 + $0x41] sm:$0xff] %vm4973_vm6, %v4950_v51 }
 0xa9d   : > { %5023 = vst.msk [vmem:[#allocation13 + $0x40] sm:$0xff] %vm5022_vm7, %v4999_v20 }
 0xaa3   : > { %v5040_v52 = vld [vmem:[#allocation13 + $0x48] sm:$0xff] }
 0xaa4   : > { %v5039_v46 = vld [vmem:[#allocation13 + $0x40] sm:$0xff] }
 0xaa5   : > { %7118 = vmatprep.mubr.msk.f32.mxu0 %vm4063_vm2, %v5039_v46 }
 0xaa6   : > { %7119 = vmatmul.mubr.msk.f32.gmra.mrb[60].mxu0 %vm4063_vm2, %v5040_v52 }
 0xaa8   : > { %v4903_v27 = vpop.permute.xlu1 %4902  ;;  %v4854_v41 = vpop.permute.xlu0 %4853 }
 0xaa9   : > { %4877 = vst.msk [vmem:[#allocation13 + $0x53] sm:$0xff] %vm4875_vm0, %v4854_v41 }
 0xaaa   : > { %4926 = vst.msk [vmem:[#allocation13 + $0x52] sm:$0xff] %vm4924_vm15, %v4903_v27 }
 0xaac   : > { %v5001_v19 = vpop.permute.xlu1 %5000  ;;  %v4952_v21 = vpop.permute.xlu0 %4951 }
 0xaad   : > { %4975 = vst.msk [vmem:[#allocation13 + $0x51] sm:$0xff] %vm4973_vm6, %v4952_v21 }
 0xaae   : > { %5024 = vst.msk [vmem:[#allocation13 + $0x50] sm:$0xff] %vm5022_vm7, %v5001_v19 }
 0xab0   : > { %v4905_v28 = vpop.permute.xlu1 %4904  ;;  %v4856_v56 = vpop.permute.xlu0 %4855 }
 0xab1   : > { %4878 = vst.msk [vmem:[#allocation13 + $0x63] sm:$0xff] %vm4875_vm0, %v4856_v56 }
 0xab2   : > { %4927 = vst.msk [vmem:[#allocation13 + $0x62] sm:$0xff] %vm4924_vm15, %v4905_v28 }
 0xab4   : > { %v5003_v11 = vpop.permute.xlu1 %5002  ;;  %v4954_v58 = vpop.permute.xlu0 %4953  ;;  %v5042_v12 = vld [vmem:[#allocation13 + $0x58] sm:$0xff] }
 0xab5   : > { %4976 = vst.msk [vmem:[#allocation13 + $0x61] sm:$0xff] %vm4973_vm6, %v4954_v58  ;;  %v5041_v15 = vld [vmem:[#allocation13 + $0x50] sm:$0xff] }
 0xab6   : > { %5025 = vst.msk [vmem:[#allocation13 + $0x60] sm:$0xff] %vm5022_vm7, %v5003_v11  ;;  %7121 = vmatprep.mubr.msk.f32.mxu0 %vm4063_vm2, %v5041_v15 }
 0xab7   : > { %7122 = vmatmul.mubr.msk.f32.gmra.mrb[62].mxu0 %vm4063_vm2, %v5042_v12 }
 0xabc   : > { %v5044_v45 = vld [vmem:[#allocation13 + $0x68] sm:$0xff] }
 0xabd   : > { %v5043_v62 = vld [vmem:[#allocation13 + $0x60] sm:$0xff] }
 0xabe   : > { %7124 = vmatprep.mubr.msk.f32.mxu0 %vm4063_vm2, %v5043_v62 }
 0xabf   : > { %7125 = vmatmul.mubr.msk.f32.gmra.mrb[64].mxu0 %vm4063_vm2, %v5044_v45 }
 0xac4   : > { %v4907_v5 = vpop.permute.xlu1 %4906  ;;  %v4858_v55 = vpop.permute.xlu0 %4857 }
 0xac5   : > { %4879 = vst.msk [vmem:[#allocation13 + $0x73] sm:$0xff] %vm4875_vm0, %v4858_v55 }
 0xac6   : > { %4928 = vst.msk [vmem:[#allocation13 + $0x72] sm:$0xff] %vm4924_vm15, %v4907_v5 }
 0xac8   : > { %v5005_v32 = vpop.permute.xlu1 %5004  ;;  %v4956_v24 = vpop.permute.xlu0 %4955 }
 0xac9   : > { %4977 = vst.msk [vmem:[#allocation13 + $0x71] sm:$0xff] %vm4973_vm6, %v4956_v24 }
 0xaca   : > { %5026 = vst.msk [vmem:[#allocation13 + $0x70] sm:$0xff] %vm5022_vm7, %v5005_v32 }
 0xacc   : > { %v4909_v33 = vpop.permute.xlu1 %4908  ;;  %v4860_v30 = vpop.permute.xlu0 %4859 }
 0xacd   : > { %4880 = vst.msk [vmem:[#allocation13 + $0x83] sm:$0xff] %vm4875_vm0, %v4860_v30 }
 0xace   : > { %4929 = vst.msk [vmem:[#allocation13 + $0x82] sm:$0xff] %vm4924_vm15, %v4909_v33 }
 0xad0   : > { %v5007_v34 = vpop.permute.xlu1 %5006  ;;  %v4958_v61 = vpop.permute.xlu0 %4957  ;;  %v5046_v0 = vld [vmem:[#allocation13 + $0x78] sm:$0xff] }
 0xad1   : > { %4978 = vst.msk [vmem:[#allocation13 + $0x81] sm:$0xff] %vm4973_vm6, %v4958_v61  ;;  %v5045_v35 = vld [vmem:[#allocation13 + $0x70] sm:$0xff] }
 0xad2   : > { %5027 = vst.msk [vmem:[#allocation13 + $0x80] sm:$0xff] %vm5022_vm7, %v5007_v34  ;;  %7127 = vmatprep.mubr.msk.f32.mxu0 %vm4063_vm2, %v5045_v35 }
 0xad3   : > { %7128 = vmatmul.mubr.msk.f32.gmra.mrb[66].mxu0 %vm4063_vm2, %v5046_v0 }
 0xad4   : > { %v4911_v42 = vpop.permute.xlu1 %4910  ;;  %v4862_v40 = vpop.permute.xlu0 %4861 }
 0xad5   : > { %4881 = vst.msk [vmem:[#allocation13 + $0x93] sm:$0xff] %vm4875_vm0, %v4862_v40 }
 0xad6   : > { %4930 = vst.msk [vmem:[#allocation13 + $0x92] sm:$0xff] %vm4924_vm15, %v4911_v42 }
 0xad8   : > { %v5009_v6 = vpop.permute.xlu1 %5008  ;;  %v4960_v60 = vpop.permute.xlu0 %4959  ;;  %v5048_v2 = vld [vmem:[#allocation13 + $0x88] sm:$0xff] }
 0xad9   : > { %4979 = vst.msk [vmem:[#allocation13 + $0x91] sm:$0xff] %vm4973_vm6, %v4960_v60  ;;  %v5047_v36 = vld [vmem:[#allocation13 + $0x80] sm:$0xff] }
 0xada   : > { %5028 = vst.msk [vmem:[#allocation13 + $0x90] sm:$0xff] %vm5022_vm7, %v5009_v6  ;;  %7130 = vmatprep.mubr.msk.f32.mxu0 %vm4063_vm2, %v5047_v36 }
 0xadb   : > { %7131 = vmatmul.mubr.msk.f32.gmra.mrb[68].mxu0 %vm4063_vm2, %v5048_v2 }
 0xadc   : > { %v4913_v47 = vpop.permute.xlu1 %4912  ;;  %v4864_v17 = vpop.permute.xlu0 %4863 }
 0xadd   : > { %4882 = vst.msk [vmem:[#allocation13 + $0xa3] sm:$0xff] %vm4875_vm0, %v4864_v17 }
 0xade   : > { %4931 = vst.msk [vmem:[#allocation13 + $0xa2] sm:$0xff] %vm4924_vm15, %v4913_v47 }
 0xae0   : > { %v5011_v23 = vpop.permute.xlu1 %5010  ;;  %v4962_v53 = vpop.permute.xlu0 %4961  ;;  %v5050_v22 = vld [vmem:[#allocation13 + $0x98] sm:$0xff] }
 0xae1   : > { %4980 = vst.msk [vmem:[#allocation13 + $0xa1] sm:$0xff] %vm4973_vm6, %v4962_v53  ;;  %v5049_v25 = vld [vmem:[#allocation13 + $0x90] sm:$0xff] }
 0xae2   : > { %5029 = vst.msk [vmem:[#allocation13 + $0xa0] sm:$0xff] %vm5022_vm7, %v5011_v23  ;;  %7133 = vmatprep.mubr.msk.f32.mxu0 %vm4063_vm2, %v5049_v25 }
 0xae3   : > { %7134 = vmatmul.mubr.msk.f32.gmra.mrb[70].mxu0 %vm4063_vm2, %v5050_v22 }
 0xae4   : > { %v4915_v7 = vpop.permute.xlu1 %4914  ;;  %v4866_v48 = vpop.permute.xlu0 %4865 }
 0xae5   : > { %4883 = vst.msk [vmem:[#allocation13 + $0xb3] sm:$0xff] %vm4875_vm0, %v4866_v48 }
 0xae6   : > { %4932 = vst.msk [vmem:[#allocation13 + $0xb2] sm:$0xff] %vm4924_vm15, %v4915_v7 }
 0xae8   : > { %v5013_v4 = vpop.permute.xlu1 %5012  ;;  %v4964_v38 = vpop.permute.xlu0 %4963  ;;  %v5052_v37 = vld [vmem:[#allocation13 + $0xa8] sm:$0xff] }
 0xae9   : > { %4981 = vst.msk [vmem:[#allocation13 + $0xb1] sm:$0xff] %vm4973_vm6, %v4964_v38  ;;  %v5051_v39 = vld [vmem:[#allocation13 + $0xa0] sm:$0xff] }
 0xaea   : > { %5030 = vst.msk [vmem:[#allocation13 + $0xb0] sm:$0xff] %vm5022_vm7, %v5013_v4  ;;  %7136 = vmatprep.mubr.msk.f32.mxu0 %vm4063_vm2, %v5051_v39 }
 0xaeb   : > { %7137 = vmatmul.mubr.msk.f32.gmra.mrb[72].mxu0 %vm4063_vm2, %v5052_v37 }
 0xaec   : > { %v5421_v45 = vpop.permute.xlu1 %5420  ;;  %v5419_v55 = vpop.permute.xlu0 %5418 }
 0xaed   : > { %v5491_v25 = vadd.f32 %v9537_v29, %v5421_v45  ;;  %v5490_v22 = vadd.f32 %v5419_v55, %v9544_v63 }
 0xaf0   : > { %v5054_v49 = vld [vmem:[#allocation13 + $0xb8] sm:$0xff]  ;;  %v5425_v33 = vpop.permute.xlu1 %5424  ;;  %v5423_v30 = vpop.permute.xlu0 %5422 }
 0xaf1   : > { %v5053_v54 = vld [vmem:[#allocation13 + $0xb0] sm:$0xff] }
 0xaf2   : > { %7139 = vmatprep.mubr.msk.f32.mxu0 %vm4063_vm2, %v5053_v54  ;;  %v9850_v54 = vld [vmem:[%s10299_s2 + $0x5] ss:$0 sm:$0xff] }
 0xaf3   : > { %7140 = vmatmul.mubr.msk.f32.gmra.mrb[74].mxu0 %vm4063_vm2, %v5054_v49 }
 0xaf4   : > { %7142 = vmatprep.mubr.msk.f32.mxu0 %vm4063_vm2, %v5055_v8  ;;  %v5519_v0 = vpop.permute.xlu1 %5518  ;;  %v5517_v40 = vpop.permute.xlu0 %5516 }
 0xaf5   : > { %v5589_v4 = vadd.f32 %v5519_v0, %v5491_v25  ;;  %v5588_v38 = vadd.f32 %v5517_v40, %v5490_v22 }
 0xaf7   : > { %7143 = vmatmul.mubr.msk.f32.gmra.mrb[76].mxu0 %vm4063_vm2, %v5056_v18 }
 0xaf8   : > { %7145 = vmatprep.mubr.msk.f32.mxu0 %vm4063_vm2, %v5057_v14  ;;  %v5523_v6 = vpop.permute.xlu1 %5522  ;;  %v5521_v60 = vpop.permute.xlu0 %5520  ;;  %v5493_v14 = vadd.f32 %v9546_v31, %v5425_v33 }
 0xafa   : > { %v5591_v55 = vadd.f32 %v5523_v6, %v5493_v14 }
 0xafb   : > { %7146 = vmatmul.mubr.msk.f32.gmra.mrb[78].mxu0 %vm4063_vm2, %v5058_v50 }
 0xafc   : > { %7148 = vmatprep.mubr.msk.f32.mxu0 %vm4063_vm2, %v5059_v26  ;;  %v9811_v36 = vpop.permute.xlu1 %5428  ;;  %v9813_v2 = vpop.permute.xlu0 %5426  ;;  %v5492_v26 = vadd.f32 %v5423_v30, %v9548_v13 }
 0xafd   : > { %v5495_v14 = vadd.f32 %v9553_v10, %v9811_v36 }
 0xafe   : > { %v5590_v31 = vadd.f32 %v5521_v60, %v5492_v26 }
 0xaff   : > { %7149 = vmatmul.mubr.msk.f32.gmra.mrb[80].mxu0 %vm4063_vm2, %v5060_v16 }
 0xb00   : > { %7151 = vmatprep.mubr.msk.f32.mxu0 %vm4063_vm2, %v5061_v44  ;;  %v5617_v47 = vpop.permute.xlu1 %5616  ;;  %v5615_v17 = vpop.permute.xlu0 %5614 }
 0xb01   : > { %v5687_v37 = vadd.f32 %v5617_v47, %v5589_v4  ;;  %v5686_v63 = vadd.f32 %v5615_v17, %v5588_v38 }
 0xb03   : > { %7152 = vmatmul.mubr.msk.f32.gmra.mrb[82].mxu0 %vm4063_vm2, %v5062_v3 }
 0xb79   : > { %v9659_v1 = vpop.f32.mrb[60].mxu0 }
 0xb7a   : > { %5432 = vrot.lane.b32.xlu1 %v9659_v1, %s7337_s19  ;;  %v9663_v59 = vpop.f32.mrb[61].mxu0 }
 0xb7b   : > { %5430 = vrot.lane.b32.xlu0 %v9663_v59, %s7337_s19 }
 0xb7e   : > { %5620 = vrot.lane.b32.xlu1 %v9659_v1, %s7342_s11 }
 0xb7f   : > { %5618 = vrot.lane.b32.xlu0 %v9663_v59, %s7342_s11 }
 0xb82   : > { %5526 = vrot.lane.b32.xlu1 %v9659_v1, %s7338_s20 }
 0xb83   : > { %5524 = vrot.lane.b32.xlu0 %v9663_v59, %s7338_s20 }
 0xb86   : > { %5714 = vrot.lane.b32.xlu1 %v9659_v1, %s7343_s14 }
 0xb87   : > { %5712 = vrot.lane.b32.xlu0 %v9663_v59, %s7343_s14 }
 0xb8a   : > { %v9679_v20 = vpop.f32.mrb[62].mxu0 }
 0xb8b   : > { %5530 = vrot.lane.b32.xlu1 %v9679_v20, %s7338_s20  ;;  %v9683_v51 = vpop.f32.mrb[63].mxu0 }
 0xb8c   : > { %5528 = vrot.lane.b32.xlu0 %v9683_v51, %s7338_s20 }
 0xb8f   : > { %5718 = vrot.lane.b32.xlu1 %v9679_v20, %s7343_s14 }
 0xb90   : > { %5716 = vrot.lane.b32.xlu0 %v9683_v51, %s7343_s14 }
 0xb92   : > { %v9691_v46 = vpop.f32.mrb[64].mxu0 }
 0xb93   : > { %5436 = vrot.lane.b32.xlu1 %v9679_v20, %s7337_s19  ;;  %v9695_v52 = vpop.f32.mrb[65].mxu0 }
 0xb94   : > { %5434 = vrot.lane.b32.xlu0 %v9683_v51, %s7337_s19 }
 0xb97   : > { %5624 = vrot.lane.b32.xlu1 %v9679_v20, %s7342_s11 }
 0xb98   : > { %5622 = vrot.lane.b32.xlu0 %v9683_v51, %s7342_s11 }
 0xb9b   : > { %5440 = vrot.lane.b32.xlu1 %v9691_v46, %s7337_s19 }
 0xb9c   : > { %5438 = vrot.lane.b32.xlu0 %v9695_v52, %s7337_s19 }
 0xb9f   : > { %5628 = vrot.lane.b32.xlu1 %v9691_v46, %s7342_s11 }
 0xba0   : > { %5626 = vrot.lane.b32.xlu0 %v9695_v52, %s7342_s11 }
 0xba3   : > { %5534 = vrot.lane.b32.xlu1 %v9691_v46, %s7338_s20 }
 0xba4   : > { %5532 = vrot.lane.b32.xlu0 %v9695_v52, %s7338_s20 }
 0xba6   : > { %v9715_v27 = vpop.f32.mrb[66].mxu0 }
 0xba7   : > { %v9717_v41 = vpop.f32.mrb[67].mxu0  ;;  %5722 = vrot.lane.b32.xlu1 %v9691_v46, %s7343_s14 }
 0xba8   : > { %5720 = vrot.lane.b32.xlu0 %v9695_v52, %s7343_s14 }
 0xbab   : > { %5538 = vrot.lane.b32.xlu1 %v9715_v27, %s7338_s20 }
 0xbac   : > { %5536 = vrot.lane.b32.xlu0 %v9717_v41, %s7338_s20 }
 0xbae   : > { %v9727_v19 = vpop.f32.mrb[68].mxu0 }
 0xbaf   : > { %v9729_v21 = vpop.f32.mrb[69].mxu0  ;;  %5726 = vrot.lane.b32.xlu1 %v9715_v27, %s7343_s14 }
 0xbb0   : > { %5724 = vrot.lane.b32.xlu0 %v9717_v41, %s7343_s14 }
 0xbb3   : > { %5444 = vrot.lane.b32.xlu1 %v9715_v27, %s7337_s19 }
 0xbb4   : > { %5442 = vrot.lane.b32.xlu0 %v9717_v41, %s7337_s19 }
 0xbb6   : > { %v9739_v28 = vpop.f32.mrb[70].mxu0 }
 0xbb7   : > { %v9741_v56 = vpop.f32.mrb[71].mxu0  ;;  %5632 = vrot.lane.b32.xlu1 %v9715_v27, %s7342_s11 }
 0xbb8   : > { %5630 = vrot.lane.b32.xlu0 %v9717_v41, %s7342_s11 }
 0xbbb   : > { %5448 = vrot.lane.b32.xlu1 %v9727_v19, %s7337_s19 }
 0xbbc   : > { %5446 = vrot.lane.b32.xlu0 %v9729_v21, %s7337_s19 }
 0xbbe   : > { %v9751_v11 = vpop.f32.mrb[72].mxu0 }
 0xbbf   : > { %v9753_v58 = vpop.f32.mrb[73].mxu0  ;;  %5636 = vrot.lane.b32.xlu1 %v9727_v19, %s7342_s11 }
 0xbc0   : > { %5634 = vrot.lane.b32.xlu0 %v9729_v21, %s7342_s11 }
 0xbc3   : > { %5542 = vrot.lane.b32.xlu1 %v9727_v19, %s7338_s20 }
 0xbc4   : > { %5540 = vrot.lane.b32.xlu0 %v9729_v21, %s7338_s20 }
 0xbc6   : > { %v9763_v15 = vpop.f32.mrb[74].mxu0 }
 0xbc7   : > { %v9765_v12 = vpop.f32.mrb[75].mxu0  ;;  %5730 = vrot.lane.b32.xlu1 %v9727_v19, %s7343_s14 }
 0xbc8   : > { %5728 = vrot.lane.b32.xlu0 %v9729_v21, %s7343_s14 }
 0xbca   : > { %v9771_v62 = vpop.f32.mrb[76].mxu0 }
 0xbcb   : > { %v9773_v5 = vpop.f32.mrb[77].mxu0  ;;  %5546 = vrot.lane.b32.xlu1 %v9739_v28, %s7338_s20 }
 0xbcc   : > { %5544 = vrot.lane.b32.xlu0 %v9741_v56, %s7338_s20 }
 0xbce   : > { %v9779_v32 = vpop.f32.mrb[78].mxu0 }
 0xbcf   : > { %v9781_v24 = vpop.f32.mrb[79].mxu0  ;;  %5734 = vrot.lane.b32.xlu1 %v9739_v28, %s7343_s14 }
 0xbd0   : > { %5732 = vrot.lane.b32.xlu0 %v9741_v56, %s7343_s14 }
 0xbd2   : > { %v9787_v34 = vpop.f32.mrb[80].mxu0 }
 0xbd3   : > { %v9789_v61 = vpop.f32.mrb[81].mxu0  ;;  %5452 = vrot.lane.b32.xlu1 %v9739_v28, %s7337_s19 }
 0xbd4   : > { %5450 = vrot.lane.b32.xlu0 %v9741_v56, %s7337_s19 }
 0xbd6   : > { %v9795_v35 = vpop.f32.mrb[82].mxu0 }
 0xbd7   : > { %v9797_v42 = vpop.f32.mrb[83].mxu0  ;;  %5640 = vrot.lane.b32.xlu1 %v9739_v28, %s7342_s11 }
 0xbd8   : > { %5638 = vrot.lane.b32.xlu0 %v9741_v56, %s7342_s11 }
 0xbdb   : > { %5456 = vrot.lane.b32.xlu1 %v9751_v11, %s7337_s19 }
 0xbdc   : > { %5454 = vrot.lane.b32.xlu0 %v9753_v58, %s7337_s19 }
 0xbdf   : > { %5644 = vrot.lane.b32.xlu1 %v9751_v11, %s7342_s11 }
 0xbe0   : > { %5642 = vrot.lane.b32.xlu0 %v9753_v58, %s7342_s11 }
 0xbe3   : > { %5550 = vrot.lane.b32.xlu1 %v9751_v11, %s7338_s20 }
 0xbe4   : > { %5548 = vrot.lane.b32.xlu0 %v9753_v58, %s7338_s20 }
 0xbe7   : > { %5738 = vrot.lane.b32.xlu1 %v9751_v11, %s7343_s14 }
 0xbe8   : > { %5736 = vrot.lane.b32.xlu0 %v9753_v58, %s7343_s14 }
 0xbeb   : > { %5554 = vrot.lane.b32.xlu1 %v9763_v15, %s7338_s20 }
 0xbec   : > { %v9825_v23 = vpop.permute.xlu1 %5432  ;;  %5552 = vrot.lane.b32.xlu0 %v9765_v12, %s7338_s20 }
 0xbed   : > { %v9829_v53 = vpop.permute.xlu0 %5430 }
 0xbef   : > { %5742 = vrot.lane.b32.xlu1 %v9763_v15, %s7343_s14 }
 0xbf0   : > { %v5621_v7 = vpop.permute.xlu1 %5620  ;;  %5740 = vrot.lane.b32.xlu0 %v9765_v12, %s7343_s14 }
 0xbf1   : > { %v5619_v48 = vpop.permute.xlu0 %5618  ;;  %v5689_v13 = vadd.f32 %v5621_v7, %v5591_v55 }
 0xbf2   : > { %v5688_v33 = vadd.f32 %v5619_v48, %v5590_v31 }
 0xbf3   : > { %5460 = vrot.lane.b32.xlu1 %v9763_v15, %s7337_s19 }
 0xbf4   : > { %v9839_v39 = vpop.permute.xlu1 %5526  ;;  %5458 = vrot.lane.b32.xlu0 %v9765_v12, %s7337_s19 }
 0xbf5   : > { %v9843_v29 = vpop.permute.xlu0 %5524 }
 0xbf7   : > { %5648 = vrot.lane.b32.xlu1 %v9763_v15, %s7342_s11 }
 0xbf8   : > { %v5715_v8 = vpop.permute.xlu1 %5714  ;;  %5646 = vrot.lane.b32.xlu0 %v9765_v12, %s7342_s11 }
 0xbf9   : > { %v5785_v49 = vadd.f32 %v5715_v8, %v5687_v37  ;;  %v5713_v18 = vpop.permute.xlu0 %5712 }
 0xbfa   : > { %v5784_v50 = vadd.f32 %v5713_v18, %v5686_v63 }
 0xbfb   : > { %v5814_v16 = vadd.f32 %v9850_v54, %v5785_v49  ;;  %5464 = vrot.lane.b32.xlu1 %v9771_v62, %s7337_s19 }
 0xbfc   : > { %v5813_v44 = vadd.f32 %v9850_v54, %v5784_v50  ;;  %5462 = vrot.lane.b32.xlu0 %v9773_v5, %s7337_s19  ;;  %v5494_v50 = vadd.f32 %v9813_v2, %v9555_v9  ;;  %v5497_v2 = vadd.f32 %v9565_v43, %v9825_v23 }
 0xbfd   : > { %v5838_v3 = vmax.f32 %v5814_v16, 0.0  ;;  %v9862_v45 = vpop.permute.xlu1 %5530  ;;  %v5593_v16 = vadd.f32 %v9839_v39, %v5495_v14 }
 0xbfe   : > { %v5837_v0 = vmax.f32 %v5813_v44, 0.0  ;;  %v9864_v40 = vpop.permute.xlu0 %5528 }
 0xbff   : > { %5862 = vst.msk [vmem:[#allocation7 + $0x8] sm:$0xff] %vm1439_vm4, %v5838_v3  ;;  %5652 = vrot.lane.b32.xlu1 %v9771_v62, %s7342_s11  ;;  %v5592_v3 = vadd.f32 %v9843_v29, %v5494_v50  ;;  %v5496_v29 = vadd.f32 %v9829_v53, %v9567_v57 }
 0xc00   : > { %5861 = vst.msk [vmem:[#allocation7] sm:$0xff] %vm1439_vm4, %v5837_v0  ;;  %5650 = vrot.lane.b32.xlu0 %v9773_v5, %s7342_s11 }
 0xc01   : > { %v5719_v30 = vpop.permute.xlu1 %5718 }
 0xc02   : > { %v5787_v47 = vadd.f32 %v5719_v30, %v5689_v13  ;;  %v5717_v17 = vpop.permute.xlu0 %5716  ;;  %v5595_v13 = vadd.f32 %v9862_v45, %v5497_v2 }
 0xc03   : > { %v5786_v6 = vadd.f32 %v5717_v17, %v5688_v33  ;;  %5558 = vrot.lane.b32.xlu1 %v9771_v62, %s7338_s20 }
 0xc04   : > { %v5816_v60 = vadd.f32 %v9850_v54, %v5787_v47  ;;  %5556 = vrot.lane.b32.xlu0 %v9773_v5, %s7338_s20 }
 0xc05   : > { %v5815_v25 = vadd.f32 %v9850_v54, %v5786_v6  ;;  %v9878_v22 = vpop.permute.xlu1 %5436  ;;  %v6210_v6 = vld [vmem:[%s10298_s1 + $0x3f0] sm:$0xff] }
 0xc06   : > { %v5840_v7 = vmax.f32 %v5816_v60, 0.0  ;;  %v9880_v4 = vpop.permute.xlu0 %5434 }
 0xc07   : > { %v5839_v48 = vmax.f32 %v5815_v25, 0.0  ;;  %5746 = vrot.lane.b32.xlu1 %v9771_v62, %s7343_s14  ;;  %v5885_v38 = vld [vmem:[#allocation7] sm:$0xff] }
 0xc08   : > { %5864 = vst.msk [vmem:[#allocation7 + $0x18] sm:$0xff] %vm1439_vm4, %v5840_v7  ;;  %5744 = vrot.lane.b32.xlu0 %v9773_v5, %s7343_s14  ;;  %5897 = vst.msk [vmem:[#allocation14] sm:$0xff] %vm1439_vm4, %v5885_v38  ;;  %v6125_v2 = vld [vmem:[#allocation7 + $0x4] sm:$0xff] }
 0xc09   : > { %5863 = vst.msk [vmem:[#allocation7 + $0x10] sm:$0xff] %vm1439_vm4, %v5839_v48  ;;  %v5625_v37 = vpop.permute.xlu1 %5624 }
 0xc0a   : > { %v5623_v63 = vpop.permute.xlu0 %5622 }
 0xc0b   : > { %5562 = vrot.lane.b32.xlu1 %v9779_v32, %s7338_s20  ;;  %v5690_v10 = vadd.f32 %v5623_v63, %v5592_v3 }
 0xc0c   : > { %5560 = vrot.lane.b32.xlu0 %v9781_v24, %s7338_s20 }
 0xc0d   : > { %v9893_v8 = vpop.permute.xlu1 %5440 }
 0xc0e   : > { %v9895_v62 = vpop.permute.xlu0 %5438 }
 0xc0f   : > { %5750 = vrot.lane.b32.xlu1 %v9779_v32, %s7343_s14 }
 0xc10   : > { %5748 = vrot.lane.b32.xlu0 %v9781_v24, %s7343_s14  ;;  %v5886_v49 = vld [vmem:[#allocation7 + $0x10] sm:$0xff] }
 0xc11   : > { %v5629_v5 = vpop.permute.xlu1 %5628  ;;  %5898 = vst.msk [vmem:[#allocation14 + $0x8] sm:$0xff] %vm1439_vm4, %v5886_v49  ;;  %v5910_v47 = vld [vmem:[#allocation7 + $0x11] sm:$0xff]  ;;  %v6211_v49 = vld [vmem:[%s10298_s1 + $0x400] sm:$0xff] }
 0xc12   : > { %v5627_v18 = vpop.permute.xlu0 %5626  ;;  %v5693_v23 = vadd.f32 %v5629_v5, %v5595_v13  ;;  %v5981_v5 = vld [vmem:[#allocation7 + $0x2] sm:$0xff] }
 0xc13   : > { %5656 = vrot.lane.b32.xlu1 %v9779_v32, %s7342_s11  ;;  %v5691_v32 = vadd.f32 %v5625_v37, %v5593_v16  ;;  %v5982_v37 = vld [vmem:[#allocation7 + $0x12] sm:$0xff] }
 0xc14   : > { %5654 = vrot.lane.b32.xlu0 %v9781_v24, %s7342_s11 }
 0xc15   : > { %v9910_v26 = vpop.permute.xlu1 %5534 }
 0xc16   : > { %v9913_v44 = vpop.permute.xlu0 %5532 }
 0xc17   : > { %5660 = vrot.lane.b32.xlu1 %v9787_v34, %s7342_s11 }
 0xc18   : > { %5658 = vrot.lane.b32.xlu0 %v9789_v61, %s7342_s11 }
 0xc19   : > { %v5723_v24 = vpop.permute.xlu1 %5722 }
 0xc1a   : > { %v5789_v36 = vadd.f32 %v5723_v24, %v5691_v32  ;;  %v5721_v55 = vpop.permute.xlu0 %5720  ;;  %v6054_v32 = vld [vmem:[#allocation7 + $0x13] sm:$0xff]  ;;  %v6213_v24 = vld [vmem:[%s10298_s1 + $0x420] sm:$0xff] }
 0xc1b   : > { %v5788_v9 = vadd.f32 %v5721_v55, %v5690_v10  ;;  %5754 = vrot.lane.b32.xlu1 %v9787_v34, %s7343_s14  ;;  %v5594_v34 = vadd.f32 %v9864_v40, %v5496_v29  ;;  %v5909_v40 = vld [vmem:[#allocation7 + $0x1] sm:$0xff] }
 0xc1c   : > { %v5818_v39 = vadd.f32 %v9850_v54, %v5789_v36  ;;  %5752 = vrot.lane.b32.xlu0 %v9789_v61, %s7343_s14  ;;  %v6053_v10 = vld [vmem:[#allocation7 + $0x3] sm:$0xff] }
 0xc1d   : > { %v5817_v0 = vadd.f32 %v9850_v54, %v5788_v9  ;;  %v9930_v31 = vpop.permute.xlu1 %5538  ;;  %v5692_v57 = vadd.f32 %v5627_v18, %v5594_v34  ;;  %v6212_v18 = vld [vmem:[%s10298_s1 + $0x410] sm:$0xff]  ;;  %v5499_v34 = vadd.f32 %v9659_v1, %v9878_v22 }
 0xc1e   : > { %v5842_v33 = vmax.f32 %v5818_v39, 0.0  ;;  %v9933_v30 = vpop.permute.xlu0 %5536  ;;  %v7296_v14 = vpack.c.bf16 %v6212_v18, %v6211_v49 }
 0xc1f   : > { %v5841_v43 = vmax.f32 %v5817_v0, 0.0  ;;  %5758 = vrot.lane.b32.xlu1 %v9795_v35, %s7343_s14  ;;  %v6209_v35 = vld [vmem:[%s10298_s1 + $0x3e0] sm:$0xff] }
 0xc20   : > { %5866 = vst.msk [vmem:[#allocation7 + $0x28] sm:$0xff] %vm1439_vm4, %v5842_v33  ;;  %5756 = vrot.lane.b32.xlu0 %v9797_v42, %s7343_s14  ;;  %v7292_v60 = vpack.c.bf16 %v6210_v6, %v6209_v35  ;;  %v6126_v33 = vld [vmem:[#allocation7 + $0x14] sm:$0xff]  ;;  %v5501_v6 = vadd.f32 %v9679_v20, %v9893_v8 }
 0xc21   : > { %5865 = vst.msk [vmem:[#allocation7 + $0x20] sm:$0xff] %vm1439_vm4, %v5841_v43  ;;  %v5727_v61 = vpop.permute.xlu1 %5726  ;;  %v5498_v43 = vadd.f32 %v9880_v4, %v9663_v59 }
 0xc22   : > { %v5791_v53 = vadd.f32 %v5727_v61, %v5693_v23  ;;  %v5725_v45 = vpop.permute.xlu0 %5724  ;;  %7293 = vmatprep.subr.bf16.mxu1 %v7292_v60 }
 0xc23   : > { %v5790_v17 = vadd.f32 %v5725_v45, %v5692_v57  ;;  %5935 = vrot.lane.b32.xlu1 %v5910_v47, %s7339_s23  ;;  %7295 = vmatpush3.bf16.msra.mxu1 %v7292_v60  ;;  %v5597_v57 = vadd.f32 %v9910_v26, %v5499_v34  ;;  %v5596_v45 = vadd.f32 %v9913_v44, %v5498_v43 }
 0xc24   : > { %v5820_v42 = vadd.f32 %v9850_v54, %v5791_v53  ;;  %5933 = vrot.lane.b32.xlu0 %v5909_v40, %s7339_s23  ;;  %7297 = vmatprep.subr.bf16.mxu1 %v7296_v14 }
 0xc25   : > { %v5819_v25 = vadd.f32 %v9850_v54, %v5790_v17  ;;  %v9952_v7 = vpop.permute.xlu1 %5444 }
 0xc26   : > { %v5844_v48 = vmax.f32 %v5820_v42, 0.0  ;;  %v9954_v38 = vpop.permute.xlu0 %5442  ;;  %v5500_v42 = vadd.f32 %v9895_v62, %v9683_v51 }
 0xc27   : > { %v5843_v63 = vmax.f32 %v5819_v25, 0.0  ;;  %6007 = vrot.lane.b32.xlu1 %v5982_v37, %s7340_s28  ;;  %7299 = vmatpush3.bf16.msra.mxu1 %v7296_v14 }
 0xc28   : > { %5868 = vst.msk [vmem:[#allocation7 + $0x38] sm:$0xff] %vm1439_vm4, %v5844_v48  ;;  %6005 = vrot.lane.b32.xlu0 %v5981_v5, %s7340_s28  ;;  %v5887_v16 = vld [vmem:[#allocation7 + $0x20] sm:$0xff]  ;;  %7162 = vmatprep.subr.mxu1 %v6213_v24  ;;  %v5599_v48 = vadd.f32 %v9930_v31, %v5501_v6  ;;  %v5598_v5 = vadd.f32 %v9933_v30, %v5500_v42 }
 0xc29   : > { %5867 = vst.msk [vmem:[#allocation7 + $0x30] sm:$0xff] %vm1439_vm4, %v5843_v63  ;;  %v5633_v50 = vpop.permute.xlu1 %5632  ;;  %5899 = vst.msk [vmem:[#allocation14 + $0x10] sm:$0xff] %vm1439_vm4, %v5887_v16  ;;  %v5911_v9 = vld [vmem:[#allocation7 + $0x21] sm:$0xff] }
 0xc2a   : > { %v5631_v3 = vpop.permute.xlu0 %5630  ;;  %v5983_v47 = vld [vmem:[#allocation7 + $0x22] sm:$0xff]  ;;  %v5695_v17 = vadd.f32 %v5633_v50, %v5597_v57 }
 0xc2b   : > { %6079 = vrot.lane.b32.xlu1 %v6054_v32, %s7341_s6  ;;  %7163 = vmatpush3.msra.mxu1 %v6213_v24  ;;  %v5694_v1 = vadd.f32 %v5631_v3, %v5596_v45  ;;  %v6055_v26 = vld [vmem:[#allocation7 + $0x23] sm:$0xff] }
 0xc2c   : > { %6077 = vrot.lane.b32.xlu0 %v6053_v10, %s7341_s6  ;;  %v6127_v20 = vld [vmem:[#allocation7 + $0x24] sm:$0xff] }
 0xc2d   : > { %v9972_v36 = vpop.permute.xlu1 %5448 }
 0xc2e   : > { %v9974_v55 = vpop.permute.xlu0 %5446 }
 0xc2f   : > { %5937 = vrot.lane.b32.xlu1 %v5911_v9, %s7339_s23 }
 0xc30   : > { %6149 = vrot.lane.b32.xlu0 %v6125_v2, %s7335_s7  ;;  %v5888_v29 = vld [vmem:[#allocation7 + $0x30] sm:$0xff] }
 0xc31   : > { %v5637_v39 = vpop.permute.xlu1 %5636  ;;  %v5912_v13 = vld [vmem:[#allocation7 + $0x31] sm:$0xff]  ;;  %5900 = vst.msk [vmem:[#allocation14 + $0x18] sm:$0xff] %vm1439_vm4, %v5888_v29 }
 0xc32   : > { %v5635_v0 = vpop.permute.xlu0 %5634  ;;  %v5984_v53 = vld [vmem:[#allocation7 + $0x32] sm:$0xff]  ;;  %v5697_v8 = vadd.f32 %v5637_v39, %v5599_v48 }
 0xc33   : > { %5939 = vrot.lane.b32.xlu1 %v5912_v13, %s7339_s23  ;;  %v6056_v59 = vld [vmem:[#allocation7 + $0x33] sm:$0xff]  ;;  %v5696_v18 = vadd.f32 %v5635_v0, %v5598_v5 }
 0xc34   : > { %6151 = vrot.lane.b32.xlu0 %v6126_v33, %s7335_s7  ;;  %v6128_v31 = vld [vmem:[#allocation7 + $0x34] sm:$0xff] }
 0xc35   : > { %v9985_v23 = vpop.permute.xlu1 %5542 }
 0xc36   : > { %v9988_v61 = vpop.permute.xlu0 %5540 }
 0xc37   : > { %6011 = vrot.lane.b32.xlu1 %v5984_v53, %s7340_s28 }
 0xc38   : > { %6009 = vrot.lane.b32.xlu0 %v5983_v47, %s7340_s28 }
 0xc39   : > { %v5731_v22 = vpop.permute.xlu1 %5730 }
 0xc3a   : > { %v5793_v40 = vadd.f32 %v5731_v22, %v5695_v17  ;;  %v5729_v35 = vpop.permute.xlu0 %5728  ;;  %v5503_v17 = vadd.f32 %v9691_v46, %v9952_v7 }
 0xc3b   : > { %v5792_v4 = vadd.f32 %v5729_v35, %v5694_v1  ;;  %6083 = vrot.lane.b32.xlu1 %v6056_v59, %s7341_s6 }
 0xc3c   : > { %v5822_v44 = vadd.f32 %v9850_v54, %v5793_v40  ;;  %6081 = vrot.lane.b32.xlu0 %v6055_v26, %s7341_s6  ;;  %v5502_v40 = vadd.f32 %v9954_v38, %v9695_v52  ;;  %v5601_v59 = vadd.f32 %v9985_v23, %v5503_v17  ;;  %v5504_v23 = vadd.f32 %v9974_v55, %v9717_v41 }
 0xc3d   : > { %v5821_v60 = vadd.f32 %v9850_v54, %v5792_v4  ;;  %v10001_v25 = vpop.permute.xlu1 %5546 }
 0xc3e   : > { %v5846_v37 = vmax.f32 %v5822_v44, 0.0  ;;  %v10004_v63 = vpop.permute.xlu0 %5544  ;;  %v5600_v26 = vadd.f32 %v9988_v61, %v5502_v40 }
 0xc3f   : > { %v5845_v49 = vmax.f32 %v5821_v60, 0.0  ;;  %v5505_v60 = vadd.f32 %v9715_v27, %v9972_v36 }
 0xc40   : > { %5870 = vst.msk [vmem:[#allocation7 + $0x48] sm:$0xff] %vm1439_vm4, %v5846_v37  ;;  %6153 = vrot.lane.b32.xlu0 %v6127_v20, %s7335_s7 }
 0xc41   : > { %5869 = vst.msk [vmem:[#allocation7 + $0x40] sm:$0xff] %vm1439_vm4, %v5845_v49  ;;  %v5735_v51 = vpop.permute.xlu1 %5734  ;;  %v5603_v5 = vadd.f32 %v10001_v25, %v5505_v60 }
 0xc42   : > { %v5795_v62 = vadd.f32 %v5735_v51, %v5697_v8  ;;  %v5733_v14 = vpop.permute.xlu0 %5732  ;;  %v5602_v8 = vadd.f32 %v10004_v63, %v5504_v23 }
 0xc43   : > { %v5794_v50 = vadd.f32 %v5733_v14, %v5696_v18 }
 0xc44   : > { %v5824_v16 = vadd.f32 %v9850_v54, %v5795_v62  ;;  %6155 = vrot.lane.b32.xlu0 %v6128_v31, %s7335_s7 }
 0xc45   : > { %v5823_v30 = vadd.f32 %v9850_v54, %v5794_v50  ;;  %v10013_v3 = vpop.permute.xlu1 %5452 }
 0xc46   : > { %v5848_v32 = vmax.f32 %v5824_v16, 0.0  ;;  %v10015_v10 = vpop.permute.xlu0 %5450 }
 0xc47   : > { %v5847_v24 = vmax.f32 %v5823_v30, 0.0 }
 0xc48   : > { %5872 = vst.msk [vmem:[#allocation7 + $0x58] sm:$0xff] %vm1439_vm4, %v5848_v32  ;;  %v5985_v9 = vld [vmem:[#allocation7 + $0x42] sm:$0xff] }
 0xc49   : > { %v5913_v2 = vld [vmem:[#allocation7 + $0x41] sm:$0xff]  ;;  %5871 = vst.msk [vmem:[#allocation7 + $0x50] sm:$0xff] %vm1439_vm4, %v5847_v24  ;;  %v5641_v39 = vpop.permute.xlu1 %5640  ;;  %6013 = vrot.lane.b32.xlu0 %v5985_v9, %s7340_s28 }
 0xc4a   : > { %5941 = vrot.lane.b32.xlu1 %v5913_v2, %s7339_s23  ;;  %v5889_v29 = vld [vmem:[#allocation7 + $0x40] sm:$0xff]  ;;  %v5639_v0 = vpop.permute.xlu0 %5638  ;;  %v5699_v6 = vadd.f32 %v5641_v39, %v5601_v59 }
 0xc4b   : > { %5901 = vst.msk [vmem:[#allocation14 + $0x20] sm:$0xff] %vm1439_vm4, %v5889_v29  ;;  %v6057_v13 = vld [vmem:[#allocation7 + $0x43] sm:$0xff]  ;;  %v5698_v46 = vadd.f32 %v5639_v0, %v5600_v26 }
 0xc4c   : > { %v6129_v43 = vld [vmem:[#allocation7 + $0x44] sm:$0xff] }
 0xc4d   : > { %v10022_v33 = vpop.permute.xlu1 %5456  ;;  %6085 = vrot.lane.b32.xlu0 %v6057_v13, %s7341_s6 }
 0xc4e   : > { %v10025_v34 = vpop.permute.xlu0 %5454 }
 0xc50   : > { %v5914_v57 = vld [vmem:[#allocation7 + $0x51] sm:$0xff] }
 0xc51   : > { %v5645_v53 = vpop.permute.xlu1 %5644  ;;  %6157 = vrot.lane.b32.xlu0 %v6129_v43, %s7335_s7  ;;  %5943 = vrot.lane.b32.xlu1 %v5914_v57, %s7339_s23  ;;  %v5890_v45 = vld [vmem:[#allocation7 + $0x50] sm:$0xff] }
 0xc52   : > { %v5643_v47 = vpop.permute.xlu0 %5642  ;;  %5902 = vst.msk [vmem:[#allocation14 + $0x28] sm:$0xff] %vm1439_vm4, %v5890_v45  ;;  %v6130_v1 = vld [vmem:[#allocation7 + $0x54] sm:$0xff]  ;;  %v5701_v51 = vadd.f32 %v5645_v53, %v5603_v5 }
 0xc53   : > { %v5986_v22 = vld [vmem:[#allocation7 + $0x52] sm:$0xff]  ;;  %v5700_v27 = vadd.f32 %v5643_v47, %v5602_v8  ;;  %v5507_v47 = vadd.f32 %v9727_v19, %v10013_v3 }
 0xc54   : > { %v6058_v44 = vld [vmem:[#allocation7 + $0x53] sm:$0xff] }
 0xc55   : > { %v10034_v35 = vpop.permute.xlu1 %5550  ;;  %6159 = vrot.lane.b32.xlu0 %v6130_v1, %s7335_s7  ;;  %6015 = vrot.lane.b32.xlu1 %v5986_v22, %s7340_s28  ;;  %v5506_v22 = vadd.f32 %v10015_v10, %v9729_v21  ;;  %v5509_v21 = vadd.f32 %v9739_v28, %v10022_v33 }
 0xc56   : > { %v10039_v4 = vpop.permute.xlu0 %5548  ;;  %v5605_v59 = vadd.f32 %v10034_v35, %v5507_v47  ;;  %v5508_v35 = vadd.f32 %v10025_v34, %v9741_v56 }
 0xc59   : > { %v5739_v7 = vpop.permute.xlu1 %5738  ;;  %6087 = vrot.lane.b32.xlu1 %v6058_v44, %s7341_s6 }
 0xc5a   : > { %v5797_v42 = vadd.f32 %v5739_v7, %v5699_v6  ;;  %v5737_v52 = vpop.permute.xlu0 %5736  ;;  %v5604_v6 = vadd.f32 %v10039_v4, %v5506_v22 }
 0xc5b   : > { %v5796_v38 = vadd.f32 %v5737_v52, %v5698_v46 }
 0xc5c   : > { %v5826_v48 = vadd.f32 %v9850_v54, %v5797_v42 }
 0xc5d   : > { %v5825_v37 = vadd.f32 %v9850_v54, %v5796_v38  ;;  %v10049_v61 = vpop.permute.xlu1 %5554 }
 0xc5e   : > { %v5850_v49 = vmax.f32 %v5826_v48, 0.0  ;;  %v10052_v20 = vpop.permute.xlu0 %5552  ;;  %v5607_v60 = vadd.f32 %v10049_v61, %v5509_v21 }
 0xc5f   : > { %v5849_v18 = vmax.f32 %v5825_v37, 0.0  ;;  %v5606_v37 = vadd.f32 %v10052_v20, %v5508_v35 }
 0xc60   : > { %5874 = vst.msk [vmem:[#allocation7 + $0x68] sm:$0xff] %vm1439_vm4, %v5850_v49 }
 0xc61   : > { %5873 = vst.msk [vmem:[#allocation7 + $0x60] sm:$0xff] %vm1439_vm4, %v5849_v18  ;;  %v5743_v36 = vpop.permute.xlu1 %5742 }
 0xc62   : > { %v5799_v41 = vadd.f32 %v5743_v36, %v5701_v51  ;;  %v5741_v55 = vpop.permute.xlu0 %5740 }
 0xc63   : > { %v5798_v62 = vadd.f32 %v5741_v55, %v5700_v27 }
 0xc64   : > { %v5828_v14 = vadd.f32 %v9850_v54, %v5799_v41 }
 0xc65   : > { %v5827_v25 = vadd.f32 %v9850_v54, %v5798_v62  ;;  %v10059_v50 = vpop.permute.xlu1 %5460 }
 0xc66   : > { %v5852_v31 = vmax.f32 %v5828_v14, 0.0  ;;  %v10061_v16 = vpop.permute.xlu0 %5458  ;;  %v5511_v20 = vadd.f32 %v9751_v11, %v10059_v50 }
 0xc67   : > { %v5851_v63 = vmax.f32 %v5827_v25, 0.0  ;;  %v5510_v14 = vadd.f32 %v10061_v16, %v9753_v58 }
 0xc68   : > { %5876 = vst.msk [vmem:[#allocation7 + $0x78] sm:$0xff] %vm1439_vm4, %v5852_v31  ;;  %v5987_v30 = vld [vmem:[#allocation7 + $0x62] sm:$0xff] }
 0xc69   : > { %v5915_v32 = vld [vmem:[#allocation7 + $0x61] sm:$0xff]  ;;  %5875 = vst.msk [vmem:[#allocation7 + $0x70] sm:$0xff] %vm1439_vm4, %v5851_v63  ;;  %v5649_v24 = vpop.permute.xlu1 %5648  ;;  %6017 = vrot.lane.b32.xlu0 %v5987_v30, %s7340_s28 }
 0xc6a   : > { %5945 = vrot.lane.b32.xlu1 %v5915_v32, %s7339_s23  ;;  %v5891_v9 = vld [vmem:[#allocation7 + $0x60] sm:$0xff]  ;;  %v5647_v2 = vpop.permute.xlu0 %5646  ;;  %v5703_v44 = vadd.f32 %v5649_v24, %v5605_v59 }
 0xc6b   : > { %5903 = vst.msk [vmem:[#allocation14 + $0x30] sm:$0xff] %vm1439_vm4, %v5891_v9  ;;  %v6059_v39 = vld [vmem:[#allocation7 + $0x63] sm:$0xff]  ;;  %v5702_v7 = vadd.f32 %v5647_v2, %v5604_v6 }
 0xc6c   : > { %v6131_v13 = vld [vmem:[#allocation7 + $0x64] sm:$0xff] }
 0xc6d   : > { %v10068_v29 = vpop.permute.xlu1 %5464  ;;  %6089 = vrot.lane.b32.xlu0 %v6059_v39, %s7341_s6 }
 0xc6e   : > { %v10071_v0 = vpop.permute.xlu0 %5462  ;;  %v5513_v50 = vadd.f32 %v9763_v15, %v10068_v29 }
 0xc6f   : > { %v5512_v58 = vadd.f32 %v10071_v0, %v9765_v12 }
 0xc70   : > { %v5916_v43 = vld [vmem:[#allocation7 + $0x71] sm:$0xff] }
 0xc71   : > { %v5653_v57 = vpop.permute.xlu1 %5652  ;;  %6161 = vrot.lane.b32.xlu0 %v6131_v13, %s7335_s7  ;;  %5947 = vrot.lane.b32.xlu1 %v5916_v43, %s7339_s23  ;;  %v5892_v53 = vld [vmem:[#allocation7 + $0x70] sm:$0xff] }
 0xc72   : > { %v5651_v45 = vpop.permute.xlu0 %5650  ;;  %5904 = vst.msk [vmem:[#allocation14 + $0x38] sm:$0xff] %vm1439_vm4, %v5892_v53  ;;  %v6132_v17 = vld [vmem:[#allocation7 + $0x74] sm:$0xff]  ;;  %v5705_v49 = vadd.f32 %v5653_v57, %v5607_v60 }
 0xc73   : > { %v5988_v1 = vld [vmem:[#allocation7 + $0x72] sm:$0xff]  ;;  %v5704_v8 = vadd.f32 %v5651_v45, %v5606_v37 }
 0xc74   : > { %v6060_v46 = vld [vmem:[#allocation7 + $0x73] sm:$0xff] }
 0xc75   : > { %v5559_v40 = vpop.permute.xlu1 %5558  ;;  %6163 = vrot.lane.b32.xlu0 %v6132_v17, %s7335_s7  ;;  %6019 = vrot.lane.b32.xlu1 %v5988_v1, %s7340_s28 }
 0xc76   : > { %v5557_v26 = vpop.permute.xlu0 %5556  ;;  %v5609_v63 = vadd.f32 %v5559_v40, %v5511_v20 }
 0xc77   : > { %v5608_v11 = vadd.f32 %v5557_v26, %v5510_v14 }
 0xc79   : > { %v5747_v42 = vpop.permute.xlu1 %5746  ;;  %6091 = vrot.lane.b32.xlu1 %v6060_v46, %s7341_s6 }
 0xc7a   : > { %v5801_v19 = vadd.f32 %v5747_v42, %v5703_v44  ;;  %v5745_v3 = vpop.permute.xlu0 %5744 }
 0xc7b   : > { %v5800_v52 = vadd.f32 %v5745_v3, %v5702_v7 }
 0xc7c   : > { %v5830_v10 = vadd.f32 %v9850_v54, %v5801_v19 }
 0xc7d   : > { %v5829_v38 = vadd.f32 %v9850_v54, %v5800_v52  ;;  %v5563_v4 = vpop.permute.xlu1 %5562 }
 0xc7e   : > { %v5854_v48 = vmax.f32 %v5830_v10, 0.0  ;;  %v5561_v23 = vpop.permute.xlu0 %5560  ;;  %v5611_v2 = vadd.f32 %v5563_v4, %v5513_v50 }
 0xc7f   : > { %v5853_v5 = vmax.f32 %v5829_v38, 0.0  ;;  %v5610_v43 = vadd.f32 %v5561_v23, %v5512_v58 }
 0xc80   : > { %5878 = vst.msk [vmem:[#allocation7 + $0x88] sm:$0xff] %vm1439_vm4, %v5854_v48 }
 0xc81   : > { %5877 = vst.msk [vmem:[#allocation7 + $0x80] sm:$0xff] %vm1439_vm4, %v5853_v5  ;;  %v5751_v28 = vpop.permute.xlu1 %5750 }
 0xc82   : > { %v5803_v33 = vadd.f32 %v5751_v28, %v5705_v49  ;;  %v5749_v18 = vpop.permute.xlu0 %5748 }
 0xc83   : > { %v5802_v56 = vadd.f32 %v5749_v18, %v5704_v8 }
 0xc84   : > { %v5832_v34 = vadd.f32 %v9850_v54, %v5803_v33 }
 0xc85   : > { %v5831_v51 = vadd.f32 %v9850_v54, %v5802_v56  ;;  %v5657_v61 = vpop.permute.xlu1 %5656 }
 0xc86   : > { %v5856_v27 = vmax.f32 %v5832_v34, 0.0  ;;  %v5655_v36 = vpop.permute.xlu0 %5654  ;;  %v5707_v32 = vadd.f32 %v5657_v61, %v5609_v63 }
 0xc87   : > { %v5855_v41 = vmax.f32 %v5831_v51, 0.0  ;;  %v5706_v16 = vadd.f32 %v5655_v36, %v5608_v11 }
 0xc88   : > { %5880 = vst.msk [vmem:[#allocation7 + $0x98] sm:$0xff] %vm1439_vm4, %v5856_v27  ;;  %v5989_v55 = vld [vmem:[#allocation7 + $0x82] sm:$0xff] }
 0xc89   : > { %v5917_v62 = vld [vmem:[#allocation7 + $0x81] sm:$0xff]  ;;  %5879 = vst.msk [vmem:[#allocation7 + $0x90] sm:$0xff] %vm1439_vm4, %v5855_v41  ;;  %v5661_v25 = vpop.permute.xlu1 %5660  ;;  %6021 = vrot.lane.b32.xlu0 %v5989_v55, %s7340_s28 }
 0xc8a   : > { %5949 = vrot.lane.b32.xlu1 %v5917_v62, %s7339_s23  ;;  %v5893_v31 = vld [vmem:[#allocation7 + $0x80] sm:$0xff]  ;;  %v5659_v30 = vpop.permute.xlu0 %5658  ;;  %v5709_v53 = vadd.f32 %v5661_v25, %v5611_v2 }
 0xc8b   : > { %5905 = vst.msk [vmem:[#allocation14 + $0x40] sm:$0xff] %vm1439_vm4, %v5893_v31  ;;  %v6061_v24 = vld [vmem:[#allocation7 + $0x83] sm:$0xff]  ;;  %v5708_v15 = vadd.f32 %v5659_v30, %v5610_v43 }
 0xc8c   : > { %v6133_v47 = vld [vmem:[#allocation7 + $0x84] sm:$0xff] }
 0xc8d   : > { %v5755_v9 = vpop.permute.xlu1 %5754  ;;  %6093 = vrot.lane.b32.xlu0 %v6061_v24, %s7341_s6 }
 0xc8e   : > { %v5805_v39 = vadd.f32 %v5755_v9, %v5707_v32  ;;  %v5753_v13 = vpop.permute.xlu0 %5752 }
 0xc8f   : > { %v5804_v57 = vadd.f32 %v5753_v13, %v5706_v16 }
 0xc90   : > { %v5834_v45 = vadd.f32 %v9850_v54, %v5805_v39  ;;  %v5918_v17 = vld [vmem:[#allocation7 + $0x91] sm:$0xff] }
 0xc91   : > { %v5833_v29 = vadd.f32 %v9850_v54, %v5804_v57  ;;  %v5759_v1 = vpop.permute.xlu1 %5758  ;;  %6165 = vrot.lane.b32.xlu0 %v6133_v47, %s7335_s7  ;;  %5951 = vrot.lane.b32.xlu1 %v5918_v17, %s7339_s23  ;;  %v5894_v12 = vld [vmem:[#allocation7 + $0x90] sm:$0xff] }
 0xc92   : > { %v5858_v0 = vmax.f32 %v5834_v45, 0.0  ;;  %v5807_v22 = vadd.f32 %v5759_v1, %v5709_v53  ;;  %v5757_v40 = vpop.permute.xlu0 %5756  ;;  %5906 = vst.msk [vmem:[#allocation14 + $0x48] sm:$0xff] %vm1439_vm4, %v5894_v12  ;;  %v6134_v44 = vld [vmem:[#allocation7 + $0x94] sm:$0xff] }
 0xc93   : > { %v5857_v59 = vmax.f32 %v5833_v29, 0.0  ;;  %v5806_v26 = vadd.f32 %v5757_v40, %v5708_v15  ;;  %v5990_v46 = vld [vmem:[#allocation7 + $0x92] sm:$0xff] }
 0xc94   : > { %5882 = vst.msk [vmem:[#allocation7 + $0xa8] sm:$0xff] %vm1439_vm4, %v5858_v0  ;;  %v5836_v6 = vadd.f32 %v9850_v54, %v5807_v22  ;;  %v6062_v21 = vld [vmem:[#allocation7 + $0x93] sm:$0xff] }
 0xc95   : > { %5881 = vst.msk [vmem:[#allocation7 + $0xa0] sm:$0xff] %vm1439_vm4, %v5857_v59  ;;  %v5835_v7 = vadd.f32 %v9850_v54, %v5806_v26  ;;  %v5936_v42 = vpop.permute.xlu1 %5935  ;;  %6167 = vrot.lane.b32.xlu0 %v6134_v44, %s7335_s7  ;;  %6023 = vrot.lane.b32.xlu1 %v5990_v46, %s7340_s28 }
 0xc96   : > { %v5860_v19 = vmax.f32 %v5836_v6, 0.0  ;;  %5970 = vst.msk [vmem:[#allocation14 + $0x8] sm:$0xff] %vm1697_vm8, %v5936_v42  ;;  %v5934_v3 = vpop.permute.xlu0 %5933 }
 0xc97   : > { %v5859_v52 = vmax.f32 %v5835_v7, 0.0  ;;  %5969 = vst.msk [vmem:[#allocation14] sm:$0xff] %vm1697_vm8, %v5934_v3 }
 0xc98   : > { %5884 = vst.msk [vmem:[#allocation7 + $0xb8] sm:$0xff] %vm1439_vm4, %v5860_v19 }
 0xc99   : > { %5883 = vst.msk [vmem:[#allocation7 + $0xb0] sm:$0xff] %vm1439_vm4, %v5859_v52  ;;  %v6008_v10 = vpop.permute.xlu1 %6007  ;;  %6095 = vrot.lane.b32.xlu1 %v6062_v21, %s7341_s6 }
 0xc9a   : > { %6042 = vst.msk [vmem:[#allocation14 + $0x8] sm:$0xff] %vm1891_vm10, %v6008_v10  ;;  %v6006_v54 = vpop.permute.xlu0 %6005 }
 0xc9b   : > { %6041 = vst.msk [vmem:[#allocation14] sm:$0xff] %vm1891_vm10, %v6006_v54 }
 0xc9c   : > { %v5991_v35 = vld [vmem:[#allocation7 + $0xa2] sm:$0xff] }
 0xc9d   : > { %v5919_v38 = vld [vmem:[#allocation7 + $0xa1] sm:$0xff]  ;;  %v6080_v4 = vpop.permute.xlu1 %6079  ;;  %6025 = vrot.lane.b32.xlu0 %v5991_v35, %s7340_s28 }
 0xc9e   : > { %5953 = vrot.lane.b32.xlu1 %v5919_v38, %s7339_s23  ;;  %v5895_v60 = vld [vmem:[#allocation7 + $0xa0] sm:$0xff]  ;;  %6114 = vst.msk [vmem:[#allocation14 + $0x8] sm:$0xff] %vm2085_vm12, %v6080_v4  ;;  %v6078_v48 = vpop.permute.xlu0 %6077 }
 0xc9f   : > { %5907 = vst.msk [vmem:[#allocation14 + $0x50] sm:$0xff] %vm1439_vm4, %v5895_v60  ;;  %v6063_v23 = vld [vmem:[#allocation7 + $0xa3] sm:$0xff] }
 0xca0   : > { %6113 = vst.msk [vmem:[#allocation14] sm:$0xff] %vm2085_vm12, %v6078_v48  ;;  %v5920_v37 = vld [vmem:[#allocation7 + $0xb1] sm:$0xff]  ;;  %v6135_v28 = vld [vmem:[#allocation7 + $0xa4] sm:$0xff] }
 0xca1   : > { %v5938_v5 = vpop.permute.xlu1 %5937  ;;  %6097 = vrot.lane.b32.xlu0 %v6063_v23, %s7341_s6  ;;  %v5896_v49 = vld [vmem:[#allocation7 + $0xb0] sm:$0xff] }
 0xca2   : > { %5955 = vrot.lane.b32.xlu1 %v5920_v37, %s7339_s23  ;;  %5971 = vst.msk [vmem:[#allocation14 + $0x10] sm:$0xff] %vm1697_vm8, %v5938_v5  ;;  %v6150_v8 = vpop.permute.xlu0 %6149  ;;  %v5992_v33 = vld [vmem:[#allocation7 + $0xb2] sm:$0xff]  ;;  %s7349_s23 = smov 122  }
 0xca3   : > { %5908 = vst.msk [vmem:[#allocation14 + $0x58] sm:$0xff] %vm1439_vm4, %v5896_v49  ;;  %v6064_v34 = vld [vmem:[#allocation7 + $0xb3] sm:$0xff]  ;;  %vm6535_vm4 = vcmask 23552  }
 0xca4   : > { %6185 = vst.msk [vmem:[#allocation14] sm:$0xff] %vm2279_vm13, %v6150_v8  ;;  %v6136_v36 = vld [vmem:[#allocation7 + $0xb4] sm:$0xff] }
 0xca5   : > { %v5940_v18 = vpop.permute.xlu1 %5939  ;;  %6169 = vrot.lane.b32.xlu0 %v6135_v28, %s7335_s7 }
 0xca6   : > { %6027 = vrot.lane.b32.xlu1 %v5992_v33, %s7340_s28  ;;  %5972 = vst.msk [vmem:[#allocation14 + $0x18] sm:$0xff] %vm1697_vm8, %v5940_v18  ;;  %v6152_v56 = vpop.permute.xlu0 %6151  ;;  %s7350_s28 = smov 119  }
 0xca7   : > { %6186 = vst.msk [vmem:[#allocation14 + $0x8] sm:$0xff] %vm2279_vm13, %v6152_v56 }
 0xca9   : > { %v6012_v51 = vpop.permute.xlu1 %6011 }
 0xcaa   : > { %6099 = vrot.lane.b32.xlu1 %v6064_v34, %s7341_s6  ;;  %6044 = vst.msk [vmem:[#allocation14 + $0x18] sm:$0xff] %vm1891_vm10, %v6012_v51  ;;  %v6010_v61 = vpop.permute.xlu0 %6009  ;;  %s7351_s6 = smov 116  }
 0xcab   : > { %v6197_v27 = vld [vmem:[#allocation14] sm:$0xff]  ;;  %6043 = vst.msk [vmem:[#allocation14 + $0x10] sm:$0xff] %vm1891_vm10, %v6010_v61 }
 0xcac   : > { %7164 = vmatprep.mubr.msk.f32.mxu1 %vm2350_vm14, %v6197_v27 }
 0xcad   : > { %v6084_v41 = vpop.permute.xlu1 %6083 }
 0xcae   : > { %6171 = vrot.lane.b32.xlu1 %v6136_v36, %s7335_s7  ;;  %6116 = vst.msk [vmem:[#allocation14 + $0x18] sm:$0xff] %vm2085_vm12, %v6084_v41  ;;  %v6082_v20 = vpop.permute.xlu0 %6081  ;;  %v6198_v55 = vld [vmem:[#allocation14 + $0x8] sm:$0xff]  ;;  %s7348_s7 = smov 125  }
 0xcaf   : > { %6115 = vst.msk [vmem:[#allocation14 + $0x10] sm:$0xff] %vm2085_vm12, %v6082_v20  ;;  %7165 = vmatmul.mubr.msk.f32.vlgmr.msra.gmra.mrb[68].mxu1 %vm2350_vm14, %v6198_v55 }
 0xcb2   : > { %v6154_v62 = vpop.permute.xlu0 %6153 }
 0xcb3   : > { %6187 = vst.msk [vmem:[#allocation14 + $0x10] sm:$0xff] %vm2279_vm13, %v6154_v62 }
 0xcb6   : > { %v6156_v14 = vpop.permute.xlu0 %6155 }
 0xcb7   : > { %6188 = vst.msk [vmem:[#allocation14 + $0x18] sm:$0xff] %vm2279_vm13, %v6156_v14 }
 0xcba   : > { %v6199_v25 = vld [vmem:[#allocation14 + $0x10] sm:$0xff] }
 0xcbb   : > { %7167 = vmatprep.mubr.msk.f32.mxu1 %vm2350_vm14, %v6199_v25  ;;  %v6014_v63 = vpop.permute.xlu0 %6013 }
 0xcbc   : > { %v5942_v31 = vpop.permute.xlu1 %5941 }
 0xcbd   : > { %5973 = vst.msk [vmem:[#allocation14 + $0x20] sm:$0xff] %vm1697_vm8, %v5942_v31 }
 0xcbe   : > { %6045 = vst.msk [vmem:[#allocation14 + $0x20] sm:$0xff] %vm1891_vm10, %v6014_v63  ;;  %v6200_v30 = vld [vmem:[#allocation14 + $0x18] sm:$0xff] }
 0xcbf   : > { %7168 = vmatmul.mubr.msk.f32.gmra.mrb[70].mxu1 %vm2350_vm14, %v6200_v30  ;;  %v6086_v11 = vpop.permute.xlu0 %6085 }
 0xcc0   : > { %6117 = vst.msk [vmem:[#allocation14 + $0x20] sm:$0xff] %vm2085_vm12, %v6086_v11 }
 0xcc3   : > { %v5944_v50 = vpop.permute.xlu1 %5943  ;;  %v6158_v32 = vpop.permute.xlu0 %6157 }
 0xcc4   : > { %5974 = vst.msk [vmem:[#allocation14 + $0x28] sm:$0xff] %vm1697_vm8, %v5944_v50 }
 0xcc5   : > { %6189 = vst.msk [vmem:[#allocation14 + $0x20] sm:$0xff] %vm2279_vm13, %v6158_v32 }
 0xcc7   : > { %v6016_v24 = vpop.permute.xlu1 %6015  ;;  %v6160_v9 = vpop.permute.xlu0 %6159 }
 0xcc8   : > { %6046 = vst.msk [vmem:[#allocation14 + $0x28] sm:$0xff] %vm1891_vm10, %v6016_v24 }
 0xccb   : > { %v6088_v58 = vpop.permute.xlu1 %6087 }
 0xccc   : > { %v6201_v16 = vld [vmem:[#allocation14 + $0x20] sm:$0xff]  ;;  %6118 = vst.msk [vmem:[#allocation14 + $0x28] sm:$0xff] %vm2085_vm12, %v6088_v58 }
 0xccd   : > { %7170 = vmatprep.mubr.msk.f32.mxu1 %vm2350_vm14, %v6201_v16  ;;  %6190 = vst.msk [vmem:[#allocation14 + $0x28] sm:$0xff] %vm2279_vm13, %v6160_v9  ;;  %v10257_v58 = vld [vmem:[%s10299_s2 + $0x6] ss:$0 sm:$0xff] }
 0xcd4   : > { %v6202_v2 = vld [vmem:[#allocation14 + $0x28] sm:$0xff] }
 0xcd5   : > { %7171 = vmatmul.mubr.msk.f32.gmra.mrb[72].mxu1 %vm2350_vm14, %v6202_v2 }
 0xcdb   : > { %v6018_v13 = vpop.permute.xlu0 %6017 }
 0xcdc   : > { %v5946_v39 = vpop.permute.xlu1 %5945 }
 0xcdd   : > { %5975 = vst.msk [vmem:[#allocation14 + $0x30] sm:$0xff] %vm1697_vm8, %v5946_v39 }
 0xcde   : > { %6047 = vst.msk [vmem:[#allocation14 + $0x30] sm:$0xff] %vm1891_vm10, %v6018_v13 }
 0xcdf   : > { %v6090_v43 = vpop.permute.xlu0 %6089 }
 0xce0   : > { %6119 = vst.msk [vmem:[#allocation14 + $0x30] sm:$0xff] %vm2085_vm12, %v6090_v43 }
 0xce3   : > { %v5948_v57 = vpop.permute.xlu1 %5947  ;;  %v6162_v53 = vpop.permute.xlu0 %6161 }
 0xce4   : > { %5976 = vst.msk [vmem:[#allocation14 + $0x38] sm:$0xff] %vm1697_vm8, %v5948_v57 }
 0xce5   : > { %6191 = vst.msk [vmem:[#allocation14 + $0x30] sm:$0xff] %vm2279_vm13, %v6162_v53 }
 0xce7   : > { %v6020_v45 = vpop.permute.xlu1 %6019  ;;  %v6164_v15 = vpop.permute.xlu0 %6163 }
 0xce8   : > { %6048 = vst.msk [vmem:[#allocation14 + $0x38] sm:$0xff] %vm1891_vm10, %v6020_v45 }
 0xceb   : > { %v6092_v47 = vpop.permute.xlu1 %6091 }
 0xcec   : > { %v6203_v17 = vld [vmem:[#allocation14 + $0x30] sm:$0xff]  ;;  %6120 = vst.msk [vmem:[#allocation14 + $0x38] sm:$0xff] %vm2085_vm12, %v6092_v47 }
 0xced   : > { %7173 = vmatprep.mubr.msk.f32.mxu1 %vm2350_vm14, %v6203_v17  ;;  %6192 = vst.msk [vmem:[#allocation14 + $0x38] sm:$0xff] %vm2279_vm13, %v6164_v15 }
 0xcf4   : > { %v6204_v29 = vld [vmem:[#allocation14 + $0x38] sm:$0xff] }
 0xcf5   : > { %7174 = vmatmul.mubr.msk.f32.gmra.mrb[74].mxu1 %vm2350_vm14, %v6204_v29 }
 0xcfb   : > { %v6022_v12 = vpop.permute.xlu0 %6021 }
 0xcfc   : > { %v5950_v1 = vpop.permute.xlu1 %5949 }
 0xcfd   : > { %5977 = vst.msk [vmem:[#allocation14 + $0x40] sm:$0xff] %vm1697_vm8, %v5950_v1 }
 0xcfe   : > { %6049 = vst.msk [vmem:[#allocation14 + $0x40] sm:$0xff] %vm1891_vm10, %v6022_v12 }
 0xcff   : > { %v6094_v0 = vpop.permute.xlu0 %6093 }
 0xd00   : > { %6121 = vst.msk [vmem:[#allocation14 + $0x40] sm:$0xff] %vm2085_vm12, %v6094_v0 }
 0xd03   : > { %v5952_v22 = vpop.permute.xlu1 %5951  ;;  %v6166_v40 = vpop.permute.xlu0 %6165 }
 0xd04   : > { %5978 = vst.msk [vmem:[#allocation14 + $0x48] sm:$0xff] %vm1697_vm8, %v5952_v22 }
 0xd05   : > { %6193 = vst.msk [vmem:[#allocation14 + $0x40] sm:$0xff] %vm2279_vm13, %v6166_v40 }
 0xd07   : > { %v6024_v59 = vpop.permute.xlu1 %6023  ;;  %v6168_v26 = vpop.permute.xlu0 %6167 }
 0xd08   : > { %6050 = vst.msk [vmem:[#allocation14 + $0x48] sm:$0xff] %vm1891_vm10, %v6024_v59 }
 0xd0b   : > { %v6096_v6 = vpop.permute.xlu1 %6095 }
 0xd0c   : > { %v6205_v44 = vld [vmem:[#allocation14 + $0x40] sm:$0xff]  ;;  %6122 = vst.msk [vmem:[#allocation14 + $0x48] sm:$0xff] %vm2085_vm12, %v6096_v6 }
 0xd0d   : > { %7176 = vmatprep.mubr.msk.f32.mxu1 %vm2350_vm14, %v6205_v44  ;;  %6194 = vst.msk [vmem:[#allocation14 + $0x48] sm:$0xff] %vm2279_vm13, %v6168_v26 }
 0xd0f   : > { %v6026_v7 = vpop.permute.xlu0 %6025 }
 0xd10   : > { %v5954_v46 = vpop.permute.xlu1 %5953 }
 0xd11   : > { %5979 = vst.msk [vmem:[#allocation14 + $0x50] sm:$0xff] %vm1697_vm8, %v5954_v46 }
 0xd12   : > { %6051 = vst.msk [vmem:[#allocation14 + $0x50] sm:$0xff] %vm1891_vm10, %v6026_v7 }
 0xd13   : > { %v6098_v19 = vpop.permute.xlu0 %6097 }
 0xd14   : > { %v5956_v42 = vpop.permute.xlu1 %5955  ;;  %6123 = vst.msk [vmem:[#allocation14 + $0x50] sm:$0xff] %vm2085_vm12, %v6098_v19  ;;  %v6206_v3 = vld [vmem:[#allocation14 + $0x48] sm:$0xff] }
 0xd15   : > { %5980 = vst.msk [vmem:[#allocation14 + $0x58] sm:$0xff] %vm1697_vm8, %v5956_v42  ;;  %7177 = vmatmul.mubr.msk.f32.gmra.mrb[76].mxu1 %vm2350_vm14, %v6206_v3 }
 0xd17   : > { %v6170_v21 = vpop.permute.xlu0 %6169 }
 0xd18   : > { %v6028_v52 = vpop.permute.xlu1 %6027  ;;  %6195 = vst.msk [vmem:[#allocation14 + $0x50] sm:$0xff] %vm2279_vm13, %v6170_v21 }
 0xd19   : > { %6052 = vst.msk [vmem:[#allocation14 + $0x58] sm:$0xff] %vm1891_vm10, %v6028_v52 }
 0xd1c   : > { %v6100_v10 = vpop.permute.xlu1 %6099 }
 0xd1d   : > { %6124 = vst.msk [vmem:[#allocation14 + $0x58] sm:$0xff] %vm2085_vm12, %v6100_v10 }
 0xd1f   : > { %v6207_v35 = vld [vmem:[#allocation14 + $0x50] sm:$0xff] }
 0xd20   : > { %v6172_v54 = vpop.permute.xlu1 %6171  ;;  %7179 = vmatprep.mubr.msk.f32.mxu1 %vm2350_vm14, %v6207_v35 }
 0xd21   : > { %6196 = vst.msk [vmem:[#allocation14 + $0x58] sm:$0xff] %vm2279_vm13, %v6172_v54 }
 0xd28   : > { %v6208_v38 = vld [vmem:[#allocation14 + $0x58] sm:$0xff] }
 0xd29   : > { %7180 = vmatmul.mubr.msk.f32.gmra.mrb[78].mxu1 %vm2350_vm14, %v6208_v38 }
 0xd82   : > { %v7166_v4 = vpop.f32.mrb[68].mxu1 }
 0xd83   : > { %6383 = vrot.lane.b32.xlu0 %v7166_v4, %s7348_s7  ;;  %v6316_v60 = vpop.f32.mrb[69].mxu1 }
 0xd92   : > { %v10196_v48 = vpop.f32.mrb[70].mxu1 }
 0xd93   : > { %6418 = vrot.lane.b32.xlu1 %v10196_v48, %s7349_s23  ;;  %6387 = vrot.lane.b32.xlu0 %v10196_v48, %s7348_s7  ;;  %v10202_v23 = vpop.f32.mrb[71].mxu1 }
 0xd97   : > { %6449 = vrot.lane.b32.xlu0 %v10196_v48, %s7350_s28  ;;  %6385 = vrot.lane.b32.xlu1 %v10202_v23, %s7348_s7 }
 0xd9b   : > { %6416 = vrot.lane.b32.xlu0 %v10202_v23, %s7349_s23 }
 0xda8   : > { %v10210_v37 = vpop.f32.mrb[72].mxu1 }
 0xda9   : > { %6422 = vrot.lane.b32.xlu1 %v10210_v37, %s7349_s23  ;;  %6391 = vrot.lane.b32.xlu0 %v10210_v37, %s7348_s7  ;;  %v6336_v5 = vpop.f32.mrb[73].mxu1 }
 0xdad   : > { %6484 = vrot.lane.b32.xlu1 %v10210_v37, %s7351_s6  ;;  %6453 = vrot.lane.b32.xlu0 %v10210_v37, %s7350_s28 }
 0xdb1   : > { %6420 = vrot.lane.b32.xlu0 %v6336_v5, %s7349_s23  ;;  %6389 = vrot.lane.b32.xlu1 %v6336_v5, %s7348_s7 }
 0xdb5   : > { %6482 = vrot.lane.b32.xlu0 %v6336_v5, %s7351_s6  ;;  %6451 = vrot.lane.b32.xlu1 %v6336_v5, %s7350_s28 }
 0xdc8   : > { %v10224_v49 = vpop.f32.mrb[74].mxu1 }
 0xdc9   : > { %6426 = vrot.lane.b32.xlu1 %v10224_v49, %s7349_s23  ;;  %6395 = vrot.lane.b32.xlu0 %v10224_v49, %s7348_s7  ;;  %v10230_v8 = vpop.f32.mrb[75].mxu1 }
 0xdcd   : > { %6488 = vrot.lane.b32.xlu1 %v10224_v49, %s7351_s6  ;;  %6457 = vrot.lane.b32.xlu0 %v10224_v49, %s7350_s28 }
 0xdd1   : > { %6424 = vrot.lane.b32.xlu0 %v10230_v8, %s7349_s23  ;;  %6393 = vrot.lane.b32.xlu1 %v10230_v8, %s7348_s7 }
 0xdd5   : > { %6486 = vrot.lane.b32.xlu0 %v10230_v8, %s7351_s6  ;;  %6455 = vrot.lane.b32.xlu1 %v10230_v8, %s7350_s28 }
 0xde8   : > { %v7178_v28 = vpop.f32.mrb[76].mxu1 }
 0xde9   : > { %6461 = vrot.lane.b32.xlu0 %v7178_v28, %s7350_s28  ;;  %6430 = vrot.lane.b32.xlu1 %v7178_v28, %s7349_s23  ;;  %v6356_v33 = vpop.f32.mrb[77].mxu1 }
 0xded   : > { %6492 = vrot.lane.b32.xlu1 %v7178_v28, %s7351_s6  ;;  %6428 = vrot.lane.b32.xlu0 %v6356_v33, %s7349_s23 }
 0xdf1   : > { %6490 = vrot.lane.b32.xlu0 %v6356_v33, %s7351_s6  ;;  %6397 = vrot.lane.b32.xlu1 %v6356_v33, %s7348_s7 }
 0xdf5   : > { %6459 = vrot.lane.b32.xlu1 %v6356_v33, %s7350_s28  ;;  %v6384_v34 = vpop.permute.xlu0 %6383 }
 0xdf6   : > { %v6407_v31 = vadd.f32 %v6384_v34, %v6316_v60 }
 0xdfc   : > { %v7181_v18 = vpop.f32.mrb[78].mxu1 }
 0xdfd   : > { %v6366_v56 = vpop.f32.mrb[79].mxu1 }
 0xdfe   : > { %6494 = vrot.lane.b32.xlu0 %v6366_v56, %s7351_s6  ;;  %6463 = vrot.lane.b32.xlu1 %v6366_v56, %s7350_s28 }
 0xe02   : > { %6496 = vrot.lane.b32.xlu1 %v7181_v18, %s7351_s6 }
 0xe05   : > { %v6388_v51 = vpop.permute.xlu0 %6387  ;;  %v6419_v61 = vpop.permute.xlu1 %6418 }
 0xe06   : > { %v6409_v1 = vadd.f32 %v6388_v51, %v10202_v23 }
 0xe09   : > { %v6450_v27 = vpop.permute.xlu0 %6449  ;;  %v6386_v36 = vpop.permute.xlu1 %6385 }
 0xe0a   : > { %v6408_v63 = vadd.f32 %v7166_v4, %v6386_v36 }
 0xe0c   : > { %v6441_v32 = vadd.f32 %v6419_v61, %v6408_v63 }
 0xe0d   : > { %v6417_v41 = vpop.permute.xlu0 %6416 }
 0xe0e   : > { %v6440_v30 = vadd.f32 %v6417_v41, %v6407_v31 }
 0xe10   : > { %v6473_v24 = vadd.f32 %v6450_v27, %v6440_v30 }
 0xe1b   : > { %v6423_v20 = vpop.permute.xlu1 %6422  ;;  %v6392_v55 = vpop.permute.xlu0 %6391 }
 0xe1c   : > { %v6411_v62 = vadd.f32 %v6392_v55, %v6336_v5 }
 0xe1f   : > { %v6485_v14 = vpop.permute.xlu1 %6484  ;;  %v6454_v25 = vpop.permute.xlu0 %6453 }
 0xe23   : > { %v6390_v11 = vpop.permute.xlu1 %6389  ;;  %v6421_v50 = vpop.permute.xlu0 %6420 }
 0xe24   : > { %v6410_v12 = vadd.f32 %v10196_v48, %v6390_v11  ;;  %v6442_v0 = vadd.f32 %v6421_v50, %v6409_v1 }
 0xe26   : > { %v6443_v59 = vadd.f32 %v6423_v20, %v6410_v12  ;;  %v6475_v26 = vadd.f32 %v6454_v25, %v6442_v0 }
 0xe27   : > { %v6452_v16 = vpop.permute.xlu1 %6451  ;;  %v6483_v9 = vpop.permute.xlu0 %6482 }
 0xe28   : > { %v6474_v2 = vadd.f32 %v6452_v16, %v6441_v32  ;;  %v6506_v39 = vadd.f32 %v6483_v9, %v6473_v24 }
 0xe2a   : > { %v6507_v13 = vadd.f32 %v6485_v14, %v6474_v2  ;;  %v6519_v43 = vadd.f32 %v10257_v58, %v6506_v39 }
 0xe2c   : > { %v6520_v57 = vadd.f32 %v10257_v58, %v6507_v13  ;;  %v6527_v53 = vmax.f32 %v6519_v43, 0.0 }
 0xe2e   : > { %v6528_v45 = vmax.f32 %v6520_v57, 0.0  ;;  %6536 = vst.msk [vmem:[%s10264_s10] sm:$0xff] %vm6535_vm4, %v6527_v53 }
 0xe30   : > { %6537 = vst.msk [vmem:[%s10264_s10 + $0x8] sm:$0xff] %vm6535_vm4, %v6528_v45 }
 0xe3b   : > { %v6427_v47 = vpop.permute.xlu1 %6426  ;;  %v6396_v17 = vpop.permute.xlu0 %6395 }
 0xe3c   : > { %v6413_v34 = vadd.f32 %v6396_v17, %v10230_v8 }
 0xe3f   : > { %v6489_v15 = vpop.permute.xlu1 %6488  ;;  %v6458_v29 = vpop.permute.xlu0 %6457 }
 0xe43   : > { %v6394_v22 = vpop.permute.xlu1 %6393  ;;  %v6425_v40 = vpop.permute.xlu0 %6424 }
 0xe44   : > { %v6444_v35 = vadd.f32 %v6425_v40, %v6411_v62  ;;  %v6412_v60 = vadd.f32 %v10210_v37, %v6394_v22 }
 0xe46   : > { %v6477_v48 = vadd.f32 %v6458_v29, %v6444_v35  ;;  %v6445_v18 = vadd.f32 %v6427_v47, %v6412_v60 }
 0xe47   : > { %v6456_v6 = vpop.permute.xlu1 %6455  ;;  %v6487_v44 = vpop.permute.xlu0 %6486 }
 0xe48   : > { %v6476_v46 = vadd.f32 %v6456_v6, %v6443_v59  ;;  %v6508_v7 = vadd.f32 %v6487_v44, %v6475_v26 }
 0xe4a   : > { %v6509_v42 = vadd.f32 %v6489_v15, %v6476_v46  ;;  %v6521_v19 = vadd.f32 %v10257_v58, %v6508_v7 }
 0xe4c   : > { %v6522_v3 = vadd.f32 %v10257_v58, %v6509_v42  ;;  %v6529_v52 = vmax.f32 %v6521_v19, 0.0 }
 0xe4e   : > { %v6530_v21 = vmax.f32 %v6522_v3, 0.0  ;;  %6538 = vst.msk [vmem:[%s10264_s10 + $0x10] sm:$0xff] %vm6535_vm4, %v6529_v52 }
 0xe50   : > { %6539 = vst.msk [vmem:[%s10264_s10 + $0x18] sm:$0xff] %vm6535_vm4, %v6530_v21 }
 0xe5b   : > { %v6431_v10 = vpop.permute.xlu1 %6430  ;;  %v6462_v54 = vpop.permute.xlu0 %6461 }
 0xe5f   : > { %v6493_v38 = vpop.permute.xlu1 %6492  ;;  %v6429_v4 = vpop.permute.xlu0 %6428 }
 0xe60   : > { %v6446_v27 = vadd.f32 %v6429_v4, %v6413_v34 }
 0xe62   : > { %v6479_v55 = vadd.f32 %v6462_v54, %v6446_v27 }
 0xe63   : > { %v6398_v23 = vpop.permute.xlu1 %6397  ;;  %v6491_v5 = vpop.permute.xlu0 %6490 }
 0xe64   : > { %v6510_v28 = vadd.f32 %v6491_v5, %v6477_v48  ;;  %v6414_v37 = vadd.f32 %v10224_v49, %v6398_v23 }
 0xe66   : > { %v6523_v33 = vadd.f32 %v10257_v58, %v6510_v28  ;;  %v6447_v25 = vadd.f32 %v6431_v10, %v6414_v37 }
 0xe67   : > { %v6460_v56 = vpop.permute.xlu1 %6459 }
 0xe68   : > { %v6531_v51 = vmax.f32 %v6523_v33, 0.0  ;;  %v6478_v61 = vadd.f32 %v6460_v56, %v6445_v18 }
 0xe6a   : > { %6540 = vst.msk [vmem:[%s10264_s10 + $0x20] sm:$0xff] %vm6535_vm4, %v6531_v51  ;;  %v6511_v36 = vadd.f32 %v6493_v38, %v6478_v61 }
 0xe6c   : > { %v6524_v41 = vadd.f32 %v10257_v58, %v6511_v36 }
 0xe6e   : > { %v6532_v20 = vmax.f32 %v6524_v41, 0.0 }
 0xe70   : > { %v6464_v62 = vpop.permute.xlu1 %6463  ;;  %v6495_v14 = vpop.permute.xlu0 %6494  ;;  %6541 = vst.msk [vmem:[%s10264_s10 + $0x28] sm:$0xff] %vm6535_vm4, %v6532_v20 }
 0xe71   : > { %v6512_v8 = vadd.f32 %v6495_v14, %v6479_v55  ;;  %v6480_v31 = vadd.f32 %v6464_v62, %v6447_v25 }
 0xe73   : > { %v6525_v63 = vadd.f32 %v10257_v58, %v6512_v8 }
 0xe74   : > { %v6497_v30 = vpop.permute.xlu1 %6496 }
 0xe75   : > { %v6533_v11 = vmax.f32 %v6525_v63, 0.0  ;;  %v6513_v50 = vadd.f32 %v6497_v30, %v6480_v31 }
 0xe77   : > { %6542 = vst.msk [vmem:[%s10264_s10 + $0x30] sm:$0xff] %vm6535_vm4, %v6533_v11  ;;  %v6526_v49 = vadd.f32 %v10257_v58, %v6513_v50 }
 0xe79   : > { %v6534_v32 = vmax.f32 %v6526_v49, 0.0 }
 0xe7b   : > { %6543 = vst.msk [vmem:[%s10264_s10 + $0x38] sm:$0xff] %vm6535_vm4, %v6534_v32 }
 0xe7c PF: > { %s13_s12 = sadd.s32 1, %s7333_s12  }
 0xe7d   : > { %p10_p4 = scmp.ge.s32.totalorder %s13_s12, 4  }
 0xe7f   :  { %12 = sbr.rel (!%p10_p4) target bundleno = 1 (0x1), region = 64 }

</bundles_post_ra>
